<compile_context>
chip_gen: v7x
topology: tpu7x:2x2x1
jax: 0.10.0
libtpu: 0.0.40
codegen_flags: <defaults>
</compile_context>

<pallas_src>
import functools

import jax
import jax.numpy as jnp
from jax.experimental import pallas as pl
from jax.experimental.pallas import tpu as pltpu

LEAKY_SLOPE = 0.1     # FixMatch-style WideResNet uses LeakyReLU(0.1)
BN_EPS = 1e-5
LANE = 128
_TAPS = tuple((ky, kx) for ky in range(3) for kx in range(3))


def _round_up(x, m):
    return (x + m - 1) // m * m


def _leaky(v):
    return jnp.where(v > 0, v, LEAKY_SLOPE * v)


def _vmem_limit_bytes():
    cap = 128 * 1024 * 1024
    try:
        cap = int(pltpu.get_tpu_info().vmem_capacity_bytes)
    except Exception:
        pass
    return min(cap * 3 // 4, 96 * 1024 * 1024)


def _per_image_vmem_bytes(h, w, cin_p, cout_p, s):
    """Rough per-image VMEM footprint (bytes) used to pick the batch block."""
    ho = (h - 1) // s + 1
    wo = (w - 1) // s + 1
    hph = _round_up(h + 2, s) // s
    wph = _round_up(w + 2, s) // s
    xin = s * s * hph * wph * cin_p * 2            # bf16 input block
    out = (ho + 2) * (wo + 2) * cout_p * 2         # bf16 output block / hbuf
    cols = ho * wo * 9 * (cin_p + cout_p) * 2      # bf16 im2col slabs
    regs = ho * wo * cout_p * 4 * 2                # f32 matmul results
    return 3 * xin + 3 * out + cols + regs         # (x2 for double buffering)


def _pick_batch_block(n, per_img_bytes, budget):
    """Largest divisor of n that fits the budget, <=8, keeping >=2 grid steps."""
    bb = 1
    for b in range(1, min(n, 8) + 1):
        if n % b:
            continue
        if b * per_img_bytes > budget:
            break
        if n >= 2 and n // b < 2:      # keep >=2 parallel steps (v7x: 2 cores)
            break
        bb = b
    return bb


# ----------------------------- fused BasicBlock kernel ----------------------

def _make_basic_block_kernel(*, s, bb, hph, wph, h, w, ho, wo, cin, cout,
                             apply_bn1, equal, abr):
    """Fused kernel for one BasicBlock; all configuration is static.

    Ref layout (per grid step = `bb` images):
      x_ref  : (s*s, bb, hph, wph, cin)  bf16  phase-split, zero-ring input
      w1_ref : (9*cin, cout)             bf16  conv1 taps (BN2 scale folded in)
      w2_ref : (9*cout, cout)            bf16  conv2 taps
      s1,b1  : (1, cin)  f32             folded BN1 scale / bias
      b2     : (1, cout) f32             folded BN2 bias (scale already in w1)
      [wsc]  : (cin, cout) bf16          1x1 shortcut (only if !equal)
      o_ref  : (bb, ho+2, wo+2, cout)    bf16  output with zero spatial ring
      scratch: [xact (s*s,bb,hph,wph,cin) bf16]  activated input (if needed)
               xcol (bb*ho*wo, 9*cin)  bf16     conv1 im2col slab
               hbuf (bb, ho+2, wo+2, cout) bf16 conv1 output, zero ring
               hcol (bb*ho*wo, 9*cout) bf16     conv2 im2col slab
    """
    has_sc = not equal
    sc_phase = (1 % s) * s + (1 % s)   # phase holding original pixel (s*a, s*b)
    sc_off = 1 // s                    # offset of that pixel inside the phase
    bf = jnp.bfloat16
    m = bb * ho * wo

    def kernel(*args):
        x_ref, w1_ref, w2_ref, s1_ref, b1_ref, b2_ref = args[:6]
        pos = 6
        wsc_ref = None
        if has_sc:
            wsc_ref = args[pos]; pos += 1
        o_ref = args[pos]; pos += 1
        xact_ref = None
        if apply_bn1:
            xact_ref = args[pos]; pos += 1
        xcol_ref, hbuf_ref, hcol_ref = args[pos:pos + 3]

        # -- stage 1: BN1 affine + LeakyReLU -> bf16 scratch (interior only);
        #    the conv zero ring is written as 4 thin strips per phase. --------
        if apply_bn1:
            for p in range(s):
                for q in range(s):
                    ph = p * s + q
                    rows = [i for i in range(hph) if 1 <= s * i + p <= h]
                    cols = [j for j in range(wph) if 1 <= s * j + q <= w]
                    i0, i1 = rows[0], rows[-1] + 1
                    j0, j1 = cols[0], cols[-1] + 1
                    if i0 > 0:
                        xact_ref[ph, :, 0:i0, :, :] = jnp.zeros(
                            (bb, i0, wph, cin), bf)
                    if i1 < hph:
                        xact_ref[ph, :, i1:hph, :, :] = jnp.zeros(
                            (bb, hph - i1, wph, cin), bf)
                    if j0 > 0:
                        xact_ref[ph, :, :, 0:j0, :] = jnp.zeros(
                            (bb, hph, j0, cin), bf)
                    if j1 < wph:
                        xact_ref[ph, :, :, j1:wph, :] = jnp.zeros(
                            (bb, hph, wph - j1, cin), bf)
                    v = x_ref[ph, :, i0:i1, j0:j1, :].astype(jnp.float32)
                    v = _leaky(v * s1_ref[...] + b1_ref[...])
                    xact_ref[ph, :, i0:i1, j0:j1, :] = v.astype(bf)
            src = xact_ref
        else:
            src = x_ref          # (!equal && !abr): conv1 consumes raw x

        # -- stage 2: conv1 (3x3, stride s) as ONE matmul over an in-VMEM
        #    im2col slab: K = 9*cin keeps the MXU fully occupied. -------------
        for t, (ky, kx) in enumerate(_TAPS):
            ph = (ky % s) * s + (kx % s)
            y0, x0 = ky // s, kx // s
            win = src[ph, :, y0:y0 + ho, x0:x0 + wo, :]        # (bb,ho,wo,cin)
            xcol_ref[:, t * cin:(t + 1) * cin] = win.reshape(m, cin)
        h1 = jnp.dot(xcol_ref[...], w1_ref[...],
                     preferred_element_type=jnp.float32)

        # -- stage 3: BN2 (scale folded into w1) bias + LeakyReLU, staged with
        #    a zero ring (4 thin strips) for conv2. ---------------------------
        h1 = _leaky(h1 + b2_ref[...])
        hbuf_ref[:, 0:1, :, :] = jnp.zeros((bb, 1, wo + 2, cout), bf)
        hbuf_ref[:, ho + 1:ho + 2, :, :] = jnp.zeros((bb, 1, wo + 2, cout), bf)
        hbuf_ref[:, :, 0:1, :] = jnp.zeros((bb, ho + 2, 1, cout), bf)
        hbuf_ref[:, :, wo + 1:wo + 2, :] = jnp.zeros((bb, ho + 2, 1, cout), bf)
        hbuf_ref[:, 1:1 + ho, 1:1 + wo, :] = h1.reshape(bb, ho, wo, cout).astype(bf)

        # -- stage 4: conv2 (3x3, stride 1) as one im2col matmul, K = 9*cout --
        for t, (ky, kx) in enumerate(_TAPS):
            win = hbuf_ref[:, ky:ky + ho, kx:kx + wo, :]       # (bb,ho,wo,cout)
            hcol_ref[:, t * cout:(t + 1) * cout] = win.reshape(m, cout)
        y = jnp.dot(hcol_ref[...], w2_ref[...],
                    preferred_element_type=jnp.float32)

        # -- stage 5: shortcut (identity or fused 1x1 conv) + residual add ----
        if has_sc and abr:
            # shortcut consumes LeakyReLU(BN1(x)) -> reuse stage-1 result
            sc_src = xact_ref[sc_phase, :, sc_off:sc_off + ho,
                              sc_off:sc_off + wo, :]
        else:
            # shortcut consumes raw x (identity or un-activated 1x1 conv)
            sc_src = x_ref[sc_phase, :, sc_off:sc_off + ho,
                           sc_off:sc_off + wo, :]
        sc_src = sc_src.reshape(m, cin)
        if has_sc:
            y = y + jnp.dot(sc_src, wsc_ref[...],
                            preferred_element_type=jnp.float32)
        else:
            y = y + sc_src.astype(jnp.float32)

        # -- stage 6: store output; ring written as 4 thin strips so the next
        #    layer's conv consumes it directly (no standalone padding pass). --
        o_ref[:, 0:1, :, :] = jnp.zeros((bb, 1, wo + 2, cout), bf)
        o_ref[:, ho + 1:ho + 2, :, :] = jnp.zeros((bb, 1, wo + 2, cout), bf)
        o_ref[:, :, 0:1, :] = jnp.zeros((bb, ho + 2, 1, cout), bf)
        o_ref[:, :, wo + 1:wo + 2, :] = jnp.zeros((bb, ho + 2, 1, cout), bf)
        o_ref[:, 1:1 + ho, 1:1 + wo, :] = y.reshape(bb, ho, wo, cout).astype(bf)

    return kernel


# ----------------------------- parameter preparation ------------------------

def _bn_scale_bias(bn):
    scale = bn['gamma'] / jnp.sqrt(bn['var'] + BN_EPS)
    bias = bn['beta'] - bn['mean'] * scale
    return scale.astype(jnp.float32), bias.astype(jnp.float32)


def _pad_row(v, cp):
    return jnp.pad(v, (0, cp - v.shape[0])).reshape(1, cp).astype(jnp.float32)


def _prep_conv3x3(w_oihw, cin_p, cout_p, out_scale=None):
    """(cout,cin,3,3) -> (9*cin_p, cout_p) bf16, tap-major K packing.
    Optionally folds a per-output-channel scale (BN2) into the weights."""
    cout, cin, _, _ = w_oihw.shape
    wf = w_oihw.astype(jnp.float32)
    if out_scale is not None:
        wf = wf * out_scale[:, None, None, None]
    wm = jnp.transpose(wf, (2, 3, 1, 0)).reshape(9, cin, cout)
    wm = jnp.pad(wm, ((0, 0), (0, cin_p - cin), (0, cout_p - cout)))
    return wm.reshape(9 * cin_p, cout_p).astype(jnp.bfloat16)


def _prep_conv1x1(w_oihw, cin_p, cout_p):
    cout, cin, _, _ = w_oihw.shape
    wm = jnp.transpose(w_oihw, (2, 3, 1, 0)).reshape(cin, cout)
    wm = jnp.pad(wm, ((0, cin_p - cin), (0, cout_p - cout)))
    return wm.astype(jnp.bfloat16)


# ----------------------------- BasicBlock / NetworkBlock --------------------

def _basic_block(xpad, params, s, equal, abr, h, w, cin, cout, vmem_limit):
    """xpad: (N, h+2, w+2, cin_p) bf16 with a zero spatial ring.
    Returns (ypad, ho, wo) with ypad: (N, ho+2, wo+2, cout_p) bf16, zero ring."""
    n, _, _, cin_p = xpad.shape
    cout_p = _round_up(cout, LANE)
    ho = (h - 1) // s + 1
    wo = (w - 1) // s + 1

    # Phase-split the padded input so every conv tap becomes a unit-stride
    # static window (identity reshape when s == 1): (s*s, N, hph, wph, cin_p).
    hp, wp = h + 2, w + 2
    hp2, wp2 = _round_up(hp, s), _round_up(wp, s)
    xq = xpad if (hp2, wp2) == (hp, wp) else jnp.pad(
        xpad, ((0, 0), (0, hp2 - hp), (0, wp2 - wp), (0, 0)))
    hph, wph = hp2 // s, wp2 // s
    xph = xq.reshape(n, hph, s, wph, s, cin_p)
    xph = xph.transpose(2, 4, 0, 1, 3, 5).reshape(s * s, n, hph, wph, cin_p)

    s1, b1 = _bn_scale_bias(params['bn1'])
    s2, b2 = _bn_scale_bias(params['bn2'])
    s1p, b1p = _pad_row(s1, cin_p), _pad_row(b1, cin_p)
    b2p = _pad_row(b2, cout_p)
    w1 = _prep_conv3x3(params['conv1'], cin_p, cout_p, out_scale=s2)  # BN2 scale folded
    w2 = _prep_conv3x3(params['conv2'], cout_p, cout_p)

    bb = _pick_batch_block(n, _per_image_vmem_bytes(h, w, cin_p, cout_p, s),
                           budget=vmem_limit // 2)

    apply_bn1 = equal or abr   # the (!equal && !abr) branch feeds conv1 raw x
    kernel = _make_basic_block_kernel(
        s=s, bb=bb, hph=hph, wph=wph, h=h, w=w, ho=ho, wo=wo,
        cin=cin_p, cout=cout_p, apply_bn1=apply_bn1, equal=equal, abr=abr)

    in_specs = [
        pl.BlockSpec((s * s, bb, hph, wph, cin_p), lambda i: (0, i, 0, 0, 0)),
        pl.BlockSpec((9 * cin_p, cout_p), lambda i: (0, 0)),
        pl.BlockSpec((9 * cout_p, cout_p), lambda i: (0, 0)),
        pl.BlockSpec((1, cin_p), lambda i: (0, 0)),
        pl.BlockSpec((1, cin_p), lambda i: (0, 0)),
        pl.BlockSpec((1, cout_p), lambda i: (0, 0)),
    ]
    args = [xph, w1, w2, s1p, b1p, b2p]
    if not equal:
        in_specs.append(pl.BlockSpec((cin_p, cout_p), lambda i: (0, 0)))
        args.append(_prep_conv1x1(params['shortcut'], cin_p, cout_p))

    scratch = []
    if apply_bn1:
        scratch.append(pltpu.VMEM((s * s, bb, hph, wph, cin_p), jnp.bfloat16))
    scratch += [
        pltpu.VMEM((bb * ho * wo, 9 * cin_p), jnp.bfloat16),    # conv1 im2col
        pltpu.VMEM((bb, ho + 2, wo + 2, cout_p), jnp.bfloat16),  # conv1 output
        pltpu.VMEM((bb * ho * wo, 9 * cout_p), jnp.bfloat16),   # conv2 im2col
    ]

    ypad = pl.pallas_call(
        kernel,
        out_shape=jax.ShapeDtypeStruct((n, ho + 2, wo + 2, cout_p), jnp.bfloat16),
        grid=(n // bb,),
        in_specs=in_specs,
        out_specs=pl.BlockSpec((bb, ho + 2, wo + 2, cout_p),
                               lambda i: (i, 0, 0, 0)),
        scratch_shapes=scratch,
        compiler_params=pltpu.CompilerParams(
            dimension_semantics=("parallel",),
            vmem_limit_bytes=vmem_limit,
        ),
    )(*args)
    return ypad, ho, wo


def network_block_forward(x_nchw, params, in_planes, out_planes, stride,
                          activate_before_residual=False):
    """Forward of WideResNet NetworkBlock (eval-mode BN, drop_rate = 0)."""
    n, c, h, w = x_nchw.shape
    cin_p = _round_up(in_planes, LANE)
    vmem_limit = _vmem_limit_bytes()
    # One-time layout work (outside the layer stack): NCHW -> NHWC, channel
    # pad to a 128-lane multiple, spatial zero ring, cast to bf16.
    x = jnp.transpose(x_nchw, (0, 2, 3, 1)).astype(jnp.float32)
    x = jnp.pad(x, ((0, 0), (1, 1), (1, 1), (0, cin_p - c)))
    xpad = x.astype(jnp.bfloat16)
    for i, p in enumerate(params):
        s = stride if i == 0 else 1
        cin = in_planes if i == 0 else out_planes
        equal = (cin == out_planes)
        xpad, h, w = _basic_block(xpad, p, s, equal, activate_before_residual,
                                  h, w, cin, out_planes, vmem_limit)
    y = xpad[:, 1:1 + h, 1:1 + w, :out_planes].astype(jnp.float32)
    return jnp.transpose(y, (0, 3, 1, 2))                          # NHWC -> NCHW


# ----------------------------- parameter init --------------------------------

def init_network_block_params(key, nb_layers, in_planes, out_planes):
    params = []
    for i in range(int(nb_layers)):
        cin = in_planes if i == 0 else out_planes
        cout = out_planes
        ks = jax.random.split(jax.random.fold_in(key, i), 11)
        p = {
            'bn1': {'gamma': 1.0 + 0.1 * jax.random.normal(ks[0], (cin,)),
                    'beta': 0.1 * jax.random.normal(ks[1], (cin,)),
                    'mean': 0.1 * jax.random.normal(ks[2], (cin,)),
                    'var': 1.0 + 0.1 * jax.random.uniform(ks[3], (cin,))},
            'conv1': 0.1 * jax.random.normal(ks[4], (cout, cin, 3, 3)),
            'bn2': {'gamma': 1.0 + 0.1 * jax.random.normal(ks[5], (cout,)),
                    'beta': 0.1 * jax.random.normal(ks[6], (cout,)),
                    'mean': 0.1 * jax.random.normal(ks[7], (cout,)),
                    'var': 1.0 + 0.1 * jax.random.uniform(ks[8], (cout,))},
            'conv2': 0.1 * jax.random.normal(ks[9], (cout, cout, 3, 3)),
        }
        if cin != cout:
            p['shortcut'] = 0.1 * jax.random.normal(ks[10], (cout, cin, 1, 1))
        params.append(p)
    return params


if __name__ == "__main__":
    key = jax.random.PRNGKey(0)
    kx, kp = jax.random.split(key)

    N, Cin, H, W = 2, 4, 16, 16
    Cout, nb_layers, stride = 8, 2, 2

    x = jax.random.normal(kx, (N, Cin, H, W), dtype=jnp.float32)
    params = init_network_block_params(kp, nb_layers, Cin, Cout)

    fwd = jax.jit(functools.partial(network_block_forward,
                                    in_planes=Cin, out_planes=Cout,
                                    stride=stride,
                                    activate_before_residual=True))
    y = fwd(x, params)
    jax.block_until_ready(y)
    assert y.shape == (N, Cout, H // stride, W // stride), y.shape
    assert bool(jnp.all(jnp.isfinite(y)))
    print("KERNEL_OK")
</pallas_src>

<mosaic_0001>
module attributes {stable_mosaic.version = 11 : i64} {
  func.func @kernel(%arg0: i32, %arg1: memref<4x1x9x9x128xbf16, #tpu.memory_space<vmem>>, %arg2: memref<1152x128xbf16, #tpu.memory_space<vmem>>, %arg3: memref<1152x128xbf16, #tpu.memory_space<vmem>>, %arg4: memref<1x128xf32, #tpu.memory_space<vmem>>, %arg5: memref<1x128xf32, #tpu.memory_space<vmem>>, %arg6: memref<1x128xf32, #tpu.memory_space<vmem>>, %arg7: memref<128x128xbf16, #tpu.memory_space<vmem>>, %arg8: memref<1x10x10x128xbf16, #tpu.memory_space<vmem>>, %arg9: memref<4x1x9x9x128xbf16, #tpu.memory_space<vmem>>, %arg10: memref<64x1152xbf16, #tpu.memory_space<vmem>>, %arg11: memref<1x10x10x128xbf16, #tpu.memory_space<vmem>>, %arg12: memref<64x1152xbf16, #tpu.memory_space<vmem>>) attributes {dimension_semantics = [#tpu.dimension_semantics<parallel>], iteration_bounds = array<i64: 2>, scalar_prefetch = 0 : i64, scratch_operands = 4 : i64, tpu.core_type = #tpu.core_type<tc>, window_params = [{transform_indices = @transform_0, window_bounds = array<i64: 4, 1, 9, 9, 128>}, {pipeline_mode = #tpu.pipeline_mode<synchronous>, transform_indices = @transform_1, window_bounds = array<i64: 1152, 128>}, {pipeline_mode = #tpu.pipeline_mode<synchronous>, transform_indices = @transform_2, window_bounds = array<i64: 1152, 128>}, {pipeline_mode = #tpu.pipeline_mode<synchronous>, transform_indices = @transform_3, window_bounds = array<i64: 1, 128>}, {pipeline_mode = #tpu.pipeline_mode<synchronous>, transform_indices = @transform_4, window_bounds = array<i64: 1, 128>}, {pipeline_mode = #tpu.pipeline_mode<synchronous>, transform_indices = @transform_5, window_bounds = array<i64: 1, 128>}, {pipeline_mode = #tpu.pipeline_mode<synchronous>, transform_indices = @transform_6, window_bounds = array<i64: 128, 128>}, {transform_indices = @transform_7, window_bounds = array<i64: 1, 10, 10, 128>}]} {
    %cst = arith.constant 0.000000e+00 : bf16
    %0 = vector.broadcast %cst : bf16 to vector<1x1x9x128xbf16>
    %c0 = arith.constant 0 : index
    %c0_0 = arith.constant 0 : index
    %c0_1 = arith.constant 0 : index
    %c0_2 = arith.constant 0 : index
    %c0_3 = arith.constant 0 : index
    %1 = vector.load %arg9[%c0, %c0_0, %c0_1, %c0_2, %c0_3] : memref<4x1x9x9x128xbf16, #tpu.memory_space<vmem>>, vector<1x1x1x9x128xbf16>
    %2 = vector.shape_cast %1 : vector<1x1x1x9x128xbf16> to vector<1x1x9x128xbf16>
    %3 = vector.shape_cast %0 : vector<1x1x9x128xbf16> to vector<1x1x1x9x128xbf16>
    tpu.vector_store %arg9[%c0, %c0_0, %c0_1, %c0_2, %c0_3], %3 {strides = array<i32>} : memref<4x1x9x9x128xbf16, #tpu.memory_space<vmem>>, vector<1x1x1x9x128xbf16>,
    %cst_4 = arith.constant 0.000000e+00 : bf16
    %4 = vector.broadcast %cst_4 : bf16 to vector<1x9x1x128xbf16>
    %c0_5 = arith.constant 0 : index
    %c0_6 = arith.constant 0 : index
    %c0_7 = arith.constant 0 : index
    %c0_8 = arith.constant 0 : index
    %c0_9 = arith.constant 0 : index
    %5 = vector.load %arg9[%c0_5, %c0_6, %c0_7, %c0_8, %c0_9] : memref<4x1x9x9x128xbf16, #tpu.memory_space<vmem>>, vector<1x1x9x1x128xbf16>
    %6 = vector.shape_cast %5 : vector<1x1x9x1x128xbf16> to vector<1x9x1x128xbf16>
    %7 = vector.shape_cast %4 : vector<1x9x1x128xbf16> to vector<1x1x9x1x128xbf16>
    tpu.vector_store %arg9[%c0_5, %c0_6, %c0_7, %c0_8, %c0_9], %7 {strides = array<i32>} : memref<4x1x9x9x128xbf16, #tpu.memory_space<vmem>>, vector<1x1x9x1x128xbf16>,
    %c0_10 = arith.constant 0 : index
    %c0_11 = arith.constant 0 : index
    %c1 = arith.constant 1 : index
    %c1_12 = arith.constant 1 : index
    %c0_13 = arith.constant 0 : index
    %8 = vector.load %arg1[%c0_10, %c0_11, %c1, %c1_12, %c0_13] : memref<4x1x9x9x128xbf16, #tpu.memory_space<vmem>>, vector<1x1x8x8x128xbf16>
    %9 = vector.shape_cast %8 : vector<1x1x8x8x128xbf16> to vector<1x8x8x128xbf16>
    %10 = arith.extf %9 : vector<1x8x8x128xbf16> to vector<1x8x8x128xf32>
    %c0_14 = arith.constant 0 : index
    %c0_15 = arith.constant 0 : index
    %11 = vector.load %arg4[%c0_14, %c0_15] : memref<1x128xf32, #tpu.memory_space<vmem>>, vector<1x128xf32>
    %12 = vector.shape_cast %11 : vector<1x128xf32> to vector<1x1x1x128xf32>
    %13 = vector.broadcast %12 : vector<1x1x1x128xf32> to vector<1x8x8x128xf32>
    %14 = arith.mulf %10, %13 : vector<1x8x8x128xf32>
    %c0_16 = arith.constant 0 : index
    %c0_17 = arith.constant 0 : index
    %15 = vector.load %arg5[%c0_16, %c0_17] : memref<1x128xf32, #tpu.memory_space<vmem>>, vector<1x128xf32>
    %16 = vector.shape_cast %15 : vector<1x128xf32> to vector<1x1x1x128xf32>
    %17 = vector.broadcast %16 : vector<1x1x1x128xf32> to vector<1x8x8x128xf32>
    %18 = arith.addf %14, %17 : vector<1x8x8x128xf32>
    %cst_18 = arith.constant 0.000000e+00 : f32
    %19 = vector.broadcast %cst_18 : f32 to vector<1x8x8x128xf32>
    %20 = arith.cmpf ogt, %18, %19 : vector<1x8x8x128xf32>
    %cst_19 = arith.constant 1.000000e-01 : f32
    %21 = vector.broadcast %cst_19 : f32 to vector<1x8x8x128xf32>
    %22 = arith.mulf %21, %18 : vector<1x8x8x128xf32>
    %23 = arith.select %20, %18, %22 : vector<1x8x8x128xi1>, vector<1x8x8x128xf32>
    %24 = arith.truncf %23 : vector<1x8x8x128xf32> to vector<1x8x8x128xbf16>
    %c0_20 = arith.constant 0 : index
    %c0_21 = arith.constant 0 : index
    %c1_22 = arith.constant 1 : index
    %c1_23 = arith.constant 1 : index
    %c0_24 = arith.constant 0 : index
    %25 = vector.load %arg9[%c0_20, %c0_21, %c1_22, %c1_23, %c0_24] : memref<4x1x9x9x128xbf16, #tpu.memory_space<vmem>>, vector<1x1x8x8x128xbf16>
    %26 = vector.shape_cast %25 : vector<1x1x8x8x128xbf16> to vector<1x8x8x128xbf16>
    %27 = vector.shape_cast %24 : vector<1x8x8x128xbf16> to vector<1x1x8x8x128xbf16>
    tpu.vector_store %arg9[%c0_20, %c0_21, %c1_22, %c1_23, %c0_24], %27 {strides = array<i32>} : memref<4x1x9x9x128xbf16, #tpu.memory_space<vmem>>, vector<1x1x8x8x128xbf16>,
    %cst_25 = arith.constant 0.000000e+00 : bf16
    %28 = vector.broadcast %cst_25 : bf16 to vector<1x1x9x128xbf16>
    %c1_26 = arith.constant 1 : index
    %c0_27 = arith.constant 0 : index
    %c0_28 = arith.constant 0 : index
    %c0_29 = arith.constant 0 : index
    %c0_30 = arith.constant 0 : index
    %29 = vector.load %arg9[%c1_26, %c0_27, %c0_28, %c0_29, %c0_30] : memref<4x1x9x9x128xbf16, #tpu.memory_space<vmem>>, vector<1x1x1x9x128xbf16>
    %30 = vector.shape_cast %29 : vector<1x1x1x9x128xbf16> to vector<1x1x9x128xbf16>
    %31 = vector.shape_cast %28 : vector<1x1x9x128xbf16> to vector<1x1x1x9x128xbf16>
    tpu.vector_store %arg9[%c1_26, %c0_27, %c0_28, %c0_29, %c0_30], %31 {strides = array<i32>} : memref<4x1x9x9x128xbf16, #tpu.memory_space<vmem>>, vector<1x1x1x9x128xbf16>,
    %cst_31 = arith.constant 0.000000e+00 : bf16
    %32 = vector.broadcast %cst_31 : bf16 to vector<1x9x1x128xbf16>
    %c1_32 = arith.constant 1 : index
    %c0_33 = arith.constant 0 : index
    %c0_34 = arith.constant 0 : index
    %c8 = arith.constant 8 : index
    %c0_35 = arith.constant 0 : index
    %33 = vector.load %arg9[%c1_32, %c0_33, %c0_34, %c8, %c0_35] : memref<4x1x9x9x128xbf16, #tpu.memory_space<vmem>>, vector<1x1x9x1x128xbf16>
    %34 = vector.shape_cast %33 : vector<1x1x9x1x128xbf16> to vector<1x9x1x128xbf16>
    %35 = vector.shape_cast %32 : vector<1x9x1x128xbf16> to vector<1x1x9x1x128xbf16>
    tpu.vector_store %arg9[%c1_32, %c0_33, %c0_34, %c8, %c0_35], %35 {strides = array<i32>} : memref<4x1x9x9x128xbf16, #tpu.memory_space<vmem>>, vector<1x1x9x1x128xbf16>,
    %c1_36 = arith.constant 1 : index
    %c0_37 = arith.constant 0 : index
    %c1_38 = arith.constant 1 : index
    %c0_39 = arith.constant 0 : index
    %c0_40 = arith.constant 0 : index
    %36 = vector.load %arg1[%c1_36, %c0_37, %c1_38, %c0_39, %c0_40] : memref<4x1x9x9x128xbf16, #tpu.memory_space<vmem>>, vector<1x1x8x8x128xbf16>
    %37 = vector.shape_cast %36 : vector<1x1x8x8x128xbf16> to vector<1x8x8x128xbf16>
    %38 = arith.extf %37 : vector<1x8x8x128xbf16> to vector<1x8x8x128xf32>
    %c0_41 = arith.constant 0 : index
    %c0_42 = arith.constant 0 : index
    %39 = vector.load %arg4[%c0_41, %c0_42] : memref<1x128xf32, #tpu.memory_space<vmem>>, vector<1x128xf32>
    %40 = vector.shape_cast %39 : vector<1x128xf32> to vector<1x1x1x128xf32>
    %41 = vector.broadcast %40 : vector<1x1x1x128xf32> to vector<1x8x8x128xf32>
    %42 = arith.mulf %38, %41 : vector<1x8x8x128xf32>
    %c0_43 = arith.constant 0 : index
    %c0_44 = arith.constant 0 : index
    %43 = vector.load %arg5[%c0_43, %c0_44] : memref<1x128xf32, #tpu.memory_space<vmem>>, vector<1x128xf32>
    %44 = vector.shape_cast %43 : vector<1x128xf32> to vector<1x1x1x128xf32>
    %45 = vector.broadcast %44 : vector<1x1x1x128xf32> to vector<1x8x8x128xf32>
    %46 = arith.addf %42, %45 : vector<1x8x8x128xf32>
    %cst_45 = arith.constant 0.000000e+00 : f32
    %47 = vector.broadcast %cst_45 : f32 to vector<1x8x8x128xf32>
    %48 = arith.cmpf ogt, %46, %47 : vector<1x8x8x128xf32>
    %cst_46 = arith.constant 1.000000e-01 : f32
    %49 = vector.broadcast %cst_46 : f32 to vector<1x8x8x128xf32>
    %50 = arith.mulf %49, %46 : vector<1x8x8x128xf32>
    %51 = arith.select %48, %46, %50 : vector<1x8x8x128xi1>, vector<1x8x8x128xf32>
    %52 = arith.truncf %51 : vector<1x8x8x128xf32> to vector<1x8x8x128xbf16>
    %c1_47 = arith.constant 1 : index
    %c0_48 = arith.constant 0 : index
    %c1_49 = arith.constant 1 : index
    %c0_50 = arith.constant 0 : index
    %c0_51 = arith.constant 0 : index
    %53 = vector.load %arg9[%c1_47, %c0_48, %c1_49, %c0_50, %c0_51] : memref<4x1x9x9x128xbf16, #tpu.memory_space<vmem>>, vector<1x1x8x8x128xbf16>
    %54 = vector.shape_cast %53 : vector<1x1x8x8x128xbf16> to vector<1x8x8x128xbf16>
    %55 = vector.shape_cast %52 : vector<1x8x8x128xbf16> to vector<1x1x8x8x128xbf16>
    tpu.vector_store %arg9[%c1_47, %c0_48, %c1_49, %c0_50, %c0_51], %55 {strides = array<i32>} : memref<4x1x9x9x128xbf16, #tpu.memory_space<vmem>>, vector<1x1x8x8x128xbf16>,
    %cst_52 = arith.constant 0.000000e+00 : bf16
    %56 = vector.broadcast %cst_52 : bf16 to vector<1x1x9x128xbf16>
    %c2 = arith.constant 2 : index
    %c0_53 = arith.constant 0 : index
    %c8_54 = arith.constant 8 : index
    %c0_55 = arith.constant 0 : index
    %c0_56 = arith.constant 0 : index
    %57 = vector.load %arg9[%c2, %c0_53, %c8_54, %c0_55, %c0_56] : memref<4x1x9x9x128xbf16, #tpu.memory_space<vmem>>, vector<1x1x1x9x128xbf16>
    %58 = vector.shape_cast %57 : vector<1x1x1x9x128xbf16> to vector<1x1x9x128xbf16>
    %59 = vector.shape_cast %56 : vector<1x1x9x128xbf16> to vector<1x1x1x9x128xbf16>
    tpu.vector_store %arg9[%c2, %c0_53, %c8_54, %c0_55, %c0_56], %59 {strides = array<i32>} : memref<4x1x9x9x128xbf16, #tpu.memory_space<vmem>>, vector<1x1x1x9x128xbf16>,
    %cst_57 = arith.constant 0.000000e+00 : bf16
    %60 = vector.broadcast %cst_57 : bf16 to vector<1x9x1x128xbf16>
    %c2_58 = arith.constant 2 : index
    %c0_59 = arith.constant 0 : index
    %c0_60 = arith.constant 0 : index
    %c0_61 = arith.constant 0 : index
    %c0_62 = arith.constant 0 : index
    %61 = vector.load %arg9[%c2_58, %c0_59, %c0_60, %c0_61, %c0_62] : memref<4x1x9x9x128xbf16, #tpu.memory_space<vmem>>, vector<1x1x9x1x128xbf16>
    %62 = vector.shape_cast %61 : vector<1x1x9x1x128xbf16> to vector<1x9x1x128xbf16>
    %63 = vector.shape_cast %60 : vector<1x9x1x128xbf16> to vector<1x1x9x1x128xbf16>
    tpu.vector_store %arg9[%c2_58, %c0_59, %c0_60, %c0_61, %c0_62], %63 {strides = array<i32>} : memref<4x1x9x9x128xbf16, #tpu.memory_space<vmem>>, vector<1x1x9x1x128xbf16>,
    %c2_63 = arith.constant 2 : index
    %c0_64 = arith.constant 0 : index
    %c0_65 = arith.constant 0 : index
    %c1_66 = arith.constant 1 : index
    %c0_67 = arith.constant 0 : index
    %64 = vector.load %arg1[%c2_63, %c0_64, %c0_65, %c1_66, %c0_67] : memref<4x1x9x9x128xbf16, #tpu.memory_space<vmem>>, vector<1x1x8x8x128xbf16>
    %65 = vector.shape_cast %64 : vector<1x1x8x8x128xbf16> to vector<1x8x8x128xbf16>
    %66 = arith.extf %65 : vector<1x8x8x128xbf16> to vector<1x8x8x128xf32>
    %c0_68 = arith.constant 0 : index
    %c0_69 = arith.constant 0 : index
    %67 = vector.load %arg4[%c0_68, %c0_69] : memref<1x128xf32, #tpu.memory_space<vmem>>, vector<1x128xf32>
    %68 = vector.shape_cast %67 : vector<1x128xf32> to vector<1x1x1x128xf32>
    %69 = vector.broadcast %68 : vector<1x1x1x128xf32> to vector<1x8x8x128xf32>
    %70 = arith.mulf %66, %69 : vector<1x8x8x128xf32>
    %c0_70 = arith.constant 0 : index
    %c0_71 = arith.constant 0 : index
    %71 = vector.load %arg5[%c0_70, %c0_71] : memref<1x128xf32, #tpu.memory_space<vmem>>, vector<1x128xf32>
    %72 = vector.shape_cast %71 : vector<1x128xf32> to vector<1x1x1x128xf32>
    %73 = vector.broadcast %72 : vector<1x1x1x128xf32> to vector<1x8x8x128xf32>
    %74 = arith.addf %70, %73 : vector<1x8x8x128xf32>
    %cst_72 = arith.constant 0.000000e+00 : f32
    %75 = vector.broadcast %cst_72 : f32 to vector<1x8x8x128xf32>
    %76 = arith.cmpf ogt, %74, %75 : vector<1x8x8x128xf32>
    %cst_73 = arith.constant 1.000000e-01 : f32
    %77 = vector.broadcast %cst_73 : f32 to vector<1x8x8x128xf32>
    %78 = arith.mulf %77, %74 : vector<1x8x8x128xf32>
    %79 = arith.select %76, %74, %78 : vector<1x8x8x128xi1>, vector<1x8x8x128xf32>
    %80 = arith.truncf %79 : vector<1x8x8x128xf32> to vector<1x8x8x128xbf16>
    %c2_74 = arith.constant 2 : index
    %c0_75 = arith.constant 0 : index
    %c0_76 = arith.constant 0 : index
    %c1_77 = arith.constant 1 : index
    %c0_78 = arith.constant 0 : index
    %81 = vector.load %arg9[%c2_74, %c0_75, %c0_76, %c1_77, %c0_78] : memref<4x1x9x9x128xbf16, #tpu.memory_space<vmem>>, vector<1x1x8x8x128xbf16>
    %82 = vector.shape_cast %81 : vector<1x1x8x8x128xbf16> to vector<1x8x8x128xbf16>
    %83 = vector.shape_cast %80 : vector<1x8x8x128xbf16> to vector<1x1x8x8x128xbf16>
    tpu.vector_store %arg9[%c2_74, %c0_75, %c0_76, %c1_77, %c0_78], %83 {strides = array<i32>} : memref<4x1x9x9x128xbf16, #tpu.memory_space<vmem>>, vector<1x1x8x8x128xbf16>,
    %cst_79 = arith.constant 0.000000e+00 : bf16
    %84 = vector.broadcast %cst_79 : bf16 to vector<1x1x9x128xbf16>
    %c3 = arith.constant 3 : index
    %c0_80 = arith.constant 0 : index
    %c8_81 = arith.constant 8 : index
    %c0_82 = arith.constant 0 : index
    %c0_83 = arith.constant 0 : index
    %85 = vector.load %arg9[%c3, %c0_80, %c8_81, %c0_82, %c0_83] : memref<4x1x9x9x128xbf16, #tpu.memory_space<vmem>>, vector<1x1x1x9x128xbf16>
    %86 = vector.shape_cast %85 : vector<1x1x1x9x128xbf16> to vector<1x1x9x128xbf16>
    %87 = vector.shape_cast %84 : vector<1x1x9x128xbf16> to vector<1x1x1x9x128xbf16>
    tpu.vector_store %arg9[%c3, %c0_80, %c8_81, %c0_82, %c0_83], %87 {strides = array<i32>} : memref<4x1x9x9x128xbf16, #tpu.memory_space<vmem>>, vector<1x1x1x9x128xbf16>,
    %cst_84 = arith.constant 0.000000e+00 : bf16
    %88 = vector.broadcast %cst_84 : bf16 to vector<1x9x1x128xbf16>
    %c3_85 = arith.constant 3 : index
    %c0_86 = arith.constant 0 : index
    %c0_87 = arith.constant 0 : index
    %c8_88 = arith.constant 8 : index
    %c0_89 = arith.constant 0 : index
    %89 = vector.load %arg9[%c3_85, %c0_86, %c0_87, %c8_88, %c0_89] : memref<4x1x9x9x128xbf16, #tpu.memory_space<vmem>>, vector<1x1x9x1x128xbf16>
    %90 = vector.shape_cast %89 : vector<1x1x9x1x128xbf16> to vector<1x9x1x128xbf16>
    %91 = vector.shape_cast %88 : vector<1x9x1x128xbf16> to vector<1x1x9x1x128xbf16>
    tpu.vector_store %arg9[%c3_85, %c0_86, %c0_87, %c8_88, %c0_89], %91 {strides = array<i32>} : memref<4x1x9x9x128xbf16, #tpu.memory_space<vmem>>, vector<1x1x9x1x128xbf16>,
    %c3_90 = arith.constant 3 : index
    %c0_91 = arith.constant 0 : index
    %c0_92 = arith.constant 0 : index
    %c0_93 = arith.constant 0 : index
    %c0_94 = arith.constant 0 : index
    %92 = vector.load %arg1[%c3_90, %c0_91, %c0_92, %c0_93, %c0_94] : memref<4x1x9x9x128xbf16, #tpu.memory_space<vmem>>, vector<1x1x8x8x128xbf16>
    %93 = vector.shape_cast %92 : vector<1x1x8x8x128xbf16> to vector<1x8x8x128xbf16>
    %94 = arith.extf %93 : vector<1x8x8x128xbf16> to vector<1x8x8x128xf32>
    %c0_95 = arith.constant 0 : index
    %c0_96 = arith.constant 0 : index
    %95 = vector.load %arg4[%c0_95, %c0_96] : memref<1x128xf32, #tpu.memory_space<vmem>>, vector<1x128xf32>
    %96 = vector.shape_cast %95 : vector<1x128xf32> to vector<1x1x1x128xf32>
    %97 = vector.broadcast %96 : vector<1x1x1x128xf32> to vector<1x8x8x128xf32>
    %98 = arith.mulf %94, %97 : vector<1x8x8x128xf32>
    %c0_97 = arith.constant 0 : index
    %c0_98 = arith.constant 0 : index
    %99 = vector.load %arg5[%c0_97, %c0_98] : memref<1x128xf32, #tpu.memory_space<vmem>>, vector<1x128xf32>
    %100 = vector.shape_cast %99 : vector<1x128xf32> to vector<1x1x1x128xf32>
    %101 = vector.broadcast %100 : vector<1x1x1x128xf32> to vector<1x8x8x128xf32>
    %102 = arith.addf %98, %101 : vector<1x8x8x128xf32>
    %cst_99 = arith.constant 0.000000e+00 : f32
    %103 = vector.broadcast %cst_99 : f32 to vector<1x8x8x128xf32>
    %104 = arith.cmpf ogt, %102, %103 : vector<1x8x8x128xf32>
    %cst_100 = arith.constant 1.000000e-01 : f32
    %105 = vector.broadcast %cst_100 : f32 to vector<1x8x8x128xf32>
    %106 = arith.mulf %105, %102 : vector<1x8x8x128xf32>
    %107 = arith.select %104, %102, %106 : vector<1x8x8x128xi1>, vector<1x8x8x128xf32>
    %108 = arith.truncf %107 : vector<1x8x8x128xf32> to vector<1x8x8x128xbf16>
    %c3_101 = arith.constant 3 : index
    %c0_102 = arith.constant 0 : index
    %c0_103 = arith.constant 0 : index
    %c0_104 = arith.constant 0 : index
    %c0_105 = arith.constant 0 : index
    %109 = vector.load %arg9[%c3_101, %c0_102, %c0_103, %c0_104, %c0_105] : memref<4x1x9x9x128xbf16, #tpu.memory_space<vmem>>, vector<1x1x8x8x128xbf16>
    %110 = vector.shape_cast %109 : vector<1x1x8x8x128xbf16> to vector<1x8x8x128xbf16>
    %111 = vector.shape_cast %108 : vector<1x8x8x128xbf16> to vector<1x1x8x8x128xbf16>
    tpu.vector_store %arg9[%c3_101, %c0_102, %c0_103, %c0_104, %c0_105], %111 {strides = array<i32>} : memref<4x1x9x9x128xbf16, #tpu.memory_space<vmem>>, vector<1x1x8x8x128xbf16>,
    %c0_106 = arith.constant 0 : index
    %c0_107 = arith.constant 0 : index
    %c0_108 = arith.constant 0 : index
    %c0_109 = arith.constant 0 : index
    %c0_110 = arith.constant 0 : index
    %112 = vector.load %arg9[%c0_106, %c0_107, %c0_108, %c0_109, %c0_110] : memref<4x1x9x9x128xbf16, #tpu.memory_space<vmem>>, vector<1x1x8x8x128xbf16>
    %113 = vector.shape_cast %112 : vector<1x1x8x8x128xbf16> to vector<1x8x8x128xbf16>
    %114 = vector.shape_cast %113 : vector<1x8x8x128xbf16> to vector<64x128xbf16>
    %c0_111 = arith.constant 0 : index
    %c0_112 = arith.constant 0 : index
    %115 = vector.load %arg10[%c0_111, %c0_112] : memref<64x1152xbf16, #tpu.memory_space<vmem>>, vector<64x128xbf16>
    tpu.vector_store %arg10[%c0_111, %c0_112], %114 {strides = array<i32>} : memref<64x1152xbf16, #tpu.memory_space<vmem>>, vector<64x128xbf16>,
    %c1_113 = arith.constant 1 : index
    %c0_114 = arith.constant 0 : index
    %c0_115 = arith.constant 0 : index
    %c0_116 = arith.constant 0 : index
    %c0_117 = arith.constant 0 : index
    %116 = vector.load %arg9[%c1_113, %c0_114, %c0_115, %c0_116, %c0_117] : memref<4x1x9x9x128xbf16, #tpu.memory_space<vmem>>, vector<1x1x8x8x128xbf16>
    %117 = vector.shape_cast %116 : vector<1x1x8x8x128xbf16> to vector<1x8x8x128xbf16>
    %118 = vector.shape_cast %117 : vector<1x8x8x128xbf16> to vector<64x128xbf16>
    %c0_118 = arith.constant 0 : index
    %c128 = arith.constant 128 : index
    %119 = vector.load %arg10[%c0_118, %c128] : memref<64x1152xbf16, #tpu.memory_space<vmem>>, vector<64x128xbf16>
    tpu.vector_store %arg10[%c0_118, %c128], %118 {strides = array<i32>} : memref<64x1152xbf16, #tpu.memory_space<vmem>>, vector<64x128xbf16>,
    %c0_119 = arith.constant 0 : index
    %c0_120 = arith.constant 0 : index
    %c0_121 = arith.constant 0 : index
    %c1_122 = arith.constant 1 : index
    %c0_123 = arith.constant 0 : index
    %120 = vector.load %arg9[%c0_119, %c0_120, %c0_121, %c1_122, %c0_123] : memref<4x1x9x9x128xbf16, #tpu.memory_space<vmem>>, vector<1x1x8x8x128xbf16>
    %121 = vector.shape_cast %120 : vector<1x1x8x8x128xbf16> to vector<1x8x8x128xbf16>
    %122 = vector.shape_cast %121 : vector<1x8x8x128xbf16> to vector<64x128xbf16>
    %c0_124 = arith.constant 0 : index
    %c256 = arith.constant 256 : index
    %123 = vector.load %arg10[%c0_124, %c256] : memref<64x1152xbf16, #tpu.memory_space<vmem>>, vector<64x128xbf16>
    tpu.vector_store %arg10[%c0_124, %c256], %122 {strides = array<i32>} : memref<64x1152xbf16, #tpu.memory_space<vmem>>, vector<64x128xbf16>,
    %c2_125 = arith.constant 2 : index
    %c0_126 = arith.constant 0 : index
    %c0_127 = arith.constant 0 : index
    %c0_128 = arith.constant 0 : index
    %c0_129 = arith.constant 0 : index
    %124 = vector.load %arg9[%c2_125, %c0_126, %c0_127, %c0_128, %c0_129] : memref<4x1x9x9x128xbf16, #tpu.memory_space<vmem>>, vector<1x1x8x8x128xbf16>
    %125 = vector.shape_cast %124 : vector<1x1x8x8x128xbf16> to vector<1x8x8x128xbf16>
    %126 = vector.shape_cast %125 : vector<1x8x8x128xbf16> to vector<64x128xbf16>
    %c0_130 = arith.constant 0 : index
    %c384 = arith.constant 384 : index
    %127 = vector.load %arg10[%c0_130, %c384] : memref<64x1152xbf16, #tpu.memory_space<vmem>>, vector<64x128xbf16>
    tpu.vector_store %arg10[%c0_130, %c384], %126 {strides = array<i32>} : memref<64x1152xbf16, #tpu.memory_space<vmem>>, vector<64x128xbf16>,
    %c3_131 = arith.constant 3 : index
    %c0_132 = arith.constant 0 : index
    %c0_133 = arith.constant 0 : index
    %c0_134 = arith.constant 0 : index
    %c0_135 = arith.constant 0 : index
    %128 = vector.load %arg9[%c3_131, %c0_132, %c0_133, %c0_134, %c0_135] : memref<4x1x9x9x128xbf16, #tpu.memory_space<vmem>>, vector<1x1x8x8x128xbf16>
    %129 = vector.shape_cast %128 : vector<1x1x8x8x128xbf16> to vector<1x8x8x128xbf16>
    %130 = vector.shape_cast %129 : vector<1x8x8x128xbf16> to vector<64x128xbf16>
    %c0_136 = arith.constant 0 : index
    %c512 = arith.constant 512 : index
    %131 = vector.load %arg10[%c0_136, %c512] : memref<64x1152xbf16, #tpu.memory_space<vmem>>, vector<64x128xbf16>
    tpu.vector_store %arg10[%c0_136, %c512], %130 {strides = array<i32>} : memref<64x1152xbf16, #tpu.memory_space<vmem>>, vector<64x128xbf16>,
    %c2_137 = arith.constant 2 : index
    %c0_138 = arith.constant 0 : index
    %c0_139 = arith.constant 0 : index
    %c1_140 = arith.constant 1 : index
    %c0_141 = arith.constant 0 : index
    %132 = vector.load %arg9[%c2_137, %c0_138, %c0_139, %c1_140, %c0_141] : memref<4x1x9x9x128xbf16, #tpu.memory_space<vmem>>, vector<1x1x8x8x128xbf16>
    %133 = vector.shape_cast %132 : vector<1x1x8x8x128xbf16> to vector<1x8x8x128xbf16>
    %134 = vector.shape_cast %133 : vector<1x8x8x128xbf16> to vector<64x128xbf16>
    %c0_142 = arith.constant 0 : index
    %c640 = arith.constant 640 : index
    %135 = vector.load %arg10[%c0_142, %c640] : memref<64x1152xbf16, #tpu.memory_space<vmem>>, vector<64x128xbf16>
    tpu.vector_store %arg10[%c0_142, %c640], %134 {strides = array<i32>} : memref<64x1152xbf16, #tpu.memory_space<vmem>>, vector<64x128xbf16>,
    %c0_143 = arith.constant 0 : index
    %c0_144 = arith.constant 0 : index
    %c1_145 = arith.constant 1 : index
    %c0_146 = arith.constant 0 : index
    %c0_147 = arith.constant 0 : index
    %136 = vector.load %arg9[%c0_143, %c0_144, %c1_145, %c0_146, %c0_147] : memref<4x1x9x9x128xbf16, #tpu.memory_space<vmem>>, vector<1x1x8x8x128xbf16>
    %137 = vector.shape_cast %136 : vector<1x1x8x8x128xbf16> to vector<1x8x8x128xbf16>
    %138 = vector.shape_cast %137 : vector<1x8x8x128xbf16> to vector<64x128xbf16>
    %c0_148 = arith.constant 0 : index
    %c768 = arith.constant 768 : index
    %139 = vector.load %arg10[%c0_148, %c768] : memref<64x1152xbf16, #tpu.memory_space<vmem>>, vector<64x128xbf16>
    tpu.vector_store %arg10[%c0_148, %c768], %138 {strides = array<i32>} : memref<64x1152xbf16, #tpu.memory_space<vmem>>, vector<64x128xbf16>,
    %c1_149 = arith.constant 1 : index
    %c0_150 = arith.constant 0 : index
    %c1_151 = arith.constant 1 : index
    %c0_152 = arith.constant 0 : index
    %c0_153 = arith.constant 0 : index
    %140 = vector.load %arg9[%c1_149, %c0_150, %c1_151, %c0_152, %c0_153] : memref<4x1x9x9x128xbf16, #tpu.memory_space<vmem>>, vector<1x1x8x8x128xbf16>
    %141 = vector.shape_cast %140 : vector<1x1x8x8x128xbf16> to vector<1x8x8x128xbf16>
    %142 = vector.shape_cast %141 : vector<1x8x8x128xbf16> to vector<64x128xbf16>
    %c0_154 = arith.constant 0 : index
    %c896 = arith.constant 896 : index
    %143 = vector.load %arg10[%c0_154, %c896] : memref<64x1152xbf16, #tpu.memory_space<vmem>>, vector<64x128xbf16>
    tpu.vector_store %arg10[%c0_154, %c896], %142 {strides = array<i32>} : memref<64x1152xbf16, #tpu.memory_space<vmem>>, vector<64x128xbf16>,
    %c0_155 = arith.constant 0 : index
    %c0_156 = arith.constant 0 : index
    %c1_157 = arith.constant 1 : index
    %c1_158 = arith.constant 1 : index
    %c0_159 = arith.constant 0 : index
    %144 = vector.load %arg9[%c0_155, %c0_156, %c1_157, %c1_158, %c0_159] : memref<4x1x9x9x128xbf16, #tpu.memory_space<vmem>>, vector<1x1x8x8x128xbf16>
    %145 = vector.shape_cast %144 : vector<1x1x8x8x128xbf16> to vector<1x8x8x128xbf16>
    %146 = vector.shape_cast %145 : vector<1x8x8x128xbf16> to vector<64x128xbf16>
    %c0_160 = arith.constant 0 : index
    %c1024 = arith.constant 1024 : index
    %147 = vector.load %arg10[%c0_160, %c1024] : memref<64x1152xbf16, #tpu.memory_space<vmem>>, vector<64x128xbf16>
    tpu.vector_store %arg10[%c0_160, %c1024], %146 {strides = array<i32>} : memref<64x1152xbf16, #tpu.memory_space<vmem>>, vector<64x128xbf16>,
    %c0_161 = arith.constant 0 : index
    %c0_162 = arith.constant 0 : index
    %148 = vector.load %arg10[%c0_161, %c0_162] : memref<64x1152xbf16, #tpu.memory_space<vmem>>, vector<64x1152xbf16>
    %c0_163 = arith.constant 0 : index
    %c0_164 = arith.constant 0 : index
    %149 = vector.load %arg2[%c0_163, %c0_164] : memref<1152x128xbf16, #tpu.memory_space<vmem>>, vector<1152x128xbf16>
    %cst_165 = arith.constant dense<0.000000e+00> : vector<64x128xf32>
    %150 = tpu.matmul %148, %149, %cst_165 {dimension_numbers = #tpu.dot_dimension_numbers<[1], [0], [0], [1], [0, 0, 1, 1], [], []>} : vector<64x1152xbf16>, vector<1152x128xbf16>, vector<64x128xf32> -> vector<64x128xf32>
    %c0_166 = arith.constant 0 : index
    %c0_167 = arith.constant 0 : index
    %151 = vector.load %arg6[%c0_166, %c0_167] : memref<1x128xf32, #tpu.memory_space<vmem>>, vector<1x128xf32>
    %152 = vector.broadcast %151 : vector<1x128xf32> to vector<64x128xf32>
    %153 = arith.addf %150, %152 : vector<64x128xf32>
    %cst_168 = arith.constant 0.000000e+00 : f32
    %154 = vector.broadcast %cst_168 : f32 to vector<64x128xf32>
    %155 = arith.cmpf ogt, %153, %154 : vector<64x128xf32>
    %cst_169 = arith.constant 1.000000e-01 : f32
    %156 = vector.broadcast %cst_169 : f32 to vector<64x128xf32>
    %157 = arith.mulf %156, %153 : vector<64x128xf32>
    %158 = arith.select %155, %153, %157 : vector<64x128xi1>, vector<64x128xf32>
    %cst_170 = arith.constant 0.000000e+00 : bf16
    %159 = vector.broadcast %cst_170 : bf16 to vector<1x1x10x128xbf16>
    %c0_171 = arith.constant 0 : index
    %c0_172 = arith.constant 0 : index
    %c0_173 = arith.constant 0 : index
    %c0_174 = arith.constant 0 : index
    %160 = vector.load %arg11[%c0_171, %c0_172, %c0_173, %c0_174] : memref<1x10x10x128xbf16, #tpu.memory_space<vmem>>, vector<1x1x10x128xbf16>
    tpu.vector_store %arg11[%c0_171, %c0_172, %c0_173, %c0_174], %159 {strides = array<i32>} : memref<1x10x10x128xbf16, #tpu.memory_space<vmem>>, vector<1x1x10x128xbf16>,
    %cst_175 = arith.constant 0.000000e+00 : bf16
    %161 = vector.broadcast %cst_175 : bf16 to vector<1x1x10x128xbf16>
    %c0_176 = arith.constant 0 : index
    %c9 = arith.constant 9 : index
    %c0_177 = arith.constant 0 : index
    %c0_178 = arith.constant 0 : index
    %162 = vector.load %arg11[%c0_176, %c9, %c0_177, %c0_178] : memref<1x10x10x128xbf16, #tpu.memory_space<vmem>>, vector<1x1x10x128xbf16>
    tpu.vector_store %arg11[%c0_176, %c9, %c0_177, %c0_178], %161 {strides = array<i32>} : memref<1x10x10x128xbf16, #tpu.memory_space<vmem>>, vector<1x1x10x128xbf16>,
    %cst_179 = arith.constant 0.000000e+00 : bf16
    %163 = vector.broadcast %cst_179 : bf16 to vector<1x10x1x128xbf16>
    %c0_180 = arith.constant 0 : index
    %c0_181 = arith.constant 0 : index
    %c0_182 = arith.constant 0 : index
    %c0_183 = arith.constant 0 : index
    %164 = vector.load %arg11[%c0_180, %c0_181, %c0_182, %c0_183] : memref<1x10x10x128xbf16, #tpu.memory_space<vmem>>, vector<1x10x1x128xbf16>
    tpu.vector_store %arg11[%c0_180, %c0_181, %c0_182, %c0_183], %163 {strides = array<i32>} : memref<1x10x10x128xbf16, #tpu.memory_space<vmem>>, vector<1x10x1x128xbf16>,
    %cst_184 = arith.constant 0.000000e+00 : bf16
    %165 = vector.broadcast %cst_184 : bf16 to vector<1x10x1x128xbf16>
    %c0_185 = arith.constant 0 : index
    %c0_186 = arith.constant 0 : index
    %c9_187 = arith.constant 9 : index
    %c0_188 = arith.constant 0 : index
    %166 = vector.load %arg11[%c0_185, %c0_186, %c9_187, %c0_188] : memref<1x10x10x128xbf16, #tpu.memory_space<vmem>>, vector<1x10x1x128xbf16>
    tpu.vector_store %arg11[%c0_185, %c0_186, %c9_187, %c0_188], %165 {strides = array<i32>} : memref<1x10x10x128xbf16, #tpu.memory_space<vmem>>, vector<1x10x1x128xbf16>,
    %167 = vector.shape_cast %158 : vector<64x128xf32> to vector<1x8x8x128xf32>
    %168 = arith.truncf %167 : vector<1x8x8x128xf32> to vector<1x8x8x128xbf16>
    %c0_189 = arith.constant 0 : index
    %c1_190 = arith.constant 1 : index
    %c1_191 = arith.constant 1 : index
    %c0_192 = arith.constant 0 : index
    %169 = vector.load %arg11[%c0_189, %c1_190, %c1_191, %c0_192] : memref<1x10x10x128xbf16, #tpu.memory_space<vmem>>, vector<1x8x8x128xbf16>
    tpu.vector_store %arg11[%c0_189, %c1_190, %c1_191, %c0_192], %168 {strides = array<i32>} : memref<1x10x10x128xbf16, #tpu.memory_space<vmem>>, vector<1x8x8x128xbf16>,
    %c0_193 = arith.constant 0 : index
    %c0_194 = arith.constant 0 : index
    %c0_195 = arith.constant 0 : index
    %c0_196 = arith.constant 0 : index
    %170 = vector.load %arg11[%c0_193, %c0_194, %c0_195, %c0_196] : memref<1x10x10x128xbf16, #tpu.memory_space<vmem>>, vector<1x8x8x128xbf16>
    %171 = vector.shape_cast %170 : vector<1x8x8x128xbf16> to vector<64x128xbf16>
    %c0_197 = arith.constant 0 : index
    %c0_198 = arith.constant 0 : index
    %172 = vector.load %arg12[%c0_197, %c0_198] : memref<64x1152xbf16, #tpu.memory_space<vmem>>, vector<64x128xbf16>
    tpu.vector_store %arg12[%c0_197, %c0_198], %171 {strides = array<i32>} : memref<64x1152xbf16, #tpu.memory_space<vmem>>, vector<64x128xbf16>,
    %c0_199 = arith.constant 0 : index
    %c0_200 = arith.constant 0 : index
    %c1_201 = arith.constant 1 : index
    %c0_202 = arith.constant 0 : index
    %173 = vector.load %arg11[%c0_199, %c0_200, %c1_201, %c0_202] : memref<1x10x10x128xbf16, #tpu.memory_space<vmem>>, vector<1x8x8x128xbf16>
    %174 = vector.shape_cast %173 : vector<1x8x8x128xbf16> to vector<64x128xbf16>
    %c0_203 = arith.constant 0 : index
    %c128_204 = arith.constant 128 : index
    %175 = vector.load %arg12[%c0_203, %c128_204] : memref<64x1152xbf16, #tpu.memory_space<vmem>>, vector<64x128xbf16>
    tpu.vector_store %arg12[%c0_203, %c128_204], %174 {strides = array<i32>} : memref<64x1152xbf16, #tpu.memory_space<vmem>>, vector<64x128xbf16>,
    %c0_205 = arith.constant 0 : index
    %c0_206 = arith.constant 0 : index
    %c2_207 = arith.constant 2 : index
    %c0_208 = arith.constant 0 : index
    %176 = vector.load %arg11[%c0_205, %c0_206, %c2_207, %c0_208] : memref<1x10x10x128xbf16, #tpu.memory_space<vmem>>, vector<1x8x8x128xbf16>
    %177 = vector.shape_cast %176 : vector<1x8x8x128xbf16> to vector<64x128xbf16>
    %c0_209 = arith.constant 0 : index
    %c256_210 = arith.constant 256 : index
    %178 = vector.load %arg12[%c0_209, %c256_210] : memref<64x1152xbf16, #tpu.memory_space<vmem>>, vector<64x128xbf16>
    tpu.vector_store %arg12[%c0_209, %c256_210], %177 {strides = array<i32>} : memref<64x1152xbf16, #tpu.memory_space<vmem>>, vector<64x128xbf16>,
    %c0_211 = arith.constant 0 : index
    %c1_212 = arith.constant 1 : index
    %c0_213 = arith.constant 0 : index
    %c0_214 = arith.constant 0 : index
    %179 = vector.load %arg11[%c0_211, %c1_212, %c0_213, %c0_214] : memref<1x10x10x128xbf16, #tpu.memory_space<vmem>>, vector<1x8x8x128xbf16>
    %180 = vector.shape_cast %179 : vector<1x8x8x128xbf16> to vector<64x128xbf16>
    %c0_215 = arith.constant 0 : index
    %c384_216 = arith.constant 384 : index
    %181 = vector.load %arg12[%c0_215, %c384_216] : memref<64x1152xbf16, #tpu.memory_space<vmem>>, vector<64x128xbf16>
    tpu.vector_store %arg12[%c0_215, %c384_216], %180 {strides = array<i32>} : memref<64x1152xbf16, #tpu.memory_space<vmem>>, vector<64x128xbf16>,
    %c0_217 = arith.constant 0 : index
    %c1_218 = arith.constant 1 : index
    %c1_219 = arith.constant 1 : index
    %c0_220 = arith.constant 0 : index
    %182 = vector.load %arg11[%c0_217, %c1_218, %c1_219, %c0_220] : memref<1x10x10x128xbf16, #tpu.memory_space<vmem>>, vector<1x8x8x128xbf16>
    %183 = vector.shape_cast %182 : vector<1x8x8x128xbf16> to vector<64x128xbf16>
    %c0_221 = arith.constant 0 : index
    %c512_222 = arith.constant 512 : index
    %184 = vector.load %arg12[%c0_221, %c512_222] : memref<64x1152xbf16, #tpu.memory_space<vmem>>, vector<64x128xbf16>
    tpu.vector_store %arg12[%c0_221, %c512_222], %183 {strides = array<i32>} : memref<64x1152xbf16, #tpu.memory_space<vmem>>, vector<64x128xbf16>,
    %c0_223 = arith.constant 0 : index
    %c1_224 = arith.constant 1 : index
    %c2_225 = arith.constant 2 : index
    %c0_226 = arith.constant 0 : index
    %185 = vector.load %arg11[%c0_223, %c1_224, %c2_225, %c0_226] : memref<1x10x10x128xbf16, #tpu.memory_space<vmem>>, vector<1x8x8x128xbf16>
    %186 = vector.shape_cast %185 : vector<1x8x8x128xbf16> to vector<64x128xbf16>
    %c0_227 = arith.constant 0 : index
    %c640_228 = arith.constant 640 : index
    %187 = vector.load %arg12[%c0_227, %c640_228] : memref<64x1152xbf16, #tpu.memory_space<vmem>>, vector<64x128xbf16>
    tpu.vector_store %arg12[%c0_227, %c640_228], %186 {strides = array<i32>} : memref<64x1152xbf16, #tpu.memory_space<vmem>>, vector<64x128xbf16>,
    %c0_229 = arith.constant 0 : index
    %c2_230 = arith.constant 2 : index
    %c0_231 = arith.constant 0 : index
    %c0_232 = arith.constant 0 : index
    %188 = vector.load %arg11[%c0_229, %c2_230, %c0_231, %c0_232] : memref<1x10x10x128xbf16, #tpu.memory_space<vmem>>, vector<1x8x8x128xbf16>
    %189 = vector.shape_cast %188 : vector<1x8x8x128xbf16> to vector<64x128xbf16>
    %c0_233 = arith.constant 0 : index
    %c768_234 = arith.constant 768 : index
    %190 = vector.load %arg12[%c0_233, %c768_234] : memref<64x1152xbf16, #tpu.memory_space<vmem>>, vector<64x128xbf16>
    tpu.vector_store %arg12[%c0_233, %c768_234], %189 {strides = array<i32>} : memref<64x1152xbf16, #tpu.memory_space<vmem>>, vector<64x128xbf16>,
    %c0_235 = arith.constant 0 : index
    %c2_236 = arith.constant 2 : index
    %c1_237 = arith.constant 1 : index
    %c0_238 = arith.constant 0 : index
    %191 = vector.load %arg11[%c0_235, %c2_236, %c1_237, %c0_238] : memref<1x10x10x128xbf16, #tpu.memory_space<vmem>>, vector<1x8x8x128xbf16>
    %192 = vector.shape_cast %191 : vector<1x8x8x128xbf16> to vector<64x128xbf16>
    %c0_239 = arith.constant 0 : index
    %c896_240 = arith.constant 896 : index
    %193 = vector.load %arg12[%c0_239, %c896_240] : memref<64x1152xbf16, #tpu.memory_space<vmem>>, vector<64x128xbf16>
    tpu.vector_store %arg12[%c0_239, %c896_240], %192 {strides = array<i32>} : memref<64x1152xbf16, #tpu.memory_space<vmem>>, vector<64x128xbf16>,
    %c0_241 = arith.constant 0 : index
    %c2_242 = arith.constant 2 : index
    %c2_243 = arith.constant 2 : index
    %c0_244 = arith.constant 0 : index
    %194 = vector.load %arg11[%c0_241, %c2_242, %c2_243, %c0_244] : memref<1x10x10x128xbf16, #tpu.memory_space<vmem>>, vector<1x8x8x128xbf16>
    %195 = vector.shape_cast %194 : vector<1x8x8x128xbf16> to vector<64x128xbf16>
    %c0_245 = arith.constant 0 : index
    %c1024_246 = arith.constant 1024 : index
    %196 = vector.load %arg12[%c0_245, %c1024_246] : memref<64x1152xbf16, #tpu.memory_space<vmem>>, vector<64x128xbf16>
    tpu.vector_store %arg12[%c0_245, %c1024_246], %195 {strides = array<i32>} : memref<64x1152xbf16, #tpu.memory_space<vmem>>, vector<64x128xbf16>,
    %c0_247 = arith.constant 0 : index
    %c0_248 = arith.constant 0 : index
    %197 = vector.load %arg12[%c0_247, %c0_248] : memref<64x1152xbf16, #tpu.memory_space<vmem>>, vector<64x1152xbf16>
    %c0_249 = arith.constant 0 : index
    %c0_250 = arith.constant 0 : index
    %198 = vector.load %arg3[%c0_249, %c0_250] : memref<1152x128xbf16, #tpu.memory_space<vmem>>, vector<1152x128xbf16>
    %cst_251 = arith.constant dense<0.000000e+00> : vector<64x128xf32>
    %199 = tpu.matmul %197, %198, %cst_251 {dimension_numbers = #tpu.dot_dimension_numbers<[1], [0], [0], [1], [0, 0, 1, 1], [], []>} : vector<64x1152xbf16>, vector<1152x128xbf16>, vector<64x128xf32> -> vector<64x128xf32>
    %c3_252 = arith.constant 3 : index
    %c0_253 = arith.constant 0 : index
    %c0_254 = arith.constant 0 : index
    %c0_255 = arith.constant 0 : index
    %c0_256 = arith.constant 0 : index
    %200 = vector.load %arg9[%c3_252, %c0_253, %c0_254, %c0_255, %c0_256] : memref<4x1x9x9x128xbf16, #tpu.memory_space<vmem>>, vector<1x1x8x8x128xbf16>
    %201 = vector.shape_cast %200 : vector<1x1x8x8x128xbf16> to vector<1x8x8x128xbf16>
    %202 = vector.shape_cast %201 : vector<1x8x8x128xbf16> to vector<64x128xbf16>
    %c0_257 = arith.constant 0 : index
    %c0_258 = arith.constant 0 : index
    %203 = vector.load %arg7[%c0_257, %c0_258] : memref<128x128xbf16, #tpu.memory_space<vmem>>, vector<128x128xbf16>
    %cst_259 = arith.constant dense<0.000000e+00> : vector<64x128xf32>
    %204 = tpu.matmul %202, %203, %cst_259 {dimension_numbers = #tpu.dot_dimension_numbers<[1], [0], [0], [1], [0, 0, 1, 1], [], []>} : vector<64x128xbf16>, vector<128x128xbf16>, vector<64x128xf32> -> vector<64x128xf32>
    %205 = arith.addf %199, %204 : vector<64x128xf32>
    %cst_260 = arith.constant 0.000000e+00 : bf16
    %206 = vector.broadcast %cst_260 : bf16 to vector<1x1x10x128xbf16>
    %c0_261 = arith.constant 0 : index
    %c0_262 = arith.constant 0 : index
    %c0_263 = arith.constant 0 : index
    %c0_264 = arith.constant 0 : index
    %207 = vector.load %arg8[%c0_261, %c0_262, %c0_263, %c0_264] : memref<1x10x10x128xbf16, #tpu.memory_space<vmem>>, vector<1x1x10x128xbf16>
    tpu.vector_store %arg8[%c0_261, %c0_262, %c0_263, %c0_264], %206 {strides = array<i32>} : memref<1x10x10x128xbf16, #tpu.memory_space<vmem>>, vector<1x1x10x128xbf16>,
    %cst_265 = arith.constant 0.000000e+00 : bf16
    %208 = vector.broadcast %cst_265 : bf16 to vector<1x1x10x128xbf16>
    %c0_266 = arith.constant 0 : index
    %c9_267 = arith.constant 9 : index
    %c0_268 = arith.constant 0 : index
    %c0_269 = arith.constant 0 : index
    %209 = vector.load %arg8[%c0_266, %c9_267, %c0_268, %c0_269] : memref<1x10x10x128xbf16, #tpu.memory_space<vmem>>, vector<1x1x10x128xbf16>
    tpu.vector_store %arg8[%c0_266, %c9_267, %c0_268, %c0_269], %208 {strides = array<i32>} : memref<1x10x10x128xbf16, #tpu.memory_space<vmem>>, vector<1x1x10x128xbf16>,
    %cst_270 = arith.constant 0.000000e+00 : bf16
    %210 = vector.broadcast %cst_270 : bf16 to vector<1x10x1x128xbf16>
    %c0_271 = arith.constant 0 : index
    %c0_272 = arith.constant 0 : index
    %c0_273 = arith.constant 0 : index
    %c0_274 = arith.constant 0 : index
    %211 = vector.load %arg8[%c0_271, %c0_272, %c0_273, %c0_274] : memref<1x10x10x128xbf16, #tpu.memory_space<vmem>>, vector<1x10x1x128xbf16>
    tpu.vector_store %arg8[%c0_271, %c0_272, %c0_273, %c0_274], %210 {strides = array<i32>} : memref<1x10x10x128xbf16, #tpu.memory_space<vmem>>, vector<1x10x1x128xbf16>,
    %cst_275 = arith.constant 0.000000e+00 : bf16
    %212 = vector.broadcast %cst_275 : bf16 to vector<1x10x1x128xbf16>
    %c0_276 = arith.constant 0 : index
    %c0_277 = arith.constant 0 : index
    %c9_278 = arith.constant 9 : index
    %c0_279 = arith.constant 0 : index
    %213 = vector.load %arg8[%c0_276, %c0_277, %c9_278, %c0_279] : memref<1x10x10x128xbf16, #tpu.memory_space<vmem>>, vector<1x10x1x128xbf16>
    tpu.vector_store %arg8[%c0_276, %c0_277, %c9_278, %c0_279], %212 {strides = array<i32>} : memref<1x10x10x128xbf16, #tpu.memory_space<vmem>>, vector<1x10x1x128xbf16>,
    %214 = vector.shape_cast %205 : vector<64x128xf32> to vector<1x8x8x128xf32>
    %215 = arith.truncf %214 : vector<1x8x8x128xf32> to vector<1x8x8x128xbf16>
    %c0_280 = arith.constant 0 : index
    %c1_281 = arith.constant 1 : index
    %c1_282 = arith.constant 1 : index
    %c0_283 = arith.constant 0 : index
    %216 = vector.load %arg8[%c0_280, %c1_281, %c1_282, %c0_283] : memref<1x10x10x128xbf16, #tpu.memory_space<vmem>>, vector<1x8x8x128xbf16>
    tpu.vector_store %arg8[%c0_280, %c1_281, %c1_282, %c0_283], %215 {strides = array<i32>} : memref<1x10x10x128xbf16, #tpu.memory_space<vmem>>, vector<1x8x8x128xbf16>,
    return
  }
  func.func @transform_0(%arg0: i32) -> (i32, i32, i32, i32, i32) {
    %c0_i32 = arith.constant 0 : i32
    %c0_i32_0 = arith.constant 0 : i32
    %c0_i32_1 = arith.constant 0 : i32
    %c0_i32_2 = arith.constant 0 : i32
    %c0_i32_3 = arith.constant 0 : i32
    return %c0_i32, %arg0, %c0_i32_0, %c0_i32_1, %c0_i32_2 : i32, i32, i32, i32, i32
  }
  func.func @transform_1(%arg0: i32) -> (i32, i32) {
    %c0_i32 = arith.constant 0 : i32
    %c0_i32_0 = arith.constant 0 : i32
    %c0_i32_1 = arith.constant 0 : i32
    return %c0_i32, %c0_i32_0 : i32, i32
  }
  func.func @transform_2(%arg0: i32) -> (i32, i32) {
    %c0_i32 = arith.constant 0 : i32
    %c0_i32_0 = arith.constant 0 : i32
    %c0_i32_1 = arith.constant 0 : i32
    return %c0_i32, %c0_i32_0 : i32, i32
  }
  func.func @transform_3(%arg0: i32) -> (i32, i32) {
    %c0_i32 = arith.constant 0 : i32
    %c0_i32_0 = arith.constant 0 : i32
    %c0_i32_1 = arith.constant 0 : i32
    return %c0_i32, %c0_i32_0 : i32, i32
  }
  func.func @transform_4(%arg0: i32) -> (i32, i32) {
    %c0_i32 = arith.constant 0 : i32
    %c0_i32_0 = arith.constant 0 : i32
    %c0_i32_1 = arith.constant 0 : i32
    return %c0_i32, %c0_i32_0 : i32, i32
  }
  func.func @transform_5(%arg0: i32) -> (i32, i32) {
    %c0_i32 = arith.constant 0 : i32
    %c0_i32_0 = arith.constant 0 : i32
    %c0_i32_1 = arith.constant 0 : i32
    return %c0_i32, %c0_i32_0 : i32, i32
  }
  func.func @transform_6(%arg0: i32) -> (i32, i32) {
    %c0_i32 = arith.constant 0 : i32
    %c0_i32_0 = arith.constant 0 : i32
    %c0_i32_1 = arith.constant 0 : i32
    return %c0_i32, %c0_i32_0 : i32, i32
  }
  func.func @transform_7(%arg0: i32) -> (i32, i32, i32, i32) {
    %c0_i32 = arith.constant 0 : i32
    %c0_i32_0 = arith.constant 0 : i32
    %c0_i32_1 = arith.constant 0 : i32
    %c0_i32_2 = arith.constant 0 : i32
    return %arg0, %c0_i32, %c0_i32_0, %c0_i32_1 : i32, i32, i32, i32
  }
}

module attributes {stable_mosaic.version = 11 : i64} {
  func.func @kernel(%arg0: i32, %arg1: memref<1x1x10x10x128xbf16, #tpu.memory_space<vmem>>, %arg2: memref<1152x128xbf16, #tpu.memory_space<vmem>>, %arg3: memref<1152x128xbf16, #tpu.memory_space<vmem>>, %arg4: memref<1x128xf32, #tpu.memory_space<vmem>>, %arg5: memref<1x128xf32, #tpu.memory_space<vmem>>, %arg6: memref<1x128xf32, #tpu.memory_space<vmem>>, %arg7: memref<1x10x10x128xbf16, #tpu.memory_space<vmem>>, %arg8: memref<1x1x10x10x128xbf16, #tpu.memory_space<vmem>>, %arg9: memref<64x1152xbf16, #tpu.memory_space<vmem>>, %arg10: memref<1x10x10x128xbf16, #tpu.memory_space<vmem>>, %arg11: memref<64x1152xbf16, #tpu.memory_space<vmem>>) attributes {dimension_semantics = [#tpu.dimension_semantics<parallel>], iteration_bounds = array<i64: 2>, scalar_prefetch = 0 : i64, scratch_operands = 4 : i64, tpu.core_type = #tpu.core_type<tc>, window_params = [{transform_indices = @transform_0, window_bounds = array<i64: 1, 1, 10, 10, 128>}, {pipeline_mode = #tpu.pipeline_mode<synchronous>, transform_indices = @transform_1, window_bounds = array<i64: 1152, 128>}, {pipeline_mode = #tpu.pipeline_mode<synchronous>, transform_indices = @transform_2, window_bounds = array<i64: 1152, 128>}, {pipeline_mode = #tpu.pipeline_mode<synchronous>, transform_indices = @transform_3, window_bounds = array<i64: 1, 128>}, {pipeline_mode = #tpu.pipeline_mode<synchronous>, transform_indices = @transform_4, window_bounds = array<i64: 1, 128>}, {pipeline_mode = #tpu.pipeline_mode<synchronous>, transform_indices = @transform_5, window_bounds = array<i64: 1, 128>}, {transform_indices = @transform_6, window_bounds = array<i64: 1, 10, 10, 128>}]} {
    %cst = arith.constant 0.000000e+00 : bf16
    %0 = vector.broadcast %cst : bf16 to vector<1x1x10x128xbf16>
    %c0 = arith.constant 0 : index
    %c0_0 = arith.constant 0 : index
    %c0_1 = arith.constant 0 : index
    %c0_2 = arith.constant 0 : index
    %c0_3 = arith.constant 0 : index
    %1 = vector.load %arg8[%c0, %c0_0, %c0_1, %c0_2, %c0_3] : memref<1x1x10x10x128xbf16, #tpu.memory_space<vmem>>, vector<1x1x1x10x128xbf16>
    %2 = vector.shape_cast %1 : vector<1x1x1x10x128xbf16> to vector<1x1x10x128xbf16>
    %3 = vector.shape_cast %0 : vector<1x1x10x128xbf16> to vector<1x1x1x10x128xbf16>
    tpu.vector_store %arg8[%c0, %c0_0, %c0_1, %c0_2, %c0_3], %3 {strides = array<i32>} : memref<1x1x10x10x128xbf16, #tpu.memory_space<vmem>>, vector<1x1x1x10x128xbf16>,
    %cst_4 = arith.constant 0.000000e+00 : bf16
    %4 = vector.broadcast %cst_4 : bf16 to vector<1x1x10x128xbf16>
    %c0_5 = arith.constant 0 : index
    %c0_6 = arith.constant 0 : index
    %c9 = arith.constant 9 : index
    %c0_7 = arith.constant 0 : index
    %c0_8 = arith.constant 0 : index
    %5 = vector.load %arg8[%c0_5, %c0_6, %c9, %c0_7, %c0_8] : memref<1x1x10x10x128xbf16, #tpu.memory_space<vmem>>, vector<1x1x1x10x128xbf16>
    %6 = vector.shape_cast %5 : vector<1x1x1x10x128xbf16> to vector<1x1x10x128xbf16>
    %7 = vector.shape_cast %4 : vector<1x1x10x128xbf16> to vector<1x1x1x10x128xbf16>
    tpu.vector_store %arg8[%c0_5, %c0_6, %c9, %c0_7, %c0_8], %7 {strides = array<i32>} : memref<1x1x10x10x128xbf16, #tpu.memory_space<vmem>>, vector<1x1x1x10x128xbf16>,
    %cst_9 = arith.constant 0.000000e+00 : bf16
    %8 = vector.broadcast %cst_9 : bf16 to vector<1x10x1x128xbf16>
    %c0_10 = arith.constant 0 : index
    %c0_11 = arith.constant 0 : index
    %c0_12 = arith.constant 0 : index
    %c0_13 = arith.constant 0 : index
    %c0_14 = arith.constant 0 : index
    %9 = vector.load %arg8[%c0_10, %c0_11, %c0_12, %c0_13, %c0_14] : memref<1x1x10x10x128xbf16, #tpu.memory_space<vmem>>, vector<1x1x10x1x128xbf16>
    %10 = vector.shape_cast %9 : vector<1x1x10x1x128xbf16> to vector<1x10x1x128xbf16>
    %11 = vector.shape_cast %8 : vector<1x10x1x128xbf16> to vector<1x1x10x1x128xbf16>
    tpu.vector_store %arg8[%c0_10, %c0_11, %c0_12, %c0_13, %c0_14], %11 {strides = array<i32>} : memref<1x1x10x10x128xbf16, #tpu.memory_space<vmem>>, vector<1x1x10x1x128xbf16>,
    %cst_15 = arith.constant 0.000000e+00 : bf16
    %12 = vector.broadcast %cst_15 : bf16 to vector<1x10x1x128xbf16>
    %c0_16 = arith.constant 0 : index
    %c0_17 = arith.constant 0 : index
    %c0_18 = arith.constant 0 : index
    %c9_19 = arith.constant 9 : index
    %c0_20 = arith.constant 0 : index
    %13 = vector.load %arg8[%c0_16, %c0_17, %c0_18, %c9_19, %c0_20] : memref<1x1x10x10x128xbf16, #tpu.memory_space<vmem>>, vector<1x1x10x1x128xbf16>
    %14 = vector.shape_cast %13 : vector<1x1x10x1x128xbf16> to vector<1x10x1x128xbf16>
    %15 = vector.shape_cast %12 : vector<1x10x1x128xbf16> to vector<1x1x10x1x128xbf16>
    tpu.vector_store %arg8[%c0_16, %c0_17, %c0_18, %c9_19, %c0_20], %15 {strides = array<i32>} : memref<1x1x10x10x128xbf16, #tpu.memory_space<vmem>>, vector<1x1x10x1x128xbf16>,
    %c0_21 = arith.constant 0 : index
    %c0_22 = arith.constant 0 : index
    %c1 = arith.constant 1 : index
    %c1_23 = arith.constant 1 : index
    %c0_24 = arith.constant 0 : index
    %16 = vector.load %arg1[%c0_21, %c0_22, %c1, %c1_23, %c0_24] : memref<1x1x10x10x128xbf16, #tpu.memory_space<vmem>>, vector<1x1x8x8x128xbf16>
    %17 = vector.shape_cast %16 : vector<1x1x8x8x128xbf16> to vector<1x8x8x128xbf16>
    %18 = arith.extf %17 : vector<1x8x8x128xbf16> to vector<1x8x8x128xf32>
    %c0_25 = arith.constant 0 : index
    %c0_26 = arith.constant 0 : index
    %19 = vector.load %arg4[%c0_25, %c0_26] : memref<1x128xf32, #tpu.memory_space<vmem>>, vector<1x128xf32>
    %20 = vector.shape_cast %19 : vector<1x128xf32> to vector<1x1x1x128xf32>
    %21 = vector.broadcast %20 : vector<1x1x1x128xf32> to vector<1x8x8x128xf32>
    %22 = arith.mulf %18, %21 : vector<1x8x8x128xf32>
    %c0_27 = arith.constant 0 : index
    %c0_28 = arith.constant 0 : index
    %23 = vector.load %arg5[%c0_27, %c0_28] : memref<1x128xf32, #tpu.memory_space<vmem>>, vector<1x128xf32>
    %24 = vector.shape_cast %23 : vector<1x128xf32> to vector<1x1x1x128xf32>
    %25 = vector.broadcast %24 : vector<1x1x1x128xf32> to vector<1x8x8x128xf32>
    %26 = arith.addf %22, %25 : vector<1x8x8x128xf32>
    %cst_29 = arith.constant 0.000000e+00 : f32
    %27 = vector.broadcast %cst_29 : f32 to vector<1x8x8x128xf32>
    %28 = arith.cmpf ogt, %26, %27 : vector<1x8x8x128xf32>
    %cst_30 = arith.constant 1.000000e-01 : f32
    %29 = vector.broadcast %cst_30 : f32 to vector<1x8x8x128xf32>
    %30 = arith.mulf %29, %26 : vector<1x8x8x128xf32>
    %31 = arith.select %28, %26, %30 : vector<1x8x8x128xi1>, vector<1x8x8x128xf32>
    %32 = arith.truncf %31 : vector<1x8x8x128xf32> to vector<1x8x8x128xbf16>
    %c0_31 = arith.constant 0 : index
    %c0_32 = arith.constant 0 : index
    %c1_33 = arith.constant 1 : index
    %c1_34 = arith.constant 1 : index
    %c0_35 = arith.constant 0 : index
    %33 = vector.load %arg8[%c0_31, %c0_32, %c1_33, %c1_34, %c0_35] : memref<1x1x10x10x128xbf16, #tpu.memory_space<vmem>>, vector<1x1x8x8x128xbf16>
    %34 = vector.shape_cast %33 : vector<1x1x8x8x128xbf16> to vector<1x8x8x128xbf16>
    %35 = vector.shape_cast %32 : vector<1x8x8x128xbf16> to vector<1x1x8x8x128xbf16>
    tpu.vector_store %arg8[%c0_31, %c0_32, %c1_33, %c1_34, %c0_35], %35 {strides = array<i32>} : memref<1x1x10x10x128xbf16, #tpu.memory_space<vmem>>, vector<1x1x8x8x128xbf16>,
    %c0_36 = arith.constant 0 : index
    %c0_37 = arith.constant 0 : index
    %c0_38 = arith.constant 0 : index
    %c0_39 = arith.constant 0 : index
    %c0_40 = arith.constant 0 : index
    %36 = vector.load %arg8[%c0_36, %c0_37, %c0_38, %c0_39, %c0_40] : memref<1x1x10x10x128xbf16, #tpu.memory_space<vmem>>, vector<1x1x8x8x128xbf16>
    %37 = vector.shape_cast %36 : vector<1x1x8x8x128xbf16> to vector<1x8x8x128xbf16>
    %38 = vector.shape_cast %37 : vector<1x8x8x128xbf16> to vector<64x128xbf16>
    %c0_41 = arith.constant 0 : index
    %c0_42 = arith.constant 0 : index
    %39 = vector.load %arg9[%c0_41, %c0_42] : memref<64x1152xbf16, #tpu.memory_space<vmem>>, vector<64x128xbf16>
    tpu.vector_store %arg9[%c0_41, %c0_42], %38 {strides = array<i32>} : memref<64x1152xbf16, #tpu.memory_space<vmem>>, vector<64x128xbf16>,
    %c0_43 = arith.constant 0 : index
    %c0_44 = arith.constant 0 : index
    %c0_45 = arith.constant 0 : index
    %c1_46 = arith.constant 1 : index
    %c0_47 = arith.constant 0 : index
    %40 = vector.load %arg8[%c0_43, %c0_44, %c0_45, %c1_46, %c0_47] : memref<1x1x10x10x128xbf16, #tpu.memory_space<vmem>>, vector<1x1x8x8x128xbf16>
    %41 = vector.shape_cast %40 : vector<1x1x8x8x128xbf16> to vector<1x8x8x128xbf16>
    %42 = vector.shape_cast %41 : vector<1x8x8x128xbf16> to vector<64x128xbf16>
    %c0_48 = arith.constant 0 : index
    %c128 = arith.constant 128 : index
    %43 = vector.load %arg9[%c0_48, %c128] : memref<64x1152xbf16, #tpu.memory_space<vmem>>, vector<64x128xbf16>
    tpu.vector_store %arg9[%c0_48, %c128], %42 {strides = array<i32>} : memref<64x1152xbf16, #tpu.memory_space<vmem>>, vector<64x128xbf16>,
    %c0_49 = arith.constant 0 : index
    %c0_50 = arith.constant 0 : index
    %c0_51 = arith.constant 0 : index
    %c2 = arith.constant 2 : index
    %c0_52 = arith.constant 0 : index
    %44 = vector.load %arg8[%c0_49, %c0_50, %c0_51, %c2, %c0_52] : memref<1x1x10x10x128xbf16, #tpu.memory_space<vmem>>, vector<1x1x8x8x128xbf16>
    %45 = vector.shape_cast %44 : vector<1x1x8x8x128xbf16> to vector<1x8x8x128xbf16>
    %46 = vector.shape_cast %45 : vector<1x8x8x128xbf16> to vector<64x128xbf16>
    %c0_53 = arith.constant 0 : index
    %c256 = arith.constant 256 : index
    %47 = vector.load %arg9[%c0_53, %c256] : memref<64x1152xbf16, #tpu.memory_space<vmem>>, vector<64x128xbf16>
    tpu.vector_store %arg9[%c0_53, %c256], %46 {strides = array<i32>} : memref<64x1152xbf16, #tpu.memory_space<vmem>>, vector<64x128xbf16>,
    %c0_54 = arith.constant 0 : index
    %c0_55 = arith.constant 0 : index
    %c1_56 = arith.constant 1 : index
    %c0_57 = arith.constant 0 : index
    %c0_58 = arith.constant 0 : index
    %48 = vector.load %arg8[%c0_54, %c0_55, %c1_56, %c0_57, %c0_58] : memref<1x1x10x10x128xbf16, #tpu.memory_space<vmem>>, vector<1x1x8x8x128xbf16>
    %49 = vector.shape_cast %48 : vector<1x1x8x8x128xbf16> to vector<1x8x8x128xbf16>
    %50 = vector.shape_cast %49 : vector<1x8x8x128xbf16> to vector<64x128xbf16>
    %c0_59 = arith.constant 0 : index
    %c384 = arith.constant 384 : index
    %51 = vector.load %arg9[%c0_59, %c384] : memref<64x1152xbf16, #tpu.memory_space<vmem>>, vector<64x128xbf16>
    tpu.vector_store %arg9[%c0_59, %c384], %50 {strides = array<i32>} : memref<64x1152xbf16, #tpu.memory_space<vmem>>, vector<64x128xbf16>,
    %c0_60 = arith.constant 0 : index
    %c0_61 = arith.constant 0 : index
    %c1_62 = arith.constant 1 : index
    %c1_63 = arith.constant 1 : index
    %c0_64 = arith.constant 0 : index
    %52 = vector.load %arg8[%c0_60, %c0_61, %c1_62, %c1_63, %c0_64] : memref<1x1x10x10x128xbf16, #tpu.memory_space<vmem>>, vector<1x1x8x8x128xbf16>
    %53 = vector.shape_cast %52 : vector<1x1x8x8x128xbf16> to vector<1x8x8x128xbf16>
    %54 = vector.shape_cast %53 : vector<1x8x8x128xbf16> to vector<64x128xbf16>
    %c0_65 = arith.constant 0 : index
    %c512 = arith.constant 512 : index
    %55 = vector.load %arg9[%c0_65, %c512] : memref<64x1152xbf16, #tpu.memory_space<vmem>>, vector<64x128xbf16>
    tpu.vector_store %arg9[%c0_65, %c512], %54 {strides = array<i32>} : memref<64x1152xbf16, #tpu.memory_space<vmem>>, vector<64x128xbf16>,
    %c0_66 = arith.constant 0 : index
    %c0_67 = arith.constant 0 : index
    %c1_68 = arith.constant 1 : index
    %c2_69 = arith.constant 2 : index
    %c0_70 = arith.constant 0 : index
    %56 = vector.load %arg8[%c0_66, %c0_67, %c1_68, %c2_69, %c0_70] : memref<1x1x10x10x128xbf16, #tpu.memory_space<vmem>>, vector<1x1x8x8x128xbf16>
    %57 = vector.shape_cast %56 : vector<1x1x8x8x128xbf16> to vector<1x8x8x128xbf16>
    %58 = vector.shape_cast %57 : vector<1x8x8x128xbf16> to vector<64x128xbf16>
    %c0_71 = arith.constant 0 : index
    %c640 = arith.constant 640 : index
    %59 = vector.load %arg9[%c0_71, %c640] : memref<64x1152xbf16, #tpu.memory_space<vmem>>, vector<64x128xbf16>
    tpu.vector_store %arg9[%c0_71, %c640], %58 {strides = array<i32>} : memref<64x1152xbf16, #tpu.memory_space<vmem>>, vector<64x128xbf16>,
    %c0_72 = arith.constant 0 : index
    %c0_73 = arith.constant 0 : index
    %c2_74 = arith.constant 2 : index
    %c0_75 = arith.constant 0 : index
    %c0_76 = arith.constant 0 : index
    %60 = vector.load %arg8[%c0_72, %c0_73, %c2_74, %c0_75, %c0_76] : memref<1x1x10x10x128xbf16, #tpu.memory_space<vmem>>, vector<1x1x8x8x128xbf16>
    %61 = vector.shape_cast %60 : vector<1x1x8x8x128xbf16> to vector<1x8x8x128xbf16>
    %62 = vector.shape_cast %61 : vector<1x8x8x128xbf16> to vector<64x128xbf16>
    %c0_77 = arith.constant 0 : index
    %c768 = arith.constant 768 : index
    %63 = vector.load %arg9[%c0_77, %c768] : memref<64x1152xbf16, #tpu.memory_space<vmem>>, vector<64x128xbf16>
    tpu.vector_store %arg9[%c0_77, %c768], %62 {strides = array<i32>} : memref<64x1152xbf16, #tpu.memory_space<vmem>>, vector<64x128xbf16>,
    %c0_78 = arith.constant 0 : index
    %c0_79 = arith.constant 0 : index
    %c2_80 = arith.constant 2 : index
    %c1_81 = arith.constant 1 : index
    %c0_82 = arith.constant 0 : index
    %64 = vector.load %arg8[%c0_78, %c0_79, %c2_80, %c1_81, %c0_82] : memref<1x1x10x10x128xbf16, #tpu.memory_space<vmem>>, vector<1x1x8x8x128xbf16>
    %65 = vector.shape_cast %64 : vector<1x1x8x8x128xbf16> to vector<1x8x8x128xbf16>
    %66 = vector.shape_cast %65 : vector<1x8x8x128xbf16> to vector<64x128xbf16>
    %c0_83 = arith.constant 0 : index
    %c896 = arith.constant 896 : index
    %67 = vector.load %arg9[%c0_83, %c896] : memref<64x1152xbf16, #tpu.memory_space<vmem>>, vector<64x128xbf16>
    tpu.vector_store %arg9[%c0_83, %c896], %66 {strides = array<i32>} : memref<64x1152xbf16, #tpu.memory_space<vmem>>, vector<64x128xbf16>,
    %c0_84 = arith.constant 0 : index
    %c0_85 = arith.constant 0 : index
    %c2_86 = arith.constant 2 : index
    %c2_87 = arith.constant 2 : index
    %c0_88 = arith.constant 0 : index
    %68 = vector.load %arg8[%c0_84, %c0_85, %c2_86, %c2_87, %c0_88] : memref<1x1x10x10x128xbf16, #tpu.memory_space<vmem>>, vector<1x1x8x8x128xbf16>
    %69 = vector.shape_cast %68 : vector<1x1x8x8x128xbf16> to vector<1x8x8x128xbf16>
    %70 = vector.shape_cast %69 : vector<1x8x8x128xbf16> to vector<64x128xbf16>
    %c0_89 = arith.constant 0 : index
    %c1024 = arith.constant 1024 : index
    %71 = vector.load %arg9[%c0_89, %c1024] : memref<64x1152xbf16, #tpu.memory_space<vmem>>, vector<64x128xbf16>
    tpu.vector_store %arg9[%c0_89, %c1024], %70 {strides = array<i32>} : memref<64x1152xbf16, #tpu.memory_space<vmem>>, vector<64x128xbf16>,
    %c0_90 = arith.constant 0 : index
    %c0_91 = arith.constant 0 : index
    %72 = vector.load %arg9[%c0_90, %c0_91] : memref<64x1152xbf16, #tpu.memory_space<vmem>>, vector<64x1152xbf16>
    %c0_92 = arith.constant 0 : index
    %c0_93 = arith.constant 0 : index
    %73 = vector.load %arg2[%c0_92, %c0_93] : memref<1152x128xbf16, #tpu.memory_space<vmem>>, vector<1152x128xbf16>
    %cst_94 = arith.constant dense<0.000000e+00> : vector<64x128xf32>
    %74 = tpu.matmul %72, %73, %cst_94 {dimension_numbers = #tpu.dot_dimension_numbers<[1], [0], [0], [1], [0, 0, 1, 1], [], []>} : vector<64x1152xbf16>, vector<1152x128xbf16>, vector<64x128xf32> -> vector<64x128xf32>
    %c0_95 = arith.constant 0 : index
    %c0_96 = arith.constant 0 : index
    %75 = vector.load %arg6[%c0_95, %c0_96] : memref<1x128xf32, #tpu.memory_space<vmem>>, vector<1x128xf32>
    %76 = vector.broadcast %75 : vector<1x128xf32> to vector<64x128xf32>
    %77 = arith.addf %74, %76 : vector<64x128xf32>
    %cst_97 = arith.constant 0.000000e+00 : f32
    %78 = vector.broadcast %cst_97 : f32 to vector<64x128xf32>
    %79 = arith.cmpf ogt, %77, %78 : vector<64x128xf32>
    %cst_98 = arith.constant 1.000000e-01 : f32
    %80 = vector.broadcast %cst_98 : f32 to vector<64x128xf32>
    %81 = arith.mulf %80, %77 : vector<64x128xf32>
    %82 = arith.select %79, %77, %81 : vector<64x128xi1>, vector<64x128xf32>
    %cst_99 = arith.constant 0.000000e+00 : bf16
    %83 = vector.broadcast %cst_99 : bf16 to vector<1x1x10x128xbf16>
    %c0_100 = arith.constant 0 : index
    %c0_101 = arith.constant 0 : index
    %c0_102 = arith.constant 0 : index
    %c0_103 = arith.constant 0 : index
    %84 = vector.load %arg10[%c0_100, %c0_101, %c0_102, %c0_103] : memref<1x10x10x128xbf16, #tpu.memory_space<vmem>>, vector<1x1x10x128xbf16>
    tpu.vector_store %arg10[%c0_100, %c0_101, %c0_102, %c0_103], %83 {strides = array<i32>} : memref<1x10x10x128xbf16, #tpu.memory_space<vmem>>, vector<1x1x10x128xbf16>,
    %cst_104 = arith.constant 0.000000e+00 : bf16
    %85 = vector.broadcast %cst_104 : bf16 to vector<1x1x10x128xbf16>
    %c0_105 = arith.constant 0 : index
    %c9_106 = arith.constant 9 : index
    %c0_107 = arith.constant 0 : index
    %c0_108 = arith.constant 0 : index
    %86 = vector.load %arg10[%c0_105, %c9_106, %c0_107, %c0_108] : memref<1x10x10x128xbf16, #tpu.memory_space<vmem>>, vector<1x1x10x128xbf16>
    tpu.vector_store %arg10[%c0_105, %c9_106, %c0_107, %c0_108], %85 {strides = array<i32>} : memref<1x10x10x128xbf16, #tpu.memory_space<vmem>>, vector<1x1x10x128xbf16>,
    %cst_109 = arith.constant 0.000000e+00 : bf16
    %87 = vector.broadcast %cst_109 : bf16 to vector<1x10x1x128xbf16>
    %c0_110 = arith.constant 0 : index
    %c0_111 = arith.constant 0 : index
    %c0_112 = arith.constant 0 : index
    %c0_113 = arith.constant 0 : index
    %88 = vector.load %arg10[%c0_110, %c0_111, %c0_112, %c0_113] : memref<1x10x10x128xbf16, #tpu.memory_space<vmem>>, vector<1x10x1x128xbf16>
    tpu.vector_store %arg10[%c0_110, %c0_111, %c0_112, %c0_113], %87 {strides = array<i32>} : memref<1x10x10x128xbf16, #tpu.memory_space<vmem>>, vector<1x10x1x128xbf16>,
    %cst_114 = arith.constant 0.000000e+00 : bf16
    %89 = vector.broadcast %cst_114 : bf16 to vector<1x10x1x128xbf16>
    %c0_115 = arith.constant 0 : index
    %c0_116 = arith.constant 0 : index
    %c9_117 = arith.constant 9 : index
    %c0_118 = arith.constant 0 : index
    %90 = vector.load %arg10[%c0_115, %c0_116, %c9_117, %c0_118] : memref<1x10x10x128xbf16, #tpu.memory_space<vmem>>, vector<1x10x1x128xbf16>
    tpu.vector_store %arg10[%c0_115, %c0_116, %c9_117, %c0_118], %89 {strides = array<i32>} : memref<1x10x10x128xbf16, #tpu.memory_space<vmem>>, vector<1x10x1x128xbf16>,
    %91 = vector.shape_cast %82 : vector<64x128xf32> to vector<1x8x8x128xf32>
    %92 = arith.truncf %91 : vector<1x8x8x128xf32> to vector<1x8x8x128xbf16>
    %c0_119 = arith.constant 0 : index
    %c1_120 = arith.constant 1 : index
    %c1_121 = arith.constant 1 : index
    %c0_122 = arith.constant 0 : index
    %93 = vector.load %arg10[%c0_119, %c1_120, %c1_121, %c0_122] : memref<1x10x10x128xbf16, #tpu.memory_space<vmem>>, vector<1x8x8x128xbf16>
    tpu.vector_store %arg10[%c0_119, %c1_120, %c1_121, %c0_122], %92 {strides = array<i32>} : memref<1x10x10x128xbf16, #tpu.memory_space<vmem>>, vector<1x8x8x128xbf16>,
    %c0_123 = arith.constant 0 : index
    %c0_124 = arith.constant 0 : index
    %c0_125 = arith.constant 0 : index
    %c0_126 = arith.constant 0 : index
    %94 = vector.load %arg10[%c0_123, %c0_124, %c0_125, %c0_126] : memref<1x10x10x128xbf16, #tpu.memory_space<vmem>>, vector<1x8x8x128xbf16>
    %95 = vector.shape_cast %94 : vector<1x8x8x128xbf16> to vector<64x128xbf16>
    %c0_127 = arith.constant 0 : index
    %c0_128 = arith.constant 0 : index
    %96 = vector.load %arg11[%c0_127, %c0_128] : memref<64x1152xbf16, #tpu.memory_space<vmem>>, vector<64x128xbf16>
    tpu.vector_store %arg11[%c0_127, %c0_128], %95 {strides = array<i32>} : memref<64x1152xbf16, #tpu.memory_space<vmem>>, vector<64x128xbf16>,
    %c0_129 = arith.constant 0 : index
    %c0_130 = arith.constant 0 : index
    %c1_131 = arith.constant 1 : index
    %c0_132 = arith.constant 0 : index
    %97 = vector.load %arg10[%c0_129, %c0_130, %c1_131, %c0_132] : memref<1x10x10x128xbf16, #tpu.memory_space<vmem>>, vector<1x8x8x128xbf16>
    %98 = vector.shape_cast %97 : vector<1x8x8x128xbf16> to vector<64x128xbf16>
    %c0_133 = arith.constant 0 : index
    %c128_134 = arith.constant 128 : index
    %99 = vector.load %arg11[%c0_133, %c128_134] : memref<64x1152xbf16, #tpu.memory_space<vmem>>, vector<64x128xbf16>
    tpu.vector_store %arg11[%c0_133, %c128_134], %98 {strides = array<i32>} : memref<64x1152xbf16, #tpu.memory_space<vmem>>, vector<64x128xbf16>,
    %c0_135 = arith.constant 0 : index
    %c0_136 = arith.constant 0 : index
    %c2_137 = arith.constant 2 : index
    %c0_138 = arith.constant 0 : index
    %100 = vector.load %arg10[%c0_135, %c0_136, %c2_137, %c0_138] : memref<1x10x10x128xbf16, #tpu.memory_space<vmem>>, vector<1x8x8x128xbf16>
    %101 = vector.shape_cast %100 : vector<1x8x8x128xbf16> to vector<64x128xbf16>
    %c0_139 = arith.constant 0 : index
    %c256_140 = arith.constant 256 : index
    %102 = vector.load %arg11[%c0_139, %c256_140] : memref<64x1152xbf16, #tpu.memory_space<vmem>>, vector<64x128xbf16>
    tpu.vector_store %arg11[%c0_139, %c256_140], %101 {strides = array<i32>} : memref<64x1152xbf16, #tpu.memory_space<vmem>>, vector<64x128xbf16>,
    %c0_141 = arith.constant 0 : index
    %c1_142 = arith.constant 1 : index
    %c0_143 = arith.constant 0 : index
    %c0_144 = arith.constant 0 : index
    %103 = vector.load %arg10[%c0_141, %c1_142, %c0_143, %c0_144] : memref<1x10x10x128xbf16, #tpu.memory_space<vmem>>, vector<1x8x8x128xbf16>
    %104 = vector.shape_cast %103 : vector<1x8x8x128xbf16> to vector<64x128xbf16>
    %c0_145 = arith.constant 0 : index
    %c384_146 = arith.constant 384 : index
    %105 = vector.load %arg11[%c0_145, %c384_146] : memref<64x1152xbf16, #tpu.memory_space<vmem>>, vector<64x128xbf16>
    tpu.vector_store %arg11[%c0_145, %c384_146], %104 {strides = array<i32>} : memref<64x1152xbf16, #tpu.memory_space<vmem>>, vector<64x128xbf16>,
    %c0_147 = arith.constant 0 : index
    %c1_148 = arith.constant 1 : index
    %c1_149 = arith.constant 1 : index
    %c0_150 = arith.constant 0 : index
    %106 = vector.load %arg10[%c0_147, %c1_148, %c1_149, %c0_150] : memref<1x10x10x128xbf16, #tpu.memory_space<vmem>>, vector<1x8x8x128xbf16>
    %107 = vector.shape_cast %106 : vector<1x8x8x128xbf16> to vector<64x128xbf16>
    %c0_151 = arith.constant 0 : index
    %c512_152 = arith.constant 512 : index
    %108 = vector.load %arg11[%c0_151, %c512_152] : memref<64x1152xbf16, #tpu.memory_space<vmem>>, vector<64x128xbf16>
    tpu.vector_store %arg11[%c0_151, %c512_152], %107 {strides = array<i32>} : memref<64x1152xbf16, #tpu.memory_space<vmem>>, vector<64x128xbf16>,
    %c0_153 = arith.constant 0 : index
    %c1_154 = arith.constant 1 : index
    %c2_155 = arith.constant 2 : index
    %c0_156 = arith.constant 0 : index
    %109 = vector.load %arg10[%c0_153, %c1_154, %c2_155, %c0_156] : memref<1x10x10x128xbf16, #tpu.memory_space<vmem>>, vector<1x8x8x128xbf16>
    %110 = vector.shape_cast %109 : vector<1x8x8x128xbf16> to vector<64x128xbf16>
    %c0_157 = arith.constant 0 : index
    %c640_158 = arith.constant 640 : index
    %111 = vector.load %arg11[%c0_157, %c640_158] : memref<64x1152xbf16, #tpu.memory_space<vmem>>, vector<64x128xbf16>
    tpu.vector_store %arg11[%c0_157, %c640_158], %110 {strides = array<i32>} : memref<64x1152xbf16, #tpu.memory_space<vmem>>, vector<64x128xbf16>,
    %c0_159 = arith.constant 0 : index
    %c2_160 = arith.constant 2 : index
    %c0_161 = arith.constant 0 : index
    %c0_162 = arith.constant 0 : index
    %112 = vector.load %arg10[%c0_159, %c2_160, %c0_161, %c0_162] : memref<1x10x10x128xbf16, #tpu.memory_space<vmem>>, vector<1x8x8x128xbf16>
    %113 = vector.shape_cast %112 : vector<1x8x8x128xbf16> to vector<64x128xbf16>
    %c0_163 = arith.constant 0 : index
    %c768_164 = arith.constant 768 : index
    %114 = vector.load %arg11[%c0_163, %c768_164] : memref<64x1152xbf16, #tpu.memory_space<vmem>>, vector<64x128xbf16>
    tpu.vector_store %arg11[%c0_163, %c768_164], %113 {strides = array<i32>} : memref<64x1152xbf16, #tpu.memory_space<vmem>>, vector<64x128xbf16>,
    %c0_165 = arith.constant 0 : index
    %c2_166 = arith.constant 2 : index
    %c1_167 = arith.constant 1 : index
    %c0_168 = arith.constant 0 : index
    %115 = vector.load %arg10[%c0_165, %c2_166, %c1_167, %c0_168] : memref<1x10x10x128xbf16, #tpu.memory_space<vmem>>, vector<1x8x8x128xbf16>
    %116 = vector.shape_cast %115 : vector<1x8x8x128xbf16> to vector<64x128xbf16>
    %c0_169 = arith.constant 0 : index
    %c896_170 = arith.constant 896 : index
    %117 = vector.load %arg11[%c0_169, %c896_170] : memref<64x1152xbf16, #tpu.memory_space<vmem>>, vector<64x128xbf16>
    tpu.vector_store %arg11[%c0_169, %c896_170], %116 {strides = array<i32>} : memref<64x1152xbf16, #tpu.memory_space<vmem>>, vector<64x128xbf16>,
    %c0_171 = arith.constant 0 : index
    %c2_172 = arith.constant 2 : index
    %c2_173 = arith.constant 2 : index
    %c0_174 = arith.constant 0 : index
    %118 = vector.load %arg10[%c0_171, %c2_172, %c2_173, %c0_174] : memref<1x10x10x128xbf16, #tpu.memory_space<vmem>>, vector<1x8x8x128xbf16>
    %119 = vector.shape_cast %118 : vector<1x8x8x128xbf16> to vector<64x128xbf16>
    %c0_175 = arith.constant 0 : index
    %c1024_176 = arith.constant 1024 : index
    %120 = vector.load %arg11[%c0_175, %c1024_176] : memref<64x1152xbf16, #tpu.memory_space<vmem>>, vector<64x128xbf16>
    tpu.vector_store %arg11[%c0_175, %c1024_176], %119 {strides = array<i32>} : memref<64x1152xbf16, #tpu.memory_space<vmem>>, vector<64x128xbf16>,
    %c0_177 = arith.constant 0 : index
    %c0_178 = arith.constant 0 : index
    %121 = vector.load %arg11[%c0_177, %c0_178] : memref<64x1152xbf16, #tpu.memory_space<vmem>>, vector<64x1152xbf16>
    %c0_179 = arith.constant 0 : index
    %c0_180 = arith.constant 0 : index
    %122 = vector.load %arg3[%c0_179, %c0_180] : memref<1152x128xbf16, #tpu.memory_space<vmem>>, vector<1152x128xbf16>
    %cst_181 = arith.constant dense<0.000000e+00> : vector<64x128xf32>
    %123 = tpu.matmul %121, %122, %cst_181 {dimension_numbers = #tpu.dot_dimension_numbers<[1], [0], [0], [1], [0, 0, 1, 1], [], []>} : vector<64x1152xbf16>, vector<1152x128xbf16>, vector<64x128xf32> -> vector<64x128xf32>
    %c0_182 = arith.constant 0 : index
    %c0_183 = arith.constant 0 : index
    %c1_184 = arith.constant 1 : index
    %c1_185 = arith.constant 1 : index
    %c0_186 = arith.constant 0 : index
    %124 = vector.load %arg1[%c0_182, %c0_183, %c1_184, %c1_185, %c0_186] : memref<1x1x10x10x128xbf16, #tpu.memory_space<vmem>>, vector<1x1x8x8x128xbf16>
    %125 = vector.shape_cast %124 : vector<1x1x8x8x128xbf16> to vector<1x8x8x128xbf16>
    %126 = vector.shape_cast %125 : vector<1x8x8x128xbf16> to vector<64x128xbf16>
    %127 = arith.extf %126 : vector<64x128xbf16> to vector<64x128xf32>
    %128 = arith.addf %123, %127 : vector<64x128xf32>
    %cst_187 = arith.constant 0.000000e+00 : bf16
    %129 = vector.broadcast %cst_187 : bf16 to vector<1x1x10x128xbf16>
    %c0_188 = arith.constant 0 : index
    %c0_189 = arith.constant 0 : index
    %c0_190 = arith.constant 0 : index
    %c0_191 = arith.constant 0 : index
    %130 = vector.load %arg7[%c0_188, %c0_189, %c0_190, %c0_191] : memref<1x10x10x128xbf16, #tpu.memory_space<vmem>>, vector<1x1x10x128xbf16>
    tpu.vector_store %arg7[%c0_188, %c0_189, %c0_190, %c0_191], %129 {strides = array<i32>} : memref<1x10x10x128xbf16, #tpu.memory_space<vmem>>, vector<1x1x10x128xbf16>,
    %cst_192 = arith.constant 0.000000e+00 : bf16
    %131 = vector.broadcast %cst_192 : bf16 to vector<1x1x10x128xbf16>
    %c0_193 = arith.constant 0 : index
    %c9_194 = arith.constant 9 : index
    %c0_195 = arith.constant 0 : index
    %c0_196 = arith.constant 0 : index
    %132 = vector.load %arg7[%c0_193, %c9_194, %c0_195, %c0_196] : memref<1x10x10x128xbf16, #tpu.memory_space<vmem>>, vector<1x1x10x128xbf16>
    tpu.vector_store %arg7[%c0_193, %c9_194, %c0_195, %c0_196], %131 {strides = array<i32>} : memref<1x10x10x128xbf16, #tpu.memory_space<vmem>>, vector<1x1x10x128xbf16>,
    %cst_197 = arith.constant 0.000000e+00 : bf16
    %133 = vector.broadcast %cst_197 : bf16 to vector<1x10x1x128xbf16>
    %c0_198 = arith.constant 0 : index
    %c0_199 = arith.constant 0 : index
    %c0_200 = arith.constant 0 : index
    %c0_201 = arith.constant 0 : index
    %134 = vector.load %arg7[%c0_198, %c0_199, %c0_200, %c0_201] : memref<1x10x10x128xbf16, #tpu.memory_space<vmem>>, vector<1x10x1x128xbf16>
    tpu.vector_store %arg7[%c0_198, %c0_199, %c0_200, %c0_201], %133 {strides = array<i32>} : memref<1x10x10x128xbf16, #tpu.memory_space<vmem>>, vector<1x10x1x128xbf16>,
    %cst_202 = arith.constant 0.000000e+00 : bf16
    %135 = vector.broadcast %cst_202 : bf16 to vector<1x10x1x128xbf16>
    %c0_203 = arith.constant 0 : index
    %c0_204 = arith.constant 0 : index
    %c9_205 = arith.constant 9 : index
    %c0_206 = arith.constant 0 : index
    %136 = vector.load %arg7[%c0_203, %c0_204, %c9_205, %c0_206] : memref<1x10x10x128xbf16, #tpu.memory_space<vmem>>, vector<1x10x1x128xbf16>
    tpu.vector_store %arg7[%c0_203, %c0_204, %c9_205, %c0_206], %135 {strides = array<i32>} : memref<1x10x10x128xbf16, #tpu.memory_space<vmem>>, vector<1x10x1x128xbf16>,
    %137 = vector.shape_cast %128 : vector<64x128xf32> to vector<1x8x8x128xf32>
    %138 = arith.truncf %137 : vector<1x8x8x128xf32> to vector<1x8x8x128xbf16>
    %c0_207 = arith.constant 0 : index
    %c1_208 = arith.constant 1 : index
    %c1_209 = arith.constant 1 : index
    %c0_210 = arith.constant 0 : index
    %139 = vector.load %arg7[%c0_207, %c1_208, %c1_209, %c0_210] : memref<1x10x10x128xbf16, #tpu.memory_space<vmem>>, vector<1x8x8x128xbf16>
    tpu.vector_store %arg7[%c0_207, %c1_208, %c1_209, %c0_210], %138 {strides = array<i32>} : memref<1x10x10x128xbf16, #tpu.memory_space<vmem>>, vector<1x8x8x128xbf16>,
    return
  }
  func.func @transform_0(%arg0: i32) -> (i32, i32, i32, i32, i32) {
    %c0_i32 = arith.constant 0 : i32
    %c0_i32_0 = arith.constant 0 : i32
    %c0_i32_1 = arith.constant 0 : i32
    %c0_i32_2 = arith.constant 0 : i32
    %c0_i32_3 = arith.constant 0 : i32
    return %c0_i32, %arg0, %c0_i32_0, %c0_i32_1, %c0_i32_2 : i32, i32, i32, i32, i32
  }
  func.func @transform_1(%arg0: i32) -> (i32, i32) {
    %c0_i32 = arith.constant 0 : i32
    %c0_i32_0 = arith.constant 0 : i32
    %c0_i32_1 = arith.constant 0 : i32
    return %c0_i32, %c0_i32_0 : i32, i32
  }
  func.func @transform_2(%arg0: i32) -> (i32, i32) {
    %c0_i32 = arith.constant 0 : i32
    %c0_i32_0 = arith.constant 0 : i32
    %c0_i32_1 = arith.constant 0 : i32
    return %c0_i32, %c0_i32_0 : i32, i32
  }
  func.func @transform_3(%arg0: i32) -> (i32, i32) {
    %c0_i32 = arith.constant 0 : i32
    %c0_i32_0 = arith.constant 0 : i32
    %c0_i32_1 = arith.constant 0 : i32
    return %c0_i32, %c0_i32_0 : i32, i32
  }
  func.func @transform_4(%arg0: i32) -> (i32, i32) {
    %c0_i32 = arith.constant 0 : i32
    %c0_i32_0 = arith.constant 0 : i32
    %c0_i32_1 = arith.constant 0 : i32
    return %c0_i32, %c0_i32_0 : i32, i32
  }
  func.func @transform_5(%arg0: i32) -> (i32, i32) {
    %c0_i32 = arith.constant 0 : i32
    %c0_i32_0 = arith.constant 0 : i32
    %c0_i32_1 = arith.constant 0 : i32
    return %c0_i32, %c0_i32_0 : i32, i32
  }
  func.func @transform_6(%arg0: i32) -> (i32, i32, i32, i32) {
    %c0_i32 = arith.constant 0 : i32
    %c0_i32_0 = arith.constant 0 : i32
    %c0_i32_1 = arith.constant 0 : i32
    %c0_i32_2 = arith.constant 0 : i32
    return %arg0, %c0_i32, %c0_i32_0, %c0_i32_1 : i32, i32, i32, i32
  }
}

</mosaic_0001>

<bundles_post_ra>
// kernel: network_block_forward.3
= control target key start
LH: loop header
LB: loop body
LE: loop exit
PB: predicated region body
PF: predicated region fallthrough
CT: control target
= control target key end

     0   :  { %11 = vsyncpa [#allocation7], 0  ;;  %s7355_s0 = inlined_call_operand.hbm [shape: bf16[1,2,10,10,128], index: 0, kind: input, shape index: {}]   ;;  %s7356_s1 = inlined_call_operand.hbm [shape: bf16[1152,128], index: 1, kind: input, shape index: {}]   ;;  %s7357_s2 = inlined_call_operand.hbm [shape: bf16[1152,128], index: 2, kind: input, shape index: {}]   ;;  %s7358_s3 = inlined_call_operand.hbm [shape: f32[1,128], index: 3, kind: input, shape index: {}]   ;;  %s7359_s4 = inlined_call_operand.hbm [shape: f32[1,128], index: 4, kind: input, shape index: {}]   ;;  %s7360_s5 = inlined_call_operand.hbm [shape: f32[1,128], index: 5, kind: input, shape index: {}]   ;;  %s7361_s6 = inlined_call_operand.hbm [shape: bf16[2,10,10,128], index: 6, kind: output, shape index: {}]  }
   0x1   :  { %13 = vsyncpa [#allocation7 + $0x1], 0 }
   0x2   :  { %14 = vsyncpa [#allocation10], 0 }
   0x3   :  { %15 = vsyncpa [#allocation13], 0 }
   0x4   :  { %16 = vsyncpa [#allocation16], 0 }
   0x5   :  { %17 = vsyncpa [#allocation8], 0 }
   0x6   :  { %19 = vsyncpa [#allocation8 + $0x1], 0  ;;  %s6282_s21 = smov 0   ;;  %s6284_s22 = smov 0  }
   0x7   :  { %s6286_s23 = smov 0   ;;  %s6288_s24 = smov 0  }
   0x8 LB: > { %s6235_s25 = smov [#allocation9]   ;;  %s6303_s27 = sadd.s32 4294967295, %s6233_s24   ;;  %s6233_s24 = sphi %s6288_s24, %s7400_s24   ;;  %s6229_s23 = sphi %s6286_s23, %s7399_s23   ;;  %s6225_s22 = sphi %s6284_s22, %s7398_s22   ;;  %s6221_s21 = sphi %s6282_s21, %s7397_s21  }
   0x9   : > { %s199_s26 = sshll.u32 %s6235_s25, 4  ;;  %p4903_p0 = scmp.ge.s32.totalorder %s6233_s24, 1  ;;  %s6308_s26 = int_to_ptr.vmem [resolvable:$true] %s199_s26 }
   0xa   : > { %p7362_p1 = scmp.eq.s32.totalorder %s6303_s27, 0  ;;  %p187_p2 = scmp.lt.s32.totalorder %s6233_s24, 3 }
   0xb   : > { %s6236_s29 = smov [#allocation12]   ;;  %s6237_s8 = smov [#allocation11]  }
   0xc   : > { %p6310_p3 = pnand %p4903_p0, %p187_p2  ;;  %s226_s30 = sshll.u32 %s6236_s29, 4  ;;  %s6323_s30 = int_to_ptr.vmem [resolvable:$true] %s226_s30 }
   0xd   : > { %s212_s9 = sshll.u32 %s6237_s8, 4  ;;  %s5985_s12 = scalar_lea.hbm %s7356_s1, 9216  ;;  %s6325_s9 = int_to_ptr.vmem [resolvable:$true] %s212_s9 }
   0xe   : > { %s7367_s28 = scalar_select %p6310_p3, 1, 0 }
   0xf   : > { %p5737_p5 = pneg %p6310_p3  ;;  %p5986_p7 = scmp.ne.s32.totalorder %s7356_s1, %s5985_s12 }
  0x10   : > { %p5992_p11 = scmp.lt.u32.totalorder %s5985_s12, %s7356_s1 }
  0x11   : > { %p6319_p6 = pnand %p5737_p5, %p7362_p1 }
  0x13   : > { %p6335_p8 = pneg %p6319_p6 }
  0x15   : > { %p5988_p9 = pnand %p6335_p8, %p5986_p7 }
  0x17   : > { %p5989_p10 = pneg %p5988_p9 }
  0x19   : > { %p5994_p12 = pnand %p5992_p11, %p5989_p10 }
  0x1b   : > { %5997 = shalt.err (!%p5994_p12)
}
  0x1c   : > { %s5998_s18 = scalar_lea.vmem %s6308_s26, 9216  ;;  %p6006_p5 = scmp.lt.s32.totalorder %s6308_s26, %s6308_s26 }
  0x1d   : > { %p5999_p13 = scmp.ne.s32.totalorder %s6308_s26, %s5998_s18  ;;  %p6007_p4 = scmp.lt.s32.totalorder %s5998_s18, %s5998_s18 }
  0x1f   : > { %p6001_p0 = pnand %p5999_p13, %p6335_p8  ;;  %p6008_p7 = por %p6007_p4, %p6006_p5 }
  0x21   : > { %p6002_p2 = pneg %p6001_p0 }
  0x23   : > { %p6009_p9 = pnand %p6008_p7, %p6002_p2 }
  0x25   : > { %6012 = shalt.err (!%p6009_p9)
}
  0x26   : > { %s7364_s19 = smov 64   ;;  %s7365_s20 = smov 4  }
  0x27   : > { %5740 = dma.hbm_to_vmem [thread:$0]  (!%p6319_p6), %s7356_s1, 9216, %s6308_s26, [#allocation10], %s7364_s19, %s7364_s19, %s7365_s20  }
  0x28   : > { %s6013_s11 = scalar_lea.hbm %s7358_s3, 16 }
  0x29   : > { %p6014_p4 = scmp.ne.s32.totalorder %s7358_s3, %s6013_s11  ;;  %p6020_p12 = scmp.lt.u32.totalorder %s6013_s11, %s7358_s3 }
  0x2b   : > { %p6016_p10 = pnand %p6014_p4, %p6335_p8 }
  0x2d   : > { %p6017_p11 = pneg %p6016_p10 }
  0x2f   : > { %p6022_p13 = pnand %p6020_p12, %p6017_p11 }
  0x31   : > { %6025 = shalt.err (!%p6022_p13)
}
  0x32   : > { %s6026_s26 = scalar_lea.vmem %s6323_s30, 16  ;;  %s6033_s17 = scalar_lea.vmem %s6323_s30, 32 }
  0x33   : > { %p6027_p0 = scmp.ne.s32.totalorder %s6323_s30, %s6026_s26  ;;  %p6034_p7 = scmp.lt.s32.totalorder %s6323_s30, %s6323_s30 }
  0x34   : > { %p6035_p9 = scmp.lt.s32.totalorder %s6033_s17, %s6026_s26 }
  0x35   : > { %p6029_p2 = pnand %p6027_p0, %p6335_p8 }
  0x36   : > { %p6036_p4 = por %p6035_p9, %p6034_p7 }
  0x37   : > { %p6030_p5 = pneg %p6029_p2 }
  0x39   : > { %p6037_p10 = pnand %p6036_p4, %p6030_p5 }
  0x3b   : > { %6040 = shalt.err (!%p6037_p10)
}
  0x3c   : > { %5746 = dma.hbm_to_vmem [thread:$0]  (!%p6319_p6), %s7358_s3, 16, %s6323_s30, [#allocation13]  }
  0x3d   : > { %s6041_s10 = scalar_lea.hbm %s7357_s2, 9216 }
  0x3e   : > { %p6042_p11 = scmp.ne.s32.totalorder %s7357_s2, %s6041_s10  ;;  %p6048_p0 = scmp.lt.u32.totalorder %s6041_s10, %s7357_s2 }
  0x40   : > { %p6044_p12 = pnand %p6042_p11, %p6335_p8 }
  0x42   : > { %p6045_p13 = pneg %p6044_p12 }
  0x44   : > { %p6050_p2 = pnand %p6048_p0, %p6045_p13 }
  0x46   : > { %6053 = shalt.err (!%p6050_p2)
}
  0x47   : > { %s6054_s30 = scalar_lea.vmem %s6325_s9, 9216  ;;  %p6062_p4 = scmp.lt.s32.totalorder %s6325_s9, %s6325_s9 }
  0x48   : > { %p6055_p5 = scmp.ne.s32.totalorder %s6325_s9, %s6054_s30  ;;  %p6063_p10 = scmp.lt.s32.totalorder %s6054_s30, %s6054_s30 }
  0x4a   : > { %p6057_p7 = pnand %p6055_p5, %p6335_p8  ;;  %p6064_p11 = por %p6063_p10, %p6062_p4 }
  0x4c   : > { %p6058_p9 = pneg %p6057_p7 }
  0x4e   : > { %p6065_p12 = pnand %p6064_p11, %p6058_p9 }
  0x50   : > { %6068 = shalt.err (!%p6065_p12)
}
  0x51   : > { %5743 = dma.hbm_to_vmem [thread:$0]  (!%p6319_p6), %s7357_s2, 9216, %s6325_s9, [#allocation10], %s7364_s19, %s7364_s19, %s7365_s20  }
  0x52   : > { %s6240_s17 = smov [#allocation14]   ;;  %s6241_s25 = smov [#allocation15]  }
  0x53   : > { %s237_s18 = sshll.u32 %s6240_s17, 4  ;;  %s248_s29 = sshll.u32 %s6241_s25, 4  ;;  %s238_s18 = int_to_ptr.vmem [resolvable:$true] %s237_s18  ;;  %s249_s29 = int_to_ptr.vmem [resolvable:$true] %s248_s29 }
  0x54   : > { %s6069_s11 = scalar_lea.hbm %s7359_s4, 16 }
  0x55   : > { %p6070_p13 = scmp.ne.s32.totalorder %s7359_s4, %s6069_s11  ;;  %p6076_p5 = scmp.lt.u32.totalorder %s6069_s11, %s7359_s4 }
  0x57   : > { %p6072_p0 = pnand %p6070_p13, %p6335_p8 }
  0x59   : > { %p6073_p2 = pneg %p6072_p0 }
  0x5b   : > { %p6078_p7 = pnand %p6076_p5, %p6073_p2 }
  0x5d   : > { %6081 = shalt.err (!%p6078_p7)
}
  0x5e   : > { %s6082_s9 = scalar_lea.vmem %s238_s18, 16  ;;  %s6089_s16 = scalar_lea.vmem %s238_s18, 32 }
  0x5f   : > { %p6083_p9 = scmp.ne.s32.totalorder %s238_s18, %s6082_s9  ;;  %p6090_p11 = scmp.lt.s32.totalorder %s238_s18, %s238_s18 }
  0x60   : > { %p6091_p12 = scmp.lt.s32.totalorder %s6089_s16, %s6082_s9 }
  0x61   : > { %p6085_p4 = pnand %p6083_p9, %p6335_p8 }
  0x62   : > { %p6092_p1 = por %p6091_p12, %p6090_p11 }
  0x63   : > { %p6086_p10 = pneg %p6085_p4 }
  0x65   : > { %p6093_p3 = pnand %p6092_p1, %p6086_p10 }
  0x67   : > { %6096 = shalt.err (!%p6093_p3)
}
  0x68   : > { %5749 = dma.hbm_to_vmem [thread:$0]  (!%p6319_p6), %s7359_s4, 16, %s238_s18, [#allocation13]  }
  0x69   : > { %s6097_s10 = scalar_lea.hbm %s7360_s5, 16 }
  0x6a   : > { %p6098_p13 = scmp.ne.s32.totalorder %s7360_s5, %s6097_s10  ;;  %p6104_p3 = scmp.lt.u32.totalorder %s6097_s10, %s7360_s5 }
  0x6c   : > { %p6100_p0 = pnand %p6098_p13, %p6335_p8 }
  0x6e   : > { %p6101_p1 = pneg %p6100_p0 }
  0x70   : > { %p6106_p2 = pnand %p6104_p3, %p6101_p1 }
  0x72   : > { %6109 = shalt.err (!%p6106_p2)
}
  0x73   : > { %s6110_s30 = scalar_lea.vmem %s249_s29, 16  ;;  %s6117_s18 = scalar_lea.vmem %s249_s29, 32 }
  0x74   : > { %p6111_p5 = scmp.ne.s32.totalorder %s249_s29, %s6110_s30  ;;  %p6118_p4 = scmp.lt.s32.totalorder %s249_s29, %s249_s29 }
  0x75   : > { %p6119_p10 = scmp.lt.s32.totalorder %s6117_s18, %s6110_s30 }
  0x76   : > { %p6113_p7 = pnand %p6111_p5, %p6335_p8 }
  0x77   : > { %p6120_p11 = por %p6119_p10, %p6118_p4 }
  0x78   : > { %p6114_p9 = pneg %p6113_p7 }
  0x7a   : > { %p6121_p12 = pnand %p6120_p11, %p6114_p9 }
  0x7c   : > { %6124 = shalt.err (!%p6121_p12)
}
  0x7d   : > { %5752 = dma.hbm_to_vmem [thread:$0]  (!%p6319_p6), %s7360_s5, 16, %s249_s29, [#allocation16]  }
  0x7e   : > { %s4902_s15 = sadd.s32 4294967294, %s6233_s24   ;;  %s6447_s7 = sadd.s32 1, %s6233_s24  }
  0x7f   : > { %s32_s26 = sadd.s32 1, %s6229_s23  ;;  %s29_s17 = ssub.s32 %s6233_s24, %s6447_s7 }
  0x80   : > { %p39_p8 = scmp.ne.s32.totalorder %s6229_s23, %s6225_s22  ;;  %p30_p13 = scmp.eq.s32.totalorder %s29_s17, 0 }
  0x81   : > { %p40_p0 = scmp.eq.s32.totalorder %s6233_s24, 0  ;;  %p45_p1 = scmp.ne.s32.totalorder %s6225_s22, %s6221_s21 }
  0x82   : > { %p174_p3 = scmp.eq.s32.totalorder %s6303_s27, 1  ;;  %p7370_p5 = scmp.eq.s32.totalorder %s6303_s27, 0 }
  0x83   : > { %s6459_s25 = scalar_select %p30_p13, %s6229_s23, %s32_s26  }
  0x84   : > { %p41_p2 = por %p40_p0, %p39_p8  ;;  %p6463_p7 = por %p7370_p5, %p45_p1 }
  0x85   : > { %p6467_p6 = por %p174_p3, %p39_p8  ;;  %p180_p9 = scmp.eq.s32.totalorder %s4902_s15, 1 }
  0x86   : > { %p5766_p4 = scmp.lt.s32.totalorder %s6233_s24, 2  ;;  %s259_s10 = sand.u32 1, %s6229_s23  }
  0x87   : > { %s7372_s29 = scalar_select %p6467_p6, 1, 0 }
  0x88   : > { %p6473_p10 = por %p180_p9, %p45_p1  ;;  %s5709_s12 = smul.u32 80, %s259_s10 }
  0x89   : > { %p6477_p11 = pnand %p5766_p4, %p41_p2  ;;  %s5710_s14 = smul.u32 1280, %s6233_s24 }
  0x8a   : > { %s7373_s11 = scalar_select %p6473_p10, 1, 0 }
  0x8b   : > { %s6485_s9 = scalar_lea.hbm %s7355_s0, %s5710_s14  ;;  %s263_s16 = scalar_lea.vmem [#allocation6], %s5709_s12 }
  0x8c   : > { %s270_s15 = sshll.u32 %s263_s16, 4  ;;  %s6489_s26 = scalar_lea.sflag [#allocation7], %s259_s10  ;;  %s6487_s15 = int_to_ptr.vmem [resolvable:$true] %s270_s15 }
  0x8d   : > { %s6125_s17 = scalar_lea.hbm %s6485_s9, 1280  ;;  %p6127_p8 = pneg %p6477_p11 }
  0x8e   : > { %p6126_p12 = scmp.ne.s32.totalorder %s6485_s9, %s6125_s17  ;;  %s6130_s18 = scalar_lea.hbm %s7355_s0, 2560 }
  0x8f   : > { %p6131_p1 = scmp.lt.u32.totalorder %s6485_s9, %s7355_s0  ;;  %p6132_p3 = scmp.lt.u32.totalorder %s6130_s18, %s6125_s17 }
  0x90   : > { %p6128_p13 = pnand %p6127_p8, %p6126_p12  ;;  %p6134_p5 = scmp.lt.u32.totalorder %s6125_s17, %s6485_s9 }
  0x91   : > { %p6133_p2 = por %p6132_p3, %p6131_p1 }
  0x92   : > { %p6129_p0 = pneg %p6128_p13 }
  0x93   : > { %p6135_p9 = por %p6134_p5, %p6133_p2 }
  0x95   : > { %p6136_p4 = pnand %p6135_p9, %p6129_p0 }
  0x97   : > { %6139 = shalt.err (!%p6136_p4)
}
  0x98   : > { %s6140_s10 = scalar_lea.vmem %s6487_s15, 1280  ;;  %s6242_s12 = smov [#allocation6]  }
  0x99   : > { %p6141_p12 = scmp.ne.s32.totalorder %s6487_s15, %s6140_s10  ;;  %s6145_s16 = sshll.u32 %s6242_s12, 4  ;;  %s6146_s16 = int_to_ptr.vmem [resolvable:$false] %s6145_s16 }
  0x9a   : > { %s6147_s19 = scalar_lea.vmem %s6146_s16, 2560  ;;  %p6148_p6 = scmp.lt.s32.totalorder %s6487_s15, %s6146_s16 }
  0x9b   : > { %p6143_p13 = pnand %p6141_p12, %p6127_p8  ;;  %p6149_p1 = scmp.lt.s32.totalorder %s6147_s19, %s6140_s10 }
  0x9d   : > { %p6144_p10 = pneg %p6143_p13  ;;  %p6150_p3 = por %p6149_p1, %p6148_p6 }
  0x9f   : > { %p6151_p2 = pnand %p6150_p3, %p6144_p10 }
  0xa1   : > { %6154 = shalt.err (!%p6151_p2)
}
  0xa2   : > { %s7375_s20 = smov 4   ;;  %s7376_s17 = smov 64  }
  0xa3   : > { %5756 = dma.hbm_to_vmem [thread:$0]  (!%p6477_p11), %s6485_s9, 1280, %s6487_s15, %s6489_s26, %s7376_s17, %s7376_s17, %s7375_s20  }
  0xa4   : > { %p7377_p8 = scmp.ne.s32.totalorder %s7367_s28, 0 }
  0xa5   : > { %s6523_s14 = sand.u32 (!%p7377_p8), 1, %s6225_s22  }
  0xa6   : > { %282 = sbr.rel (%p7377_p8) target bundleno = 921 (0x399), region = 44  ;;  %s285_s18 = scalar_lea.sflag (!%p7377_p8), [#allocation7], %s6523_s14 }
  0xa7   : > { %s5711_s30 = smul.u32 (!%p7377_p8), 80, %s6523_s14 }
  0xa9   : > { %s6527_s10 = scalar_lea.vmem (!%p7377_p8), [#allocation6], %s5711_s30 }
  0xad   : > { %6200 = dma.done.wait (%p6463_p7), %s285_s18, 1280  }
  0xae   : > { %6202 = vsyncadd (%p6463_p7), %s285_s18, 4294966016  ;;  %p7378_p6 = scmp.eq.s32.totalorder %s6303_s27, 0 }
  0xb0   : > { %6204 = dma.done.wait (%p7378_p6), [#allocation10], 18432   ;;  %p7379_p10 = pmov %p7378_p6 }
  0xb1   : > { %p7380_p11 = pmov %p7378_p6 }
  0xb2   : > { %6206 = vsyncadd (%p7379_p10), [#allocation10], 4294948864 }
  0xb3   : > { %6208 = dma.done.wait (%p7380_p11), [#allocation13], 32   ;;  %p7381_p0 = pmov %p7378_p6 }
  0xb5   : > { %6210 = vsyncadd (%p7381_p0), [#allocation13], 4294967264  ;;  %p7382_p5 = pmov %p7381_p0 }
  0xb6   : > { %p7383_p9 = pmov %p7381_p0 }
  0xb7   : > { %6212 = dma.done.wait (%p7382_p5), [#allocation16], 16  }
  0xb8   : > { %6214 = vsyncadd (%p7383_p9), [#allocation16], 4294967280  ;;  %v6243_v0 = vmov 0   ;;  %s6545_s28 = scalar_lea.vmem [#allocation17], %s5711_s30  ;;  %v5815_v1 = vld [vmem:[#allocation9 + $0x40] sm:$0xff]   ;;  %v5819_v5 = vld [vmem:[#allocation9 + $0x48] sm:$0xff]  }
  0xb9   : > { %338 = vst [vmem:[#allocation2] sm:$0xf] %v6243_v0  ;;  %339 = vst [vmem:[#allocation2 + $0x4] sm:$0x1] %v6243_v0  ;;  %v5816_v2 = vld [vmem:[#allocation9] sm:$0xff]   ;;  %5317 = vmatprep.subr.bf16.mxu0 %v5815_v1  ;;  %v5820_v6 = vld [vmem:[#allocation9 + $0x8] sm:$0xff]  }
  0xba   : > { %4541 = vst [vmem:[%s6545_s28] sm:$0xf] %v6243_v0  ;;  %4542 = vst [vmem:[%s6545_s28 + $0x4] sm:$0x1] %v6243_v0  ;;  %v5817_v3 = vld [vmem:[#allocation9 + $0xc0] sm:$0xff]   ;;  %5318 = vmatpush3.bf16.msra.mxu0 %v5816_v2  ;;  %v5821_v7 = vld [vmem:[#allocation9 + $0xc8] sm:$0xff]   ;;  %vm343_vm2 = vcmask 1040384  }
  0xbb   : > { %5240 = vst [vmem:[%s6545_s28 + $0x48] sm:$0xf] %v6243_v0  ;;  %5241 = vst [vmem:[%s6545_s28 + $0x4c] sm:$0x1] %v6243_v0  ;;  %v5818_v4 = vld [vmem:[#allocation9 + $0x80] sm:$0xff]   ;;  %5357 = vmatprep.subr.bf16.mxu1 %v5817_v3  ;;  %5319 = vmatprep.subr.bf16.mxu0 %v5819_v5  ;;  %v5822_v8 = vld [vmem:[#allocation9 + $0x88] sm:$0xff]  }
  0xbc   : > { %341 = vst [vmem:[#allocation2 + $0x48] sm:$0xf] %v6243_v0  ;;  %342 = vst [vmem:[#allocation2 + $0x4c] sm:$0x1] %v6243_v0  ;;  %5358 = vmatpush3.bf16.msra.mxu1 %v5818_v4  ;;  %v5823_v9 = vld [vmem:[#allocation9 + $0x50] sm:$0xff]   ;;  %v5827_v13 = vld [vmem:[#allocation9 + $0x58] sm:$0xff]  }
  0xbd   : > { %2429 = vst [vmem:[#allocation4] sm:$0xf] %v6243_v0  ;;  %2430 = vst [vmem:[#allocation4 + $0x4] sm:$0x1] %v6243_v0  ;;  %5359 = vmatprep.subr.bf16.mxu1 %v5821_v7  ;;  %v5824_v10 = vld [vmem:[#allocation9 + $0x10] sm:$0xff]   ;;  %v5828_v14 = vld [vmem:[#allocation9 + $0x18] sm:$0xff]  }
  0xbe   : > { %2432 = vst [vmem:[#allocation4 + $0x48] sm:$0xf] %v6243_v0  ;;  %2433 = vst [vmem:[#allocation4 + $0x4c] sm:$0x1] %v6243_v0  ;;  %5320 = vmatpush3.bf16.msra.mxu0 %v5820_v6  ;;  %v5825_v11 = vld [vmem:[#allocation9 + $0xd0] sm:$0xff]   ;;  %v5829_v15 = vld [vmem:[#allocation9 + $0xd8] sm:$0xff]  }
  0xbf   : > { %5321 = vmatprep.subr.bf16.mxu0 %v5823_v9  ;;  %vm344_vm0 = vsmask.f32 256  ;;  %v5826_v12 = vld [vmem:[#allocation9 + $0x90] sm:$0xff]   ;;  %vm376_vm1 = vsmask.f32 7938  ;;  %v5830_v16 = vld [vmem:[#allocation9 + $0x98] sm:$0xff]  }
  0xc0   : > { %5360 = vmatpush3.bf16.msra.mxu1 %v5822_v8  ;;  %v5831_v17 = vld [vmem:[#allocation9 + $0x60] sm:$0xff]   ;;  %v5835_v21 = vld [vmem:[#allocation9 + $0x68] sm:$0xff]   ;;  %vm6552_vm3 = vmand %vm343_vm2, %vm344_vm0  ;;  %vm600_vm5 = vcmask 1043456   ;;  %vm702_vm6 = vsmask.f32 3328  ;;  %vm869_vm12 = vcmask 1042432  }
  0xc1   : > { %5361 = vmatprep.subr.bf16.mxu1 %v5825_v11  ;;  %v5832_v18 = vld [vmem:[#allocation9 + $0x20] sm:$0xff]   ;;  %v5836_v22 = vld [vmem:[#allocation9 + $0x28] sm:$0xff]   ;;  %vm6557_vm4 = vmand %vm343_vm2, %vm376_vm1  ;;  %vm703_vm7 = vsmask.f32 7440  ;;  %vm870_vm13 = vcmask 1046532   ;;  %s5712_s8 = smul.u32 1280, %s6303_s27 }
  0xc2   : > { %5322 = vmatpush3.bf16.msra.mxu0 %v5824_v10  ;;  %v5833_v19 = vld [vmem:[#allocation9 + $0xe0] sm:$0xff]   ;;  %v5837_v24 = vld [vmem:[#allocation9 + $0xe8] sm:$0xff]   ;;  %v5839_v27 = vld [vmem:[#allocation9 + $0x70] sm:$0xff]   ;;  %s4781_s13 = sshll.u32 %s6545_s28, 4  ;;  %s4768_s26 = scalar_lea.sflag [#allocation8], %s6523_s14  ;;  %s7294_s13 = int_to_ptr.vmem [resolvable:$true] %s4781_s13 }
  0xc3   : > { %5323 = vmatprep.subr.bf16.mxu0 %v5827_v13  ;;  %v5834_v20 = vld [vmem:[#allocation9 + $0xa0] sm:$0xff]   ;;  %v5838_v26 = vld [vmem:[#allocation9 + $0xa8] sm:$0xff]   ;;  %v5840_v28 = vld [vmem:[#allocation9 + $0x30] sm:$0xff]   ;;  %s7299_s15 = scalar_lea.hbm %s7361_s6, %s5712_s8  ;;  %s6155_s12 = scalar_lea.vmem %s7294_s13, 1280 }
  0xc4   : > { %5362 = vmatpush3.bf16.msra.mxu1 %v5826_v12  ;;  %v5841_v29 = vld [vmem:[#allocation9 + $0xf0] sm:$0xff]   ;;  %v5843_v31 = vld [vmem:[#allocation9 + $0x78] sm:$0xff]   ;;  %v346_v34 = vld [vmem:[#allocation2] sm:$0x1]  ;;  %p6156_p7 = scmp.ne.s32.totalorder %s7294_s13, %s6155_s12  ;;  %p7394_p4 = scmp.ne.s32.totalorder %s7372_s29, 0 }
  0xc5   : > { %5363 = vmatprep.subr.bf16.mxu1 %v5829_v15  ;;  %v5842_v30 = vld [vmem:[#allocation9 + $0xb0] sm:$0xff]   ;;  %v5844_v32 = vld [vmem:[#allocation9 + $0x38] sm:$0xff]   ;;  %v349_v35 = vld [vmem:[#allocation2 + $0x8] sm:$0x1]  ;;  %v347_v37 = vsel %vm6552_vm3, 0, %v346_v34  ;;  %s6244_s16 = smov [#allocation17]  }
  0xc6   : > { %5324 = vmatpush3.bf16.msra.mxu0 %v5828_v14  ;;  %v5845_v33 = vld [vmem:[#allocation9 + $0xf8] sm:$0xff]   ;;  %v378_v36 = vld [vmem:[#allocation2 + $0x4] sm:$0x1]  ;;  %v350_v38 = vsel %vm6552_vm3, 0, %v349_v35  ;;  %v381_v40 = vld [vmem:[#allocation2 + $0xc] sm:$0x1]  ;;  %p6157_p12 = pnand %p6156_p7, %p7394_p4 }
  0xc7   : > { %5325 = vmatprep.subr.bf16.mxu0 %v5831_v17  ;;  %v379_v39 = vsel %vm6557_vm4, 0, %v378_v36  ;;  %v5846_v41 = vld [vmem:[#allocation9 + $0xb8] sm:$0xff]   ;;  %348 = vst [vmem:[#allocation2] sm:$0x1] %v347_v37  ;;  %351 = vst [vmem:[#allocation2 + $0x8] sm:$0x1] %v350_v38 }
  0xc8   : > { %5364 = vmatpush3.bf16.msra.mxu1 %v5830_v16  ;;  %380 = vst [vmem:[#allocation2 + $0x4] sm:$0x1] %v379_v39  ;;  %v382_v42 = vsel %vm6557_vm4, 0, %v381_v40  ;;  %v4917_v43 = vld [vmem:[%s6527_s10 + $0x8] ss:$8 sps:$4 sm:$0xff]   ;;  %vm6601_vm10 = vmand %vm600_vm5, %vm376_vm1  ;;  %p6158_p13 = pneg %p6157_p12  ;;  %s6159_s19 = sshll.u32 %s6244_s16, 4  ;;  %s6160_s19 = int_to_ptr.vmem [resolvable:$false] %s6159_s19 }
  0xc9   : > { %5365 = vmatprep.subr.bf16.mxu1 %v5833_v19  ;;  %v4918_v44 = vld [vmem:[%s6527_s10 + $0xc] sm:$0x1]  ;;  %v5848_v45 = vld [vmem:[#allocation9 + $0x140] sm:$0xff]   ;;  %383 = vst [vmem:[#allocation2 + $0xc] sm:$0x1] %v382_v42  ;;  %v425_v46 = vunpack.c.l.bf16 %v4917_v43  ;;  %v427_v51 = vunpack.c.h.bf16 %v4917_v43  ;;  %vm6615_vm14 = vmor %vm702_vm6, %vm703_vm7  ;;  %s6161_s20 = scalar_lea.vmem %s6160_s19, 2560  ;;  %p6162_p1 = scmp.lt.s32.totalorder %s7294_s13, %s6160_s19 }
  0xca   : > { %5326 = vmatpush3.bf16.msra.mxu0 %v5832_v18  ;;  %v426_v47 = vunpack.c.l.bf16 %v4918_v44  ;;  %v6571_v48 = vld [vmem:[#allocation12] ss:$0 sm:$0xff]  ;;  %v6573_v49 = vld [vmem:[#allocation14] ss:$0 sm:$0xff]  ;;  %v4546_v50 = vld [vmem:[%s6545_s28] sm:$0x1]  ;;  %p6163_p3 = scmp.lt.s32.totalorder %s6161_s20, %s6155_s12 }
  0xcb   : > { %5327 = vmatprep.subr.bf16.mxu0 %v5835_v21  ;;  %v4547_v52 = vsel %vm6552_vm3, 0, %v4546_v50  ;;  %v4573_v53 = vld [vmem:[%s6545_s28 + $0x48] sm:$0x1]  ;;  %v4576_v54 = vld [vmem:[%s6545_s28 + $0x4] sm:$0x1]  ;;  %v448_v55 = vmul.f32 %v6571_v48, %v425_v46  ;;  %v450_v61 = vmul.f32 %v6571_v48, %v427_v51  ;;  %v5851_v62 = vld [vmem:[#allocation9 + $0x1c0] sm:$0xff]  }
  0xcc   : > { %5366 = vmatpush3.bf16.msra.mxu1 %v5834_v20  ;;  %v449_v56 = vmul.f32 %v6571_v48, %v426_v47  ;;  %4548 = vst [vmem:[%s6545_s28] sm:$0x1] %v4547_v52  ;;  %v4574_v57 = vsel %vm6552_vm3, 0, %v4573_v53  ;;  %v4577_v58 = vsel %vm6557_vm4, 0, %v4576_v54  ;;  %v4603_v59 = vld [vmem:[%s6545_s28 + $0x4c] sm:$0x1]  ;;  %vm6627_vm15 = vmor %vm869_vm12, %vm870_vm13  ;;  %p6164_p2 = por %p6163_p3, %p6162_p1 }
  0xcd   : > { %5367 = vmatprep.subr.bf16.mxu1 %v5837_v24  ;;  %4575 = vst [vmem:[%s6545_s28 + $0x48] sm:$0x1] %v4574_v57  ;;  %4578 = vst [vmem:[%s6545_s28 + $0x4] sm:$0x1] %v4577_v58  ;;  %v4604_v60 = vsel %vm6557_vm4, 0, %v4603_v59  ;;  %v471_v63 = vadd.f32 %v6573_v49, %v448_v55  ;;  %v473_v3 = vadd.f32 %v6573_v49, %v450_v61 }
  0xce   : > { %5328 = vmatpush3.bf16.msra.mxu0 %v5836_v22  ;;  %v472_v0 = vadd.f32 %v6573_v49, %v449_v56  ;;  %4605 = vst [vmem:[%s6545_s28 + $0x4c] sm:$0x1] %v4604_v60  ;;  %v352_v1 = vld [vmem:[#allocation2 + $0x10] sm:$0x1]  ;;  %v602_v6 = vld [vmem:[#allocation2 + $0x8] sm:$0xf]  ;;  %p6165_p8 = pnand %p6164_p2, %p6158_p13 }
  0xcf   : > { %5329 = vmatprep.subr.bf16.mxu0 %v5839_v27  ;;  %v353_v2 = vsel %vm6552_vm3, 0, %v352_v1  ;;  %vm487_vm8 = vcmp.gt.f32.partialorder %v471_v63, 0.0  ;;  %v503_v4 = vmul.f32 0.1, %v471_v63  ;;  %v686_v8 = vld [vmem:[#allocation2] sm:$0xf] }
  0xd0   : > { %5368 = vmatpush3.bf16.msra.mxu1 %v5838_v26  ;;  %vm488_vm9 = vcmp.gt.f32.partialorder %v472_v0, 0.0  ;;  %v504_v5 = vmul.f32 0.1, %v472_v0  ;;  %354 = vst [vmem:[#allocation2 + $0x10] sm:$0x1] %v353_v2  ;;  %v706_v13 = vshrl.u32 %v686_v8, 16 }
  0xd1   : > { %5369 = vmatprep.subr.bf16.mxu1 %v5841_v29  ;;  %v605_v7 = vld [vmem:[#allocation2 + $0xc] sm:$0x1]  ;;  %v519_v9 = vsel %vm487_vm8, %v471_v63, %v503_v4  ;;  %v687_v12 = vld [vmem:[#allocation2 + $0x4] sm:$0x1]  ;;  %v709_v14 = vshll.u32 %v686_v8, 16  ;;  %vm489_vm11 = vcmp.gt.f32.partialorder %v473_v3, 0.0 }
  0xd2   : > { %5330 = vmatpush3.bf16.msra.mxu0 %v5840_v28  ;;  %v520_v10 = vsel %vm488_vm9, %v472_v0, %v504_v5  ;;  %v5285_v15 = vpack.c.bf16 %v519_v9, %v519_v9  ;;  %v837_v17 = vld [vmem:[#allocation2] sm:$0xe]  ;;  %v708_v18 = vrot.slane %v706_v13, 4  ;;  %v715_v20 = vshll.u32 %v687_v12, 16  ;;  %v838_v26 = vld [vmem:[#allocation2 + $0x4] sm:$0x1] }
  0xd3   : > { %5331 = vmatprep.subr.bf16.mxu0 %v5843_v31  ;;  %v5286_v16 = vpack.c.bf16 %v520_v10, %v520_v10  ;;  %v711_v19 = vrot.slane %v709_v14, 5  ;;  %v505_v21 = vmul.f32 0.1, %v473_v3  ;;  %v4959_v31 = vrot.slane %v837_v17, 9  ;;  %v355_v35 = vld [vmem:[#allocation2 + $0x18] sm:$0x1] }
  0xd4   : > { %5370 = vmatpush3.bf16.msra.mxu1 %v5842_v30  ;;  %v603_v22 = vsel %vm6601_vm10, %v5285_v15, %v602_v6  ;;  %v874_v34 = vrot.slane %v838_v26, 5  ;;  %v384_v36 = vld [vmem:[#allocation2 + $0x14] sm:$0x1]  ;;  %v356_v38 = vsel %vm6552_vm3, 0, %v355_v35  ;;  %v387_v40 = vld [vmem:[#allocation2 + $0x1c] sm:$0x1] }
  0xd5   : > { %5371 = vmatprep.subr.bf16.mxu1 %v5845_v33  ;;  %v606_v24 = vsel %vm6552_vm3, %v5286_v16, %v605_v7  ;;  %604 = vst [vmem:[#allocation2 + $0x8] sm:$0xf] %v603_v22  ;;  %v521_v27 = vsel %vm489_vm11, %v473_v3, %v505_v21  ;;  %v712_v28 = vor.u32 %v711_v19, %v708_v18  ;;  %v385_v39 = vsel %vm6557_vm4, 0, %v384_v36  ;;  %v4922_v46 = vld [vmem:[%s6527_s10 + $0x1c] sm:$0x1]  ;;  %v5852_v13 = vld [vmem:[#allocation9 + $0x180] sm:$0xff]  }
  0xd6   : > { %5332 = vmatpush3.bf16.msra.mxu0 %v5844_v32  ;;  %607 = vst [vmem:[#allocation2 + $0xc] sm:$0x1] %v606_v24  ;;  %v5287_v29 = vpack.c.bf16 %v521_v27, %v521_v27  ;;  %v6609_v32 = vrot.slane %v715_v20, 5  ;;  %357 = vst [vmem:[#allocation2 + $0x18] sm:$0x1] %v356_v38  ;;  %v388_v44 = vsel %vm6557_vm4, 0, %v387_v40  ;;  %v430_v51 = vunpack.c.l.bf16 %v4922_v46 }
  0xd7   : > { %5397 = vmatprep.subr.bf16.mxu0 %v5848_v45  ;;  %v608_v30 = vld [vmem:[#allocation2 + $0x10] sm:$0xf]  ;;  %v6624_v42 = vrot.slane %v712_v28, 4  ;;  %386 = vst [vmem:[#allocation2 + $0x14] sm:$0x1] %v385_v39  ;;  %v5855_v24 = vld [vmem:[#allocation9 + $0x1c8] sm:$0xff]  }
  0xd8   : > { %5372 = vmatpush3.bf16.msra.mxu1 %v5846_v41  ;;  %v609_v33 = vsel %vm6601_vm10, %v5287_v29, %v608_v30  ;;  %v4920_v41 = vld [vmem:[%s6527_s10 + $0x14] sm:$0x1]  ;;  %v4921_v45 = vld [vmem:[%s6527_s10 + $0x18] ss:$8 sps:$4 sm:$0xff]   ;;  %389 = vst [vmem:[#allocation2 + $0x1c] sm:$0x1] %v388_v44  ;;  %v453_v63 = vmul.f32 %v6571_v48, %v430_v51 }
  0xd9   : > { %5437 = vmatprep.subr.bf16.mxu1 %v5851_v62  ;;  %610 = vst [vmem:[#allocation2 + $0x10] sm:$0xf] %v609_v33  ;;  %v428_v47 = vunpack.c.l.bf16 %v4920_v41  ;;  %v429_v50 = vunpack.c.l.bf16 %v4921_v45  ;;  %v431_v52 = vunpack.c.h.bf16 %v4921_v45  ;;  %v875_v62 = vsel %vm6627_vm15, %v4959_v31, %v874_v34  ;;  %v5850_v30 = vld [vmem:[#allocation9 + $0x100] sm:$0xff]   ;;  %v5853_v38 = vld [vmem:[#allocation9 + $0x148] sm:$0xff]   ;;  %v5861_v51 = vld [vmem:[#allocation9 + $0x1d0] sm:$0xff]  }
  0xda   : > { %v718_v2 = vsel %vm6615_vm14, %v6624_v42, %v6609_v32  ;;  %v476_v9 = vadd.f32 %v6573_v49, %v453_v63  ;;  %v358_v35 = vld [vmem:[#allocation2 + $0x20] sm:$0x1]  ;;  %v5856_v41 = vld [vmem:[#allocation9 + $0x188] sm:$0xff]   ;;  %v5155_v25 = vld [vmem:[%s6527_s10 + $0x14] sm:$0x1] }
  0xdb   : > { %v451_v55 = vmul.f32 %v6571_v48, %v428_v47  ;;  %v452_v59 = vmul.f32 %v6571_v48, %v429_v50  ;;  %v454_v1 = vmul.f32 %v6571_v48, %v431_v52  ;;  %v359_v42 = vsel %vm6552_vm3, 0, %v358_v35  ;;  %v4549_v43 = vld [vmem:[%s6545_s28 + $0x8] sm:$0x1] }
  0xdc   : > { %v688_v53 = vld [vmem:[#allocation2 + $0x8] sm:$0xf]  ;;  %vm492_vm2 = vcmp.gt.f32.partialorder %v476_v9, 0.0  ;;  %v508_v26 = vmul.f32 0.1, %v476_v9 }
  0xdd   : > { %v689_v54 = vld [vmem:[#allocation2 + $0xc] sm:$0x1]  ;;  %v720_v56 = vshrl.u32 %v688_v53, 16  ;;  %v723_v57 = vshll.u32 %v688_v53, 16  ;;  %v839_v60 = vld [vmem:[#allocation2 + $0x8] sm:$0xe]  ;;  %v474_v0 = vadd.f32 %v6573_v49, %v451_v55  ;;  %v475_v8 = vadd.f32 %v6573_v49, %v452_v59 }
  0xde   : > { %v729_v58 = vshll.u32 %v689_v54, 16  ;;  %v840_v61 = vld [vmem:[#allocation2 + $0xc] sm:$0x1]  ;;  %v4960_v5 = vrot.slane %v839_v60, 9  ;;  %v611_v15 = vld [vmem:[#allocation2 + $0x14] sm:$0x1]  ;;  %v477_v16 = vadd.f32 %v6573_v49, %v454_v1  ;;  %v524_v39 = vsel %vm492_vm2, %v476_v9, %v508_v26 }
  0xdf   : > { %v722_v3 = vrot.slane %v720_v56, 4  ;;  %v725_v4 = vrot.slane %v723_v57, 5  ;;  %v878_v7 = vrot.slane %v840_v61, 5  ;;  %vm490_vm0 = vcmp.gt.f32.partialorder %v474_v0, 0.0  ;;  %v614_v19 = vld [vmem:[#allocation2 + $0x18] sm:$0xf] }
  0xe0   : > { %v5849_v6 = vld [vmem:[#allocation2 + $0x8] ss:$8 sps:$4 sm:$0xff]   ;;  %v731_v12 = vrot.slane %v729_v58, 5  ;;  %v506_v14 = vmul.f32 0.1, %v474_v0  ;;  %vm491_vm1 = vcmp.gt.f32.partialorder %v475_v8, 0.0  ;;  %v5290_v45 = vpack.c.bf16 %v524_v39, %v524_v39 }
  0xe1   : > { %v726_v10 = vor.u32 %v725_v4, %v722_v3  ;;  %2177 = vmatprep.mubr.bf16.mxu1 %v5849_v6  ;;  %v879_v17 = vsel %vm6627_vm15, %v4960_v5, %v878_v7  ;;  %v507_v18 = vmul.f32 0.1, %v475_v8  ;;  %v5847_v21 = vld [vmem:[#allocation2] ss:$8 sps:$4 sm:$0xff]   ;;  %v617_v28 = vld [vmem:[#allocation2 + $0x1c] sm:$0x1] }
  0xe2   : > { %v4967_v22 = vcombine.low %v875_v62, %v879_v17  ;;  %v522_v27 = vsel %vm490_vm0, %v474_v0, %v506_v14  ;;  %v690_v29 = vld [vmem:[#allocation2 + $0x10] sm:$0xf]  ;;  %360 = vst [vmem:[#allocation2 + $0x20] sm:$0x1] %v359_v42  ;;  %vm493_vm5 = vcmp.gt.f32.partialorder %v477_v16, 0.0  ;;  %v5854_v55 = vld [vmem:[#allocation9 + $0x108] sm:$0xff]   ;;  %v618_v56 = vsel %vm6552_vm3, %v5290_v45, %v617_v28 }
  0xe3   : > { %v727_v20 = vrot.slane %v726_v10, 4  ;;  %v523_v31 = vsel %vm491_vm1, %v475_v8, %v507_v18  ;;  %v5288_v32 = vpack.c.bf16 %v522_v27, %v522_v27  ;;  %v734_v33 = vshrl.u32 %v690_v29, 16  ;;  %v6659_v50 = vld [vmem:[#allocation2 + $0x10] sm:$0xe]  ;;  %619 = vst [vmem:[#allocation2 + $0x1c] sm:$0x1] %v618_v56 }
  0xe4   : > { %v737_v34 = vshll.u32 %v690_v29, 16  ;;  %2178 = vmatmul.mubr.bf16.vlgmr.msra.gmra.mrb[0].mxu1 %v4967_v22  ;;  %v5289_v40 = vpack.c.bf16 %v523_v31, %v523_v31  ;;  %v509_v54 = vmul.f32 0.1, %v477_v16  ;;  %v5858_v58 = vld [vmem:[#allocation9 + $0x150] sm:$0xff]   ;;  %v4961_v61 = vrot.slane %v6659_v50, 9  ;;  %v5865_v0 = vld [vmem:[#allocation9 + $0x1d8] sm:$0xff]  }
  0xe5   : > { %v732_v36 = vsel %vm6615_vm14, %v727_v20, %v731_v12  ;;  %5438 = vmatpush3.bf16.msra.mxu1 %v5852_v13  ;;  %v612_v46 = vsel %vm6552_vm3, %v5288_v32, %v611_v15  ;;  %v736_v47 = vrot.slane %v734_v33, 4  ;;  %v5862_v62 = vld [vmem:[#allocation9 + $0x190] sm:$0xff]   ;;  %v361_v1 = vld [vmem:[#allocation2 + $0x28] sm:$0x1]  ;;  %v390_v4 = vld [vmem:[#allocation2 + $0x24] sm:$0x1] }
  0xe6   : > { %v4955_v44 = vcombine.low %v718_v2, %v732_v36  ;;  %5439 = vmatprep.subr.bf16.mxu1 %v5855_v24  ;;  %613 = vst [vmem:[#allocation2 + $0x14] sm:$0x1] %v612_v46  ;;  %v615_v52 = vsel %vm6601_vm10, %v5289_v40, %v614_v19  ;;  %v739_v53 = vrot.slane %v737_v34, 5  ;;  %v525_v59 = vsel %vm493_vm5, %v477_v16, %v509_v54  ;;  %v5860_v2 = vld [vmem:[#allocation9 + $0x110] sm:$0xff]   ;;  %v393_v5 = vld [vmem:[#allocation2 + $0x2c] sm:$0x1] }
  0xe7   : > { %616 = vst [vmem:[#allocation2 + $0x18] sm:$0xf] %v615_v52  ;;  %v5291_v60 = vpack.c.bf16 %v525_v59, %v525_v59  ;;  %v362_v3 = vsel %vm6552_vm3, 0, %v361_v1  ;;  %v5866_v6 = vld [vmem:[#allocation9 + $0x198] sm:$0xff]   ;;  %v391_v9 = vsel %vm6557_vm4, 0, %v390_v4  ;;  %v394_v10 = vsel %vm6557_vm4, 0, %v393_v5 }
  0xe8   : > { %2112 = vmatprep.mubr.bf16.mxu0 %v4955_v44  ;;  %v740_v57 = vor.u32 %v739_v53, %v736_v47  ;;  %v5863_v8 = vld [vmem:[#allocation9 + $0x158] sm:$0xff]   ;;  %363 = vst [vmem:[#allocation2 + $0x28] sm:$0x1] %v362_v3  ;;  %v4924_v12 = vld [vmem:[%s6527_s10 + $0x24] sm:$0x1] }
  0xe9   : > { %2113 = vmatmul.mubr.bf16.vlgmr.msra.gmra.mrb[0].mxu0 %v5847_v21  ;;  %5440 = vmatpush3.bf16.msra.mxu1 %v5856_v41  ;;  %v620_v7 = vld [vmem:[#allocation2 + $0x20] sm:$0xf]  ;;  %392 = vst [vmem:[#allocation2 + $0x24] sm:$0x1] %v391_v9  ;;  %395 = vst [vmem:[#allocation2 + $0x2c] sm:$0x1] %v394_v10  ;;  %v432_v17 = vunpack.c.l.bf16 %v4924_v12 }
  0xea   : > { %5398 = vmatpush3.bf16.msra.mxu0 %v5850_v30  ;;  %v6666_v63 = vrot.slane %v740_v57, 4  ;;  %5441 = vmatprep.subr.bf16.mxu1 %v5861_v51  ;;  %v621_v14 = vsel %vm6601_vm10, %v5291_v60, %v620_v7  ;;  %v4925_v16 = vld [vmem:[%s6527_s10 + $0x28] ss:$8 sps:$4 sm:$0xff]   ;;  %v693_v22 = vld [vmem:[#allocation2 + $0x1c] sm:$0x1] }
  0xeb   : > { %5399 = vmatprep.subr.bf16.mxu0 %v5853_v38  ;;  %622 = vst [vmem:[#allocation2 + $0x20] sm:$0xf] %v621_v14  ;;  %v433_v21 = vunpack.c.l.bf16 %v4925_v16  ;;  %v5864_v27 = vld [vmem:[#allocation9 + $0x118] sm:$0xff]   ;;  %v455_v28 = vmul.f32 %v6571_v48, %v432_v17  ;;  %v435_v29 = vunpack.c.h.bf16 %v4925_v16  ;;  %v757_v31 = vshll.u32 %v693_v22, 16  ;;  %v5868_v41 = vld [vmem:[#allocation9 + $0x160] sm:$0xff]   ;;  %v5873_v12 = vld [vmem:[#allocation9 + $0x168] sm:$0xff]  }
  0xec   : > { %v844_v38 = vld [vmem:[#allocation2 + $0x1c] sm:$0x1]  ;;  %v5870_v53 = vld [vmem:[#allocation9 + $0x120] sm:$0xff]   ;;  %v364_v16 = vld [vmem:[#allocation2 + $0x30] sm:$0x1] }
  0xed   : > { %v691_v13 = vld [vmem:[#allocation2 + $0x14] sm:$0x1]  ;;  %5442 = vmatpush3.bf16.msra.mxu1 %v5862_v62  ;;  %v456_v34 = vmul.f32 %v6571_v48, %v433_v21  ;;  %v478_v40 = vadd.f32 %v6573_v49, %v455_v28  ;;  %v759_v44 = vrot.slane %v757_v31, 5  ;;  %v886_v45 = vrot.slane %v844_v38, 5  ;;  %v4926_v46 = vld [vmem:[%s6527_s10 + $0x2c] sm:$0x1] }
  0xee   : > { %5400 = vmatpush3.bf16.msra.mxu0 %v5854_v55  ;;  %v842_v15 = vld [vmem:[#allocation2 + $0x14] sm:$0x1]  ;;  %v692_v18 = vld [vmem:[#allocation2 + $0x18] sm:$0xf]  ;;  %v743_v19 = vshll.u32 %v691_v13, 16  ;;  %5443 = vmatprep.subr.bf16.mxu1 %v5865_v0  ;;  %v434_v51 = vunpack.c.l.bf16 %v4926_v46  ;;  %v458_v57 = vmul.f32 %v6571_v48, %v435_v29  ;;  %v5872_v1 = vld [vmem:[#allocation9 + $0x1a0] sm:$0xff]  }
  0xef   : > { %5401 = vmatprep.subr.bf16.mxu0 %v5858_v58  ;;  %v882_v20 = vrot.slane %v842_v15, 5  ;;  %v748_v24 = vshrl.u32 %v692_v18, 16  ;;  %v751_v26 = vshll.u32 %v692_v18, 16  ;;  %v843_v32 = vld [vmem:[#allocation2 + $0x18] sm:$0xe]  ;;  %v479_v47 = vadd.f32 %v6573_v49, %v456_v34  ;;  %v5871_v58 = vld [vmem:[#allocation9 + $0x1e0] sm:$0xff]  }
  0xf0   : > { %v745_v30 = vrot.slane %v743_v19, 5  ;;  %v4962_v39 = vrot.slane %v843_v32, 9  ;;  %vm494_vm6 = vcmp.gt.f32.partialorder %v478_v40, 0.0  ;;  %v510_v52 = vmul.f32 0.1, %v478_v40 }
  0xf1   : > { %v883_v33 = vsel %vm6627_vm15, %v4961_v61, %v882_v20  ;;  %v750_v35 = vrot.slane %v748_v24, 4  ;;  %v753_v36 = vrot.slane %v751_v26, 5  ;;  %5444 = vmatpush3.bf16.msra.mxu1 %v5866_v6  ;;  %vm495_vm7 = vcmp.gt.f32.partialorder %v479_v47, 0.0  ;;  %v623_v56 = vld [vmem:[#allocation2 + $0x24] sm:$0x1] }
  0xf2   : > { %5402 = vmatpush3.bf16.msra.mxu0 %v5860_v2  ;;  %v746_v42 = vsel %vm6615_vm14, %v6666_v63, %v745_v30  ;;  %v887_v54 = vsel %vm6627_vm15, %v4962_v39, %v886_v45  ;;  %v511_v55 = vmul.f32 0.1, %v479_v47  ;;  %v5857_v60 = vld [vmem:[#allocation2 + $0x10] ss:$8 sps:$4 sm:$0xff]   ;;  %v457_v63 = vmul.f32 %v6571_v48, %v434_v51  ;;  %v626_v4 = vld [vmem:[#allocation2 + $0x28] sm:$0xf]  ;;  %5445 = vmatprep.subr.bf16.mxu1 %v5871_v58 }
  0xf3   : > { %5403 = vmatprep.subr.bf16.mxu0 %v5863_v8  ;;  %v754_v50 = vor.u32 %v753_v36, %v750_v35  ;;  %v5859_v61 = vld [vmem:[#allocation2 + $0x18] ss:$8 sps:$4 sm:$0xff]   ;;  %v4968_v62 = vcombine.low %v883_v33, %v887_v54  ;;  %v526_v0 = vsel %vm494_vm6, %v478_v40, %v510_v52  ;;  %v481_v6 = vadd.f32 %v6573_v49, %v458_v57  ;;  %v629_v26 = vld [vmem:[#allocation2 + $0x2c] sm:$0x1]  ;;  %v396_v36 = vld [vmem:[#allocation2 + $0x34] sm:$0x1] }
  0xf4   : > { %v527_v2 = vsel %vm495_vm7, %v479_v47, %v511_v55  ;;  %v5292_v3 = vpack.c.bf16 %v526_v0, %v526_v0  ;;  %v694_v5 = vld [vmem:[#allocation2 + $0x20] sm:$0xf]  ;;  %2185 = vmatprep.mubr.bf16.mxu1 %v5859_v61  ;;  %v480_v8 = vadd.f32 %v6573_v49, %v457_v63  ;;  %v365_v21 = vsel %vm6552_vm3, 0, %v364_v16  ;;  %v5874_v30 = vld [vmem:[#allocation9 + $0x128] sm:$0xff]   ;;  %v367_v35 = vld [vmem:[#allocation2 + $0x38] sm:$0x1] }
  0xf5   : > { %v755_v59 = vrot.slane %v754_v50, 4  ;;  %v5293_v9 = vpack.c.bf16 %v527_v2, %v527_v2  ;;  %v762_v10 = vshrl.u32 %v694_v5, 16  ;;  %5446 = vmatpush3.bf16.msra.mxu1 %v5872_v1  ;;  %v765_v15 = vshll.u32 %v694_v5, 16  ;;  %366 = vst [vmem:[#allocation2 + $0x30] sm:$0x1] %v365_v21  ;;  %v5875_v33 = vld [vmem:[#allocation9 + $0x1e8] sm:$0xff]  }
  0xf6   : > { %5404 = vmatpush3.bf16.msra.mxu0 %v5864_v27  ;;  %2186 = vmatmul.mubr.bf16.gmra.mrb[4].mxu1 %v4968_v62  ;;  %v624_v14 = vsel %vm6552_vm3, %v5292_v3, %v623_v56  ;;  %vm497_vm8 = vcmp.gt.f32.partialorder %v481_v6, 0.0  ;;  %vm496_vm9 = vcmp.gt.f32.partialorder %v480_v8, 0.0  ;;  %v512_v17 = vmul.f32 0.1, %v480_v8  ;;  %v845_v29 = vld [vmem:[#allocation2 + $0x20] sm:$0xe] }
  0xf7   : > { %5405 = vmatprep.subr.bf16.mxu0 %v5868_v41  ;;  %v760_v7 = vsel %vm6615_vm14, %v755_v59, %v759_v44  ;;  %625 = vst [vmem:[#allocation2 + $0x24] sm:$0x1] %v624_v14  ;;  %v627_v18 = vsel %vm6601_vm10, %v5293_v9, %v626_v4  ;;  %v764_v19 = vrot.slane %v762_v10, 4  ;;  %v767_v20 = vrot.slane %v765_v15, 5  ;;  %5447 = vmatprep.subr.bf16.mxu1 %v5875_v33  ;;  %v5876_v56 = vld [vmem:[#allocation9 + $0x1a8] sm:$0xff]   ;;  %v5878_v61 = vld [vmem:[#allocation9 + $0x170] sm:$0xff]  }
  0xf8   : > { %v4956_v13 = vcombine.low %v746_v42, %v760_v7  ;;  %628 = vst [vmem:[#allocation2 + $0x28] sm:$0xf] %v627_v18  ;;  %v513_v22 = vmul.f32 0.1, %v481_v6  ;;  %v528_v24 = vsel %vm496_vm9, %v480_v8, %v512_v17  ;;  %v368_v40 = vsel %vm6552_vm3, 0, %v367_v35  ;;  %v5880_v1 = vld [vmem:[#allocation9 + $0x130] sm:$0xff]  }
  0xf9   : > { %v5294_v27 = vpack.c.bf16 %v528_v24, %v528_v24  ;;  %v768_v32 = vor.u32 %v767_v20, %v764_v19  ;;  %v397_v41 = vsel %vm6557_vm4, 0, %v396_v36  ;;  %v4963_v45 = vrot.slane %v845_v29, 9  ;;  %369 = vst [vmem:[#allocation2 + $0x38] sm:$0x1] %v368_v40  ;;  %v4928_v63 = vld [vmem:[%s6527_s10 + $0x34] sm:$0x1]  ;;  %5448 = vmatpush3.bf16.msra.mxu1 %v5876_v56 }
  0xfa   : > { %5406 = vmatpush3.bf16.msra.mxu0 %v5870_v53  ;;  %2120 = vmatprep.mubr.bf16.mxu0 %v4956_v13  ;;  %v529_v28 = vsel %vm497_vm8, %v481_v6, %v513_v22  ;;  %398 = vst [vmem:[#allocation2 + $0x34] sm:$0x1] %v397_v41  ;;  %v4929_v0 = vld [vmem:[%s6527_s10 + $0x38] ss:$8 sps:$4 sm:$0xff]   ;;  %v4930_v5 = vld [vmem:[%s6527_s10 + $0x3c] sm:$0x1]  ;;  %v436_v6 = vunpack.c.l.bf16 %v4928_v63 }
  0xfb   : > { %5407 = vmatprep.subr.bf16.mxu0 %v5873_v12  ;;  %2121 = vmatmul.mubr.bf16.gmra.mrb[4].mxu0 %v5857_v60  ;;  %v630_v31 = vsel %vm6552_vm3, %v5294_v27, %v629_v26  ;;  %v5295_v34 = vpack.c.bf16 %v529_v28, %v529_v28  ;;  %v769_v46 = vrot.slane %v768_v32, 4  ;;  %v399_v60 = vld [vmem:[#allocation2 + $0x3c] sm:$0x1]  ;;  %v437_v7 = vunpack.c.l.bf16 %v4929_v0  ;;  %v5881_v18 = vld [vmem:[#allocation9 + $0x1f0] sm:$0xff]  }
  0xfc   : > { %631 = vst [vmem:[#allocation2 + $0x2c] sm:$0x1] %v630_v31  ;;  %v632_v51 = vld [vmem:[#allocation2 + $0x30] sm:$0xf]  ;;  %v400_v62 = vsel %vm6557_vm4, 0, %v399_v60  ;;  %v439_v8 = vunpack.c.h.bf16 %v4929_v0  ;;  %v438_v13 = vunpack.c.l.bf16 %v4930_v5  ;;  %v459_v15 = vmul.f32 %v6571_v48, %v436_v6  ;;  %5449 = vmatprep.subr.bf16.mxu1 %v5881_v18  ;;  %v5885_v60 = vld [vmem:[#allocation9 + $0x1f8] sm:$0xff]  }
  0xfd   : > { %v633_v54 = vsel %vm6601_vm10, %v5295_v34, %v632_v51  ;;  %401 = vst [vmem:[#allocation2 + $0x3c] sm:$0x1] %v400_v62  ;;  %v460_v16 = vmul.f32 %v6571_v48, %v437_v7  ;;  %v5882_v26 = vld [vmem:[#allocation9 + $0x1b0] sm:$0xff]   ;;  %v5886_v62 = vld [vmem:[#allocation9 + $0x1b8] sm:$0xff]   ;;  %v1109_v5 = vld [vmem:[#allocation2 + $0xc] sm:$0x1] }
  0xfe   : > { %5408 = vmatpush3.bf16.msra.mxu0 %v5874_v30  ;;  %v695_v38 = vld [vmem:[#allocation2 + $0x24] sm:$0x1]  ;;  %634 = vst [vmem:[#allocation2 + $0x30] sm:$0xf] %v633_v54  ;;  %v462_v17 = vmul.f32 %v6571_v48, %v439_v8  ;;  %v461_v24 = vmul.f32 %v6571_v48, %v438_v13  ;;  %v482_v28 = vadd.f32 %v6573_v49, %v459_v15  ;;  %v370_v30 = vld [vmem:[#allocation2 + $0x40] sm:$0x1] }
  0xff   : > { %v846_v39 = vld [vmem:[#allocation2 + $0x24] sm:$0x1]  ;;  %v696_v42 = vld [vmem:[#allocation2 + $0x28] sm:$0xf]  ;;  %v771_v44 = vshll.u32 %v695_v38, 16  ;;  %5409 = vmatprep.subr.bf16.mxu0 %v5878_v61  ;;  %v483_v29 = vadd.f32 %v6573_v49, %v460_v16  ;;  %5450 = vmatpush3.bf16.msra.mxu1 %v5882_v26  ;;  %v5884_v54 = vld [vmem:[#allocation9 + $0x138] sm:$0xff]  }
 0x100   : > { %v776_v47 = vshrl.u32 %v696_v42, 16  ;;  %v779_v50 = vshll.u32 %v696_v42, 16  ;;  %v890_v52 = vrot.slane %v846_v39, 5  ;;  %v847_v55 = vld [vmem:[#allocation2 + $0x28] sm:$0xe]  ;;  %v485_v31 = vadd.f32 %v6573_v49, %v462_v17  ;;  %5451 = vmatprep.subr.bf16.mxu1 %v5885_v60  ;;  %v6744_v6 = vld [vmem:[#allocation9 + $0x200] sm:$0xff]  }
 0x101   : > { %v773_v53 = vrot.slane %v771_v44, 5  ;;  %v4964_v59 = vrot.slane %v847_v55, 9  ;;  %v5867_v21 = vld [vmem:[#allocation2 + $0x20] ss:$8 sps:$4 sm:$0xff]   ;;  %v484_v34 = vadd.f32 %v6573_v49, %v461_v24  ;;  %vm498_vm11 = vcmp.gt.f32.partialorder %v482_v28, 0.0 }
 0x102   : > { %v778_v57 = vrot.slane %v776_v47, 4  ;;  %v781_v58 = vrot.slane %v779_v50, 5  ;;  %v891_v10 = vsel %vm6627_vm15, %v4963_v45, %v890_v52  ;;  %5410 = vmatpush3.bf16.msra.mxu0 %v5880_v1  ;;  %vm499_vm12 = vcmp.gt.f32.partialorder %v483_v29, 0.0  ;;  %v635_v38 = vld [vmem:[#allocation2 + $0x34] sm:$0x1] }
 0x103   : > { %v697_v2 = vld [vmem:[#allocation2 + $0x2c] sm:$0x1]  ;;  %v774_v19 = vsel %vm6615_vm14, %v769_v46, %v773_v53  ;;  %v514_v48 = vmul.f32 0.1, %v482_v28  ;;  %vm500_vm13 = vcmp.gt.f32.partialorder %v484_v34, 0.0  ;;  %v371_v49 = vsel %vm6552_vm3, 0, %v370_v30  ;;  %5452 = vmatpush3.bf16.msra.mxu1 %v5886_v62 }
 0x104   : > { %v782_v3 = vor.u32 %v781_v58, %v778_v57  ;;  %v848_v4 = vld [vmem:[#allocation2 + $0x2c] sm:$0x1]  ;;  %v785_v9 = vshll.u32 %v697_v2, 16  ;;  %v515_v39 = vmul.f32 0.1, %v483_v29  ;;  %vm501_vm0 = vcmp.gt.f32.partialorder %v485_v31, 0.0 }
 0x105   : > { %v894_v12 = vrot.slane %v848_v4, 5  ;;  %v5869_v33 = vld [vmem:[#allocation2 + $0x28] ss:$8 sps:$4 sm:$0xff]   ;;  %v516_v40 = vmul.f32 0.1, %v484_v34  ;;  %v530_v42 = vsel %vm498_vm11, %v482_v28, %v514_v48  ;;  %v5883_v46 = vld [vmem:[#allocation9 + $0x178] sm:$0xff]  }
 0x106   : > { %v783_v14 = vrot.slane %v782_v3, 4  ;;  %v787_v20 = vrot.slane %v785_v9, 5  ;;  %v698_v35 = vld [vmem:[#allocation2 + $0x30] sm:$0xf]  ;;  %2193 = vmatprep.mubr.bf16.mxu1 %v5869_v33  ;;  %v638_v44 = vld [vmem:[#allocation2 + $0x38] sm:$0xf]  ;;  %v531_v47 = vsel %vm499_vm12, %v483_v29, %v515_v39  ;;  %v5296_v51 = vpack.c.bf16 %v530_v42, %v530_v42  ;;  %5411 = vmatprep.subr.bf16.mxu0 %v5883_v46 }
 0x107   : > { %v895_v22 = vsel %vm6627_vm15, %v4964_v59, %v894_v12  ;;  %v790_v41 = vshrl.u32 %v698_v35, 16  ;;  %v793_v45 = vshll.u32 %v698_v35, 16  ;;  %v532_v50 = vsel %vm500_vm13, %v484_v34, %v516_v40  ;;  %v641_v52 = vld [vmem:[#allocation2 + $0x3c] sm:$0x1]  ;;  %372 = vst [vmem:[#allocation2 + $0x40] sm:$0x1] %v371_v49  ;;  %5412 = vmatpush3.bf16.msra.mxu0 %v5884_v54 }
 0x108   : > { %v4969_v27 = vcombine.low %v891_v10, %v895_v22  ;;  %v788_v32 = vsel %vm6615_vm14, %v783_v14, %v787_v20  ;;  %v5297_v55 = vpack.c.bf16 %v531_v47, %v531_v47  ;;  %v5298_v56 = vpack.c.bf16 %v532_v50, %v532_v50  ;;  %v6735_v59 = vld [vmem:[#allocation2 + $0x30] sm:$0xe]  ;;  %v1108_v4 = vld [vmem:[#allocation2 + $0x8] sm:$0xe]  ;;  %v1111_v10 = vld [vmem:[#allocation2 + $0x14] sm:$0x1]  ;;  %5661 = vmatprep.subr.bf16.mxu0 %v6744_v6 }
 0x109   : > { %v4957_v36 = vcombine.low %v774_v19, %v788_v32  ;;  %v792_v53 = vrot.slane %v790_v41, 4  ;;  %v795_v57 = vrot.slane %v793_v45, 5  ;;  %v517_v58 = vmul.f32 0.1, %v485_v31  ;;  %v1110_v9 = vld [vmem:[#allocation2 + $0x10] sm:$0xe] }
 0x10a   : > { %2194 = vmatmul.mubr.bf16.gmra.mrb[8].mxu1 %v4969_v27  ;;  %v636_v61 = vsel %vm6552_vm3, %v5296_v51, %v635_v38  ;;  %v639_v63 = vsel %vm6601_vm10, %v5297_v55, %v638_v44  ;;  %v642_v0 = vsel %vm6552_vm3, %v5298_v56, %v641_v52  ;;  %v4965_v8 = vrot.slane %v6735_v59, 9  ;;  %v960_v16 = vld [vmem:[#allocation2 + $0x8] sm:$0xf]  ;;  %v961_v17 = vld [vmem:[#allocation2 + $0xc] sm:$0x1] }
 0x10b   : > { %2128 = vmatprep.mubr.bf16.mxu0 %v4957_v36  ;;  %637 = vst [vmem:[#allocation2 + $0x34] sm:$0x1] %v636_v61  ;;  %v796_v1 = vor.u32 %v795_v57, %v792_v53  ;;  %v533_v2 = vsel %vm501_vm0, %v485_v31, %v517_v58  ;;  %640 = vst [vmem:[#allocation2 + $0x38] sm:$0xf] %v639_v63  ;;  %v4979_v13 = vrot.slane %v1108_v4, 9  ;;  %v1142_v14 = vrot.slane %v1109_v5, 5 }
 0x10c   : > { %2129 = vmatmul.mubr.bf16.gmra.mrb[8].mxu0 %v5867_v21  ;;  %643 = vst [vmem:[#allocation2 + $0x3c] sm:$0x1] %v642_v0  ;;  %v5299_v3 = vpack.c.bf16 %v533_v2, %v533_v2  ;;  %v4980_v18 = vrot.slane %v1110_v9, 9  ;;  %v1146_v19 = vrot.slane %v1111_v10, 5  ;;  %v962_v20 = vld [vmem:[#allocation2 + $0x10] sm:$0xf] }
 0x10d   : > { %v6746_v7 = vrot.slane %v796_v1, 4  ;;  %v977_v21 = vshrl.u32 %v960_v16, 16  ;;  %v980_v22 = vshll.u32 %v960_v16, 16  ;;  %v986_v27 = vshll.u32 %v961_v17, 16  ;;  %v963_v39 = vld [vmem:[#allocation2 + $0x14] sm:$0x1] }
 0x10e   : > { %v644_v12 = vld [vmem:[#allocation2 + $0x40] sm:$0xf]  ;;  %v991_v28 = vshrl.u32 %v962_v20, 16  ;;  %v1143_v38 = vsel %vm6627_vm15, %v4979_v13, %v1142_v14  ;;  %v1147_v50 = vsel %vm6627_vm15, %v4980_v18, %v1146_v19  ;;  %v994_v57 = vshll.u32 %v962_v20, 16  ;;  %v1229_v60 = vld [vmem:[#allocation2 + $0x10] sm:$0xf] }
 0x10f   : > { %v645_v15 = vsel %vm6601_vm10, %v5299_v3, %v644_v12  ;;  %v979_v36 = vrot.slane %v977_v21, 4  ;;  %v982_v40 = vrot.slane %v980_v22, 5  ;;  %v988_v49 = vrot.slane %v986_v27, 5  ;;  %v1230_v1 = vld [vmem:[#allocation2 + $0x14] sm:$0x1] }
 0x110   : > { %646 = vst [vmem:[#allocation2 + $0x40] sm:$0xf] %v645_v15  ;;  %v993_v52 = vrot.slane %v991_v28, 4  ;;  %v1000_v59 = vshll.u32 %v963_v39, 16  ;;  %v996_v0 = vrot.slane %v994_v57, 5  ;;  %v4987_v4 = vcombine.low %v1143_v38, %v1147_v50 }
 0x111   : > { %v983_v51 = vor.u32 %v982_v40, %v979_v36  ;;  %v1231_v2 = vld [vmem:[#allocation2 + $0x18] sm:$0xf]  ;;  %v1246_v9 = vshrl.u32 %v1229_v60, 16  ;;  %v1249_v14 = vshll.u32 %v1229_v60, 16  ;;  %v965_v40 = vld [vmem:[#allocation2 + $0x1c] sm:$0x1] }
 0x112   : > { %v699_v24 = vld [vmem:[#allocation2 + $0x34] sm:$0x1]  ;;  %v700_v29 = vld [vmem:[#allocation2 + $0x38] sm:$0xf]  ;;  %v1002_v5 = vrot.slane %v1000_v59, 5  ;;  %v997_v13 = vor.u32 %v996_v0, %v993_v52  ;;  %v1260_v17 = vshrl.u32 %v1231_v2, 16 }
 0x113   : > { %v850_v26 = vld [vmem:[#allocation2 + $0x34] sm:$0x1]  ;;  %v701_v30 = vld [vmem:[#allocation2 + $0x3c] sm:$0x1]  ;;  %v799_v31 = vshll.u32 %v699_v24, 16  ;;  %v804_v33 = vshrl.u32 %v700_v29, 16 }
 0x114   : > { %v898_v32 = vrot.slane %v850_v26, 5  ;;  %v807_v34 = vshll.u32 %v700_v29, 16  ;;  %v813_v35 = vshll.u32 %v701_v30, 16  ;;  %v851_v45 = vld [vmem:[#allocation2 + $0x38] sm:$0xe]  ;;  %v984_v58 = vrot.slane %v983_v51, 4 }
 0x115   : > { %v801_v48 = vrot.slane %v799_v31, 5  ;;  %v806_v41 = vrot.slane %v804_v33, 4  ;;  %v852_v46 = vld [vmem:[#allocation2 + $0x3c] sm:$0x1]  ;;  %v4966_v47 = vrot.slane %v851_v45, 9  ;;  %v1248_v16 = vrot.slane %v1246_v9, 4 }
 0x116   : > { %v809_v42 = vrot.slane %v807_v34, 5  ;;  %v815_v44 = vrot.slane %v813_v35, 5  ;;  %v899_v55 = vsel %vm6627_vm15, %v4965_v8, %v898_v32  ;;  %v902_v56 = vrot.slane %v852_v46, 5  ;;  %v1232_v8 = vld [vmem:[#allocation2 + $0x1c] sm:$0x1] }
 0x117   : > { %v5879_v54 = vld [vmem:[#allocation2 + $0x38] ss:$8 sps:$4 sm:$0xff]   ;;  %v802_v61 = vsel %vm6615_vm14, %v6746_v7, %v801_v48  ;;  %v1255_v7 = vshll.u32 %v1230_v1, 16  ;;  %v1263_v18 = vshll.u32 %v1231_v2, 16  ;;  %v998_v19 = vrot.slane %v997_v13, 4  ;;  %v5889_v1 = vld [vmem:[#allocation9 + $0x208] sm:$0xff]  }
 0x118   : > { %v810_v53 = vor.u32 %v809_v42, %v806_v41  ;;  %2201 = vmatprep.mubr.bf16.mxu1 %v5879_v54  ;;  %v903_v63 = vsel %vm6627_vm15, %v4966_v47, %v902_v56  ;;  %v5877_v12 = vld [vmem:[#allocation2 + $0x30] ss:$8 sps:$4 sm:$0xff]   ;;  %v1251_v20 = vrot.slane %v1249_v14, 5  ;;  %v1269_v22 = vshll.u32 %v1232_v8, 16  ;;  %v1113_v29 = vld [vmem:[#allocation2 + $0x1c] sm:$0x1] }
 0x119   : > { %v4970_v3 = vcombine.low %v899_v55, %v903_v63  ;;  %v1257_v21 = vrot.slane %v1255_v7, 5  ;;  %v989_v24 = vsel %vm6615_vm14, %v984_v58, %v988_v49  ;;  %v1262_v26 = vrot.slane %v1260_v17, 4  ;;  %v1112_v28 = vld [vmem:[#allocation2 + $0x18] sm:$0xe]  ;;  %v1114_v33 = vld [vmem:[#allocation2 + $0x20] sm:$0xe] }
 0x11a   : > { %v811_v62 = vrot.slane %v810_v53, 4  ;;  %v1265_v27 = vrot.slane %v1263_v18, 5  ;;  %v1003_v30 = vsel %vm6615_vm14, %v998_v19, %v1002_v5  ;;  %v1252_v31 = vor.u32 %v1251_v20, %v1248_v16  ;;  %v1115_v34 = vld [vmem:[#allocation2 + $0x24] sm:$0x1]  ;;  %v964_v39 = vld [vmem:[#allocation2 + $0x18] sm:$0xf] }
 0x11b   : > { %2202 = vmatmul.mubr.bf16.gmra.mrb[12].mxu1 %v4970_v3  ;;  %v1271_v32 = vrot.slane %v1269_v22, 5  ;;  %v4981_v35 = vrot.slane %v1112_v28, 9  ;;  %v1150_v48 = vrot.slane %v1113_v29, 5  ;;  %v4982_v38 = vrot.slane %v1114_v33, 9  ;;  %v966_v45 = vld [vmem:[#allocation2 + $0x20] sm:$0xf] }
 0x11c   : > { %v816_v10 = vsel %vm6615_vm14, %v811_v62, %v815_v44  ;;  %v1266_v36 = vor.u32 %v1265_v27, %v1262_v26  ;;  %v4975_v41 = vcombine.low %v989_v24, %v1003_v30  ;;  %v1253_v42 = vrot.slane %v1252_v31, 4  ;;  %v967_v49 = vld [vmem:[#allocation2 + $0x24] sm:$0x1]  ;;  %v5888_v47 = vld [vmem:[#allocation2 + $0x10] ss:$8 sps:$4 sm:$0xff]  }
 0x11d   : > { %v4958_v15 = vcombine.low %v802_v61, %v816_v10  ;;  %v1154_v44 = vrot.slane %v1115_v34, 5  ;;  %v1151_v50 = vsel %vm6627_vm15, %v4981_v35, %v1150_v48  ;;  %v1005_v51 = vshrl.u32 %v964_v39, 16  ;;  %v1233_v57 = vld [vmem:[#allocation2 + $0x20] sm:$0xf]  ;;  %v1234_v62 = vld [vmem:[#allocation2 + $0x24] sm:$0x1] }
 0x11e   : > { %v1267_v46 = vrot.slane %v1266_v36, 4  ;;  %v1008_v52 = vshll.u32 %v964_v39, 16  ;;  %v1258_v53 = vsel %vm6615_vm14, %v1253_v42, %v1257_v21  ;;  %v1014_v55 = vshll.u32 %v965_v40, 16  ;;  %v1235_v63 = vld [vmem:[#allocation2 + $0x28] sm:$0xf]  ;;  %v5890_v21 = vld [vmem:[#allocation9 + $0x210] sm:$0xff]  }
 0x11f   : > { %2136 = vmatprep.mubr.bf16.mxu0 %v4958_v15  ;;  %v1155_v54 = vsel %vm6627_vm15, %v4982_v38, %v1154_v44  ;;  %v1019_v56 = vshrl.u32 %v966_v45, 16  ;;  %v1007_v60 = vrot.slane %v1005_v51, 4  ;;  %v1236_v5 = vld [vmem:[#allocation2 + $0x2c] sm:$0x1]  ;;  %v1028_v9 = vshll.u32 %v967_v49, 16 }
 0x120   : > { %2137 = vmatmul.mubr.bf16.gmra.mrb[12].mxu0 %v5877_v12  ;;  %v1272_v58 = vsel %vm6615_vm14, %v1267_v46, %v1271_v32  ;;  %v4988_v59 = vcombine.low %v1151_v50, %v1155_v54  ;;  %v1010_v61 = vrot.slane %v1008_v52, 5  ;;  %v1016_v2 = vrot.slane %v1014_v55, 5  ;;  %v1116_v29 = vld [vmem:[#allocation2 + $0x28] sm:$0xe]  ;;  %v1117_v32 = vld [vmem:[#allocation2 + $0x2c] sm:$0x1] }
 0x121   : > { %2242 = vmatprep.mubr.bf16.mxu0 %v4987_v4  ;;  %v4995_v0 = vcombine.low %v1258_v53, %v1272_v58  ;;  %v1021_v3 = vrot.slane %v1019_v56, 4  ;;  %v1022_v4 = vshll.u32 %v966_v45, 16  ;;  %v1274_v10 = vshrl.u32 %v1233_v57, 16  ;;  %v1118_v33 = vld [vmem:[#allocation2 + $0x30] sm:$0xe]  ;;  %v5892_v50 = vld [vmem:[#allocation9 + $0x218] sm:$0xff]  }
 0x122   : > { %v1011_v8 = vor.u32 %v1010_v61, %v1007_v60  ;;  %v1277_v12 = vshll.u32 %v1233_v57, 16  ;;  %v1283_v14 = vshll.u32 %v1234_v62, 16  ;;  %v1288_v7 = vshrl.u32 %v1235_v63, 16  ;;  %v1119_v48 = vld [vmem:[#allocation2 + $0x34] sm:$0x1] }
 0x123   : > { %2307 = vmatprep.mubr.bf16.mxu1 %v4995_v0  ;;  %v1024_v13 = vrot.slane %v1022_v4, 5  ;;  %v1291_v15 = vshll.u32 %v1235_v63, 16  ;;  %v1276_v17 = vrot.slane %v1274_v10, 4  ;;  %v1030_v20 = vrot.slane %v1028_v9, 5  ;;  %v5891_v42 = vld [vmem:[#allocation2 + $0x20] ss:$8 sps:$4 sm:$0xff]  }
 0x124   : > { %2308 = vmatmul.mubr.bf16.vlgmr.msra.gmra.mrb[16].mxu1 %v5888_v47  ;;  %v1012_v16 = vrot.slane %v1011_v8, 4  ;;  %v1279_v18 = vrot.slane %v1277_v12, 5  ;;  %v1290_v22 = vrot.slane %v1288_v7, 4  ;;  %v1285_v27 = vrot.slane %v1283_v14, 5  ;;  %v968_v45 = vld [vmem:[#allocation2 + $0x28] sm:$0xf] }
 0x125   : > { %v1025_v19 = vor.u32 %v1024_v13, %v1021_v3  ;;  %v1293_v24 = vrot.slane %v1291_v15, 5  ;;  %v1297_v28 = vshll.u32 %v1236_v5, 16  ;;  %v4983_v34 = vrot.slane %v1116_v29, 9  ;;  %v969_v49 = vld [vmem:[#allocation2 + $0x2c] sm:$0x1]  ;;  %v5893_v4 = vld [vmem:[#allocation9 + $0x220] sm:$0xff]  }
 0x126   : > { %v1280_v26 = vor.u32 %v1279_v18, %v1276_v17  ;;  %v1017_v30 = vsel %vm6615_vm14, %v1012_v16, %v1016_v2  ;;  %v1158_v38 = vrot.slane %v1117_v32, 5  ;;  %v4984_v39 = vrot.slane %v1118_v33, 9  ;;  %v970_v52 = vld [vmem:[#allocation2 + $0x30] sm:$0xf]  ;;  %v971_v53 = vld [vmem:[#allocation2 + $0x34] sm:$0x1] }
 0x127   : > { %v1026_v31 = vrot.slane %v1025_v19, 4  ;;  %v1299_v36 = vrot.slane %v1297_v28, 5  ;;  %v1162_v44 = vrot.slane %v1119_v48, 5  ;;  %v1033_v54 = vshrl.u32 %v968_v45, 16  ;;  %v1237_v63 = vld [vmem:[#allocation2 + $0x30] sm:$0xf] }
 0x128   : > { %2243 = vmatmul.mubr.bf16.vlgmr.msra.gmra.mrb[16].mxu0 %v4975_v41  ;;  %v1281_v35 = vrot.slane %v1280_v26, 4  ;;  %v1159_v51 = vsel %vm6627_vm15, %v4983_v34, %v1158_v38  ;;  %v1036_v57 = vshll.u32 %v968_v45, 16  ;;  %v1042_v58 = vshll.u32 %v969_v49, 16  ;;  %v1238_v0 = vld [vmem:[#allocation2 + $0x34] sm:$0x1] }
 0x129   : > { %5662 = vmatpush3.bf16.msra.mxu0 %v6744_v6  ;;  %2250 = vmatprep.mubr.bf16.mxu0 %v4988_v59  ;;  %v1294_v6 = vor.u32 %v1293_v24, %v1290_v22  ;;  %v1031_v40 = vsel %vm6615_vm14, %v1026_v31, %v1030_v20  ;;  %v1163_v56 = vsel %vm6627_vm15, %v4984_v39, %v1162_v44  ;;  %v1035_v61 = vrot.slane %v1033_v54, 4  ;;  %v1239_v5 = vld [vmem:[#allocation2 + $0x38] sm:$0xf]  ;;  %v1240_v9 = vld [vmem:[#allocation2 + $0x3c] sm:$0x1] }
 0x12a   : > { %5663 = vmatprep.subr.bf16.mxu0 %v5889_v1  ;;  %v4976_v46 = vcombine.low %v1017_v30, %v1031_v40  ;;  %v1286_v47 = vsel %vm6615_vm14, %v1281_v35, %v1285_v27  ;;  %v4989_v60 = vcombine.low %v1159_v51, %v1163_v56  ;;  %v1047_v62 = vshrl.u32 %v970_v52, 16  ;;  %v5895_v27 = vld [vmem:[#allocation9 + $0x228] sm:$0xff]   ;;  %v402_v33 = vld [vmem:[#allocation2 + $0x44] sm:$0x1]  ;;  %v972_v40 = vld [vmem:[#allocation2 + $0x38] sm:$0xf] }
 0x12b   : > { %v1295_v41 = vrot.slane %v1294_v6, 4  ;;  %v1050_v2 = vshll.u32 %v970_v52, 16  ;;  %v1056_v3 = vshll.u32 %v971_v53, 16  ;;  %v1302_v10 = vshrl.u32 %v1237_v63, 16  ;;  %v4932_v34 = vld [vmem:[%s6527_s10 + $0x44] sm:$0x1] }
 0x12c   : > { %v1049_v8 = vrot.slane %v1047_v62, 4  ;;  %v1305_v12 = vshll.u32 %v1237_v63, 16  ;;  %v1311_v13 = vshll.u32 %v1238_v0, 16  ;;  %v1044_v7 = vrot.slane %v1042_v58, 5  ;;  %v5894_v45 = vld [vmem:[#allocation2 + $0x30] ss:$8 sps:$4 sm:$0xff]  }
 0x12d   : > { %5664 = vmatpush3.bf16.msra.mxu0 %v5889_v1  ;;  %v1300_v55 = vsel %vm6615_vm14, %v1295_v41, %v1299_v36  ;;  %v1038_v1 = vrot.slane %v1036_v57, 5  ;;  %v1052_v15 = vrot.slane %v1050_v2, 5  ;;  %v1316_v16 = vshrl.u32 %v1239_v5, 16  ;;  %v5983_v49 = vld [vmem:[#allocation12] ss:$0 sm:$0xff] }
 0x12e   : > { %5665 = vmatprep.subr.bf16.mxu0 %v5890_v21  ;;  %v4996_v59 = vcombine.low %v1286_v47, %v1300_v55  ;;  %v1058_v17 = vrot.slane %v1056_v3, 5  ;;  %v1304_v18 = vrot.slane %v1302_v10, 4  ;;  %v1307_v19 = vrot.slane %v1305_v12, 5  ;;  %v974_v47 = vld [vmem:[#allocation2 + $0x40] sm:$0xf] }
 0x12f   : > { %v1039_v14 = vor.u32 %v1038_v1, %v1035_v61  ;;  %v1319_v20 = vshll.u32 %v1239_v5, 16  ;;  %v1053_v22 = vor.u32 %v1052_v15, %v1049_v8  ;;  %v1318_v24 = vrot.slane %v1316_v16, 4  ;;  %v973_v51 = vld [vmem:[#allocation2 + $0x3c] sm:$0x1]  ;;  %v5984_v55 = vld [vmem:[#allocation14] ss:$0 sm:$0xff] }
 0x130   : > { %2251 = vmatmul.mubr.bf16.gmra.mrb[20].mxu0 %v4976_v46  ;;  %2315 = vmatprep.mubr.bf16.mxu1 %v4996_v59  ;;  %v1325_v26 = vshll.u32 %v1240_v9, 16  ;;  %v1308_v28 = vor.u32 %v1307_v19, %v1304_v18  ;;  %v1313_v29 = vrot.slane %v1311_v13, 5  ;;  %v403_v48 = vsel %vm6557_vm4, 0, %v402_v33  ;;  %v6801_v57 = vld [vmem:[#allocation2 + $0x38] sm:$0xe] }
 0x131   : > { %5666 = vmatpush3.bf16.msra.mxu0 %v5890_v21  ;;  %2316 = vmatmul.mubr.bf16.gmra.mrb[20].mxu1 %v5891_v42  ;;  %v1040_v21 = vrot.slane %v1039_v14, 4  ;;  %v1321_v30 = vrot.slane %v1319_v20, 5  ;;  %v1054_v6 = vrot.slane %v1053_v22, 4  ;;  %v440_v38 = vunpack.c.l.bf16 %v4932_v34  ;;  %404 = vst [vmem:[#allocation2 + $0x44] sm:$0x1] %v403_v48  ;;  %v5898_v1 = vld [vmem:[#allocation9 + $0x238] sm:$0xff]  }
 0x132   : > { %5667 = vmatprep.subr.bf16.mxu0 %v5892_v50  ;;  %2258 = vmatprep.mubr.bf16.mxu0 %v4989_v60  ;;  %v1327_v32 = vrot.slane %v1325_v26, 5  ;;  %v1309_v35 = vrot.slane %v1308_v28, 4  ;;  %v1061_v52 = vshrl.u32 %v972_v40, 16  ;;  %v1064_v53 = vshll.u32 %v972_v40, 16  ;;  %v373_v59 = vld [vmem:[#allocation2 + $0x48] sm:$0x1] }
 0x133   : > { %v1045_v31 = vsel %vm6615_vm14, %v1040_v21, %v1044_v7  ;;  %v1322_v36 = vor.u32 %v1321_v30, %v1318_v24  ;;  %v1059_v39 = vsel %vm6615_vm14, %v1054_v6, %v1058_v17  ;;  %v463_v46 = vmul.f32 %v5983_v49, %v440_v38  ;;  %v405_v0 = vld [vmem:[#allocation2 + $0x4c] sm:$0x1]  ;;  %v6803_v3 = vld [vmem:[#allocation2 + $0x3c] sm:$0x1]  ;;  %v1241_v13 = vld [vmem:[#allocation2 + $0x40] sm:$0xf] }
 0x134   : > { %v4977_v41 = vcombine.low %v1045_v31, %v1059_v39  ;;  %v1314_v42 = vsel %vm6615_vm14, %v1309_v35, %v1313_v29  ;;  %v1075_v58 = vshrl.u32 %v974_v47, 16  ;;  %v1063_v61 = vrot.slane %v1061_v52, 4  ;;  %v1377_v24 = vld [vmem:[#allocation2 + $0x10] sm:$0xe]  ;;  %v1378_v26 = vld [vmem:[#allocation2 + $0x14] sm:$0x1] }
 0x135   : > { %5668 = vmatpush3.bf16.msra.mxu0 %v5892_v50  ;;  %v1323_v44 = vrot.slane %v1322_v36, 4  ;;  %v5896_v50 = vld [vmem:[#allocation9 + $0x230] sm:$0xff]   ;;  %v486_v56 = vadd.f32 %v5984_v55, %v463_v46  ;;  %v1066_v62 = vrot.slane %v1064_v53, 5  ;;  %v1078_v63 = vshll.u32 %v974_v47, 16  ;;  %v1379_v30 = vld [vmem:[#allocation2 + $0x18] sm:$0xe] }
 0x136   : > { %5669 = vmatprep.subr.bf16.mxu0 %v5893_v4  ;;  %v1077_v5 = vrot.slane %v1075_v58, 4  ;;  %v1070_v8 = vshll.u32 %v973_v51, 16  ;;  %v374_v10 = vsel %vm6552_vm3, 0, %v373_v59  ;;  %v406_v12 = vsel %vm6557_vm4, 0, %v405_v0  ;;  %v1380_v31 = vld [vmem:[#allocation2 + $0x1c] sm:$0x1] }
 0x137   : > { %v1328_v54 = vsel %vm6615_vm14, %v1323_v44, %v1327_v32  ;;  %vm502_vm1 = vcmp.gt.f32.partialorder %v486_v56, 0.0  ;;  %v518_v2 = vmul.f32 0.1, %v486_v56  ;;  %v1080_v9 = vrot.slane %v1078_v63, 5  ;;  %375 = vst [vmem:[#allocation2 + $0x48] sm:$0x1] %v374_v10 }
 0x138   : > { %2259 = vmatmul.mubr.bf16.gmra.mrb[24].mxu0 %v4977_v41  ;;  %v4997_v60 = vcombine.low %v1314_v42, %v1328_v54  ;;  %v647_v7 = vld [vmem:[#allocation2 + $0x44] sm:$0x1]  ;;  %v1067_v15 = vor.u32 %v1066_v62, %v1063_v61  ;;  %407 = vst [vmem:[#allocation2 + $0x4c] sm:$0x1] %v406_v12  ;;  %v1330_v16 = vshrl.u32 %v1241_v13, 16  ;;  %v1333_v17 = vshll.u32 %v1241_v13, 16 }
 0x139   : > { %5670 = vmatpush3.bf16.msra.mxu0 %v5893_v4  ;;  %v6805_v4 = vld [vmem:[#allocation2 + $0x40] sm:$0xe]  ;;  %v534_v14 = vsel %vm502_vm1, %v486_v56, %v518_v2  ;;  %v4985_v19 = vrot.slane %v6801_v57, 9  ;;  %v1081_v20 = vor.u32 %v1080_v9, %v1077_v5  ;;  %v1166_v28 = vrot.slane %v6803_v3, 5  ;;  %v1382_v40 = vld [vmem:[#allocation2 + $0x24] sm:$0x1] }
 0x13a   : > { %5671 = vmatprep.subr.bf16.mxu0 %v5895_v27  ;;  %2323 = vmatprep.mubr.bf16.mxu1 %v4997_v60  ;;  %v5300_v18 = vpack.c.bf16 %v534_v14, %v534_v14  ;;  %v1332_v21 = vrot.slane %v1330_v16, 4  ;;  %v1335_v22 = vrot.slane %v1333_v17, 5  ;;  %v4986_v29 = vrot.slane %v6805_v4, 9  ;;  %v6816_v39 = vld [vmem:[#allocation2 + $0x20] sm:$0xe] }
 0x13b   : > { %2324 = vmatmul.mubr.bf16.gmra.mrb[24].mxu1 %v5894_v45  ;;  %v1068_v6 = vrot.slane %v1067_v15, 4  ;;  %v1072_v32 = vrot.slane %v1070_v8, 5  ;;  %v1082_v33 = vrot.slane %v1081_v20, 4  ;;  %v4999_v35 = vrot.slane %v1377_v24, 9  ;;  %v1383_v41 = vld [vmem:[#allocation2 + $0x28] sm:$0xe] }
 0x13c   : > { %v1336_v34 = vor.u32 %v1335_v22, %v1332_v21  ;;  %v1411_v36 = vrot.slane %v1378_v26, 5  ;;  %v5000_v48 = vrot.slane %v1379_v30, 9  ;;  %v1415_v38 = vrot.slane %v1380_v31, 5  ;;  %v1385_v53 = vld [vmem:[#allocation2 + $0x30] sm:$0xe] }
 0x13d   : > { %5672 = vmatpush3.bf16.msra.mxu0 %v5895_v27  ;;  %v648_v27 = vsel %vm6552_vm3, %v5300_v18, %v647_v7  ;;  %v5001_v51 = vrot.slane %v6816_v39, 9  ;;  %v1419_v52 = vrot.slane %v1382_v40, 5  ;;  %v1386_v54 = vld [vmem:[#allocation2 + $0x34] sm:$0x1]  ;;  %v5002_v58 = vrot.slane %v1383_v41, 9 }
 0x13e   : > { %5673 = vmatprep.subr.bf16.mxu0 %v5896_v50  ;;  %649 = vst [vmem:[#allocation2 + $0x44] sm:$0x1] %v648_v27  ;;  %v1243_v42 = vld [vmem:[#allocation2 + $0x48] sm:$0xf]  ;;  %v1337_v45 = vrot.slane %v1336_v34, 4  ;;  %v1167_v61 = vsel %vm6627_vm15, %v4985_v19, %v1166_v28  ;;  %v1073_v63 = vsel %vm6615_vm14, %v1068_v6, %v1072_v32  ;;  %v1416_v2 = vsel %vm6627_vm15, %v5000_v48, %v1415_v38 }
 0x13f   : > { %v1244_v44 = vld [vmem:[#allocation2 + $0x4c] sm:$0x1]  ;;  %v1344_v49 = vshrl.u32 %v1243_v42, 16  ;;  %v1347_v46 = vshll.u32 %v1243_v42, 16  ;;  %v1387_v59 = vld [vmem:[#allocation2 + $0x38] sm:$0xe] }
 0x140   : > { %v1353_v47 = vshll.u32 %v1244_v44, 16  ;;  %v1388_v9 = vld [vmem:[#allocation2 + $0x3c] sm:$0x1]  ;;  %v5003_v12 = vrot.slane %v1385_v53, 9  ;;  %v1427_v13 = vrot.slane %v1386_v54, 5  ;;  %v5004_v14 = vrot.slane %v1387_v59, 9 }
 0x141   : > { %5674 = vmatpush3.bf16.msra.mxu0 %v5896_v50  ;;  %v1384_v50 = vld [vmem:[#allocation2 + $0x2c] sm:$0x1]  ;;  %v1346_v55 = vrot.slane %v1344_v49, 4  ;;  %v1349_v56 = vrot.slane %v1347_v46, 5  ;;  %v1389_v7 = vld [vmem:[#allocation2 + $0x40] sm:$0xe] }
 0x142   : > { %5675 = vmatprep.subr.bf16.mxu0 %v5898_v1  ;;  %v1355_v57 = vrot.slane %v1353_v47, 5  ;;  %v1423_v10 = vrot.slane %v1384_v50, 5  ;;  %v5897_v19 = vld [vmem:[#allocation2 + $0x40] ss:$8 sps:$4 sm:$0xff]   ;;  %v1392_v26 = vld [vmem:[#allocation2 + $0x4c] sm:$0x1]  ;;  %v1428_v38 = vsel %vm6627_vm15, %v5003_v12, %v1427_v13 }
 0x143   : > { %v1350_v8 = vor.u32 %v1349_v56, %v1346_v55  ;;  %v1391_v24 = vld [vmem:[#allocation2 + $0x48] sm:$0xe]  ;;  %v1431_v31 = vrot.slane %v1388_v9, 5  ;;  %v5005_v32 = vrot.slane %v1389_v7, 9  ;;  %v5899_v49 = vld [vmem:[#allocation11 + $0xc0] sm:$0xff]  }
 0x144   : > { %v1424_v48 = vsel %vm6627_vm15, %v5002_v58, %v1423_v10  ;;  %v5900_v46 = vld [vmem:[#allocation11 + $0x80] sm:$0xff]   ;;  %v5901_v47 = vld [vmem:[#allocation11 + $0xc8] sm:$0xff]   ;;  %v2446_v9 = vld [vmem:[#allocation4 + $0x20] sm:$0x1] }
 0x145   : > { %5676 = vmatpush3.bf16.msra.mxu0 %v5898_v1  ;;  %v1123_v60 = vld [vmem:[#allocation2 + $0x44] sm:$0x1]  ;;  %v1412_v1 = vsel %vm6627_vm15, %v4999_v35, %v1411_v36  ;;  %v1351_v18 = vrot.slane %v1350_v8, 4  ;;  %v5006_v35 = vrot.slane %v1391_v24, 9  ;;  %v1439_v36 = vrot.slane %v1392_v26, 5  ;;  %v5902_v50 = vld [vmem:[#allocation11 + $0x88] sm:$0xff]  }
 0x146   : > { %v975_v62 = vld [vmem:[#allocation2 + $0x44] sm:$0x1]  ;;  %v1170_v3 = vrot.slane %v1123_v60, 5  ;;  %v5007_v22 = vcombine.low %v1412_v1, %v1416_v2  ;;  %v1432_v39 = vsel %vm6627_vm15, %v5004_v14, %v1431_v31  ;;  %5529 = vmatprep.subr.bf16.mxu0 %v5899_v49  ;;  %v2443_v60 = vld [vmem:[#allocation4 + $0x18] sm:$0x1]  ;;  %v2447_v14 = vsel %vm6552_vm3, 0, %v2446_v9 }
 0x147   : > { %v1242_v0 = vld [vmem:[#allocation2 + $0x44] sm:$0x1]  ;;  %v1084_v4 = vshll.u32 %v975_v62, 16  ;;  %v1356_v30 = vsel %vm6615_vm14, %v1351_v18, %v1355_v57  ;;  %v5009_v41 = vcombine.low %v1428_v38, %v1432_v39  ;;  %v1440_v44 = vsel %vm6627_vm15, %v5006_v35, %v1439_v36  ;;  %v5905_v57 = vld [vmem:[#allocation11 + $0xd0] sm:$0xff]   ;;  %v2467_v8 = vld [vmem:[#allocation4 + $0xc] sm:$0x1] }
 0x148   : > { %v1339_v5 = vshll.u32 %v1242_v0, 16  ;;  %v1171_v15 = vsel %vm6627_vm15, %v4986_v29, %v1170_v3  ;;  %v1390_v20 = vld [vmem:[#allocation2 + $0x44] sm:$0x1]  ;;  %v5906_v62 = vld [vmem:[#allocation11 + $0x90] sm:$0xff]   ;;  %v2444_v1 = vsel %vm6552_vm3, 0, %v2443_v60  ;;  %v2468_v13 = vsel %vm6557_vm4, 0, %v2467_v8 }
 0x149   : > { %v1086_v16 = vrot.slane %v1084_v4, 5  ;;  %v4990_v21 = vcombine.low %v1167_v61, %v1171_v15  ;;  %v1435_v34 = vrot.slane %v1390_v20, 5  ;;  %v5903_v53 = vld [vmem:[#allocation11 + $0x40] sm:$0xff]   ;;  %v2473_v61 = vld [vmem:[#allocation4 + $0x1c] sm:$0x1] }
 0x14a   : > { %v1341_v17 = vrot.slane %v1339_v5, 5  ;;  %v5904_v56 = vld [vmem:[#allocation11] sm:$0xff]   ;;  %5489 = vmatprep.subr.bf16.mxu1 %v5903_v53  ;;  %v2474_v2 = vsel %vm6557_vm4, 0, %v2473_v61  ;;  %v2437_v3 = vld [vmem:[#allocation4 + $0x8] sm:$0x1]  ;;  %v5907_v24 = vld [vmem:[#allocation11 + $0x48] sm:$0xff]  }
 0x14b   : > { %v1087_v27 = vsel %vm6615_vm14, %v1082_v33, %v1086_v16  ;;  %2266 = vmatprep.mubr.bf16.mxu0 %v4990_v21  ;;  %v1420_v33 = vsel %vm6627_vm15, %v5001_v51, %v1419_v52  ;;  %v1436_v42 = vsel %vm6627_vm15, %v5005_v32, %v1435_v34  ;;  %v6847_v58 = vld [vmem:[#allocation15] ss:$0 sm:$0xff]  ;;  %5490 = vmatpush3.bf16.msra.mxu1 %v5904_v56  ;;  %v2438_v5 = vsel %vm6552_vm3, 0, %v2437_v3  ;;  %v2476_v7 = vld [vmem:[#allocation4 + $0x24] sm:$0x1]  ;;  %v5910_v34 = vld [vmem:[#allocation11 + $0x98] sm:$0xff]  }
 0x14c   : > { %v1342_v28 = vsel %vm6615_vm14, %v1337_v45, %v1341_v17  ;;  %v4978_v29 = vcombine.low %v1073_v63, %v1087_v27  ;;  %v5008_v40 = vcombine.low %v1420_v33, %v1424_v48  ;;  %v5010_v45 = vcombine.low %v1436_v42, %v1440_v44  ;;  %2445 = vst [vmem:[#allocation4 + $0x18] sm:$0x1] %v2444_v1  ;;  %v2440_v17 = vld [vmem:[#allocation4 + $0x10] sm:$0x1]  ;;  %v2470_v18 = vld [vmem:[#allocation4 + $0x14] sm:$0x1] }
 0x14d   : > { %v4998_v6 = vcombine.low %v1342_v28, %v1356_v30  ;;  %2475 = vst [vmem:[#allocation4 + $0x1c] sm:$0x1] %v2474_v2  ;;  %2439 = vst [vmem:[#allocation4 + $0x8] sm:$0x1] %v2438_v5  ;;  %v2477_v16 = vsel %vm6557_vm4, 0, %v2476_v7  ;;  %v2441_v21 = vsel %vm6552_vm3, 0, %v2440_v17  ;;  %5491 = vmatprep.subr.bf16.mxu1 %v5907_v24 }
 0x14e   : > { %2267 = vmatmul.mubr.bf16.gmra.mrb[28].mxu0 %v4978_v29  ;;  %2469 = vst [vmem:[#allocation4 + $0xc] sm:$0x1] %v2468_v13  ;;  %2448 = vst [vmem:[#allocation4 + $0x20] sm:$0x1] %v2447_v14  ;;  %v5908_v28 = vld [vmem:[#allocation11 + $0x8] sm:$0xff]   ;;  %v5909_v30 = vld [vmem:[#allocation11 + $0xd8] sm:$0xff]  }
 0x14f   : > { %2331 = vmatprep.mubr.bf16.mxu1 %v4998_v6  ;;  %5677 = vmatprep.mubr.bf16.mxu0 %v5007_v22  ;;  %2478 = vst [vmem:[#allocation4 + $0x24] sm:$0x1] %v2477_v16  ;;  %v2471_v22 = vsel %vm6557_vm4, 0, %v2470_v18  ;;  %2442 = vst [vmem:[#allocation4 + $0x10] sm:$0x1] %v2441_v21  ;;  %v5911_v48 = vld [vmem:[#allocation11 + $0x50] sm:$0xff]  }
 0x150   : > { %2332 = vmatmul.mubr.bf16.gmra.mrb[28].mxu1 %v5897_v19  ;;  %2472 = vst [vmem:[#allocation4 + $0x14] sm:$0x1] %v2471_v22  ;;  %v2455_v29 = vld [vmem:[#allocation4 + $0x38] sm:$0x1]  ;;  %v2485_v32 = vld [vmem:[#allocation4 + $0x3c] sm:$0x1] }
 0x151   : > { %5492 = vmatpush3.bf16.msra.mxu1 %v5908_v28  ;;  %v2456_v6 = vsel %vm6552_vm3, 0, %v2455_v29  ;;  %v2486_v35 = vsel %vm6557_vm4, 0, %v2485_v32  ;;  %v2449_v36 = vld [vmem:[#allocation4 + $0x28] sm:$0x1]  ;;  %v2479_v33 = vld [vmem:[#allocation4 + $0x2c] sm:$0x1] }
 0x152   : > { %2457 = vst [vmem:[#allocation4 + $0x38] sm:$0x1] %v2456_v6  ;;  %2487 = vst [vmem:[#allocation4 + $0x3c] sm:$0x1] %v2486_v35  ;;  %v2450_v38 = vsel %vm6552_vm3, 0, %v2449_v36  ;;  %v2480_v39 = vsel %vm6557_vm4, 0, %v2479_v33  ;;  %5493 = vmatprep.subr.bf16.mxu1 %v5911_v48 }
 0x153   : > { %2451 = vst [vmem:[#allocation4 + $0x28] sm:$0x1] %v2450_v38  ;;  %2481 = vst [vmem:[#allocation4 + $0x2c] sm:$0x1] %v2480_v39  ;;  %v5914_v42 = vld [vmem:[#allocation11 + $0xa0] sm:$0xff]   ;;  %v5917_v1 = vld [vmem:[#allocation11 + $0xe8] sm:$0xff]  }
 0x154   : > { %v2488_v49 = vld [vmem:[#allocation4 + $0x44] sm:$0x1]  ;;  %v2482_v56 = vld [vmem:[#allocation4 + $0x34] sm:$0x1]  ;;  %v5918_v2 = vld [vmem:[#allocation11 + $0xa8] sm:$0xff]  }
 0x155   : > { %v5919_v8 = vld [vmem:[#allocation11 + $0x60] sm:$0xff]   ;;  %v2434_v9 = vld [vmem:[#allocation4] sm:$0x1]  ;;  %v5925_v21 = vld [vmem:[#allocation11 + $0xf8] sm:$0xff]  }
 0x156   : > { %5678 = vmatmul.mubr.bf16.vlgmr.msra.gmra.mrb[32].mxu0 %v5008_v40  ;;  %v5912_v40 = vld [vmem:[#allocation11 + $0x10] sm:$0xff]   ;;  %v2435_v16 = vsel %vm6552_vm3, 0, %v2434_v9  ;;  %v5926_v24 = vld [vmem:[#allocation11 + $0xb8] sm:$0xff]   ;;  %v5938_v32 = vld [vmem:[#allocation11 + $0x140] sm:$0xff]  }
 0x157   : > { %5681 = vmatprep.mubr.bf16.mxu0 %v5009_v41  ;;  %5530 = vmatpush3.bf16.msra.mxu0 %v5900_v46  ;;  %v5913_v41 = vld [vmem:[#allocation11 + $0xe0] sm:$0xff]   ;;  %v5921_v7 = vld [vmem:[#allocation11 + $0xf0] sm:$0xff]   ;;  %2436 = vst [vmem:[#allocation4] sm:$0x1] %v2435_v16  ;;  %v5933_v29 = vld [vmem:[#allocation11 + $0x78] sm:$0xff]  }
 0x158   : > { %5531 = vmatprep.subr.bf16.mxu0 %v5901_v47  ;;  %5494 = vmatpush3.bf16.msra.mxu1 %v5912_v40  ;;  %v5929_v28 = vld [vmem:[#allocation11 + $0x30] sm:$0xff]   ;;  %v5934_v6 = vld [vmem:[#allocation11 + $0x38] sm:$0xff]  }
 0x15b   : > { %5532 = vmatpush3.bf16.msra.mxu0 %v5902_v50  ;;  %v2489_v50 = vsel %vm6557_vm4, 0, %v2488_v49 }
 0x15c   : > { %5533 = vmatprep.subr.bf16.mxu0 %v5905_v57  ;;  %2490 = vst [vmem:[#allocation4 + $0x44] sm:$0x1] %v2489_v50  ;;  %v5916_v57 = vld [vmem:[#allocation11 + $0x18] sm:$0xff]  }
 0x15e   : > { %5682 = vmatmul.mubr.bf16.gmra.mrb[36].mxu0 %v5010_v45  ;;  %v2458_v45 = vld [vmem:[#allocation4 + $0x40] sm:$0x1] }
 0x15f   : > { %5534 = vmatpush3.bf16.msra.mxu0 %v5906_v62  ;;  %v2459_v47 = vsel %vm6552_vm3, 0, %v2458_v45  ;;  %v2483_v62 = vsel %vm6557_vm4, 0, %v2482_v56 }
 0x160   : > { %5535 = vmatprep.subr.bf16.mxu0 %v5909_v30  ;;  %2460 = vst [vmem:[#allocation4 + $0x40] sm:$0x1] %v2459_v47  ;;  %2484 = vst [vmem:[#allocation4 + $0x34] sm:$0x1] %v2483_v62  ;;  %v5930_v30 = vld [vmem:[#allocation11 + $0x1c0] sm:$0xff]  }
 0x163   : > { %5536 = vmatpush3.bf16.msra.mxu0 %v5910_v34 }
 0x164   : > { %5537 = vmatprep.subr.bf16.mxu0 %v5913_v41 }
 0x167   : > { %5538 = vmatpush3.bf16.msra.mxu0 %v5914_v42 }
 0x168   : > { %5539 = vmatprep.subr.bf16.mxu0 %v5917_v1 }
 0x16b   : > { %5540 = vmatpush3.bf16.msra.mxu0 %v5918_v2 }
 0x16c   : > { %5541 = vmatprep.subr.bf16.mxu0 %v5921_v7 }
 0x1b7   : > { %v5373_v51 = vpop.f32.mrb[0].mxu1 }
 0x1b8   : > { %v5374_v52 = vpop.f32.mrb[1].mxu1 }
 0x1b9   : > { %v5375_v54 = vadd.f32 %v5374_v52, %v5373_v51  ;;  %v5376_v55 = vpop.f32.mrb[2].mxu1  ;;  %v5915_v51 = vld [vmem:[#allocation11 + $0x58] sm:$0xff]   ;;  %v2464_v52 = vld [vmem:[#allocation4 + $0x4] sm:$0x1] }
 0x1ba   : > { %v5377_v59 = vpop.f32.mrb[3].mxu1  ;;  %5495 = vmatprep.subr.bf16.mxu1 %v5915_v51  ;;  %v2465_v3 = vsel %vm6557_vm4, 0, %v2464_v52 }
 0x1bb   : > { %v5378_v0 = vadd.f32 %v5377_v59, %v5376_v55  ;;  %v2452_v55 = vld [vmem:[#allocation4 + $0x30] sm:$0x1]  ;;  %5496 = vmatpush3.bf16.msra.mxu1 %v5916_v57  ;;  %2466 = vst [vmem:[#allocation4 + $0x4] sm:$0x1] %v2465_v3 }
 0x1bc   : > { %v5333_v63 = vpop.f32.mrb[0].mxu0  ;;  %v2453_v61 = vsel %vm6552_vm3, 0, %v2452_v55  ;;  %5497 = vmatprep.subr.bf16.mxu1 %v5919_v8 }
 0x1bd   : > { %v5334_v4 = vpop.f32.mrb[1].mxu0  ;;  %2454 = vst [vmem:[#allocation4 + $0x30] sm:$0x1] %v2453_v61 }
 0x1be   : > { %v5335_v10 = vadd.f32 %v5334_v4, %v5333_v63  ;;  %v5336_v12 = vpop.f32.mrb[2].mxu0 }
 0x1bf   : > { %v5337_v15 = vpop.f32.mrb[3].mxu0 }
 0x1c0   : > { %v2115_v19 = vadd.f32 %v5335_v10, %v6847_v58  ;;  %v5338_v20 = vadd.f32 %v5337_v15, %v5336_v12  ;;  %v5920_v12 = vld [vmem:[#allocation11 + $0x20] sm:$0xff]   ;;  %v5922_v15 = vld [vmem:[#allocation11 + $0xb0] sm:$0xff]  }
 0x1c1   : > { %5498 = vmatpush3.bf16.msra.mxu1 %v5920_v12  ;;  %5542 = vmatpush3.bf16.msra.mxu0 %v5922_v15 }
 0x1c2   : > { %v2118_v26 = vadd.f32 %v5338_v20, %v6847_v58  ;;  %v6867_v27 = vadd.f32 %v5375_v54, %v2115_v19  ;;  %v5923_v19 = vld [vmem:[#allocation11 + $0x68] sm:$0xff]   ;;  %5543 = vmatprep.subr.bf16.mxu0 %v5925_v21 }
 0x1c3   : > { %v5924_v20 = vld [vmem:[#allocation11 + $0x28] sm:$0xff]   ;;  %5499 = vmatprep.subr.bf16.mxu1 %v5923_v19 }
 0x1c4   : > { %v6869_v31 = vadd.f32 %v5378_v0, %v2118_v26  ;;  %v5927_v26 = vld [vmem:[#allocation11 + $0x70] sm:$0xff]  }
 0x1c5   : > { %5500 = vmatpush3.bf16.msra.mxu1 %v5924_v20  ;;  %5544 = vmatpush3.bf16.msra.mxu0 %v5926_v24 }
 0x1c6   : > { %5501 = vmatprep.subr.bf16.mxu1 %v5927_v26  ;;  %5609 = vmatprep.subr.bf16.mxu0 %v5930_v30 }
 0x1c9   : > { %v5379_v44 = vpop.f32.mrb[4].mxu1  ;;  %5502 = vmatpush3.bf16.msra.mxu1 %v5929_v28 }
 0x1ca   : > { %v5380_v46 = vpop.f32.mrb[5].mxu1  ;;  %5503 = vmatprep.subr.bf16.mxu1 %v5933_v29 }
 0x1cb   : > { %v5381_v53 = vadd.f32 %v5380_v46, %v5379_v44  ;;  %v5382_v54 = vpop.f32.mrb[6].mxu1 }
 0x1cc   : > { %v5383_v60 = vpop.f32.mrb[7].mxu1 }
 0x1cd   : > { %v5384_v0 = vadd.f32 %v5383_v60, %v5382_v54  ;;  %5504 = vmatpush3.bf16.msra.mxu1 %v5934_v6 }
 0x1ce   : > { %v5339_v59 = vpop.f32.mrb[4].mxu0  ;;  %5569 = vmatprep.subr.bf16.mxu1 %v5938_v32 }
 0x1cf   : > { %v5340_v63 = vpop.f32.mrb[5].mxu0 }
 0x1d0   : > { %v5341_v4 = vadd.f32 %v5340_v63, %v5339_v59  ;;  %v5342_v5 = vpop.f32.mrb[6].mxu0 }
 0x1d1   : > { %v5343_v10 = vpop.f32.mrb[7].mxu0 }
 0x1d2   : > { %v2123_v13 = vadd.f32 %v5341_v4, %v6847_v58  ;;  %v5344_v14 = vadd.f32 %v5343_v10, %v5342_v5 }
 0x1d4   : > { %v2126_v17 = vadd.f32 %v5344_v14, %v6847_v58  ;;  %v6893_v18 = vadd.f32 %v5381_v53, %v2123_v13  ;;  %v2461_v13 = vld [vmem:[#allocation4 + $0x48] sm:$0x1] }
 0x1d5   : > { %v2462_v16 = vsel %vm6552_vm3, 0, %v2461_v13 }
 0x1d6   : > { %v6895_v22 = vadd.f32 %v5384_v0, %v2126_v17  ;;  %v2491_v17 = vld [vmem:[#allocation4 + $0x4c] sm:$0x1]  ;;  %2463 = vst [vmem:[#allocation4 + $0x48] sm:$0x1] %v2462_v16 }
 0x1d7   : > { %v2492_v21 = vsel %vm6557_vm4, 0, %v2491_v17 }
 0x1d8   : > { %2493 = vst [vmem:[#allocation4 + $0x4c] sm:$0x1] %v2492_v21 }
 0x1dd   : > { %v5385_v34 = vpop.f32.mrb[8].mxu1 }
 0x1de   : > { %v5386_v36 = vpop.f32.mrb[9].mxu1 }
 0x1df   : > { %v5345_v35 = vpop.f32.mrb[8].mxu0  ;;  %v5387_v48 = vadd.f32 %v5386_v36, %v5385_v34  ;;  %v5388_v38 = vpop.f32.mrb[10].mxu1 }
 0x1e0   : > { %v5346_v33 = vpop.f32.mrb[9].mxu0  ;;  %v5389_v41 = vpop.f32.mrb[11].mxu1 }
 0x1e1   : > { %v5347_v39 = vadd.f32 %v5346_v33, %v5345_v35  ;;  %v5348_v40 = vpop.f32.mrb[10].mxu0  ;;  %v5390_v44 = vadd.f32 %v5389_v41, %v5388_v38 }
 0x1e2   : > { %v5349_v42 = vpop.f32.mrb[11].mxu0 }
 0x1e3   : > { %v2131_v45 = vadd.f32 %v5347_v39, %v6847_v58  ;;  %v5350_v49 = vadd.f32 %v5349_v42, %v5348_v40 }
 0x1e5   : > { %v2134_v46 = vadd.f32 %v5350_v49, %v6847_v58  ;;  %v2196_v47 = vadd.f32 %v5387_v48, %v2131_v45 }
 0x1e7   : > { %v6899_v50 = vadd.f32 %v5390_v44, %v2134_v46 }
 0x1ee   : > { %v5391_v51 = vpop.f32.mrb[12].mxu1 }
 0x1ef   : > { %v5392_v52 = vpop.f32.mrb[13].mxu1 }
 0x1f0   : > { %v5393_v53 = vadd.f32 %v5392_v52, %v5391_v51  ;;  %v5394_v54 = vpop.f32.mrb[14].mxu1 }
 0x1f1   : > { %v5395_v56 = vpop.f32.mrb[15].mxu1 }
 0x1f2   : > { %v5396_v59 = vadd.f32 %v5395_v56, %v5394_v54 }
 0x1f3   : > { %v5351_v55 = vpop.f32.mrb[12].mxu0 }
 0x1f4   : > { %v5352_v57 = vpop.f32.mrb[13].mxu0 }
 0x1f5   : > { %v5353_v60 = vadd.f32 %v5352_v57, %v5351_v55  ;;  %v5354_v61 = vpop.f32.mrb[14].mxu0 }
 0x1f6   : > { %v5355_v62 = vpop.f32.mrb[15].mxu0 }
 0x1f7   : > { %v2139_v63 = vadd.f32 %v5353_v60, %v6847_v58  ;;  %v5356_v0 = vadd.f32 %v5355_v62, %v5354_v61  ;;  %v5453_v8 = vpop.f32.mrb[16].mxu1 }
 0x1f8   : > { %v5454_v12 = vpop.f32.mrb[17].mxu1 }
 0x1f9   : > { %v2142_v1 = vadd.f32 %v5356_v0, %v6847_v58  ;;  %v6903_v2 = vadd.f32 %v5393_v53, %v2139_v63  ;;  %v5455_v7 = vadd.f32 %v5454_v12, %v5453_v8  ;;  %v5456_v15 = vpop.f32.mrb[18].mxu1  ;;  %v2691_v12 = vld [vmem:[#allocation4] sm:$0xf] }
 0x1fa   : > { %v5457_v20 = vpop.f32.mrb[19].mxu1  ;;  %v2708_v17 = vshrl.u32 %v2691_v12, 16 }
 0x1fb   : > { %v6905_v3 = vadd.f32 %v5396_v59, %v2142_v1  ;;  %v5413_v4 = vpop.f32.mrb[16].mxu0  ;;  %v5458_v24 = vadd.f32 %v5457_v20, %v5456_v15 }
 0x1fc   : > { %v5414_v5 = vpop.f32.mrb[17].mxu0 }
 0x1fd   : > { %v5415_v9 = vadd.f32 %v5414_v5, %v5413_v4  ;;  %v5416_v10 = vpop.f32.mrb[18].mxu0 }
 0x1fe   : > { %v5417_v14 = vpop.f32.mrb[19].mxu0 }
 0x1ff   : > { %v2245_v58 = vadd.f32 %v5415_v9, %v6867_v27  ;;  %v5418_v19 = vadd.f32 %v5417_v14, %v5416_v10 }
 0x201   : > { %v2248_v26 = vadd.f32 %v5418_v19, %v6869_v31  ;;  %v2310_v28 = vadd.f32 %v5455_v7, %v2245_v58  ;;  %v2711_v58 = vshll.u32 %v2691_v12, 16 }
 0x203   : > { %v6913_v30 = vadd.f32 %v5458_v24, %v2248_v26  ;;  %v5419_v29 = vpop.f32.mrb[20].mxu0  ;;  %v6926_v26 = vld [vmem:[#allocation4] sm:$0xe] }
 0x204   : > { %v5420_v6 = vpop.f32.mrb[21].mxu0  ;;  %v5459_v35 = vpop.f32.mrb[20].mxu1 }
 0x205   : > { %v5421_v32 = vadd.f32 %v5420_v6, %v5419_v29  ;;  %v5422_v34 = vpop.f32.mrb[22].mxu0  ;;  %v5460_v48 = vpop.f32.mrb[21].mxu1 }
 0x206   : > { %v5423_v36 = vpop.f32.mrb[23].mxu0  ;;  %v5461_v38 = vadd.f32 %v5460_v48, %v5459_v35  ;;  %v5462_v39 = vpop.f32.mrb[22].mxu1  ;;  %v5100_v48 = vrot.slane %v6926_v26, 9 }
 0x207   : > { %v2253_v27 = vadd.f32 %v5421_v32, %v6893_v18  ;;  %v5424_v33 = vadd.f32 %v5423_v36, %v5422_v34  ;;  %v5463_v41 = vpop.f32.mrb[23].mxu1  ;;  %v6928_v32 = vld [vmem:[#allocation4 + $0x4] sm:$0x1]  ;;  %v6932_v36 = vrot.slane %v2711_v58, 5 }
 0x208   : > { %v5464_v42 = vadd.f32 %v5463_v41, %v5462_v39 }
 0x209   : > { %v2256_v40 = vadd.f32 %v5424_v33, %v6895_v22  ;;  %v2318_v31 = vadd.f32 %v5461_v38, %v2253_v27  ;;  %v6936_v38 = vld [vmem:[#allocation4 + $0x4] sm:$0x1] }
 0x20b   : > { %v2321_v44 = vadd.f32 %v5464_v42, %v2256_v40  ;;  %v5425_v45 = vpop.f32.mrb[24].mxu0  ;;  %v2873_v40 = vrot.slane %v6928_v32, 5 }
 0x20c   : > { %v5426_v49 = vpop.f32.mrb[25].mxu0 }
 0x20d   : > { %v5427_v46 = vadd.f32 %v5426_v49, %v5425_v45  ;;  %v5428_v51 = vpop.f32.mrb[26].mxu0 }
 0x20e   : > { %v5429_v52 = vpop.f32.mrb[27].mxu0  ;;  %v5465_v54 = vpop.f32.mrb[24].mxu1 }
 0x20f   : > { %v2261_v53 = vadd.f32 %v5427_v46, %v2196_v47  ;;  %v5430_v55 = vadd.f32 %v5429_v52, %v5428_v51  ;;  %v5466_v56 = vpop.f32.mrb[25].mxu1 }
 0x210   : > { %v5467_v57 = vadd.f32 %v5466_v56, %v5465_v54  ;;  %v5468_v59 = vpop.f32.mrb[26].mxu1  ;;  %v2622_v56 = vld [vmem:[#allocation4 + $0x1c] sm:$0x1] }
 0x211   : > { %v2264_v18 = vadd.f32 %v5430_v55, %v6899_v50  ;;  %v5469_v60 = vpop.f32.mrb[27].mxu1  ;;  %v2619_v55 = vld [vmem:[#allocation4 + $0x18] sm:$0xf] }
 0x212   : > { %v5470_v61 = vadd.f32 %v5469_v60, %v5468_v59  ;;  %v6918_v22 = vadd.f32 %v5467_v57, %v2261_v53 }
 0x214   : > { %v6920_v62 = vadd.f32 %v5470_v61, %v2264_v18 }
 0x221   : > { %v5431_v63 = vpop.f32.mrb[28].mxu0 }
 0x222   : > { %v5432_v0 = vpop.f32.mrb[29].mxu0 }
 0x223   : > { %v5471_v1 = vpop.f32.mrb[28].mxu1  ;;  %v5433_v4 = vadd.f32 %v5432_v0, %v5431_v63  ;;  %v5434_v5 = vpop.f32.mrb[30].mxu0  ;;  %v2607_v0 = vld [vmem:[#allocation4 + $0x8] sm:$0xf] }
 0x224   : > { %v5472_v8 = vpop.f32.mrb[29].mxu1  ;;  %v5435_v47 = vpop.f32.mrb[31].mxu0 }
 0x225   : > { %v5473_v9 = vadd.f32 %v5472_v8, %v5471_v1  ;;  %v5474_v10 = vpop.f32.mrb[30].mxu1  ;;  %v2269_v50 = vadd.f32 %v5433_v4, %v6903_v2  ;;  %v5436_v13 = vadd.f32 %v5435_v47, %v5434_v5  ;;  %v6930_v2 = vrot.slane %v2708_v17, 4  ;;  %v2610_v1 = vld [vmem:[#allocation4 + $0xc] sm:$0x1] }
 0x226   : > { %v5475_v14 = vpop.f32.mrb[31].mxu1 }
 0x227   : > { %v5476_v7 = vadd.f32 %v5475_v14, %v5474_v10  ;;  %v2272_v15 = vadd.f32 %v5436_v13, %v6905_v3  ;;  %v2334_v16 = vadd.f32 %v5473_v9, %v2269_v50  ;;  %v2714_v49 = vor.u32 %v6932_v36, %v6930_v2 }
 0x229   : > { %v5679_v19 = vpop.f32.mrb[32].mxu0  ;;  %v6924_v20 = vadd.f32 %v5476_v7, %v2272_v15  ;;  %v2625_v15 = vld [vmem:[#allocation4 + $0x20] sm:$0xf]  ;;  %v6978_v26 = vrot.slane %v2714_v49, 4 }
 0x22a   : > { %v2383_v21 = vadd.f32 %v5679_v19, %v2318_v31  ;;  %v2374_v24 = vpop.f32.mrb[33].mxu0  ;;  %v2628_v19 = vld [vmem:[#allocation4 + $0x24] sm:$0x1] }
 0x22b   : > { %v2375_v29 = vadd.f32 %v2374_v24, %v2310_v28  ;;  %v5680_v6 = vpop.f32.mrb[34].mxu0 }
 0x22c   : > { %vm2407_vm2 = vcmp.gt.f32.partialorder %v2383_v21, 0.0  ;;  %v2415_v34 = vmul.f32 0.1, %v2383_v21  ;;  %v2386_v35 = vadd.f32 %v5680_v6, %v2321_v44  ;;  %v2377_v3 = vpop.f32.mrb[35].mxu0 }
 0x22d   : > { %vm2405_vm5 = vcmp.gt.f32.partialorder %v2375_v29, 0.0  ;;  %v2413_v27 = vmul.f32 0.1, %v2375_v29  ;;  %v2378_v33 = vadd.f32 %v2377_v3, %v6913_v30  ;;  %v2717_v30 = vshll.u32 %v6936_v38, 16 }
 0x22e   : > { %v2423_v28 = vsel %vm2407_vm2, %v2383_v21, %v2415_v34  ;;  %vm2408_vm6 = vcmp.gt.f32.partialorder %v2386_v35, 0.0  ;;  %v2416_v39 = vmul.f32 0.1, %v2386_v35  ;;  %v2613_v34 = vld [vmem:[#allocation4 + $0x10] sm:$0xf] }
 0x22f   : > { %v5303_v41 = vpack.c.bf16 %v2423_v28, %v2423_v28  ;;  %v2421_v42 = vsel %vm2405_vm5, %v2375_v29, %v2413_v27  ;;  %vm2406_vm7 = vcmp.gt.f32.partialorder %v2378_v33, 0.0  ;;  %v2414_v31 = vmul.f32 0.1, %v2378_v33 }
 0x230   : > { %v5301_v44 = vpack.c.bf16 %v2421_v42, %v2421_v42  ;;  %v2424_v45 = vsel %vm2408_vm6, %v2386_v35, %v2416_v39  ;;  %v2616_v35 = vld [vmem:[#allocation4 + $0x14] sm:$0x1]  ;;  %v3242_v39 = vld [vmem:[#allocation4 + $0x48] sm:$0xf] }
 0x231   : > { %v2543_v46 = vshrl.u32 %v5303_v41, 16  ;;  %v2546_v51 = vshll.u32 %v5303_v41, 16  ;;  %v5304_v52 = vpack.c.bf16 %v2424_v45, %v2424_v45  ;;  %v2422_v53 = vsel %vm2406_vm7, %v2378_v33, %v2414_v31  ;;  %v5683_v54 = vpop.f32.mrb[36].mxu0 }
 0x232   : > { %v2527_v18 = vshrl.u32 %v5301_v44, 16  ;;  %v2530_v57 = vshll.u32 %v5301_v44, 16  ;;  %v5302_v59 = vpack.c.bf16 %v2422_v53, %v2422_v53  ;;  %v2399_v60 = vadd.f32 %v5683_v54, %v2334_v16  ;;  %v2390_v61 = vpop.f32.mrb[37].mxu0 }
 0x233   : > { %v2545_v63 = vrot.slane %v2543_v46, 7  ;;  %v2551_v4 = vshrl.u32 %v5304_v52, 16  ;;  %v2554_v5 = vshll.u32 %v5304_v52, 16  ;;  %v2391_v8 = vadd.f32 %v2390_v61, %v6918_v22  ;;  %v5684_v47 = vpop.f32.mrb[38].mxu0 }
 0x234   : > { %v2529_v9 = vrot.slane %v2527_v18, 7  ;;  %v2535_v10 = vshrl.u32 %v5302_v59, 16  ;;  %v2538_v12 = vshll.u32 %v5302_v59, 16  ;;  %vm2411_vm8 = vcmp.gt.f32.partialorder %v2399_v60, 0.0  ;;  %v2393_v50 = vpop.f32.mrb[39].mxu0 }
 0x235   : > { %v2548_v13 = vor.u32 %v2546_v51, %v2545_v63  ;;  %v2549_v14 = vrot.slane %v2545_v63, 4  ;;  %v2553_v7 = vrot.slane %v2551_v4, 7  ;;  %v2419_v17 = vmul.f32 0.1, %v2399_v60  ;;  %v2643_v59 = vld [vmem:[#allocation4 + $0x38] sm:$0xf] }
 0x236   : > { %v2532_v16 = vor.u32 %v2530_v57, %v2529_v9  ;;  %v2533_v58 = vrot.slane %v2529_v9, 4  ;;  %v2537_v21 = vrot.slane %v2535_v10, 7  ;;  %vm2409_vm9 = vcmp.gt.f32.partialorder %v2391_v8, 0.0  ;;  %v2634_v4 = vld [vmem:[#allocation4 + $0x2c] sm:$0x1] }
 0x237   : > { %v2620_v24 = vsel %vm6601_vm10, %v2548_v13, %v2619_v55  ;;  %v2623_v22 = vsel %vm6552_vm3, %v2549_v14, %v2622_v56  ;;  %v2556_v29 = vor.u32 %v2554_v5, %v2553_v7  ;;  %v2557_v6 = vrot.slane %v2553_v7, 4 }
 0x238   : > { %2621 = vst [vmem:[#allocation4 + $0x18] sm:$0xf] %v2620_v24  ;;  %2624 = vst [vmem:[#allocation4 + $0x1c] sm:$0x1] %v2623_v22  ;;  %v2608_v3 = vsel %vm6601_vm10, %v2532_v16, %v2607_v0  ;;  %v2611_v27 = vsel %vm6552_vm3, %v2533_v58, %v2610_v1  ;;  %v2540_v33 = vor.u32 %v2538_v12, %v2537_v21  ;;  %v2541_v28 = vrot.slane %v2537_v21, 4 }
 0x239   : > { %2609 = vst [vmem:[#allocation4 + $0x8] sm:$0xf] %v2608_v3  ;;  %2612 = vst [vmem:[#allocation4 + $0xc] sm:$0x1] %v2611_v27  ;;  %v2626_v41 = vsel %vm6601_vm10, %v2556_v29, %v2625_v15  ;;  %v2629_v42 = vsel %vm6552_vm3, %v2557_v6, %v2628_v19  ;;  %v2427_v31 = vsel %vm2411_vm8, %v2399_v60, %v2419_v17  ;;  %v2417_v44 = vmul.f32 0.1, %v2391_v8 }
 0x23a   : > { %2627 = vst [vmem:[#allocation4 + $0x20] sm:$0xf] %v2626_v41  ;;  %2630 = vst [vmem:[#allocation4 + $0x24] sm:$0x1] %v2629_v42  ;;  %v2614_v45 = vsel %vm6601_vm10, %v2540_v33, %v2613_v34  ;;  %v2617_v46 = vsel %vm6552_vm3, %v2541_v28, %v2616_v35  ;;  %v5307_v51 = vpack.c.bf16 %v2427_v31, %v2427_v31  ;;  %v3343_v56 = vshrl.u32 %v3242_v39, 16 }
 0x23b   : > { %v2402_v52 = vadd.f32 %v5684_v47, %v6924_v20  ;;  %2615 = vst [vmem:[#allocation4 + $0x10] sm:$0xf] %v2614_v45  ;;  %2618 = vst [vmem:[#allocation4 + $0x14] sm:$0x1] %v2617_v46  ;;  %v2425_v53 = vsel %vm2409_vm9, %v2391_v8, %v2417_v44  ;;  %v2394_v54 = vadd.f32 %v2393_v50, %v6920_v62  ;;  %v6973_v20 = vrot.slane %v2717_v30, 5 }
 0x23c   : > { %v6969_v55 = vsel %vm6627_vm15, %v5100_v48, %v2873_v40  ;;  %v2575_v18 = vshrl.u32 %v5307_v51, 16  ;;  %v5305_v57 = vpack.c.bf16 %v2425_v53, %v2425_v53  ;;  %v2578_v48 = vshll.u32 %v5307_v51, 16  ;;  %v2646_v40 = vld [vmem:[#allocation4 + $0x3c] sm:$0x1]  ;;  %v2631_v1 = vld [vmem:[#allocation4 + $0x28] sm:$0xf] }
 0x23d   : > { %vm2412_vm11 = vcmp.gt.f32.partialorder %v2402_v52, 0.0  ;;  %v2420_v60 = vmul.f32 0.1, %v2402_v52  ;;  %vm2410_vm12 = vcmp.gt.f32.partialorder %v2394_v54, 0.0  ;;  %v2418_v62 = vmul.f32 0.1, %v2394_v54 }
 0x23e   : > { %v2577_v32 = vrot.slane %v2575_v18, 7  ;;  %v2559_v61 = vshrl.u32 %v5305_v57, 16  ;;  %v3346_v63 = vshll.u32 %v3242_v39, 16  ;;  %v2562_v0 = vshll.u32 %v5305_v57, 16  ;;  %v2649_v34 = vld [vmem:[#allocation4 + $0x40] sm:$0xf] }
 0x23f   : > { %v2428_v38 = vsel %vm2412_vm11, %v2402_v52, %v2420_v60  ;;  %v2426_v30 = vsel %vm2410_vm12, %v2394_v54, %v2418_v62  ;;  %v6980_v5 = vld [vmem:[#allocation4 + $0x18] sm:$0xf]  ;;  %v6982_v8 = vrot.slane %v3343_v56, 4  ;;  %v2720_v13 = vsel %vm6615_vm14, %v6978_v26, %v6973_v20  ;;  %v2652_v35 = vld [vmem:[#allocation4 + $0x44] sm:$0x1]  ;;  %v5932_v51 = vld [vmem:[#allocation11 + $0x180] sm:$0xff]  }
 0x240   : > { %v2580_v47 = vor.u32 %v2578_v48, %v2577_v32  ;;  %v2581_v9 = vrot.slane %v2577_v32, 4  ;;  %v2561_v10 = vrot.slane %v2559_v61, 7  ;;  %v5308_v2 = vpack.c.bf16 %v2428_v38, %v2428_v38  ;;  %v2841_v36 = vld [vmem:[#allocation4 + $0x8] sm:$0xe]  ;;  %v2842_v12 = vld [vmem:[#allocation4 + $0xc] sm:$0x1] }
 0x241   : > { %v5306_v49 = vpack.c.bf16 %v2426_v30, %v2426_v30  ;;  %v5101_v50 = vrot.slane %v2841_v36, 9  ;;  %v2750_v14 = vshrl.u32 %v6980_v5, 16  ;;  %v6993_v22 = vrot.slane %v3346_v63, 5  ;;  %v2637_v27 = vld [vmem:[#allocation4 + $0x30] sm:$0xf]  ;;  %v5935_v61 = vld [vmem:[#allocation11 + $0x1c8] sm:$0xff]  }
 0x242   : > { %v2644_v7 = vsel %vm6601_vm10, %v2580_v47, %v2643_v59  ;;  %v2647_v15 = vsel %vm6552_vm3, %v2581_v9, %v2646_v40  ;;  %v2564_v17 = vor.u32 %v2562_v0, %v2561_v10  ;;  %v2565_v16 = vrot.slane %v2561_v10, 4  ;;  %v5928_v58 = vld [vmem:[#allocation4 + $0x8] ss:$8 sps:$4 sm:$0xff]   ;;  %v2640_v33 = vld [vmem:[#allocation4 + $0x34] sm:$0x1]  ;;  %v5936_v10 = vld [vmem:[#allocation11 + $0x188] sm:$0xff]  }
 0x243   : > { %2645 = vst [vmem:[#allocation4 + $0x38] sm:$0xf] %v2644_v7  ;;  %2648 = vst [vmem:[#allocation4 + $0x3c] sm:$0x1] %v2647_v15  ;;  %v2583_v19 = vshrl.u32 %v5308_v2, 16  ;;  %v2586_v21 = vshll.u32 %v5308_v2, 16  ;;  %4313 = vmatprep.mubr.bf16.mxu0 %v5928_v58 }
 0x244   : > { %v2567_v24 = vshrl.u32 %v5306_v49, 16  ;;  %v2632_v29 = vsel %vm6601_vm10, %v2564_v17, %v2631_v1  ;;  %v2635_v6 = vsel %vm6552_vm3, %v2565_v16, %v2634_v4  ;;  %v2570_v3 = vshll.u32 %v5306_v49, 16  ;;  %v2693_v39 = vld [vmem:[#allocation4 + $0x8] sm:$0xf]  ;;  %v2694_v41 = vld [vmem:[#allocation4 + $0xc] sm:$0x1] }
 0x245   : > { %v2877_v28 = vrot.slane %v2842_v12, 5  ;;  %2633 = vst [vmem:[#allocation4 + $0x28] sm:$0xf] %v2632_v29  ;;  %2636 = vst [vmem:[#allocation4 + $0x2c] sm:$0x1] %v2635_v6  ;;  %v2585_v42 = vrot.slane %v2583_v19, 7 }
 0x246   : > { %v2569_v31 = vrot.slane %v2567_v24, 7  ;;  %v2722_v44 = vshrl.u32 %v2693_v39, 16  ;;  %v2725_v45 = vshll.u32 %v2693_v39, 16  ;;  %v2731_v52 = vshll.u32 %v2694_v41, 16  ;;  %v2695_v53 = vld [vmem:[#allocation4 + $0x10] sm:$0xf] }
 0x247   : > { %v2878_v46 = vsel %vm6627_vm15, %v5101_v50, %v2877_v28  ;;  %v2698_v54 = vld [vmem:[#allocation4 + $0x1c] sm:$0x1]  ;;  %v2752_v56 = vrot.slane %v2750_v14, 4  ;;  %v2753_v18 = vshll.u32 %v6980_v5, 16  ;;  %v2588_v57 = vor.u32 %v2586_v21, %v2585_v42  ;;  %v2696_v32 = vld [vmem:[#allocation4 + $0x14] sm:$0x1] }
 0x248   : > { %v2589_v59 = vrot.slane %v2585_v42, 4  ;;  %v2572_v60 = vor.u32 %v2570_v3, %v2569_v31  ;;  %v2573_v62 = vrot.slane %v2569_v31, 4  ;;  %v2843_v48 = vld [vmem:[#allocation4 + $0x10] sm:$0xe]  ;;  %v5108_v40 = vcombine.low %v6969_v55, %v2878_v46  ;;  %v2844_v4 = vld [vmem:[#allocation4 + $0x14] sm:$0x1] }
 0x249   : > { %v2724_v63 = vrot.slane %v2722_v44, 4  ;;  %v2727_v0 = vrot.slane %v2725_v45, 5  ;;  %v2733_v1 = vrot.slane %v2731_v52, 5  ;;  %v2650_v38 = vsel %vm6601_vm10, %v2588_v57, %v2649_v34  ;;  %v5931_v9 = vld [vmem:[#allocation4 + $0x18] ss:$8 sps:$4 sm:$0xff]   ;;  %v5939_v3 = vld [vmem:[#allocation11 + $0x100] sm:$0xff]  }
 0x24a   : > { %v2653_v30 = vsel %vm6552_vm3, %v2589_v59, %v2652_v35  ;;  %v2638_v5 = vsel %vm6601_vm10, %v2572_v60, %v2637_v27  ;;  %v2641_v47 = vsel %vm6552_vm3, %v2573_v62, %v2640_v33  ;;  %v2845_v55 = vld [vmem:[#allocation4 + $0x18] sm:$0xe]  ;;  %2651 = vst [vmem:[#allocation4 + $0x40] sm:$0xf] %v2650_v38  ;;  %4314 = vmatmul.mubr.bf16.vlgmr.msra.gmra.mrb[40].mxu0 %v5108_v40  ;;  %v2736_v36 = vshrl.u32 %v2695_v53, 16  ;;  %v5940_v50 = vld [vmem:[#allocation11 + $0x1d0] sm:$0xff]  }
 0x24b   : > { %2654 = vst [vmem:[#allocation4 + $0x44] sm:$0x1] %v2653_v30  ;;  %2639 = vst [vmem:[#allocation4 + $0x30] sm:$0xf] %v2638_v5  ;;  %v2728_v2 = vor.u32 %v2727_v0, %v2724_v63  ;;  %v2739_v49 = vshll.u32 %v2695_v53, 16  ;;  %v2745_v12 = vshll.u32 %v2696_v32, 16  ;;  %4321 = vmatprep.mubr.bf16.mxu0 %v5931_v9  ;;  %5610 = vmatpush3.bf16.msra.mxu0 %v5932_v51 }
 0x24c   : > { %2642 = vst [vmem:[#allocation4 + $0x34] sm:$0x1] %v2641_v47  ;;  %v2755_v14 = vrot.slane %v2753_v18, 5  ;;  %v2759_v7 = vshll.u32 %v2698_v54, 16  ;;  %v2846_v15 = vld [vmem:[#allocation4 + $0x1c] sm:$0x1]  ;;  %5611 = vmatprep.subr.bf16.mxu0 %v5935_v61  ;;  %v3349_v18 = vor.u32 %v6993_v22, %v6982_v8 }
 0x24d   : > { %v5102_v17 = vrot.slane %v2843_v48, 9  ;;  %v2881_v16 = vrot.slane %v2844_v4, 5  ;;  %v2729_v58 = vrot.slane %v2728_v2, 4  ;;  %v2738_v19 = vrot.slane %v2736_v36, 4  ;;  %v2699_v27 = vld [vmem:[#allocation4 + $0x20] sm:$0xf] }
 0x24e   : > { %v2741_v21 = vrot.slane %v2739_v49, 5  ;;  %v2747_v24 = vrot.slane %v2745_v12, 5  ;;  %v2756_v29 = vor.u32 %v2755_v14, %v2752_v56  ;;  %v2761_v6 = vrot.slane %v2759_v7, 5  ;;  %v5937_v28 = vld [vmem:[#allocation4] ss:$8 sps:$4 sm:$0xff]   ;;  %v5943_v52 = vld [vmem:[#allocation11 + $0x148] sm:$0xff]  }
 0x24f   : > { %v2882_v34 = vsel %vm6627_vm15, %v5102_v17, %v2881_v16  ;;  %v5103_v35 = vrot.slane %v2845_v55, 9  ;;  %v2734_v33 = vsel %vm6615_vm14, %v2729_v58, %v2733_v1  ;;  %v2885_v41 = vrot.slane %v2846_v15, 5  ;;  %v5942_v42 = vld [vmem:[#allocation11 + $0x190] sm:$0xff]   ;;  %v2701_v44 = vld [vmem:[#allocation4 + $0x28] sm:$0xf]  ;;  %5612 = vmatpush3.bf16.msra.mxu0 %v5936_v10  ;;  %v5944_v61 = vld [vmem:[#allocation11 + $0x108] sm:$0xff]  }
 0x250   : > { %v2742_v39 = vor.u32 %v2741_v21, %v2738_v19  ;;  %v2700_v31 = vld [vmem:[#allocation4 + $0x24] sm:$0x1]  ;;  %v2764_v45 = vshrl.u32 %v2699_v27, 16  ;;  %v5096_v46 = vcombine.low %v2720_v13, %v2734_v33  ;;  %v2757_v51 = vrot.slane %v2756_v29, 4  ;;  %v2702_v53 = vld [vmem:[#allocation4 + $0x2c] sm:$0x1]  ;;  %5613 = vmatprep.subr.bf16.mxu0 %v5940_v50 }
 0x251   : > { %v2767_v54 = vshll.u32 %v2699_v27, 16  ;;  %v2847_v56 = vld [vmem:[#allocation4 + $0x20] sm:$0xe]  ;;  %v2886_v59 = vsel %vm6627_vm15, %v5103_v35, %v2885_v41  ;;  %v5945_v60 = vld [vmem:[#allocation11 + $0x1d8] sm:$0xff]   ;;  %v2778_v32 = vshrl.u32 %v2701_v44, 16  ;;  %v2773_v8 = vshll.u32 %v2700_v31, 16 }
 0x252   : > { %v2743_v57 = vrot.slane %v2742_v39, 4  ;;  %v2766_v62 = vrot.slane %v2764_v45, 4  ;;  %v2848_v48 = vld [vmem:[#allocation4 + $0x24] sm:$0x1]  ;;  %v7024_v40 = vld [vmem:[#allocation4 + $0x4c] sm:$0x1]  ;;  %4248 = vmatprep.mubr.bf16.mxu1 %v5096_v46  ;;  %v2762_v20 = vsel %vm6615_vm14, %v2757_v51, %v2761_v6  ;;  %v5109_v26 = vcombine.low %v2882_v34, %v2886_v59 }
 0x253   : > { %v5941_v13 = vld [vmem:[#allocation4 + $0x28] ss:$8 sps:$4 sm:$0xff]   ;;  %v2769_v63 = vrot.slane %v2767_v54, 5  ;;  %4249 = vmatmul.mubr.bf16.vlgmr.msra.gmra.mrb[32].mxu1 %v5937_v28  ;;  %v5948_v1 = vld [vmem:[#allocation11 + $0x150] sm:$0xff]   ;;  %v2780_v4 = vrot.slane %v2778_v32, 4  ;;  %v2781_v38 = vshll.u32 %v2701_v44, 16  ;;  %5614 = vmatpush3.bf16.msra.mxu0 %v5942_v42 }
 0x254   : > { %v2748_v22 = vsel %vm6615_vm14, %v2743_v57, %v2747_v24  ;;  %v5946_v0 = vld [vmem:[#allocation11 + $0x198] sm:$0xff]   ;;  %v2787_v30 = vshll.u32 %v2702_v53, 16  ;;  %4322 = vmatmul.mubr.bf16.gmra.mrb[44].mxu0 %v5109_v26  ;;  %5570 = vmatpush3.bf16.msra.mxu1 %v5939_v3  ;;  %v5104_v55 = vrot.slane %v2847_v56, 9  ;;  %v2889_v2 = vrot.slane %v2848_v48, 5  ;;  %v5950_v50 = vld [vmem:[#allocation11 + $0x1e0] sm:$0xff]   ;;  %v5949_v15 = vld [vmem:[#allocation11 + $0x110] sm:$0xff]  }
 0x255   : > { %v2849_v5 = vld [vmem:[#allocation4 + $0x28] sm:$0xe]  ;;  %v5097_v47 = vcombine.low %v2748_v22, %v2762_v20  ;;  %v2770_v9 = vor.u32 %v2769_v63, %v2766_v62  ;;  %v2850_v10 = vld [vmem:[#allocation4 + $0x2c] sm:$0x1]  ;;  %4329 = vmatprep.mubr.bf16.mxu0 %v5941_v13  ;;  %v2783_v36 = vrot.slane %v2781_v38, 5  ;;  %5571 = vmatprep.subr.bf16.mxu1 %v5943_v52  ;;  %v2775_v7 = vrot.slane %v2773_v8, 5 }
 0x256   : > { %v5105_v49 = vrot.slane %v2849_v5, 9  ;;  %v2893_v12 = vrot.slane %v2850_v10, 5  ;;  %v7030_v17 = vrot.slane %v3349_v18, 4  ;;  %v3352_v16 = vshll.u32 %v7024_v40, 16  ;;  %5615 = vmatprep.subr.bf16.mxu0 %v5945_v60  ;;  %v5947_v58 = vld [vmem:[#allocation4 + $0x10] ss:$8 sps:$4 sm:$0xff]  }
 0x257   : > { %4256 = vmatprep.mubr.bf16.mxu1 %v5097_v47  ;;  %v2771_v14 = vrot.slane %v2770_v9, 4  ;;  %v2784_v19 = vor.u32 %v2783_v36, %v2780_v4  ;;  %v2789_v21 = vrot.slane %v2787_v30, 5  ;;  %v2890_v24 = vsel %vm6627_vm15, %v5104_v55, %v2889_v2  ;;  %v5952_v6 = vld [vmem:[#allocation11 + $0x1a0] sm:$0xff]   ;;  %v5953_v27 = vld [vmem:[#allocation11 + $0x158] sm:$0xff]   ;;  %v2705_v28 = vld [vmem:[#allocation4 + $0x38] sm:$0xf]  ;;  %5616 = vmatpush3.bf16.msra.mxu0 %v5946_v0 }
 0x258   : > { %v2894_v29 = vsel %vm6627_vm15, %v5105_v49, %v2893_v12  ;;  %v2703_v34 = vld [vmem:[#allocation4 + $0x30] sm:$0xf]  ;;  %5572 = vmatpush3.bf16.msra.mxu1 %v5944_v61  ;;  %v2704_v33 = vld [vmem:[#allocation4 + $0x34] sm:$0x1]  ;;  %v2706_v39 = vld [vmem:[#allocation4 + $0x3c] sm:$0x1]  ;;  %5617 = vmatprep.subr.bf16.mxu0 %v5950_v50 }
 0x259   : > { %v2776_v35 = vsel %vm6615_vm14, %v2771_v14, %v2775_v7  ;;  %v5110_v3 = vcombine.low %v2890_v24, %v2894_v29  ;;  %5573 = vmatprep.subr.bf16.mxu1 %v5948_v1  ;;  %v2785_v41 = vrot.slane %v2784_v19, 4  ;;  %v5951_v42 = vld [vmem:[#allocation4 + $0x38] ss:$8 sps:$4 sm:$0xff]   ;;  %v2792_v44 = vshrl.u32 %v2703_v34, 16  ;;  %v2851_v51 = vld [vmem:[#allocation4 + $0x30] sm:$0xe] }
 0x25a   : > { %v5955_v31 = vld [vmem:[#allocation11 + $0x1e8] sm:$0xff]   ;;  %v2795_v45 = vshll.u32 %v2703_v34, 16  ;;  %v2801_v46 = vshll.u32 %v2704_v33, 16  ;;  %v5954_v52 = vld [vmem:[#allocation11 + $0x118] sm:$0xff]   ;;  %v2806_v53 = vshrl.u32 %v2705_v28, 16  ;;  %v2809_v54 = vshll.u32 %v2705_v28, 16 }
 0x25b   : > { %v2815_v56 = vshll.u32 %v2706_v39, 16  ;;  %v2852_v18 = vld [vmem:[#allocation4 + $0x34] sm:$0x1]  ;;  %v5106_v57 = vrot.slane %v2851_v51, 9  ;;  %4257 = vmatmul.mubr.bf16.gmra.mrb[36].mxu1 %v5947_v58  ;;  %v2790_v59 = vsel %vm6615_vm14, %v2785_v41, %v2789_v21  ;;  %v5956_v60 = vld [vmem:[#allocation11 + $0x1a8] sm:$0xff]   ;;  %v2794_v62 = vrot.slane %v2792_v44, 4  ;;  %5618 = vmatpush3.bf16.msra.mxu0 %v5952_v6 }
 0x25c   : > { %v2797_v32 = vrot.slane %v2795_v45, 5  ;;  %v2803_v48 = vrot.slane %v2801_v46, 5  ;;  %v2853_v20 = vld [vmem:[#allocation4 + $0x38] sm:$0xe]  ;;  %v5098_v26 = vcombine.low %v2776_v35, %v2790_v59  ;;  %4330 = vmatmul.mubr.bf16.gmra.mrb[48].mxu0 %v5110_v3  ;;  %5574 = vmatpush3.bf16.msra.mxu1 %v5949_v15  ;;  %v5958_v13 = vld [vmem:[#allocation11 + $0x160] sm:$0xff]   ;;  %v2808_v61 = vrot.slane %v2806_v53, 4 }
 0x25d   : > { %v2811_v63 = vrot.slane %v2809_v54, 5  ;;  %v2817_v8 = vrot.slane %v2815_v56, 5  ;;  %v2854_v22 = vld [vmem:[#allocation4 + $0x3c] sm:$0x1]  ;;  %4337 = vmatprep.mubr.bf16.mxu0 %v5951_v42  ;;  %v2897_v1 = vrot.slane %v2852_v18, 5  ;;  %v5107_v4 = vrot.slane %v2853_v20, 9  ;;  %5575 = vmatprep.subr.bf16.mxu1 %v5953_v27 }
 0x25e   : > { %v2798_v0 = vor.u32 %v2797_v32, %v2794_v62  ;;  %v2901_v38 = vrot.slane %v2854_v22, 5  ;;  %v5960_v30 = vld [vmem:[#allocation11 + $0x1f0] sm:$0xff]   ;;  %v3228_v5 = vld [vmem:[#allocation4 + $0x10] sm:$0xf]  ;;  %4264 = vmatprep.mubr.bf16.mxu1 %v5098_v26  ;;  %v3229_v10 = vld [vmem:[#allocation4 + $0x14] sm:$0x1]  ;;  %5619 = vmatprep.subr.bf16.mxu0 %v5955_v31 }
 0x25f   : > { %v2812_v47 = vor.u32 %v2811_v63, %v2808_v61  ;;  %v5959_v9 = vld [vmem:[#allocation11 + $0x120] sm:$0xff]   ;;  %v3230_v55 = vld [vmem:[#allocation4 + $0x18] sm:$0xf]  ;;  %v3231_v2 = vld [vmem:[#allocation4 + $0x1c] sm:$0x1]  ;;  %v2898_v49 = vsel %vm6627_vm15, %v5106_v57, %v2897_v1  ;;  %v3245_v12 = vshrl.u32 %v3228_v5, 16  ;;  %5620 = vmatpush3.bf16.msra.mxu0 %v5956_v60 }
 0x260   : > { %v2799_v36 = vrot.slane %v2798_v0, 4  ;;  %5576 = vmatpush3.bf16.msra.mxu1 %v5954_v52  ;;  %v5957_v50 = vld [vmem:[#allocation4 + $0x20] ss:$8 sps:$4 sm:$0xff]   ;;  %v2902_v7 = vsel %vm6627_vm15, %v5107_v4, %v2901_v38  ;;  %v3248_v58 = vshll.u32 %v3228_v5, 16  ;;  %v3254_v19 = vshll.u32 %v3229_v10, 16  ;;  %v5962_v34 = vld [vmem:[#allocation11 + $0x168] sm:$0xff]   ;;  %5621 = vmatprep.subr.bf16.mxu0 %v5960_v30 }
 0x261   : > { %v2813_v14 = vrot.slane %v2812_v47, 4  ;;  %v5961_v15 = vld [vmem:[#allocation11 + $0x1b0] sm:$0xff]   ;;  %5577 = vmatprep.subr.bf16.mxu1 %v5958_v13  ;;  %v3247_v24 = vrot.slane %v3245_v12, 4  ;;  %v3259_v29 = vshrl.u32 %v3230_v55, 16  ;;  %v3262_v6 = vshll.u32 %v3230_v55, 16  ;;  %v5963_v39 = vld [vmem:[#allocation11 + $0x128] sm:$0xff]  }
 0x262   : > { %v2804_v21 = vsel %vm6615_vm14, %v2799_v36, %v2803_v48  ;;  %v3107_v35 = vld [vmem:[#allocation4 + $0x8] sm:$0xe]  ;;  %v5111_v27 = vcombine.low %v2898_v49, %v2902_v7  ;;  %v3250_v33 = vrot.slane %v3248_v58, 5  ;;  %v3268_v28 = vshll.u32 %v3231_v2, 16  ;;  %v3108_v42 = vld [vmem:[#allocation4 + $0xc] sm:$0x1] }
 0x263   : > { %v2818_v3 = vsel %vm6615_vm14, %v2813_v14, %v2817_v8  ;;  %v5964_v41 = vld [vmem:[#allocation11 + $0x1f8] sm:$0xff]   ;;  %4265 = vmatmul.mubr.bf16.gmra.mrb[40].mxu1 %v5957_v50  ;;  %v3261_v44 = vrot.slane %v3259_v29, 4  ;;  %v3264_v45 = vrot.slane %v3262_v6, 5  ;;  %v3109_v46 = vld [vmem:[#allocation4 + $0x10] sm:$0xe]  ;;  %v5120_v54 = vrot.slane %v3107_v35, 9  ;;  %5622 = vmatpush3.bf16.msra.mxu0 %v5961_v15 }
 0x264   : > { %v5099_v31 = vcombine.low %v2804_v21, %v2818_v3  ;;  %v3110_v51 = vld [vmem:[#allocation4 + $0x14] sm:$0x1]  ;;  %4338 = vmatmul.mubr.bf16.gmra.mrb[52].mxu0 %v5111_v27  ;;  %5578 = vmatpush3.bf16.msra.mxu1 %v5959_v9  ;;  %v3251_v52 = vor.u32 %v3250_v33, %v3247_v24  ;;  %v5965_v53 = vld [vmem:[#allocation11 + $0x1b8] sm:$0xff]   ;;  %v3141_v56 = vrot.slane %v3108_v42, 5  ;;  %v7051_v18 = vrot.slane %v3352_v16, 5  ;;  %v5967_v60 = vld [vmem:[#allocation11 + $0x170] sm:$0xff]  }
 0x265   : > { %v3256_v57 = vrot.slane %v3254_v19, 5  ;;  %v3265_v59 = vor.u32 %v3264_v45, %v3261_v44  ;;  %v5121_v62 = vrot.slane %v3109_v46, 9  ;;  %v3145_v32 = vrot.slane %v3110_v51, 5  ;;  %5579 = vmatprep.subr.bf16.mxu1 %v5962_v34  ;;  %5623 = vmatprep.subr.bf16.mxu0 %v5964_v41  ;;  %v5968_v26 = vld [vmem:[#allocation11 + $0x130] sm:$0xff]   ;;  %v5966_v8 = vld [vmem:[#allocation4 + $0x30] ss:$8 sps:$4 sm:$0xff]  }
 0x266   : > { %4272 = vmatprep.mubr.bf16.mxu1 %v5099_v31  ;;  %v3252_v48 = vrot.slane %v3251_v52, 4  ;;  %v3270_v20 = vrot.slane %v3268_v28, 5  ;;  %v3232_v13 = vld [vmem:[#allocation4 + $0x20] sm:$0xf]  ;;  %v3233_v61 = vld [vmem:[#allocation4 + $0x24] sm:$0x1]  ;;  %v3142_v40 = vsel %vm6627_vm15, %v5120_v54, %v3141_v56 }
 0x267   : > { %v3266_v63 = vrot.slane %v3265_v59, 4  ;;  %v3146_v16 = vsel %vm6627_vm15, %v5121_v62, %v3145_v32  ;;  %v3234_v22 = vld [vmem:[#allocation4 + $0x28] sm:$0xf]  ;;  %v3235_v0 = vld [vmem:[#allocation4 + $0x2c] sm:$0x1]  ;;  %v3273_v1 = vshrl.u32 %v3232_v13, 16  ;;  %5624 = vmatpush3.bf16.msra.mxu0 %v5965_v53 }
 0x268   : > { %v3257_v4 = vsel %vm6615_vm14, %v3252_v48, %v3256_v57  ;;  %5580 = vmatpush3.bf16.msra.mxu1 %v5963_v39  ;;  %v5128_v38 = vcombine.low %v3142_v40, %v3146_v16  ;;  %v3276_v30 = vshll.u32 %v3232_v13, 16  ;;  %v3282_v5 = vshll.u32 %v3233_v61, 16  ;;  %v2959_v47 = vld [vmem:[#allocation4 + $0x8] sm:$0xf]  ;;  %v2960_v9 = vld [vmem:[#allocation4 + $0xc] sm:$0x1] }
 0x269   : > { %v3271_v10 = vsel %vm6615_vm14, %v3266_v63, %v3270_v20  ;;  %5581 = vmatprep.subr.bf16.mxu1 %v5967_v60  ;;  %v5969_v55 = vld [vmem:[#allocation4 + $0x10] ss:$8 sps:$4 sm:$0xff]   ;;  %v3275_v2 = vrot.slane %v3273_v1, 4  ;;  %v3287_v36 = vshrl.u32 %v3234_v22, 16  ;;  %v3290_v49 = vshll.u32 %v3234_v22, 16  ;;  %v5970_v58 = vld [vmem:[#allocation11 + $0x178] sm:$0xff]  }
 0x26a   : > { %v2961_v12 = vld [vmem:[#allocation4 + $0x10] sm:$0xf]  ;;  %v5136_v50 = vcombine.low %v3257_v4, %v3271_v10  ;;  %v3278_v14 = vrot.slane %v3276_v30, 5  ;;  %v3284_v7 = vrot.slane %v3282_v5, 5  ;;  %v3296_v15 = vshll.u32 %v3235_v0, 16  ;;  %v5971_v27 = vld [vmem:[#allocation11 + $0x138] sm:$0xff]  }
 0x26b   : > { %v2962_v19 = vld [vmem:[#allocation4 + $0x14] sm:$0x1]  ;;  %4273 = vmatmul.mubr.bf16.gmra.mrb[44].mxu1 %v5966_v8  ;;  %v3289_v21 = vrot.slane %v3287_v36, 4  ;;  %v3292_v24 = vrot.slane %v3290_v49, 5  ;;  %v2976_v29 = vshrl.u32 %v2959_v47, 16  ;;  %v2979_v6 = vshll.u32 %v2959_v47, 16 }
 0x26c   : > { %v3111_v34 = vld [vmem:[#allocation4 + $0x18] sm:$0xe]  ;;  %4443 = vmatprep.mubr.bf16.mxu0 %v5136_v50  ;;  %5582 = vmatpush3.bf16.msra.mxu1 %v5968_v26  ;;  %v3279_v35 = vor.u32 %v3278_v14, %v3275_v2  ;;  %v3298_v3 = vrot.slane %v3296_v15, 5  ;;  %v2985_v33 = vshll.u32 %v2960_v9, 16  ;;  %v2990_v28 = vshrl.u32 %v2961_v12, 16  ;;  %v7061_v45 = vld [vmem:[#allocation11 + $0x200] sm:$0xff]  }
 0x26d   : > { %v3112_v39 = vld [vmem:[#allocation4 + $0x1c] sm:$0x1]  ;;  %4378 = vmatprep.mubr.bf16.mxu1 %v5128_v38  ;;  %4444 = vmatmul.mubr.bf16.vlgmr.msra.gmra.mrb[56].mxu0 %v5969_v55  ;;  %v3293_v41 = vor.u32 %v3292_v24, %v3289_v21  ;;  %v2978_v42 = vrot.slane %v2976_v29, 4  ;;  %v2981_v31 = vrot.slane %v2979_v6, 5  ;;  %v2993_v44 = vshll.u32 %v2961_v12, 16 }
 0x26e   : > { %v3113_v46 = vld [vmem:[#allocation4 + $0x20] sm:$0xe]  ;;  %v3280_v51 = vrot.slane %v3279_v35, 4  ;;  %5583 = vmatprep.subr.bf16.mxu1 %v5970_v58  ;;  %v2987_v52 = vrot.slane %v2985_v33, 5  ;;  %v2992_v53 = vrot.slane %v2990_v28, 4  ;;  %v2999_v54 = vshll.u32 %v2962_v19, 16 }
 0x26f   : > { %v3114_v56 = vld [vmem:[#allocation4 + $0x24] sm:$0x1]  ;;  %v3294_v57 = vrot.slane %v3293_v41, 4  ;;  %v2982_v59 = vor.u32 %v2981_v31, %v2978_v42  ;;  %v2995_v60 = vrot.slane %v2993_v44, 5  ;;  %v5122_v62 = vrot.slane %v3111_v34, 9  ;;  %v5974_v6 = vld [vmem:[#allocation11 + $0x208] sm:$0xff]  }
 0x270   : > { %v3285_v32 = vsel %vm6615_vm14, %v3280_v51, %v3284_v7  ;;  %5584 = vmatpush3.bf16.msra.mxu1 %v5971_v27  ;;  %v3001_v48 = vrot.slane %v2999_v54, 5  ;;  %v3149_v20 = vrot.slane %v3112_v39, 5  ;;  %v5123_v26 = vrot.slane %v3113_v46, 9  ;;  %v3236_v40 = vld [vmem:[#allocation4 + $0x30] sm:$0xf]  ;;  %v5975_v44 = vld [vmem:[#allocation11 + $0x210] sm:$0xff]  }
 0x271   : > { %v3299_v13 = vsel %vm6615_vm14, %v3294_v57, %v3298_v3  ;;  %v2983_v61 = vrot.slane %v2982_v59, 4  ;;  %v2996_v63 = vor.u32 %v2995_v60, %v2992_v53  ;;  %5685 = vmatprep.subr.bf16.mxu1 %v7061_v45  ;;  %v3153_v8 = vrot.slane %v3114_v56, 5  ;;  %v3237_v0 = vld [vmem:[#allocation4 + $0x34] sm:$0x1]  ;;  %v3238_v1 = vld [vmem:[#allocation4 + $0x38] sm:$0xf] }
 0x272   : > { %v5137_v16 = vcombine.low %v3285_v32, %v3299_v13  ;;  %v3150_v22 = vsel %vm6627_vm15, %v5122_v62, %v3149_v20  ;;  %v3239_v4 = vld [vmem:[#allocation4 + $0x3c] sm:$0x1]  ;;  %v5973_v47 = vld [vmem:[#allocation4 + $0x20] ss:$8 sps:$4 sm:$0xff]   ;;  %v3301_v9 = vshrl.u32 %v3236_v40, 16  ;;  %v3304_v2 = vshll.u32 %v3236_v40, 16 }
 0x273   : > { %v2988_v38 = vsel %vm6615_vm14, %v2983_v61, %v2987_v52  ;;  %v2997_v30 = vrot.slane %v2996_v63, 4  ;;  %v3154_v5 = vsel %vm6627_vm15, %v5123_v26, %v3153_v8  ;;  %v2963_v10 = vld [vmem:[#allocation4 + $0x18] sm:$0xf]  ;;  %v3310_v36 = vshll.u32 %v3237_v0, 16  ;;  %v2964_v12 = vld [vmem:[#allocation4 + $0x1c] sm:$0x1] }
 0x274   : > { %4451 = vmatprep.mubr.bf16.mxu0 %v5137_v16  ;;  %v5129_v55 = vcombine.low %v3150_v22, %v3154_v5  ;;  %v3315_v49 = vshrl.u32 %v3238_v1, 16  ;;  %v3303_v14 = vrot.slane %v3301_v9, 4  ;;  %v3318_v7 = vshll.u32 %v3238_v1, 16  ;;  %v2965_v58 = vld [vmem:[#allocation4 + $0x20] sm:$0xf] }
 0x275   : > { %v3002_v50 = vsel %vm6615_vm14, %v2997_v30, %v3001_v48  ;;  %4452 = vmatmul.mubr.bf16.gmra.mrb[60].mxu0 %v5973_v47  ;;  %v3324_v15 = vshll.u32 %v3239_v4, 16  ;;  %v3306_v21 = vrot.slane %v3304_v2, 5  ;;  %v3312_v24 = vrot.slane %v3310_v36, 5  ;;  %v2966_v34 = vld [vmem:[#allocation4 + $0x24] sm:$0x1]  ;;  %v5977_v47 = vld [vmem:[#allocation11 + $0x218] sm:$0xff]  }
 0x276   : > { %v5116_v19 = vcombine.low %v2988_v38, %v3002_v50  ;;  %v3317_v29 = vrot.slane %v3315_v49, 4  ;;  %v3320_v35 = vrot.slane %v3318_v7, 5  ;;  %v3004_v27 = vshrl.u32 %v2963_v10, 16  ;;  %v3115_v28 = vld [vmem:[#allocation4 + $0x28] sm:$0xe] }
 0x277   : > { %v3326_v3 = vrot.slane %v3324_v15, 5  ;;  %v3007_v33 = vshll.u32 %v2963_v10, 16  ;;  %v3307_v39 = vor.u32 %v3306_v21, %v3303_v14  ;;  %v3013_v41 = vshll.u32 %v2964_v12, 16  ;;  %v3116_v46 = vld [vmem:[#allocation4 + $0x2c] sm:$0x1] }
 0x278   : > { %4379 = vmatmul.mubr.bf16.vlgmr.msra.gmra.mrb[48].mxu1 %v5116_v19  ;;  %v3018_v42 = vshrl.u32 %v2965_v58, 16  ;;  %v3021_v31 = vshll.u32 %v2965_v58, 16  ;;  %v3321_v51 = vor.u32 %v3320_v35, %v3317_v29  ;;  %v3006_v52 = vrot.slane %v3004_v27, 4  ;;  %v3117_v54 = vld [vmem:[#allocation4 + $0x30] sm:$0xe] }
 0x279   : > { %4386 = vmatprep.mubr.bf16.mxu1 %v5129_v55  ;;  %5686 = vmatpush3.bf16.msra.mxu1 %v7061_v45  ;;  %v3009_v53 = vrot.slane %v3007_v33, 5  ;;  %v3118_v56 = vld [vmem:[#allocation4 + $0x34] sm:$0x1]  ;;  %v3308_v57 = vrot.slane %v3307_v39, 4  ;;  %v3027_v62 = vshll.u32 %v2966_v34, 16  ;;  %v3015_v20 = vrot.slane %v3013_v41, 5 }
 0x27a   : > { %5687 = vmatprep.subr.bf16.mxu1 %v5974_v6  ;;  %v3020_v59 = vrot.slane %v3018_v42, 4  ;;  %v3023_v60 = vrot.slane %v3021_v31, 5  ;;  %v3322_v32 = vrot.slane %v3321_v51, 4  ;;  %v5124_v26 = vrot.slane %v3115_v28, 9  ;;  %v3240_v8 = vld [vmem:[#allocation4 + $0x40] sm:$0xf] }
 0x27b   : > { %v3010_v48 = vor.u32 %v3009_v53, %v3006_v52  ;;  %v3313_v13 = vsel %vm6615_vm14, %v3308_v57, %v3312_v24  ;;  %v3157_v63 = vrot.slane %v3116_v46, 5  ;;  %v5125_v45 = vrot.slane %v3117_v54, 9  ;;  %v3241_v0 = vld [vmem:[#allocation4 + $0x44] sm:$0x1]  ;;  %v2967_v9 = vld [vmem:[#allocation4 + $0x28] sm:$0xf] }
 0x27c   : > { %v3024_v61 = vor.u32 %v3023_v60, %v3020_v59  ;;  %v3327_v40 = vsel %vm6615_vm14, %v3322_v32, %v3326_v3  ;;  %v3161_v22 = vrot.slane %v3118_v56, 5  ;;  %v3329_v1 = vshrl.u32 %v3240_v8, 16  ;;  %v5976_v2 = vld [vmem:[#allocation4 + $0x30] ss:$8 sps:$4 sm:$0xff]   ;;  %v2968_v15 = vld [vmem:[#allocation4 + $0x2c] sm:$0x1] }
 0x27d   : > { %5688 = vmatpush3.bf16.msra.mxu1 %v5974_v6  ;;  %v3011_v16 = vrot.slane %v3010_v48, 4  ;;  %v5138_v4 = vcombine.low %v3313_v13, %v3327_v40  ;;  %v3029_v30 = vrot.slane %v3027_v62, 5  ;;  %v3332_v5 = vshll.u32 %v3240_v8, 16  ;;  %v2969_v12 = vld [vmem:[#allocation4 + $0x30] sm:$0xf] }
 0x27e   : > { %v3025_v38 = vrot.slane %v3024_v61, 4  ;;  %5689 = vmatprep.subr.bf16.mxu1 %v5975_v44  ;;  %v3158_v10 = vsel %vm6627_vm15, %v5124_v26, %v3157_v63  ;;  %v3162_v55 = vsel %vm6627_vm15, %v5125_v45, %v3161_v22  ;;  %v3331_v36 = vrot.slane %v3329_v1, 4  ;;  %v2970_v58 = vld [vmem:[#allocation4 + $0x34] sm:$0x1]  ;;  %v3119_v6 = vld [vmem:[#allocation4 + $0x38] sm:$0xe] }
 0x27f   : > { %v3338_v49 = vshll.u32 %v3241_v0, 16  ;;  %4459 = vmatprep.mubr.bf16.mxu0 %v5138_v4  ;;  %v3016_v50 = vsel %vm6615_vm14, %v3011_v16, %v3015_v20  ;;  %v3334_v7 = vrot.slane %v3332_v5, 5  ;;  %v3032_v19 = vshrl.u32 %v2967_v9, 16  ;;  %v3120_v34 = vld [vmem:[#allocation4 + $0x3c] sm:$0x1]  ;;  %v5978_v39 = vld [vmem:[#allocation11 + $0x220] sm:$0xff]  }
 0x280   : > { %v3030_v14 = vsel %vm6615_vm14, %v3025_v38, %v3029_v30  ;;  %v5130_v24 = vcombine.low %v3158_v10, %v3162_v55  ;;  %4460 = vmatmul.mubr.bf16.gmra.mrb[64].mxu0 %v5976_v2  ;;  %v3035_v29 = vshll.u32 %v2967_v9, 16  ;;  %v3121_v35 = vld [vmem:[#allocation4 + $0x40] sm:$0xe]  ;;  %v3046_v33 = vshrl.u32 %v2969_v12, 16  ;;  %v3122_v41 = vld [vmem:[#allocation4 + $0x44] sm:$0x1] }
 0x281   : > { %v5117_v21 = vcombine.low %v3016_v50, %v3030_v14  ;;  %5690 = vmatpush3.bf16.msra.mxu1 %v5975_v44  ;;  %v3335_v3 = vor.u32 %v3334_v7, %v3331_v36  ;;  %v3034_v27 = vrot.slane %v3032_v19, 4  ;;  %v3049_v28 = vshll.u32 %v2969_v12, 16  ;;  %v2971_v60 = vld [vmem:[#allocation4 + $0x38] sm:$0xf]  ;;  %v5979_v61 = vld [vmem:[#allocation4 + $0x40] ss:$8 sps:$4 sm:$0xff]  }
 0x282   : > { %5691 = vmatprep.subr.bf16.mxu1 %v5977_v47  ;;  %v3340_v42 = vrot.slane %v3338_v49, 5  ;;  %v3355_v31 = vsel %vm6615_vm14, %v7030_v17, %v7051_v18  ;;  %v3037_v46 = vrot.slane %v3035_v29, 5  ;;  %v3041_v44 = vshll.u32 %v2968_v15, 16  ;;  %v5980_v17 = vld [vmem:[#allocation11 + $0x228] sm:$0xff]   ;;  %v2973_v18 = vld [vmem:[#allocation4 + $0x40] sm:$0xf] }
 0x283   : > { %4387 = vmatmul.mubr.bf16.gmra.mrb[52].mxu1 %v5117_v21  ;;  %v3336_v51 = vrot.slane %v3335_v3, 4  ;;  %v3048_v52 = vrot.slane %v3046_v33, 4  ;;  %v3051_v53 = vrot.slane %v3049_v28, 5  ;;  %v3055_v54 = vshll.u32 %v2970_v58, 16  ;;  %v2974_v16 = vld [vmem:[#allocation4 + $0x44] sm:$0x1] }
 0x284   : > { %4394 = vmatprep.mubr.bf16.mxu1 %v5130_v24  ;;  %v3038_v56 = vor.u32 %v3037_v46, %v3034_v27  ;;  %v5127_v57 = vrot.slane %v3121_v35, 9  ;;  %v3169_v59 = vrot.slane %v3122_v41, 5  ;;  %v5126_v48 = vrot.slane %v3119_v6, 9  ;;  %v2972_v1 = vld [vmem:[#allocation4 + $0x3c] sm:$0x1]  ;;  %v5981_v14 = vld [vmem:[#allocation11 + $0x230] sm:$0xff]  }
 0x285   : > { %5692 = vmatpush3.bf16.msra.mxu1 %v5977_v47  ;;  %v3341_v62 = vsel %vm6615_vm14, %v3336_v51, %v3340_v42  ;;  %v3052_v32 = vor.u32 %v3051_v53, %v3048_v52  ;;  %v3165_v20 = vrot.slane %v3120_v34, 5  ;;  %v3060_v63 = vshrl.u32 %v2971_v60, 16  ;;  %v3376_v55 = vld [vmem:[#allocation4 + $0x10] sm:$0xe]  ;;  %v3377_v2 = vld [vmem:[#allocation4 + $0x14] sm:$0x1] }
 0x286   : > { %5693 = vmatprep.subr.bf16.mxu1 %v5978_v39  ;;  %v5139_v26 = vcombine.low %v3341_v62, %v3355_v31  ;;  %v3039_v13 = vrot.slane %v3038_v56, 4  ;;  %v3043_v45 = vrot.slane %v3041_v44, 5  ;;  %v3057_v40 = vrot.slane %v3055_v54, 5  ;;  %v3378_v19 = vld [vmem:[#allocation4 + $0x18] sm:$0xe]  ;;  %v5982_v28 = vld [vmem:[#allocation11 + $0x238] sm:$0xff]  }
 0x287   : > { %v3053_v8 = vrot.slane %v3052_v32, 4  ;;  %v3063_v22 = vshll.u32 %v2971_v60, 16  ;;  %v3170_v0 = vsel %vm6627_vm15, %v5127_v57, %v3169_v59  ;;  %v3062_v4 = vrot.slane %v3060_v63, 4  ;;  %v3379_v21 = vld [vmem:[#allocation4 + $0x1c] sm:$0x1] }
 0x288   : > { %4467 = vmatprep.mubr.bf16.mxu0 %v5139_v26  ;;  %v3074_v38 = vshrl.u32 %v2973_v18, 16  ;;  %v3077_v30 = vshll.u32 %v2973_v18, 16  ;;  %v3044_v5 = vsel %vm6615_vm14, %v3039_v13, %v3043_v45  ;;  %v3166_v9 = vsel %vm6627_vm15, %v5126_v48, %v3165_v20  ;;  %v3382_v31 = vld [vmem:[#allocation4 + $0x28] sm:$0xe]  ;;  %v3383_v46 = vld [vmem:[#allocation4 + $0x2c] sm:$0x1] }
 0x289   : > { %5694 = vmatpush3.bf16.msra.mxu1 %v5978_v39  ;;  %v3058_v47 = vsel %vm6615_vm14, %v3053_v8, %v3057_v40  ;;  %4468 = vmatmul.mubr.bf16.gmra.mrb[68].mxu0 %v5979_v61  ;;  %v3065_v10 = vrot.slane %v3063_v22, 5  ;;  %v3083_v50 = vshll.u32 %v2974_v16, 16  ;;  %v5131_v7 = vcombine.low %v3166_v9, %v3170_v0  ;;  %v3384_v51 = vld [vmem:[#allocation4 + $0x30] sm:$0xe]  ;;  %v3385_v52 = vld [vmem:[#allocation4 + $0x34] sm:$0x1] }
 0x28a   : > { %5695 = vmatprep.subr.bf16.mxu1 %v5980_v17  ;;  %v5118_v36 = vcombine.low %v3044_v5, %v3058_v47  ;;  %v3076_v49 = vrot.slane %v3074_v38, 4  ;;  %v3079_v12 = vrot.slane %v3077_v30, 5  ;;  %v3069_v58 = vshll.u32 %v2972_v1, 16  ;;  %v3380_v56 = vld [vmem:[#allocation4 + $0x20] sm:$0xe] }
 0x28b   : > { %v3066_v15 = vor.u32 %v3065_v10, %v3062_v4  ;;  %v5140_v29 = vrot.slane %v3376_v55, 9  ;;  %v3410_v6 = vrot.slane %v3377_v2, 5  ;;  %v3085_v3 = vrot.slane %v3083_v50, 5  ;;  %v3381_v57 = vld [vmem:[#allocation4 + $0x24] sm:$0x1] }
 0x28c   : > { %4395 = vmatmul.mubr.bf16.gmra.mrb[56].mxu1 %v5118_v36  ;;  %v3080_v24 = vor.u32 %v3079_v12, %v3076_v49  ;;  %v5141_v27 = vrot.slane %v3378_v19, 9  ;;  %v3414_v33 = vrot.slane %v3379_v21, 5  ;;  %v3071_v39 = vrot.slane %v3069_v58, 5  ;;  %v3386_v32 = vld [vmem:[#allocation4 + $0x38] sm:$0xe] }
 0x28d   : > { %4402 = vmatprep.mubr.bf16.mxu1 %v5131_v7  ;;  %5696 = vmatpush3.bf16.msra.mxu1 %v5980_v17  ;;  %v3067_v34 = vrot.slane %v3066_v15, 4  ;;  %v3411_v42 = vsel %vm6627_vm15, %v5140_v29, %v3410_v6  ;;  %v5143_v60 = vrot.slane %v3382_v31, 9  ;;  %v3422_v62 = vrot.slane %v3383_v46, 5  ;;  %v3387_v48 = vld [vmem:[#allocation4 + $0x3c] sm:$0x1] }
 0x28e   : > { %v3081_v35 = vrot.slane %v3080_v24, 4  ;;  %5697 = vmatprep.subr.bf16.mxu1 %v5981_v14  ;;  %v3415_v54 = vsel %vm6627_vm15, %v5141_v27, %v3414_v33  ;;  %v5144_v20 = vrot.slane %v3384_v51, 9  ;;  %v3426_v17 = vrot.slane %v3385_v52, 5  ;;  %v3390_v45 = vld [vmem:[#allocation4 + $0x48] sm:$0xe] }
 0x28f   : > { %v3072_v44 = vsel %vm6615_vm14, %v3067_v34, %v3071_v39  ;;  %v5148_v59 = vcombine.low %v3411_v42, %v3415_v54  ;;  %v5142_v18 = vrot.slane %v3380_v56, 9  ;;  %v3418_v26 = vrot.slane %v3381_v57, 5  ;;  %v3388_v40 = vld [vmem:[#allocation4 + $0x40] sm:$0xe]  ;;  %v3389_v16 = vld [vmem:[#allocation4 + $0x44] sm:$0x1] }
 0x290   : > { %v3086_v41 = vsel %vm6615_vm14, %v3081_v35, %v3085_v3  ;;  %v5145_v13 = vrot.slane %v3386_v32, 9  ;;  %v3430_v61 = vrot.slane %v3387_v48, 5  ;;  %v3423_v63 = vsel %vm6627_vm15, %v5143_v60, %v3422_v62  ;;  %v3391_v22 = vld [vmem:[#allocation4 + $0x4c] sm:$0x1]  ;;  %v4555_v36 = vld [vmem:[%s6545_s28 + $0x18] sm:$0x1] }
 0x291   : > { %5698 = vmatpush3.bf16.msra.mxu1 %v5981_v14  ;;  %v5119_v53 = vcombine.low %v3072_v44, %v3086_v41  ;;  %v3427_v8 = vsel %vm6627_vm15, %v5144_v20, %v3426_v17  ;;  %v3419_v0 = vsel %vm6627_vm15, %v5142_v18, %v3418_v26  ;;  %v5147_v38 = vrot.slane %v3390_v45, 9  ;;  %v4585_v49 = vld [vmem:[%s6545_s28 + $0x1c] sm:$0x1]  ;;  %v4579_v14 = vld [vmem:[%s6545_s28 + $0xc] sm:$0x1] }
 0x292   : > { %5699 = vmatprep.subr.bf16.mxu1 %v5982_v28  ;;  %v5149_v1 = vcombine.low %v3419_v0, %v3423_v63  ;;  %v3431_v4 = vsel %vm6627_vm15, %v5145_v13, %v3430_v61  ;;  %v5146_v5 = vrot.slane %v3388_v40, 9  ;;  %v3434_v47 = vrot.slane %v3389_v16, 5  ;;  %v4558_v58 = vld [vmem:[%s6545_s28 + $0x20] sm:$0x1]  ;;  %v4588_v19 = vld [vmem:[%s6545_s28 + $0x24] sm:$0x1] }
 0x293   : > { %v5150_v30 = vcombine.low %v3427_v8, %v3431_v4  ;;  %v3438_v9 = vrot.slane %v3391_v22, 5  ;;  %v4556_v12 = vsel %vm6552_vm3, 0, %v4555_v36  ;;  %v4586_v50 = vsel %vm6557_vm4, 0, %v4585_v49  ;;  %v4552_v29 = vld [vmem:[%s6545_s28 + $0x10] sm:$0x1] }
 0x294   : > { %4403 = vmatmul.mubr.bf16.gmra.mrb[60].mxu1 %v5119_v53  ;;  %v3435_v10 = vsel %vm6627_vm15, %v5146_v5, %v3434_v47  ;;  %4557 = vst [vmem:[%s6545_s28 + $0x18] sm:$0x1] %v4556_v12  ;;  %4587 = vst [vmem:[%s6545_s28 + $0x1c] sm:$0x1] %v4586_v50  ;;  %v4550_v7 = vsel %vm6552_vm3, 0, %v4549_v43  ;;  %v4580_v15 = vsel %vm6557_vm4, 0, %v4579_v14 }
 0x295   : > { %5701 = vmatprep.mubr.bf16.mxu1 %v5148_v59  ;;  %5700 = vmatpush3.bf16.msra.mxu1 %v5982_v28  ;;  %v3439_v55 = vsel %vm6627_vm15, %v5147_v38, %v3438_v9  ;;  %4551 = vst [vmem:[%s6545_s28 + $0x8] sm:$0x1] %v4550_v7  ;;  %4581 = vst [vmem:[%s6545_s28 + $0xc] sm:$0x1] %v4580_v15  ;;  %v4559_v21 = vsel %vm6552_vm3, 0, %v4558_v58  ;;  %v4589_v24 = vsel %vm6557_vm4, 0, %v4588_v19 }
 0x296   : > { %v5151_v2 = vcombine.low %v3435_v10, %v3439_v55  ;;  %v4582_v6 = vld [vmem:[%s6545_s28 + $0x14] sm:$0x1]  ;;  %4560 = vst [vmem:[%s6545_s28 + $0x20] sm:$0x1] %v4559_v21  ;;  %4590 = vst [vmem:[%s6545_s28 + $0x24] sm:$0x1] %v4589_v24 }
 0x297   : > { %v4553_v34 = vsel %vm6552_vm3, 0, %v4552_v29  ;;  %v4583_v35 = vsel %vm6557_vm4, 0, %v4582_v6  ;;  %v4567_v3 = vld [vmem:[%s6545_s28 + $0x38] sm:$0x1]  ;;  %v4597_v27 = vld [vmem:[%s6545_s28 + $0x3c] sm:$0x1] }
 0x298   : > { %4554 = vst [vmem:[%s6545_s28 + $0x10] sm:$0x1] %v4553_v34  ;;  %4584 = vst [vmem:[%s6545_s28 + $0x14] sm:$0x1] %v4583_v35  ;;  %v4568_v33 = vsel %vm6552_vm3, 0, %v4567_v3  ;;  %v4598_v28 = vsel %vm6557_vm4, 0, %v4597_v27 }
 0x299   : > { %4569 = vst [vmem:[%s6545_s28 + $0x38] sm:$0x1] %v4568_v33  ;;  %4599 = vst [vmem:[%s6545_s28 + $0x3c] sm:$0x1] %v4598_v28  ;;  %v4561_v39 = vld [vmem:[%s6545_s28 + $0x28] sm:$0x1] }
 0x29a   : > { %v4562_v41 = vsel %vm6552_vm3, 0, %v4561_v39  ;;  %v4591_v42 = vld [vmem:[%s6545_s28 + $0x2c] sm:$0x1]  ;;  %v4570_v46 = vld [vmem:[%s6545_s28 + $0x40] sm:$0x1]  ;;  %v3680_v38 = vshll.u32 %v5155_v25, 16 }
 0x29b   : > { %4563 = vst [vmem:[%s6545_s28 + $0x28] sm:$0x1] %v4562_v41  ;;  %v4592_v31 = vsel %vm6557_vm4, 0, %v4591_v42  ;;  %v4600_v44 = vld [vmem:[%s6545_s28 + $0x44] sm:$0x1]  ;;  %v4571_v51 = vsel %vm6552_vm3, 0, %v4570_v46 }
 0x29c   : > { %5702 = vmatmul.mubr.bf16.vlgmr.msra.gmra.mrb[64].mxu1 %v5149_v1  ;;  %4593 = vst [vmem:[%s6545_s28 + $0x2c] sm:$0x1] %v4592_v31  ;;  %v4601_v52 = vsel %vm6557_vm4, 0, %v4600_v44  ;;  %v4564_v53 = vld [vmem:[%s6545_s28 + $0x30] sm:$0x1]  ;;  %v3682_v15 = vrot.slane %v3680_v38, 5 }
 0x29d   : > { %5705 = vmatprep.mubr.bf16.mxu1 %v5150_v30  ;;  %v4594_v54 = vld [vmem:[%s6545_s28 + $0x34] sm:$0x1]  ;;  %4572 = vst [vmem:[%s6545_s28 + $0x40] sm:$0x1] %v4571_v51  ;;  %4602 = vst [vmem:[%s6545_s28 + $0x44] sm:$0x1] %v4601_v52 }
 0x29e   : > { %v4565_v56 = vsel %vm6552_vm3, 0, %v4564_v53  ;;  %v4595_v57 = vsel %vm6557_vm4, 0, %v4594_v54  ;;  %v5152_v59 = vld [vmem:[%s6527_s10 + $0x8] sm:$0xf]  ;;  %v5154_v60 = vld [vmem:[%s6527_s10 + $0x10] sm:$0xf] }
 0x29f   : > { %4566 = vst [vmem:[%s6545_s28 + $0x30] sm:$0x1] %v4565_v56  ;;  %4596 = vst [vmem:[%s6545_s28 + $0x34] sm:$0x1] %v4595_v57  ;;  %v3657_v62 = vshrl.u32 %v5152_v59, 16  ;;  %v3660_v32 = vshll.u32 %v5152_v59, 16 }
 0x2a0   : > { %v3671_v48 = vshrl.u32 %v5154_v60, 16  ;;  %v3674_v20 = vshll.u32 %v5154_v60, 16  ;;  %v5156_v26 = vld [vmem:[%s6527_s10 + $0x18] sm:$0xf]  ;;  %v5153_v13 = vld [vmem:[%s6527_s10 + $0xc] sm:$0x1] }
 0x2a1   : > { %v3659_v17 = vrot.slane %v3657_v62, 4  ;;  %v3662_v18 = vrot.slane %v3660_v32, 5  ;;  %v5158_v45 = vld [vmem:[%s6527_s10 + $0x20] sm:$0xf]  ;;  %v3685_v8 = vshrl.u32 %v5156_v26, 16  ;;  %v3688_v40 = vshll.u32 %v5156_v26, 16 }
 0x2a2   : > { %v3673_v61 = vrot.slane %v3671_v48, 4  ;;  %v3676_v63 = vrot.slane %v3674_v20, 5  ;;  %v3666_v22 = vshll.u32 %v5153_v13, 16  ;;  %v3699_v0 = vshrl.u32 %v5158_v45, 16  ;;  %v5160_v43 = vld [vmem:[%s6527_s10 + $0x28] sm:$0xf] }
 0x2a3   : > { %v3663_v16 = vor.u32 %v3662_v18, %v3659_v17  ;;  %v3702_v1 = vshll.u32 %v5158_v45, 16  ;;  %v3687_v5 = vrot.slane %v3685_v8, 4  ;;  %v3690_v47 = vrot.slane %v3688_v40, 5  ;;  %v5159_v58 = vld [vmem:[%s6527_s10 + $0x24] sm:$0x1] }
 0x2a4   : > { %5706 = vmatmul.mubr.bf16.gmra.mrb[68].mxu1 %v5151_v2  ;;  %v3677_v4 = vor.u32 %v3676_v63, %v3673_v61  ;;  %v3668_v55 = vrot.slane %v3666_v22, 5  ;;  %v5157_v2 = vld [vmem:[%s6527_s10 + $0x1c] sm:$0x1]  ;;  %v3701_v12 = vrot.slane %v3699_v0, 4  ;;  %v5162_v29 = vld [vmem:[%s6527_s10 + $0x30] sm:$0xf] }
 0x2a5   : > { %v3664_v10 = vrot.slane %v3663_v16, 4  ;;  %v3704_v50 = vrot.slane %v3702_v1, 5  ;;  %v3691_v21 = vor.u32 %v3690_v47, %v3687_v5  ;;  %v3694_v24 = vshll.u32 %v5157_v2, 16  ;;  %v5161_v52 = vld [vmem:[%s6527_s10 + $0x2c] sm:$0x1] }
 0x2a6   : > { %v3678_v7 = vrot.slane %v3677_v4, 4  ;;  %v3713_v34 = vshrl.u32 %v5160_v43, 16  ;;  %v3716_v35 = vshll.u32 %v5160_v43, 16  ;;  %v3708_v27 = vshll.u32 %v5159_v58, 16  ;;  %v5164_v48 = vld [vmem:[%s6527_s10 + $0x38] sm:$0xf] }
 0x2a7   : > { %v3669_v6 = vsel %vm6615_vm14, %v3664_v10, %v3668_v55  ;;  %v3705_v3 = vor.u32 %v3704_v50, %v3701_v12  ;;  %v3727_v28 = vshrl.u32 %v5162_v29, 16  ;;  %v3730_v39 = vshll.u32 %v5162_v29, 16  ;;  %v5163_v26 = vld [vmem:[%s6527_s10 + $0x34] sm:$0x1]  ;;  %v5166_v16 = vld [vmem:[%s6527_s10 + $0x40] sm:$0xf] }
 0x2a8   : > { %v3683_v33 = vsel %vm6615_vm14, %v3678_v7, %v3682_v15  ;;  %v3776_v42 = vunpack.c.l.bf16 %v3669_v6  ;;  %v3692_v31 = vrot.slane %v3691_v21, 4  ;;  %v3696_v46 = vrot.slane %v3694_v24, 5 }
 0x2a9   : > { %v3715_v53 = vrot.slane %v3713_v34, 4  ;;  %v3718_v54 = vrot.slane %v3716_v35, 5  ;;  %v3777_v60 = vunpack.c.l.bf16 %v3683_v33  ;;  %v3706_v62 = vrot.slane %v3705_v3, 4  ;;  %v5165_v34 = vld [vmem:[%s6527_s10 + $0x3c] sm:$0x1] }
 0x2aa   : > { %v3710_v32 = vrot.slane %v3708_v27, 5  ;;  %v3729_v13 = vrot.slane %v3727_v28, 4  ;;  %v3732_v61 = vrot.slane %v3730_v39, 5  ;;  %v3697_v8 = vsel %vm6615_vm14, %v3692_v31, %v3696_v46  ;;  %v5167_v31 = vld [vmem:[%s6527_s10 + $0x44] sm:$0x1] }
 0x2ab   : > { %v3722_v40 = vshll.u32 %v5161_v52, 16  ;;  %v3719_v0 = vor.u32 %v3718_v54, %v3715_v53  ;;  %v3741_v1 = vshrl.u32 %v5164_v48, 16  ;;  %v3744_v4 = vshll.u32 %v5164_v48, 16 }
 0x2ac   : > { %v3711_v47 = vsel %vm6615_vm14, %v3706_v62, %v3710_v32  ;;  %v3755_v10 = vshrl.u32 %v5166_v16, 16  ;;  %v3758_v55 = vshll.u32 %v5166_v16, 16  ;;  %v3750_v52 = vshll.u32 %v5165_v34, 16 }
 0x2ad   : > { %v3724_v7 = vrot.slane %v3722_v40, 5  ;;  %v3743_v15 = vrot.slane %v3741_v1, 4  ;;  %v3746_v58 = vrot.slane %v3744_v4, 5  ;;  %v3779_v29 = vunpack.c.l.bf16 %v3711_v47 }
 0x2ae   : > { %v3757_v28 = vrot.slane %v3755_v10, 4 }
 0x31d   : > { %v5545_v30 = vpop.f32.mrb[40].mxu0 }
 0x31e   : > { %v5546_v9 = vpop.f32.mrb[41].mxu0 }
 0x31f   : > { %v5547_v36 = vadd.f32 %v5546_v9, %v5545_v30  ;;  %v5548_v49 = vpop.f32.mrb[42].mxu0  ;;  %v3736_v30 = vshll.u32 %v5163_v26, 16  ;;  %v3733_v9 = vor.u32 %v3732_v61, %v3729_v13  ;;  %v3752_v26 = vrot.slane %v3750_v52, 5 }
 0x320   : > { %v5549_v14 = vpop.f32.mrb[43].mxu0 }
 0x321   : > { %v5550_v19 = vadd.f32 %v5549_v14, %v5548_v49  ;;  %v3778_v49 = vunpack.c.l.bf16 %v3697_v8  ;;  %v3720_v14 = vrot.slane %v3719_v0, 4  ;;  %v3738_v6 = vrot.slane %v3736_v30, 5 }
 0x322   : > { %v3734_v33 = vrot.slane %v3733_v9, 4 }
 0x326   : > { %v5505_v41 = vpop.f32.mrb[32].mxu1 }
 0x327   : > { %v5506_v44 = vpop.f32.mrb[33].mxu1  ;;  %v5551_v51 = vpop.f32.mrb[44].mxu0 }
 0x328   : > { %v5507_v56 = vadd.f32 %v5506_v44, %v5505_v41  ;;  %v5508_v57 = vpop.f32.mrb[34].mxu1  ;;  %v5552_v59 = vpop.f32.mrb[45].mxu0  ;;  %v3725_v44 = vsel %vm6615_vm14, %v3720_v14, %v3724_v7 }
 0x329   : > { %v5553_v20 = vadd.f32 %v5552_v59, %v5551_v51  ;;  %v5509_v17 = vpop.f32.mrb[35].mxu1  ;;  %v5554_v18 = vpop.f32.mrb[46].mxu0  ;;  %v3747_v51 = vor.u32 %v3746_v58, %v3743_v15  ;;  %v3764_v59 = vshll.u32 %v5167_v31, 16  ;;  %v3780_v62 = vunpack.c.l.bf16 %v3725_v44 }
 0x32a   : > { %v4251_v63 = vadd.f32 %v5507_v56, %v3776_v42  ;;  %v5510_v45 = vadd.f32 %v5509_v17, %v5508_v57  ;;  %v5555_v25 = vpop.f32.mrb[47].mxu0  ;;  %v3739_v56 = vsel %vm6615_vm14, %v3734_v33, %v3738_v6 }
 0x32b   : > { %v5556_v22 = vadd.f32 %v5555_v25, %v5554_v18  ;;  %v3748_v18 = vrot.slane %v3747_v51, 4  ;;  %v3766_v16 = vrot.slane %v3764_v59, 5 }
 0x32c   : > { %v4254_v38 = vadd.f32 %v5510_v45, %v3777_v60  ;;  %v7207_v5 = vadd.f32 %v5547_v36, %v4251_v63  ;;  %v3781_v45 = vunpack.c.l.bf16 %v3739_v56 }
 0x32e   : > { %v5511_v2 = vpop.f32.mrb[36].mxu1  ;;  %v7211_v12 = vadd.f32 %v5550_v19, %v4254_v38  ;;  %v3760_v19 = vrot.slane %v3758_v55, 5 }
 0x32f   : > { %v5512_v50 = vpop.f32.mrb[37].mxu1  ;;  %v5557_v43 = vpop.f32.mrb[48].mxu0 }
 0x330   : > { %v5513_v36 = vadd.f32 %v5512_v50, %v5511_v2  ;;  %v5514_v21 = vpop.f32.mrb[38].mxu1  ;;  %v5558_v24 = vpop.f32.mrb[49].mxu0  ;;  %v3761_v57 = vor.u32 %v3760_v19, %v3757_v28 }
 0x331   : > { %v5559_v35 = vadd.f32 %v5558_v24, %v5557_v43  ;;  %v5515_v3 = vpop.f32.mrb[39].mxu1  ;;  %v5560_v27 = vpop.f32.mrb[50].mxu0 }
 0x332   : > { %v4259_v39 = vadd.f32 %v5513_v36, %v3778_v49  ;;  %v5516_v41 = vadd.f32 %v5515_v3, %v5514_v21  ;;  %v5561_v42 = vpop.f32.mrb[51].mxu0  ;;  %v3762_v40 = vrot.slane %v3761_v57, 4 }
 0x333   : > { %v5562_v46 = vadd.f32 %v5561_v42, %v5560_v27 }
 0x334   : > { %v4262_v53 = vadd.f32 %v5516_v41, %v3779_v29  ;;  %v7217_v54 = vadd.f32 %v5553_v20, %v4259_v39  ;;  %v3767_v9 = vsel %vm6615_vm14, %v3762_v40, %v3766_v16 }
 0x335   : > { %v3783_v7 = vunpack.c.l.bf16 %v3767_v9 }
 0x336   : > { %v5517_v60 = vpop.f32.mrb[40].mxu1  ;;  %v7221_v32 = vadd.f32 %v5556_v22, %v4262_v53  ;;  %v3753_v22 = vsel %vm6615_vm14, %v3748_v18, %v3752_v26 }
 0x337   : > { %v5518_v48 = vpop.f32.mrb[41].mxu1  ;;  %v5563_v17 = vpop.f32.mrb[52].mxu0  ;;  %v3782_v55 = vunpack.c.l.bf16 %v3753_v22 }
 0x338   : > { %v5519_v13 = vadd.f32 %v5518_v48, %v5517_v60  ;;  %v5520_v61 = vpop.f32.mrb[42].mxu1  ;;  %v5564_v63 = vpop.f32.mrb[53].mxu0 }
 0x339   : > { %v5565_v25 = vadd.f32 %v5564_v63, %v5563_v17  ;;  %v5521_v20 = vpop.f32.mrb[43].mxu1  ;;  %v5566_v8 = vpop.f32.mrb[54].mxu0 }
 0x33a   : > { %v4267_v0 = vadd.f32 %v5519_v13, %v3780_v62  ;;  %v5522_v1 = vadd.f32 %v5521_v20, %v5520_v61  ;;  %v5567_v4 = vpop.f32.mrb[55].mxu0 }
 0x33b   : > { %v5568_v38 = vadd.f32 %v5567_v4, %v5566_v8 }
 0x33c   : > { %v4270_v30 = vadd.f32 %v5522_v1, %v3781_v45  ;;  %v7225_v47 = vadd.f32 %v5559_v35, %v4267_v0 }
 0x33e   : > { %v5523_v10 = vpop.f32.mrb[44].mxu1  ;;  %v4335_v2 = vadd.f32 %v5562_v46, %v4270_v30 }
 0x33f   : > { %v5524_v49 = vpop.f32.mrb[45].mxu1 }
 0x340   : > { %v5525_v50 = vadd.f32 %v5524_v49, %v5523_v10  ;;  %v5625_v43 = vpop.f32.mrb[56].mxu0  ;;  %v5526_v14 = vpop.f32.mrb[46].mxu1 }
 0x341   : > { %v5626_v15 = vpop.f32.mrb[57].mxu0  ;;  %v5527_v58 = vpop.f32.mrb[47].mxu1 }
 0x342   : > { %v4275_v36 = vadd.f32 %v5525_v50, %v3782_v55  ;;  %v5627_v21 = vadd.f32 %v5626_v15, %v5625_v43  ;;  %v5528_v24 = vadd.f32 %v5527_v58, %v5526_v14  ;;  %v5628_v29 = vpop.f32.mrb[58].mxu0 }
 0x343   : > { %v5629_v6 = vpop.f32.mrb[59].mxu0 }
 0x344   : > { %v4278_v34 = vadd.f32 %v5528_v24, %v3783_v7  ;;  %v5630_v35 = vadd.f32 %v5629_v6, %v5628_v29  ;;  %v4340_v3 = vadd.f32 %v5565_v25, %v4275_v36 }
 0x346   : > { %v4343_v37 = vadd.f32 %v5568_v38, %v4278_v34 }
 0x348   : > { %v5631_v27 = vpop.f32.mrb[60].mxu0 }
 0x349   : > { %v5632_v33 = vpop.f32.mrb[61].mxu0 }
 0x34a   : > { %v5633_v28 = vadd.f32 %v5632_v33, %v5631_v27  ;;  %v5634_v19 = vpop.f32.mrb[62].mxu0 }
 0x34b   : > { %v5585_v39 = vpop.f32.mrb[48].mxu1  ;;  %v5635_v41 = vpop.f32.mrb[63].mxu0 }
 0x34c   : > { %v5586_v42 = vpop.f32.mrb[49].mxu1  ;;  %v5636_v31 = vadd.f32 %v5635_v41, %v5634_v19 }
 0x34d   : > { %v5587_v46 = vadd.f32 %v5586_v42, %v5585_v39  ;;  %v5588_v44 = vpop.f32.mrb[50].mxu1 }
 0x34e   : > { %v5589_v51 = vpop.f32.mrb[51].mxu1 }
 0x34f   : > { %v4381_v52 = vadd.f32 %v5587_v46, %v7207_v5  ;;  %v5590_v53 = vadd.f32 %v5589_v51, %v5588_v44  ;;  %v5258_v44 = vld [vmem:[%s6545_s28 + $0x18] sm:$0xf] }
 0x351   : > { %v4384_v56 = vadd.f32 %v5590_v53, %v7211_v12  ;;  %v4446_v57 = vadd.f32 %v5627_v21, %v4381_v52 }
 0x353   : > { %v4449_v59 = vadd.f32 %v5630_v35, %v4384_v56  ;;  %v5637_v60 = vpop.f32.mrb[64].mxu0 }
 0x354   : > { %v5638_v62 = vpop.f32.mrb[65].mxu0 }
 0x355   : > { %v5639_v17 = vadd.f32 %v5638_v62, %v5637_v60  ;;  %v5640_v18 = vpop.f32.mrb[66].mxu0  ;;  %v5250_v62 = vld [vmem:[%s6545_s28 + $0x8] sm:$0xf] }
 0x356   : > { %v5591_v48 = vpop.f32.mrb[52].mxu1  ;;  %v5641_v13 = vpop.f32.mrb[67].mxu0 }
 0x357   : > { %v5592_v26 = vpop.f32.mrb[53].mxu1  ;;  %v5642_v45 = vadd.f32 %v5641_v13, %v5640_v18 }
 0x358   : > { %v5593_v61 = vadd.f32 %v5592_v26, %v5591_v48  ;;  %v5594_v63 = vpop.f32.mrb[54].mxu1 }
 0x359   : > { %v5595_v25 = vpop.f32.mrb[55].mxu1 }
 0x35a   : > { %v4389_v20 = vadd.f32 %v5593_v61, %v7217_v54  ;;  %v5596_v8 = vadd.f32 %v5595_v25, %v5594_v63  ;;  %v5262_v25 = vld [vmem:[%s6545_s28 + $0x20] sm:$0xf] }
 0x35c   : > { %v4392_v5 = vadd.f32 %v5596_v8, %v7221_v32  ;;  %v4454_v40 = vadd.f32 %v5633_v28, %v4389_v20  ;;  %v5643_v12 = vpop.f32.mrb[68].mxu0 }
 0x35d   : > { %v5644_v16 = vpop.f32.mrb[69].mxu0 }
 0x35e   : > { %v4457_v0 = vadd.f32 %v5636_v31, %v4392_v5  ;;  %v5645_v1 = vadd.f32 %v5644_v16, %v5643_v12  ;;  %v5646_v4 = vpop.f32.mrb[70].mxu0  ;;  %v5264_v12 = vld [vmem:[%s6545_s28 + $0x24] sm:$0x1] }
 0x35f   : > { %v5597_v38 = vpop.f32.mrb[56].mxu1  ;;  %v5647_v22 = vpop.f32.mrb[71].mxu0 }
 0x360   : > { %v5598_v30 = vpop.f32.mrb[57].mxu1  ;;  %v5648_v9 = vadd.f32 %v5647_v22, %v5646_v4 }
 0x361   : > { %v5599_v10 = vadd.f32 %v5598_v30, %v5597_v38  ;;  %v5600_v55 = vpop.f32.mrb[58].mxu1 }
 0x362   : > { %v5601_v49 = vpop.f32.mrb[59].mxu1 }
 0x363   : > { %v4397_v50 = vadd.f32 %v5599_v10, %v7225_v47  ;;  %v5602_v43 = vadd.f32 %v5601_v49, %v5600_v55  ;;  %v5256_v10 = vld [vmem:[%s6545_s28 + $0x14] sm:$0x1] }
 0x365   : > { %v4400_v54 = vadd.f32 %v5602_v43, %v4335_v2  ;;  %v4462_v14 = vadd.f32 %v5639_v17, %v4397_v50 }
 0x367   : > { %v5603_v7 = vpop.f32.mrb[60].mxu1  ;;  %v7234_v32 = vadd.f32 %v5642_v45, %v4400_v54 }
 0x368   : > { %v5604_v15 = vpop.f32.mrb[61].mxu1 }
 0x369   : > { %v5605_v58 = vadd.f32 %v5604_v15, %v5603_v7  ;;  %v5606_v36 = vpop.f32.mrb[62].mxu1 }
 0x36a   : > { %v5607_v21 = vpop.f32.mrb[63].mxu1 }
 0x36b   : > { %v4405_v24 = vadd.f32 %v5605_v58, %v4340_v3  ;;  %v5608_v29 = vadd.f32 %v5607_v21, %v5606_v36 }
 0x36d   : > { %v4408_v6 = vadd.f32 %v5608_v29, %v4343_v37  ;;  %v4470_v34 = vadd.f32 %v5645_v1, %v4405_v24  ;;  %v5260_v37 = vld [vmem:[%s6545_s28 + $0x1c] sm:$0x1] }
 0x36f   : > { %v5703_v35 = vpop.f32.mrb[64].mxu1  ;;  %v7236_v27 = vadd.f32 %v5648_v9, %v4408_v6  ;;  %v5254_v9 = vld [vmem:[%s6545_s28 + $0x10] sm:$0xf] }
 0x370   : > { %v4519_v47 = vadd.f32 %v5703_v35, %v4454_v40  ;;  %v4510_v33 = vpop.f32.mrb[65].mxu1  ;;  %v5274_v35 = vld [vmem:[%s6545_s28 + $0x38] sm:$0xf] }
 0x371   : > { %v4511_v2 = vadd.f32 %v4510_v33, %v4446_v57  ;;  %v5704_v28 = vpop.f32.mrb[66].mxu1  ;;  %v5252_v57 = vld [vmem:[%s6545_s28 + $0xc] sm:$0x1] }
 0x372   : > { %v5311_v19 = vpack.c.bf16 %v4519_v47, %v4519_v47  ;;  %v4522_v39 = vadd.f32 %v5704_v28, %v4457_v0  ;;  %v4513_v41 = vpop.f32.mrb[67].mxu1  ;;  %v5276_v47 = vld [vmem:[%s6545_s28 + $0x3c] sm:$0x1] }
 0x373   : > { %v5309_v42 = vpack.c.bf16 %v4511_v2, %v4511_v2  ;;  %v4514_v31 = vadd.f32 %v4513_v41, %v4449_v59 }
 0x374   : > { %v4655_v3 = vshrl.u32 %v5311_v19, 16  ;;  %v5312_v46 = vpack.c.bf16 %v4522_v39, %v4522_v39  ;;  %v4658_v56 = vshll.u32 %v5311_v19, 16 }
 0x375   : > { %v4639_v51 = vshrl.u32 %v5309_v42, 16  ;;  %v5310_v52 = vpack.c.bf16 %v4514_v31, %v4514_v31  ;;  %v4642_v60 = vshll.u32 %v5309_v42, 16  ;;  %v5266_v42 = vld [vmem:[%s6545_s28 + $0x28] sm:$0xf]  ;;  %v5268_v31 = vld [vmem:[%s6545_s28 + $0x2c] sm:$0x1] }
 0x376   : > { %v4657_v53 = vrot.slane %v4655_v3, 7  ;;  %v4663_v48 = vshrl.u32 %v5312_v46, 16  ;;  %v4666_v18 = vshll.u32 %v5312_v46, 16 }
 0x377   : > { %v4641_v17 = vrot.slane %v4639_v51, 7  ;;  %v4647_v26 = vshrl.u32 %v5310_v52, 16  ;;  %v4650_v13 = vshll.u32 %v5310_v52, 16  ;;  %v5707_v61 = vpop.f32.mrb[68].mxu1 }
 0x378   : > { %v4660_v59 = vor.u32 %v4658_v56, %v4657_v53  ;;  %v4661_v63 = vrot.slane %v4657_v53, 4  ;;  %v4665_v45 = vrot.slane %v4663_v48, 7  ;;  %v4535_v20 = vadd.f32 %v5707_v61, %v4470_v34  ;;  %v4526_v8 = vpop.f32.mrb[69].mxu1  ;;  %v5278_v53 = vld [vmem:[%s6545_s28 + $0x40] sm:$0xf] }
 0x379   : > { %v4644_v5 = vor.u32 %v4642_v60, %v4641_v17  ;;  %v4645_v40 = vrot.slane %v4641_v17, 4  ;;  %v4649_v16 = vrot.slane %v4647_v26, 7  ;;  %v4527_v0 = vadd.f32 %v4526_v8, %v4462_v14  ;;  %v5708_v1 = vpop.f32.mrb[70].mxu1  ;;  %v5270_v26 = vld [vmem:[%s6545_s28 + $0x30] sm:$0xf] }
 0x37a   : > { %v4732_v4 = vsel %vm6601_vm10, %v4660_v59, %v5258_v44  ;;  %v4735_v38 = vsel %vm6552_vm3, %v4661_v63, %v5260_v37  ;;  %v4668_v22 = vor.u32 %v4666_v18, %v4665_v45  ;;  %v4669_v30 = vrot.slane %v4665_v45, 4  ;;  %v4529_v55 = vpop.f32.mrb[71].mxu1  ;;  %v5280_v18 = vld [vmem:[%s6545_s28 + $0x44] sm:$0x1] }
 0x37b   : > { %5259 = vst [vmem:[%s6545_s28 + $0x18] sm:$0xf] %v4732_v4  ;;  %5261 = vst [vmem:[%s6545_s28 + $0x1c] sm:$0x1] %v4735_v38  ;;  %v4720_v49 = vsel %vm6601_vm10, %v4644_v5, %v5250_v62  ;;  %v4723_v50 = vsel %vm6552_vm3, %v4645_v40, %v5252_v57  ;;  %v4652_v43 = vor.u32 %v4650_v13, %v4649_v16  ;;  %v4653_v54 = vrot.slane %v4649_v16, 4 }
 0x37c   : > { %5251 = vst [vmem:[%s6545_s28 + $0x8] sm:$0xf] %v4720_v49  ;;  %5253 = vst [vmem:[%s6545_s28 + $0xc] sm:$0x1] %v4723_v50  ;;  %v4738_v14 = vsel %vm6601_vm10, %v4668_v22, %v5262_v25  ;;  %v4741_v7 = vsel %vm6552_vm3, %v4669_v30, %v5264_v12  ;;  %v5315_v15 = vpack.c.bf16 %v4535_v20, %v4535_v20  ;;  %v5272_v13 = vld [vmem:[%s6545_s28 + $0x34] sm:$0x1] }
 0x37d   : > { %v5313_v58 = vpack.c.bf16 %v4527_v0, %v4527_v0  ;;  %5263 = vst [vmem:[%s6545_s28 + $0x20] sm:$0xf] %v4738_v14  ;;  %5265 = vst [vmem:[%s6545_s28 + $0x24] sm:$0x1] %v4741_v7  ;;  %v4726_v36 = vsel %vm6601_vm10, %v4652_v43, %v5254_v9  ;;  %v4729_v21 = vsel %vm6552_vm3, %v4653_v54, %v5256_v10 }
 0x37e   : > { %v4538_v24 = vadd.f32 %v5708_v1, %v7236_v27  ;;  %v4530_v29 = vadd.f32 %v4529_v55, %v7234_v32  ;;  %5255 = vst [vmem:[%s6545_s28 + $0x10] sm:$0xf] %v4726_v36  ;;  %5257 = vst [vmem:[%s6545_s28 + $0x14] sm:$0x1] %v4729_v21  ;;  %v4687_v6 = vshrl.u32 %v5315_v15, 16  ;;  %v4690_v19 = vshll.u32 %v5315_v15, 16 }
 0x37f   : > { %v4671_v34 = vshrl.u32 %v5313_v58, 16  ;;  %v4674_v41 = vshll.u32 %v5313_v58, 16 }
 0x380   : > { %v5316_v33 = vpack.c.bf16 %v4538_v24, %v4538_v24  ;;  %v5314_v2 = vpack.c.bf16 %v4530_v29, %v4530_v29  ;;  %v4689_v28 = vrot.slane %v4687_v6, 7 }
 0x381   : > { %v4673_v39 = vrot.slane %v4671_v34, 7 }
 0x382   : > { %v4695_v27 = vshrl.u32 %v5316_v33, 16  ;;  %v4679_v3 = vshrl.u32 %v5314_v2, 16  ;;  %v4692_v32 = vor.u32 %v4690_v19, %v4689_v28  ;;  %v4693_v46 = vrot.slane %v4689_v28, 4 }
 0x383   : > { %v4676_v44 = vor.u32 %v4674_v41, %v4673_v39  ;;  %v4677_v37 = vrot.slane %v4673_v39, 4  ;;  %v4698_v52 = vshll.u32 %v5316_v33, 16  ;;  %v4682_v60 = vshll.u32 %v5314_v2, 16 }
 0x384   : > { %v4697_v51 = vrot.slane %v4695_v27, 7  ;;  %v4681_v56 = vrot.slane %v4679_v3, 7  ;;  %v4756_v62 = vsel %vm6601_vm10, %v4692_v32, %v5274_v35  ;;  %v4759_v57 = vsel %vm6552_vm3, %v4693_v46, %v5276_v47 }
 0x385   : > { %v4744_v48 = vsel %vm6601_vm10, %v4676_v44, %v5266_v42  ;;  %v4747_v17 = vsel %vm6552_vm3, %v4677_v37, %v5268_v31  ;;  %5275 = vst [vmem:[%s6545_s28 + $0x38] sm:$0xf] %v4756_v62  ;;  %5277 = vst [vmem:[%s6545_s28 + $0x3c] sm:$0x1] %v4759_v57 }
 0x386   : > { %5267 = vst [vmem:[%s6545_s28 + $0x28] sm:$0xf] %v4744_v48  ;;  %5269 = vst [vmem:[%s6545_s28 + $0x2c] sm:$0x1] %v4747_v17  ;;  %v4700_v61 = vor.u32 %v4698_v52, %v4697_v51  ;;  %v4701_v59 = vrot.slane %v4697_v51, 4  ;;  %v4684_v63 = vor.u32 %v4682_v60, %v4681_v56  ;;  %v4685_v45 = vrot.slane %v4681_v56, 4 }
 0x388   : > { %v4762_v25 = vsel %vm6601_vm10, %v4700_v61, %v5278_v53  ;;  %v4765_v20 = vsel %vm6552_vm3, %v4701_v59, %v5280_v18  ;;  %v4750_v8 = vsel %vm6601_vm10, %v4684_v63, %v5270_v26  ;;  %v4753_v5 = vsel %vm6552_vm3, %v4685_v45, %v5272_v13 }
 0x389   : > { %5279 = vst [vmem:[%s6545_s28 + $0x40] sm:$0xf] %v4762_v25  ;;  %5281 = vst [vmem:[%s6545_s28 + $0x44] sm:$0x1] %v4765_v20 }
 0x38a   : > { %5271 = vst [vmem:[%s6545_s28 + $0x30] sm:$0xf] %v4750_v8  ;;  %5273 = vst [vmem:[%s6545_s28 + $0x34] sm:$0x1] %v4753_v5 }
 0x38b   : > { %6168 = shalt.err (!%p6165_p8)
}
 0x38c   : > { %s6169_s17 = scalar_lea.hbm %s7299_s15, 1280  ;;  %s6173_s10 = scalar_lea.hbm %s7361_s6, 2560 }
 0x38d   : > { %p6170_p6 = scmp.ne.s32.totalorder %s7299_s15, %s6169_s17  ;;  %p6174_p0 = scmp.lt.u32.totalorder %s7299_s15, %s7361_s6 }
 0x38e   : > { %p6175_p5 = scmp.lt.u32.totalorder %s6173_s10, %s6169_s17  ;;  %p6177_p7 = scmp.lt.u32.totalorder %s6169_s17, %s7299_s15 }
 0x38f   : > { %p6171_p10 = pnand %p6170_p6, %p7394_p4 }
 0x390   : > { %p6176_p9 = por %p6175_p5, %p6174_p0 }
 0x391   : > { %p6172_p11 = pneg %p6171_p10 }
 0x392   : > { %p6178_p12 = por %p6177_p7, %p6176_p9 }
 0x394   : > { %p6179_p13 = pnand %p6178_p12, %p6172_p11 }
 0x396   : > { %6182 = shalt.err (!%p6179_p13)
}
 0x397   : > { %s6245_s27 = smov 64   ;;  %s6246_s9 = smov 4  }
 0x398   : > { %5735 = dma.vmem_to_hbm [thread:$0]  (%p7394_p4), %s7294_s13, 1280, %s7299_s15, %s4768_s26, %s6245_s27, %s6245_s27, %s6246_s9  }
 0x399 PF: > { %s4796_s12 = sand.u32 1, %s6221_s21   ;;  %p7395_p1 = scmp.ne.s32.totalorder %s7373_s11, 0 }
 0x39a   : > { %p7396_p3 = scmp.ge.s32.totalorder %s6233_s24, 2  ;;  %s4797_s16 = scalar_lea.sflag [#allocation8], %s4796_s12 }
 0x39c   : > { %p5758_p2 = pnand %p7396_p3, %p7395_p1 }
 0x39e   : > { %6216 = dma.done.wait (!%p5758_p2), %s4797_s16, 1280  }
 0x39f   : > { %6218 = vsyncadd (!%p5758_p2), %s4797_s16, 4294966016  ;;  %p22_p8 = scmp.ge.s32.totalorder %s6447_s7, 4   ;;  %s7397_s21 = smov %s6225_s22 }
 0x3a0   : > { %s7398_s22 = smov %s6229_s23  ;;  %s7399_s23 = smov %s6459_s25 }
 0x3a1   : > { %s7400_s24 = smov %s6447_s7  ;;  %24 = sbr.rel (!%p22_p8) target bundleno = 8 (0x8), region = 118 }
 0x3a8   :  { %4802 = vsyncpa [#allocation7], 1 }
 0x3a9   :  { %4804 = vsyncpa [#allocation7 + $0x1], 1 }
 0x3aa   :  { %4805 = vsyncpa [#allocation10], 1 }
 0x3ab   :  { %4806 = vsyncpa [#allocation13], 1 }
 0x3ac   :  { %4807 = vsyncpa [#allocation16], 1 }
 0x3ad   :  { %4808 = vsyncpa [#allocation8], 1 }
 0x3ae   :  { %4810 = vsyncpa [#allocation8 + $0x1], 1 }

// kernel: network_block_forward.2
= control target key start
LH: loop header
LB: loop body
LE: loop exit
PB: predicated region body
PF: predicated region fallthrough
CT: control target
= control target key end

     0   :  { %s8101_s0 = inlined_call_operand.hbm [shape: bf16[4,2,9,9,128], index: 0, kind: input, shape index: {}]   ;;  %s8102_s1 = inlined_call_operand.hbm [shape: bf16[1152,128], index: 1, kind: input, shape index: {}]   ;;  %s8103_s2 = inlined_call_operand.hbm [shape: bf16[1152,128], index: 2, kind: input, shape index: {}]   ;;  %s8104_s3 = inlined_call_operand.hbm [shape: f32[1,128], index: 3, kind: input, shape index: {}]   ;;  %s8105_s4 = inlined_call_operand.hbm [shape: f32[1,128], index: 4, kind: input, shape index: {}]   ;;  %s8106_s5 = inlined_call_operand.hbm [shape: f32[1,128], index: 5, kind: input, shape index: {}]   ;;  %s8107_s6 = inlined_call_operand.hbm [shape: bf16[128,128], index: 6, kind: input, shape index: {}]   ;;  %s8108_s7 = inlined_call_operand.hbm [shape: bf16[2,10,10,128], index: 7, kind: output, shape index: {}]  }
   0x1   :  { %8122 = sst [smem:[#allocation31_spill]] %s8102_s1 }
   0x2   :  { %8123 = sst [smem:[#allocation32_spill]] %s8104_s3 }
   0x3   :  { %12 = vsyncpa [#allocation7], 0 }
   0x4   :  { %14 = vsyncpa [#allocation7 + $0x1], 0 }
   0x5   :  { %15 = vsyncpa [#allocation10], 0 }
   0x6   :  { %16 = vsyncpa [#allocation13], 0 }
   0x7   :  { %17 = vsyncpa [#allocation16], 0 }
   0x8   :  { %18 = vsyncpa [#allocation8], 0 }
   0x9   :  { %20 = vsyncpa [#allocation8 + $0x1], 0  ;;  %s6899_s24 = smov 0   ;;  %s6901_s25 = smov 0  }
   0xa   :  { %s6903_s26 = smov 0   ;;  %s6905_s27 = smov 0  }
   0xb LB: > { %8124 = sst [smem:[#allocation27_spill]] %s6827_s24  ;;  %s6920_s28 = sadd.s32 4294967295, %s6839_s27   ;;  %s6839_s27 = sphi %s6905_s27, %s8162_s27   ;;  %s6835_s26 = sphi %s6903_s26, %s8166_s26   ;;  %s6831_s25 = sphi %s6901_s25, %s8165_s25   ;;  %s6827_s24 = sphi %s6899_s24, %s8164_s24  }
   0xc   : > { %s5327_s29 = sadd.s32 4294967294, %s6839_s27   ;;  %s6924_s30 = sadd.s32 1, %s6839_s27  }
   0xd   : > { %8125 = sst [smem:[#allocation28_spill]] %s6924_s30  ;;  %s33_s8 = sadd.s32 1, %s6835_s26 }
   0xe   : > { %s30_s9 = ssub.s32 %s6839_s27, %s6924_s30  ;;  %p40_p0 = scmp.ne.s32.totalorder %s6835_s26, %s6831_s25 }
   0xf   : > { %p31_p1 = scmp.eq.s32.totalorder %s30_s9, 0  ;;  %p41_p2 = scmp.eq.s32.totalorder %s6839_s27, 0 }
  0x10   : > { %p46_p3 = scmp.ne.s32.totalorder %s6831_s25, %s6827_s24  ;;  %p8109_p4 = scmp.eq.s32.totalorder %s6920_s28, 0 }
  0x11   : > { %s6936_s10 = scalar_select %p31_p1, %s6835_s26, %s33_s8  }
  0x12   : > { %p6938_p5 = por %p41_p2, %p40_p0  ;;  %p6944_p6 = por %p8109_p4, %p46_p3 }
  0x13   : > { %8126 = sst [smem:[#allocation29_spill]] %s6936_s10  ;;  %p196_p7 = scmp.eq.s32.totalorder %s6920_s28, 1 }
  0x14   : > { %s8127_s11 = scalar_select %p6938_p5, 1, 0 }
  0x15   : > { %s8128_s12 = scalar_select %p6944_p6, 1, 0 }
  0x16   : > { %p202_p8 = scmp.eq.s32.totalorder %s5327_s29, 1  ;;  %p5328_p9 = scmp.ge.s32.totalorder %s6839_s27, 1 }
  0x17   : > { %p209_p10 = scmp.lt.s32.totalorder %s6839_s27, 3  ;;  %p6951_p11 = por %p196_p7, %p40_p0 }
  0x18   : > { %p6955_p12 = por %p202_p8, %p46_p3  ;;  %s6841_s16 = smov [#allocation9]  }
  0x19   : > { %s8129_s13 = scalar_select %p6951_p11, 1, 0 }
  0x1a   : > { %s8130_s14 = scalar_select %p6955_p12, 1, 0 }
  0x1b   : > { %p6959_p13 = pnand %p5328_p9, %p209_p10  ;;  %s221_s17 = sshll.u32 %s6841_s16, 4  ;;  %s222_s17 = int_to_ptr.vmem [resolvable:$true] %s221_s17 }
  0x1c   : > { %8131 = sst [smem:[#allocation30_spill]] %s8130_s14  ;;  %s6842_s19 = smov [#allocation12]  }
  0x1d   : > { %s8132_s15 = scalar_select %p6959_p13, 1, 0 }
  0x1e   : > { %p6312_p1 = pneg %p6959_p13  ;;  %s248_s20 = sshll.u32 %s6842_s19, 4  ;;  %s6971_s20 = int_to_ptr.vmem [resolvable:$true] %s248_s20 }
  0x1f   : > { %s8134_s1 = sld [smem:[#allocation31_spill]] }
  0x20   : > { %p6967_p2 = pnand %p6312_p1, %p8109_p4 }
  0x22   : > { %p6981_p3 = pneg %p6967_p2 }
  0x25   : > { %s6593_s23 = scalar_lea.hbm %s8134_s1, 9216 }
  0x26   : > { %p6594_p0 = scmp.ne.s32.totalorder %s8134_s1, %s6593_s23  ;;  %p6600_p9 = scmp.lt.u32.totalorder %s6593_s23, %s8134_s1 }
  0x28   : > { %p6596_p7 = pnand %p6981_p3, %p6594_p0 }
  0x2a   : > { %p6597_p8 = pneg %p6596_p7 }
  0x2c   : > { %p6602_p10 = pnand %p6600_p9, %p6597_p8 }
  0x2e   : > { %6605 = shalt.err (!%p6602_p10)
}
  0x2f   : > { %s6606_s21 = scalar_lea.vmem %s222_s17, 9216  ;;  %p6614_p11 = scmp.lt.s32.totalorder %s222_s17, %s222_s17 }
  0x30   : > { %p6607_p1 = scmp.ne.s32.totalorder %s222_s17, %s6606_s21  ;;  %p6615_p6 = scmp.lt.s32.totalorder %s6606_s21, %s6606_s21 }
  0x32   : > { %p6609_p4 = pnand %p6607_p1, %p6981_p3  ;;  %p6616_p13 = por %p6615_p6, %p6614_p11 }
  0x34   : > { %p6610_p12 = pneg %p6609_p4 }
  0x36   : > { %p6617_p5 = pnand %p6616_p13, %p6610_p12 }
  0x38   : > { %6620 = shalt.err (!%p6617_p5)
}
  0x39   : > { %s8118_s22 = smov 64   ;;  %s8120_s29 = smov 4  }
  0x3a   : > { %6315 = dma.hbm_to_vmem [thread:$0]  (!%p6967_p2), %s8134_s1, 9216, %s222_s17, [#allocation10], %s8118_s22, %s8118_s22, %s8120_s29  }
  0x3b   : > { %s8136_s3 = sld [smem:[#allocation32_spill]] }
  0x41   : > { %s6621_s10 = scalar_lea.hbm %s8136_s3, 16 }
  0x42   : > { %p6622_p4 = scmp.ne.s32.totalorder %s8136_s3, %s6621_s10  ;;  %p6628_p11 = scmp.lt.u32.totalorder %s6621_s10, %s8136_s3 }
  0x44   : > { %p6624_p5 = pnand %p6622_p4, %p6981_p3 }
  0x46   : > { %p6625_p6 = pneg %p6624_p5 }
  0x48   : > { %p6630_p12 = pnand %p6628_p11, %p6625_p6 }
  0x4a   : > { %6633 = shalt.err (!%p6630_p12)
}
  0x4b   : > { %s6634_s17 = scalar_lea.vmem %s6971_s20, 16  ;;  %s6641_s30 = scalar_lea.vmem %s6971_s20, 32 }
  0x4c   : > { %p6635_p13 = scmp.ne.s32.totalorder %s6971_s20, %s6634_s17  ;;  %p6642_p8 = scmp.lt.s32.totalorder %s6971_s20, %s6971_s20 }
  0x4d   : > { %p6643_p9 = scmp.lt.s32.totalorder %s6641_s30, %s6634_s17 }
  0x4e   : > { %p6637_p0 = pnand %p6635_p13, %p6981_p3 }
  0x4f   : > { %p6644_p10 = por %p6643_p9, %p6642_p8 }
  0x50   : > { %p6638_p7 = pneg %p6637_p0 }
  0x52   : > { %p6645_p1 = pnand %p6644_p10, %p6638_p7 }
  0x54   : > { %6648 = shalt.err (!%p6645_p1)
}
  0x55   : > { %6321 = dma.hbm_to_vmem [thread:$0]  (!%p6967_p2), %s8136_s3, 16, %s6971_s20, [#allocation13]  }
  0x56   : > { %s6845_s14 = smov [#allocation15]   ;;  %s6846_s8 = smov [#allocation11]  }
  0x57   : > { %s270_s23 = sshll.u32 %s6845_s14, 4  ;;  %s234_s16 = sshll.u32 %s6846_s8, 4  ;;  %s271_s23 = int_to_ptr.vmem [resolvable:$true] %s270_s23  ;;  %s235_s16 = int_to_ptr.vmem [resolvable:$true] %s234_s16 }
  0x58   : > { %s6649_s17 = scalar_lea.hbm %s8106_s5, 16 }
  0x59   : > { %p6650_p4 = scmp.ne.s32.totalorder %s8106_s5, %s6649_s17  ;;  %p6656_p11 = scmp.lt.u32.totalorder %s6649_s17, %s8106_s5 }
  0x5b   : > { %p6652_p5 = pnand %p6650_p4, %p6981_p3 }
  0x5d   : > { %p6653_p6 = pneg %p6652_p5 }
  0x5f   : > { %p6658_p12 = pnand %p6656_p11, %p6653_p6 }
  0x61   : > { %6661 = shalt.err (!%p6658_p12)
}
  0x62   : > { %s6662_s20 = scalar_lea.vmem %s271_s23, 16  ;;  %s6669_s10 = scalar_lea.vmem %s271_s23, 32 }
  0x63   : > { %p6663_p13 = scmp.ne.s32.totalorder %s271_s23, %s6662_s20  ;;  %p6670_p8 = scmp.lt.s32.totalorder %s271_s23, %s271_s23 }
  0x64   : > { %p6671_p9 = scmp.lt.s32.totalorder %s6669_s10, %s6662_s20 }
  0x65   : > { %p6665_p0 = pnand %p6663_p13, %p6981_p3 }
  0x66   : > { %p6672_p10 = por %p6671_p9, %p6670_p8 }
  0x67   : > { %p6666_p7 = pneg %p6665_p0 }
  0x69   : > { %p6673_p1 = pnand %p6672_p10, %p6666_p7 }
  0x6b   : > { %6676 = shalt.err (!%p6673_p1)
}
  0x6c   : > { %6327 = dma.hbm_to_vmem [thread:$0]  (!%p6967_p2), %s8106_s5, 16, %s271_s23, [#allocation16]  }
  0x6d   : > { %s6677_s19 = scalar_lea.hbm %s8103_s2, 9216 }
  0x6e   : > { %p6678_p4 = scmp.ne.s32.totalorder %s8103_s2, %s6677_s19  ;;  %p6684_p11 = scmp.lt.u32.totalorder %s6677_s19, %s8103_s2 }
  0x70   : > { %p6680_p5 = pnand %p6678_p4, %p6981_p3 }
  0x72   : > { %p6681_p6 = pneg %p6680_p5 }
  0x74   : > { %p6686_p12 = pnand %p6684_p11, %p6681_p6 }
  0x76   : > { %6689 = shalt.err (!%p6686_p12)
}
  0x77   : > { %s6690_s20 = scalar_lea.vmem %s235_s16, 9216  ;;  %p6698_p8 = scmp.lt.s32.totalorder %s235_s16, %s235_s16 }
  0x78   : > { %p6691_p13 = scmp.ne.s32.totalorder %s235_s16, %s6690_s20  ;;  %p6699_p9 = scmp.lt.s32.totalorder %s6690_s20, %s6690_s20 }
  0x7a   : > { %p6693_p0 = pnand %p6691_p13, %p6981_p3  ;;  %p6700_p10 = por %p6699_p9, %p6698_p8 }
  0x7c   : > { %p6694_p7 = pneg %p6693_p0 }
  0x7e   : > { %p6701_p1 = pnand %p6700_p10, %p6694_p7 }
  0x80   : > { %6704 = shalt.err (!%p6701_p1)
}
  0x81   : > { %s8137_s23 = smov 4   ;;  %s8138_s10 = smov 64  }
  0x82   : > { %6318 = dma.hbm_to_vmem [thread:$0]  (!%p6967_p2), %s8103_s2, 9216, %s235_s16, [#allocation10], %s8138_s10, %s8138_s10, %s8137_s23  }
  0x83   : > { %s6847_s29 = smov [#allocation14]   ;;  %s6848_s19 = smov [#allocation17]  }
  0x84   : > { %s259_s8 = sshll.u32 %s6847_s29, 4  ;;  %s280_s21 = sshll.u32 %s6848_s19, 4  ;;  %s260_s8 = int_to_ptr.vmem [resolvable:$true] %s259_s8  ;;  %s281_s21 = int_to_ptr.vmem [resolvable:$true] %s280_s21 }
  0x85   : > { %s6705_s24 = scalar_lea.hbm %s8105_s4, 16 }
  0x86   : > { %p6706_p4 = scmp.ne.s32.totalorder %s8105_s4, %s6705_s24  ;;  %p6712_p11 = scmp.lt.u32.totalorder %s6705_s24, %s8105_s4 }
  0x88   : > { %p6708_p5 = pnand %p6706_p4, %p6981_p3 }
  0x8a   : > { %p6709_p6 = pneg %p6708_p5 }
  0x8c   : > { %p6714_p12 = pnand %p6712_p11, %p6709_p6 }
  0x8e   : > { %6717 = shalt.err (!%p6714_p12)
}
  0x8f   : > { %s6718_s16 = scalar_lea.vmem %s260_s8, 16  ;;  %s6725_s14 = scalar_lea.vmem %s260_s8, 32 }
  0x90   : > { %p6719_p13 = scmp.ne.s32.totalorder %s260_s8, %s6718_s16  ;;  %p6726_p8 = scmp.lt.s32.totalorder %s260_s8, %s260_s8 }
  0x91   : > { %p6727_p9 = scmp.lt.s32.totalorder %s6725_s14, %s6718_s16 }
  0x92   : > { %p6721_p0 = pnand %p6719_p13, %p6981_p3 }
  0x93   : > { %p6728_p10 = por %p6727_p9, %p6726_p8 }
  0x94   : > { %p6722_p7 = pneg %p6721_p0 }
  0x96   : > { %p6729_p1 = pnand %p6728_p10, %p6722_p7 }
  0x98   : > { %6732 = shalt.err (!%p6729_p1)
}
  0x99   : > { %6324 = dma.hbm_to_vmem [thread:$0]  (!%p6967_p2), %s8105_s4, 16, %s260_s8, [#allocation13]  }
  0x9a   : > { %s6733_s17 = scalar_lea.hbm %s8107_s6, 1024 }
  0x9b   : > { %p6734_p4 = scmp.ne.s32.totalorder %s8107_s6, %s6733_s17  ;;  %p6740_p11 = scmp.lt.u32.totalorder %s6733_s17, %s8107_s6 }
  0x9d   : > { %p6736_p5 = pnand %p6734_p4, %p6981_p3 }
  0x9f   : > { %p6737_p6 = pneg %p6736_p5 }
  0xa1   : > { %p6742_p12 = pnand %p6740_p11, %p6737_p6 }
  0xa3   : > { %6745 = shalt.err (!%p6742_p12)
}
  0xa4   : > { %s6746_s16 = scalar_lea.vmem %s281_s21, 1024  ;;  %p6754_p8 = scmp.lt.s32.totalorder %s281_s21, %s281_s21 }
  0xa5   : > { %p6747_p13 = scmp.ne.s32.totalorder %s281_s21, %s6746_s16  ;;  %p6755_p9 = scmp.lt.s32.totalorder %s6746_s16, %s6746_s16 }
  0xa7   : > { %p6749_p0 = pnand %p6747_p13, %p6981_p3  ;;  %p6756_p10 = por %p6755_p9, %p6754_p8 }
  0xa9   : > { %p6750_p7 = pneg %p6749_p0 }
  0xab   : > { %p6757_p1 = pnand %p6756_p10, %p6750_p7 }
  0xad   : > { %6760 = shalt.err (!%p6757_p1)
}
  0xae   : > { %6330 = dma.hbm_to_vmem [thread:$0]  (!%p6967_p2), %s8107_s6, 1024, %s281_s21, [#allocation16], %s8138_s10, %s8138_s10, %s8137_s23  }
  0xaf   : > { %p5335_p4 = scmp.ge.s32.totalorder %s6839_s27, 2 }
  0xb1   : > { %290 = sbr.rel (%p5335_p4) target bundleno = 200 (0xc8), region = 40 }
  0xb8   : > { %s294_s18 = sand.u32 1, %s6835_s26   ;;  %s6273_s9 = smul.u32 1152, %s6839_s27 }
  0xb9   : > { %s6272_s1 = smul.u32 288, %s294_s18  ;;  %s6849_s29 = smov 2304  }
  0xba   : > { %p8139_p3 = scmp.ne.s32.totalorder %s8127_s11, 0  ;;  %s304_s3 = scalar_lea.hbm %s8101_s0, %s6273_s9 }
  0xbb   : > { %s298_s17 = scalar_lea.vmem [#allocation6], %s6272_s1  ;;  %s6850_s24 = smov 1152  }
  0xbc   : > { %6290 = sst [smem:[#allocation20]] (%p8139_p3), %s6849_s29  ;;  %s317_s30 = sshll.u32 %s298_s17, 4  ;;  %s318_s30 = int_to_ptr.vmem [resolvable:$true] %s317_s30 }
  0xbd   : > { %s6289_s23 = scalar_select %p8139_p3, [#allocation0], [#allocation21] }
  0xbe   : > { %6291 = sst [smem:[#allocation20 + $0x1]] (%p8139_p3), %s6850_s24  ;;  %s6851_s20 = smov 18  }
  0xbf   : > { %s309_s19 = sld [smem:[%s6289_s23]]   ;;  %s6852_s22 = smov 64  }
  0xc0   : > { %6292 = sst [smem:[#allocation20 + $0x2]] (%p8139_p3), %s6851_s20  ;;  %s6853_s16 = smov 4  }
  0xc1   : > { %6293 = sst [smem:[#allocation20 + $0x3]] (%p8139_p3), %s6852_s22  ;;  %s295_s9 = scalar_lea.sflag [#allocation7], %s294_s18 }
  0xc2   : > { %6294 = sst [smem:[#allocation20 + $0x4]] (%p8139_p3), %s6852_s22  ;;  %s6854_s1 = smov [#allocation19]  }
  0xc3   : > { %6295 = sst [smem:[#allocation20 + $0x5]] (%p8139_p3), %s6853_s16 }
  0xc5   : > { %s5337_s8 = sshll.u32 %s309_s19, 26 }
  0xc6   : > { %s5338_s14 = sadd.s32 134217728, %s5337_s8 }
  0xc7   : > { %6296 = dma.general (%p8139_p3), %s304_s3, 4608, %s318_s30, %s295_s9, %s6854_s1, [#allocation20], %s5338_s14, 0  }
  0xc8 PF: > { %p8140_p2 = scmp.ne.s32.totalorder %s8132_s15, 0 }
  0xc9   : > { %s7129_s29 = sand.u32 (!%p8140_p2), 1, %s6831_s25   ;;  %p8141_p5 = scmp.ne.s32.totalorder (!%p8140_p2), %s8128_s12, 0 }
  0xca   : > { %342 = sbr.rel (%p8140_p2) target bundleno = 984 (0x3d8), region = 48  ;;  %s345_s10 = scalar_lea.sflag (!%p8140_p2), [#allocation7], %s7129_s29 }
  0xcb   : > { %s6274_s23 = smul.u32 (!%p8140_p2), 288, %s7129_s29 }
  0xcd   : > { %s7133_s21 = scalar_lea.vmem (!%p8140_p2), [#allocation6], %s6274_s23 }
  0xd1   : > { %6806 = dma.done.wait (%p8141_p5), %s345_s10, 4608  }
  0xd2   : > { %6808 = vsyncadd (%p8141_p5), %s345_s10, 4294962688  ;;  %p8142_p6 = scmp.eq.s32.totalorder %s6920_s28, 0 }
  0xd4   : > { %6810 = dma.done.wait (%p8142_p6), [#allocation10], 18432   ;;  %p8143_p11 = pmov %p8142_p6 }
  0xd5   : > { %p8144_p12 = pmov %p8142_p6 }
  0xd6   : > { %6812 = vsyncadd (%p8143_p11), [#allocation10], 4294948864 }
  0xd7   : > { %6814 = dma.done.wait (%p8144_p12), [#allocation13], 32   ;;  %p8145_p13 = pmov %p8142_p6 }
  0xd8   : > { %p8146_p0 = pmov %p8142_p6 }
  0xd9   : > { %6816 = vsyncadd (%p8145_p13), [#allocation13], 4294967264 }
  0xda   : > { %6818 = dma.done.wait (%p8146_p0), [#allocation16], 1040   ;;  %p8147_p7 = pmov %p8146_p0 }
  0xdb   : > { %s6275_s11 = smul.u32 80, %s7129_s29  ;;  %v6855_v0 = vmov 0   ;;  %vm405_vm0 = vcmask 1040384   ;;  %vm406_vm1 = vsmask.f32 256  ;;  %v6397_v9 = vld [vmem:[#allocation9 + $0x40] sm:$0xff]  }
  0xdc   : > { %6820 = vsyncadd (%p8147_p7), [#allocation16], 4294966256  ;;  %682 = vst [vmem:[#allocation2 + $0x48] sm:$0xf] %v6855_v0  ;;  %v683_v2 = vld [vmem:[#allocation2 + $0x4c] sm:$0x1]  ;;  %5788 = vmatprep.subr.bf16.mxu0 %v6397_v9 }
  0xdd   : > { %802 = vst [vmem:[#allocation2 + $0xd0] sm:$0xf] %v6855_v0  ;;  %404 = vst [vmem:[#allocation2] sm:$0xf] %v6855_v0  ;;  %s7152_s12 = scalar_lea.vmem [#allocation18], %s6275_s11  ;;  %v6398_v13 = vld [vmem:[#allocation9] sm:$0xff]  }
  0xde   : > { %2824 = vst [vmem:[#allocation4] sm:$0xf] %v6855_v0  ;;  %2825 = vst [vmem:[#allocation4 + $0x4] sm:$0x1] %v6855_v0  ;;  %v689_v3 = vld [vmem:[#allocation2 + $0x54] sm:$0x1]  ;;  %5789 = vmatpush3.bf16.msra.mxu0 %v6398_v13 }
  0xdf   : > { %2827 = vst [vmem:[#allocation4 + $0x48] sm:$0xf] %v6855_v0  ;;  %2828 = vst [vmem:[#allocation4 + $0x4c] sm:$0x1] %v6855_v0  ;;  %v692_v4 = vld [vmem:[#allocation2 + $0x5c] sm:$0x1] }
  0xe0   : > { %4957 = vst [vmem:[%s7152_s12] sm:$0xf] %v6855_v0  ;;  %4958 = vst [vmem:[%s7152_s12 + $0x4] sm:$0x1] %v6855_v0  ;;  %v695_v8 = vld [vmem:[#allocation2 + $0x64] sm:$0x1]  ;;  %v6399_v44 = vld [vmem:[#allocation9 + $0xc0] sm:$0xff]  }
  0xe1   : > { %5695 = vst [vmem:[%s7152_s12 + $0x48] sm:$0xf] %v6855_v0  ;;  %5696 = vst [vmem:[%s7152_s12 + $0x4c] sm:$0x1] %v6855_v0  ;;  %v698_v11 = vld [vmem:[#allocation2 + $0x6c] sm:$0x1]  ;;  %5828 = vmatprep.subr.bf16.mxu1 %v6399_v44 }
  0xe2   : > { %vm7159_vm2 = vmand %vm405_vm0, %vm406_vm1  ;;  %v701_v12 = vld [vmem:[#allocation2 + $0x74] sm:$0x1]  ;;  %v704_v16 = vld [vmem:[#allocation2 + $0x7c] sm:$0x1]  ;;  %vm631_vm3 = vsmask.f32 7938 }
  0xe3   : > { %v684_v5 = vsel %vm7159_vm2, 0, %v683_v2  ;;  %v690_v6 = vsel %vm7159_vm2, 0, %v689_v3  ;;  %v693_v7 = vsel %vm7159_vm2, 0, %v692_v4  ;;  %v696_v10 = vsel %vm7159_vm2, 0, %v695_v8  ;;  %v707_v17 = vld [vmem:[#allocation2 + $0x84] sm:$0x1]  ;;  %vm7215_vm4 = vmand %vm405_vm0, %vm631_vm3 }
  0xe4   : > { %685 = vst [vmem:[#allocation2 + $0x4c] sm:$0x1] %v684_v5  ;;  %691 = vst [vmem:[#allocation2 + $0x54] sm:$0x1] %v690_v6  ;;  %v699_v14 = vsel %vm7159_vm2, 0, %v698_v11  ;;  %v702_v15 = vsel %vm7159_vm2, 0, %v701_v12 }
  0xe5   : > { %694 = vst [vmem:[#allocation2 + $0x5c] sm:$0x1] %v693_v7  ;;  %697 = vst [vmem:[#allocation2 + $0x64] sm:$0x1] %v696_v10  ;;  %v705_v18 = vsel %vm7159_vm2, 0, %v704_v16  ;;  %v708_v19 = vsel %vm7159_vm2, 0, %v707_v17 }
  0xe6   : > { %700 = vst [vmem:[#allocation2 + $0x6c] sm:$0x1] %v699_v14  ;;  %703 = vst [vmem:[#allocation2 + $0x74] sm:$0x1] %v702_v15  ;;  %v710_v20 = vld [vmem:[#allocation2 + $0x8c] sm:$0x1] }
  0xe7   : > { %v803_v21 = vld [vmem:[#allocation2 + $0xd4] sm:$0x1]  ;;  %706 = vst [vmem:[#allocation2 + $0x7c] sm:$0x1] %v705_v18  ;;  %709 = vst [vmem:[#allocation2 + $0x84] sm:$0x1] %v708_v19 }
  0xe8   : > { %v711_v22 = vsel %vm7159_vm2, 0, %v710_v20  ;;  %v804_v23 = vsel %vm7159_vm2, 0, %v803_v21  ;;  %v1075_v24 = vld [vmem:[#allocation2 + $0x11c] sm:$0x1]  ;;  %v1082_v28 = vld [vmem:[#allocation2 + $0xe4] sm:$0x1] }
  0xe9   : > { %v1079_v25 = vld [vmem:[#allocation2 + $0xdc] sm:$0x1]  ;;  %712 = vst [vmem:[#allocation2 + $0x8c] sm:$0x1] %v711_v22  ;;  %805 = vst [vmem:[#allocation2 + $0xd4] sm:$0x1] %v804_v23 }
  0xea   : > { %v1076_v26 = vsel %vm7159_vm2, 0, %v1075_v24  ;;  %v1080_v27 = vsel %vm7159_vm2, 0, %v1079_v25  ;;  %v1085_v29 = vld [vmem:[#allocation2 + $0xec] sm:$0x1]  ;;  %v1083_v30 = vsel %vm7159_vm2, 0, %v1082_v28  ;;  %v6400_v45 = vld [vmem:[#allocation9 + $0x80] sm:$0xff]  }
  0xeb   : > { %1077 = vst [vmem:[#allocation2 + $0x11c] sm:$0x1] %v1076_v26  ;;  %1081 = vst [vmem:[#allocation2 + $0xdc] sm:$0x1] %v1080_v27  ;;  %v1086_v31 = vsel %vm7159_vm2, 0, %v1085_v29  ;;  %v6401_v47 = vld [vmem:[#allocation9 + $0x48] sm:$0xff]   ;;  %5829 = vmatpush3.bf16.msra.mxu1 %v6400_v45 }
  0xec   : > { %v1088_v32 = vld [vmem:[#allocation2 + $0xf4] sm:$0x1]  ;;  %v1091_v33 = vld [vmem:[#allocation2 + $0xfc] sm:$0x1]  ;;  %1084 = vst [vmem:[#allocation2 + $0xe4] sm:$0x1] %v1083_v30  ;;  %5790 = vmatprep.subr.bf16.mxu0 %v6401_v47 }
  0xed   : > { %1087 = vst [vmem:[#allocation2 + $0xec] sm:$0x1] %v1086_v31  ;;  %v1089_v34 = vsel %vm7159_vm2, 0, %v1088_v32  ;;  %v1092_v35 = vsel %vm7159_vm2, 0, %v1091_v33  ;;  %v1094_v36 = vld [vmem:[#allocation2 + $0x104] sm:$0x1] }
  0xee   : > { %v1097_v37 = vld [vmem:[#allocation2 + $0x10c] sm:$0x1]  ;;  %1090 = vst [vmem:[#allocation2 + $0xf4] sm:$0x1] %v1089_v34  ;;  %1093 = vst [vmem:[#allocation2 + $0xfc] sm:$0x1] %v1092_v35 }
  0xef   : > { %v686_v38 = vld [vmem:[#allocation2 + $0x4c] sm:$0x1]  ;;  %v1095_v39 = vsel %vm7159_vm2, 0, %v1094_v36  ;;  %v1098_v40 = vsel %vm7159_vm2, 0, %v1097_v37  ;;  %v1100_v41 = vld [vmem:[#allocation2 + $0x114] sm:$0x1] }
  0xf0   : > { %v687_v42 = vsel %vm7159_vm2, 0, %v686_v38  ;;  %1096 = vst [vmem:[#allocation2 + $0x104] sm:$0x1] %v1095_v39  ;;  %1099 = vst [vmem:[#allocation2 + $0x10c] sm:$0x1] %v1098_v40  ;;  %v1101_v43 = vsel %vm7159_vm2, 0, %v1100_v41 }
  0xf1   : > { %688 = vst [vmem:[#allocation2 + $0x4c] sm:$0x1] %v687_v42  ;;  %1102 = vst [vmem:[#allocation2 + $0x114] sm:$0x1] %v1101_v43  ;;  %v6402_v49 = vld [vmem:[#allocation9 + $0x8] sm:$0xff]   ;;  %v6405_v52 = vld [vmem:[#allocation9 + $0x50] sm:$0xff]  }
  0xf2   : > { %v1103_v46 = vld [vmem:[#allocation2 + $0x11c] sm:$0x1]  ;;  %5791 = vmatpush3.bf16.msra.mxu0 %v6402_v49  ;;  %v6406_v53 = vld [vmem:[#allocation9 + $0x10] sm:$0xff]   ;;  %v6409_v56 = vld [vmem:[#allocation9 + $0x58] sm:$0xff]   ;;  %vm630_vm5 = vcmask 1043456   ;;  %s6276_s15 = smul.u32 1280, %s6920_s28 }
  0xf3   : > { %v1104_v48 = vsel %vm7159_vm2, 0, %v1103_v46  ;;  %v6403_v50 = vld [vmem:[#allocation9 + $0xc8] sm:$0xff]   ;;  %5792 = vmatprep.subr.bf16.mxu0 %v6405_v52  ;;  %v6407_v54 = vld [vmem:[#allocation9 + $0xd0] sm:$0xff]   ;;  %v6410_v57 = vld [vmem:[#allocation9 + $0x18] sm:$0xff]   ;;  %vm1281_vm11 = vsmask.f32 3328 }
  0xf4   : > { %1105 = vst [vmem:[#allocation2 + $0x11c] sm:$0x1] %v1104_v48  ;;  %v6404_v51 = vld [vmem:[#allocation9 + $0x88] sm:$0xff]   ;;  %5830 = vmatprep.subr.bf16.mxu1 %v6403_v50  ;;  %v6408_v55 = vld [vmem:[#allocation9 + $0x90] sm:$0xff]   ;;  %v6411_v58 = vld [vmem:[#allocation9 + $0xd8] sm:$0xff]   ;;  %s5197_s18 = sshll.u32 %s7152_s12, 4  ;;  %s8049_s19 = scalar_lea.hbm %s8108_s7, %s6276_s15  ;;  %s8051_s18 = int_to_ptr.vmem [resolvable:$true] %s5197_s18 }
  0xf5   : > { %5831 = vmatpush3.bf16.msra.mxu1 %v6404_v51  ;;  %v6412_v59 = vld [vmem:[#allocation9 + $0x98] sm:$0xff]   ;;  %v6413_v60 = vld [vmem:[#allocation9 + $0x60] sm:$0xff]   ;;  %v6417_v0 = vld [vmem:[#allocation9 + $0x68] sm:$0xff]   ;;  %vm1282_vm12 = vsmask.f32 7440  ;;  %s5184_s17 = scalar_lea.sflag [#allocation8], %s7129_s29 }
  0xf6   : > { %5793 = vmatpush3.bf16.msra.mxu0 %v6406_v53  ;;  %5832 = vmatprep.subr.bf16.mxu1 %v6407_v54  ;;  %v6414_v61 = vld [vmem:[#allocation9 + $0x20] sm:$0xff]   ;;  %v6418_v2 = vld [vmem:[#allocation9 + $0x28] sm:$0xff]   ;;  %v6421_v5 = vld [vmem:[#allocation9 + $0x70] sm:$0xff]   ;;  %s6761_s30 = scalar_lea.vmem %s8051_s18, 1280  ;;  %p8158_p9 = scmp.ne.s32.totalorder %s8129_s13, 0 }
  0xf7   : > { %5794 = vmatprep.subr.bf16.mxu0 %v6409_v56  ;;  %v6415_v62 = vld [vmem:[#allocation9 + $0xe0] sm:$0xff]   ;;  %v6419_v3 = vld [vmem:[#allocation9 + $0xe8] sm:$0xff]   ;;  %v6422_v6 = vld [vmem:[#allocation9 + $0x30] sm:$0xff]   ;;  %p6762_p8 = scmp.ne.s32.totalorder %s8051_s18, %s6761_s30  ;;  %s6856_s24 = smov [#allocation18]  }
  0xf8   : > { %v6416_v63 = vld [vmem:[#allocation9 + $0xa0] sm:$0xff]   ;;  %v6420_v4 = vld [vmem:[#allocation9 + $0xa8] sm:$0xff]   ;;  %v6423_v7 = vld [vmem:[#allocation9 + $0xf0] sm:$0xff]   ;;  %s6765_s20 = sshll.u32 %s6856_s24, 4  ;;  %s6766_s20 = int_to_ptr.vmem [resolvable:$false] %s6765_s20 }
  0xf9   : > { %5833 = vmatpush3.bf16.msra.mxu1 %v6408_v55  ;;  %v6424_v8 = vld [vmem:[#allocation9 + $0xb0] sm:$0xff]   ;;  %v6425_v9 = vld [vmem:[#allocation9 + $0x78] sm:$0xff]   ;;  %v7206_v13 = vld [vmem:[#allocation12] ss:$0 sm:$0xff]  ;;  %p6763_p10 = pnand %p6762_p8, %p8158_p9  ;;  %s6767_s22 = scalar_lea.vmem %s6766_s20, 2560 }
  0xfa   : > { %5795 = vmatpush3.bf16.msra.mxu0 %v6410_v57  ;;  %5834 = vmatprep.subr.bf16.mxu1 %v6411_v58  ;;  %v6426_v10 = vld [vmem:[#allocation9 + $0x38] sm:$0xff]   ;;  %v5380_v12 = vld [vmem:[%s7133_s21 + $0x8] ss:$72 sps:$4 sm:$0xff]   ;;  %v7208_v14 = vld [vmem:[#allocation14] ss:$0 sm:$0xff]  ;;  %p6768_p3 = scmp.lt.s32.totalorder %s8051_s18, %s6766_s20  ;;  %p6769_p2 = scmp.lt.s32.totalorder %s6767_s22, %s6761_s30 }
  0xfb   : > { %5796 = vmatprep.subr.bf16.mxu0 %v6413_v60  ;;  %v6427_v11 = vld [vmem:[#allocation9 + $0xf8] sm:$0xff]   ;;  %v722_v15 = vunpack.c.h.bf16 %v5380_v12  ;;  %v831_v16 = vld [vmem:[#allocation2 + $0xd0] sm:$0x1]  ;;  %v4962_v17 = vld [vmem:[%s7152_s12] sm:$0x1]  ;;  %v455_v18 = vunpack.c.l.bf16 %v5380_v12  ;;  %p6764_p1 = pneg %p6763_p10 }
  0xfc   : > { %v832_v19 = vsel %vm7159_vm2, 0, %v831_v16  ;;  %v4963_v21 = vsel %vm7159_vm2, 0, %v4962_v17  ;;  %v4989_v22 = vld [vmem:[%s7152_s12 + $0x48] sm:$0x1]  ;;  %v4992_v23 = vld [vmem:[%s7152_s12 + $0x4] sm:$0x1]  ;;  %vm7250_vm8 = vmand %vm630_vm5, %vm631_vm3  ;;  %p6770_p5 = por %p6769_p2, %p6768_p3 }
  0xfd   : > { %5835 = vmatpush3.bf16.msra.mxu1 %v6412_v59  ;;  %v737_v24 = vmul.f32 %v7206_v13, %v722_v15  ;;  %833 = vst [vmem:[#allocation2 + $0xd0] sm:$0x1] %v832_v19  ;;  %4964 = vst [vmem:[%s7152_s12] sm:$0x1] %v4963_v21  ;;  %v4990_v25 = vsel %vm7159_vm2, 0, %v4989_v22  ;;  %v4993_v26 = vsel %vm7215_vm4, 0, %v4992_v23  ;;  %v478_v28 = vmul.f32 %v7206_v13, %v455_v18  ;;  %v6429_v30 = vld [vmem:[#allocation9 + $0xb8] sm:$0xff]  }
  0xfe   : > { %5797 = vmatpush3.bf16.msra.mxu0 %v6414_v61  ;;  %5836 = vmatprep.subr.bf16.mxu1 %v6415_v62  ;;  %v5019_v27 = vld [vmem:[%s7152_s12 + $0x4c] sm:$0x1]  ;;  %4991 = vst [vmem:[%s7152_s12 + $0x48] sm:$0x1] %v4990_v25  ;;  %4994 = vst [vmem:[%s7152_s12 + $0x4] sm:$0x1] %v4993_v26  ;;  %p6771_p6 = pnand %p6770_p5, %p6764_p1 }
  0xff   : > { %5798 = vmatprep.subr.bf16.mxu0 %v6417_v0  ;;  %v5020_v29 = vsel %vm7215_vm4, 0, %v5019_v27  ;;  %v411_v31 = vld [vmem:[#allocation2] sm:$0x1]  ;;  %v752_v32 = vadd.f32 %v7208_v14, %v737_v24  ;;  %v414_v34 = vld [vmem:[#allocation2 + $0x8] sm:$0x1]  ;;  %v501_v35 = vadd.f32 %v7208_v14, %v478_v28  ;;  %v6431_v36 = vld [vmem:[#allocation9 + $0x140] sm:$0xff]  }
 0x100   : > { %5021 = vst [vmem:[%s7152_s12 + $0x4c] sm:$0x1] %v5020_v29  ;;  %v412_v33 = vsel %vm7159_vm2, 0, %v411_v31  ;;  %v415_v37 = vsel %vm7159_vm2, 0, %v414_v34  ;;  %v807_v38 = vld [vmem:[#allocation2 + $0x90] sm:$0x1]  ;;  %vm7293_vm14 = vmor %vm1281_vm11, %vm1282_vm12 }
 0x101   : > { %5837 = vmatpush3.bf16.msra.mxu1 %v6416_v63  ;;  %413 = vst [vmem:[#allocation2] sm:$0x1] %v412_v33  ;;  %vm760_vm6 = vcmp.gt.f32.partialorder %v752_v32, 0.0  ;;  %v768_v39 = vmul.f32 0.1, %v752_v32  ;;  %vm517_vm7 = vcmp.gt.f32.partialorder %v501_v35, 0.0 }
 0x102   : > { %5799 = vmatpush3.bf16.msra.mxu0 %v6418_v2  ;;  %5838 = vmatprep.subr.bf16.mxu1 %v6419_v3  ;;  %416 = vst [vmem:[#allocation2 + $0x8] sm:$0x1] %v415_v37  ;;  %v533_v40 = vmul.f32 0.1, %v501_v35  ;;  %v808_v41 = vsel %vm7159_vm2, 0, %v807_v38  ;;  %v6434_v44 = vld [vmem:[#allocation9 + $0x1c0] sm:$0xff]  }
 0x103   : > { %5800 = vmatprep.subr.bf16.mxu0 %v6421_v5  ;;  %v810_v42 = vld [vmem:[#allocation2 + $0x98] sm:$0x1]  ;;  %v5390_v43 = vld [vmem:[%s7133_s21 + $0x90] ss:$8 sps:$4 sm:$0xff]   ;;  %v776_v45 = vsel %vm760_vm6, %v752_v32, %v768_v39  ;;  %809 = vst [vmem:[#allocation2 + $0x90] sm:$0x1] %v808_v41 }
 0x104   : > { %v549_v46 = vsel %vm517_vm7, %v501_v35, %v533_v40  ;;  %v811_v47 = vsel %vm7159_vm2, 0, %v810_v42  ;;  %v851_v48 = vunpack.c.l.bf16 %v5390_v43  ;;  %v784_v49 = vpack.c.bf16 %v776_v45, %v776_v45  ;;  %v408_v51 = vld [vmem:[#allocation2 + $0x4] sm:$0x1]  ;;  %v5347_v52 = vld [vmem:[%s7133_s21 + $0xc] sm:$0x1]  ;;  %v6433_v25 = vld [vmem:[#allocation9 + $0x100] sm:$0xff]  }
 0x105   : > { %5839 = vmatpush3.bf16.msra.mxu1 %v6420_v4  ;;  %812 = vst [vmem:[#allocation2 + $0x98] sm:$0x1] %v811_v47  ;;  %v853_v50 = vunpack.c.h.bf16 %v5390_v43  ;;  %v5740_v53 = vpack.c.bf16 %v549_v46, %v549_v46  ;;  %v409_v56 = vsel %vm7159_vm2, 0, %v408_v51  ;;  %v456_v57 = vunpack.c.l.bf16 %v5347_v52  ;;  %v5381_v28 = vld [vmem:[%s7133_s21 + $0x58] ss:$8 sps:$4 sm:$0xff]  }
 0x106   : > { %5801 = vmatpush3.bf16.msra.mxu0 %v6422_v6  ;;  %5840 = vmatprep.subr.bf16.mxu1 %v6423_v7  ;;  %v874_v55 = vmul.f32 %v7206_v13, %v851_v48  ;;  %793 = vst [vmem:[#allocation2 + $0x50] sm:$0xf] %v784_v49  ;;  %410 = vst [vmem:[#allocation2 + $0x4] sm:$0x1] %v409_v56  ;;  %v723_v31 = vunpack.c.l.bf16 %v5381_v28  ;;  %v724_v32 = vunpack.c.h.bf16 %v5381_v28  ;;  %v417_v33 = vld [vmem:[#allocation2 + $0x10] sm:$0x1] }
 0x107   : > { %5802 = vmatprep.subr.bf16.mxu0 %v6425_v9  ;;  %v876_v58 = vmul.f32 %v7206_v13, %v853_v50  ;;  %v479_v60 = vmul.f32 %v7206_v13, %v456_v57  ;;  %v420_v37 = vld [vmem:[#allocation2 + $0x18] sm:$0x1]  ;;  %v5348_v38 = vld [vmem:[%s7133_s21 + $0x10] ss:$8 sps:$4 sm:$0xff]  }
 0x108   : > { %v897_v59 = vadd.f32 %v7208_v14, %v874_v55  ;;  %v1265_v61 = vld [vmem:[#allocation2] sm:$0xf]  ;;  %v738_v41 = vmul.f32 %v7206_v13, %v723_v31  ;;  %v739_v42 = vmul.f32 %v7206_v13, %v724_v32  ;;  %v457_v43 = vunpack.c.l.bf16 %v5348_v38  ;;  %v6437_v48 = vld [vmem:[#allocation9 + $0x108] sm:$0xff]   ;;  %v816_v57 = vld [vmem:[#allocation2 + $0xa8] sm:$0x1] }
 0x109   : > { %5841 = vmatpush3.bf16.msra.mxu1 %v6424_v8  ;;  %v633_v62 = vld [vmem:[#allocation2 + $0x8] sm:$0xf]  ;;  %v899_v63 = vadd.f32 %v7208_v14, %v876_v58  ;;  %v1285_v0 = vshrl.u32 %v1265_v61, 16  ;;  %v1288_v2 = vshll.u32 %v1265_v61, 16  ;;  %v502_v5 = vadd.f32 %v7208_v14, %v479_v60  ;;  %v6442_v55 = vld [vmem:[#allocation9 + $0x150] sm:$0xff]  }
 0x10a   : > { %5803 = vmatpush3.bf16.msra.mxu0 %v6426_v10  ;;  %5842 = vmatprep.subr.bf16.mxu1 %v6427_v11  ;;  %v634_v3 = vsel %vm7250_vm8, %v5740_v53, %v633_v62  ;;  %vm913_vm9 = vcmp.gt.f32.partialorder %v897_v59, 0.0  ;;  %v929_v4 = vmul.f32 0.1, %v897_v59  ;;  %v1025_v9 = vld [vmem:[#allocation2 + $0x90] sm:$0xf]  ;;  %v421_v49 = vsel %vm7159_vm2, 0, %v420_v37 }
 0x10b   : > { %5868 = vmatprep.subr.bf16.mxu0 %v6431_v36  ;;  %635 = vst [vmem:[#allocation2 + $0x8] sm:$0xf] %v634_v3  ;;  %vm915_vm10 = vcmp.gt.f32.partialorder %v899_v63, 0.0  ;;  %v931_v6 = vmul.f32 0.1, %v899_v63  ;;  %v1287_v7 = vrot.slane %v1285_v0, 4  ;;  %v753_v50 = vadd.f32 %v7208_v14, %v738_v41 }
 0x10c   : > { %v945_v8 = vsel %vm913_vm9, %v897_v59, %v929_v4  ;;  %vm518_vm13 = vcmp.gt.f32.partialorder %v502_v5, 0.0  ;;  %v534_v10 = vmul.f32 0.1, %v502_v5  ;;  %v636_v11 = vld [vmem:[#allocation2 + $0xc] sm:$0x1]  ;;  %v1290_v12 = vrot.slane %v1288_v2, 5 }
 0x10d   : > { %5843 = vmatpush3.bf16.msra.mxu1 %v6429_v30  ;;  %v947_v15 = vsel %vm915_vm10, %v899_v63, %v931_v6  ;;  %v5756_v16 = vpack.c.bf16 %v945_v8, %v945_v8  ;;  %v1031_v17 = vld [vmem:[#allocation2 + $0x98] sm:$0xf]  ;;  %v6428_v18 = vld [vmem:[#allocation2 + $0x48] ss:$8 sps:$4 sm:$0xff]   ;;  %v1266_v22 = vld [vmem:[#allocation2 + $0x4] sm:$0x1]  ;;  %v754_v51 = vadd.f32 %v7208_v14, %v739_v42  ;;  %v480_v52 = vmul.f32 %v7206_v13, %v457_v43 }
 0x10e   : > { %5908 = vmatprep.subr.bf16.mxu1 %v6434_v44  ;;  %v5758_v19 = vpack.c.bf16 %v947_v15, %v947_v15  ;;  %v550_v21 = vsel %vm518_vm13, %v502_v5, %v534_v10  ;;  %v1291_v23 = vor.u32 %v1290_v12, %v1287_v7  ;;  %v1294_v27 = vshll.u32 %v1266_v22, 16  ;;  %2507 = vmatprep.mubr.bf16.mxu0 %v6428_v18  ;;  %v6436_v30 = vld [vmem:[#allocation9 + $0x148] sm:$0xff]   ;;  %v813_v56 = vld [vmem:[#allocation2 + $0xa0] sm:$0x1] }
 0x10f   : > { %v1026_v24 = vsel %vm7250_vm8, %v5756_v16, %v1025_v9  ;;  %v5741_v26 = vpack.c.bf16 %v550_v21, %v550_v21  ;;  %v418_v36 = vsel %vm7159_vm2, 0, %v417_v33  ;;  %v459_v44 = vunpack.c.h.bf16 %v5348_v38  ;;  %422 = vst [vmem:[#allocation2 + $0x18] sm:$0x1] %v421_v49  ;;  %v5394_v62 = vld [vmem:[%s7133_s21 + $0xa0] ss:$8 sps:$4 sm:$0xff]   ;;  %v6444_v18 = vld [vmem:[#allocation9 + $0x110] sm:$0xff]  }
 0x110   : > { %1027 = vst [vmem:[#allocation2 + $0x90] sm:$0xf] %v1026_v24  ;;  %v1032_v29 = vsel %vm7250_vm8, %v5758_v19, %v1031_v17  ;;  %v7271_v35 = vrot.slane %v1291_v23, 4  ;;  %419 = vst [vmem:[#allocation2 + $0x10] sm:$0x1] %v418_v36  ;;  %v7278_v45 = vrot.slane %v1294_v27, 5  ;;  %v503_v4 = vadd.f32 %v7208_v14, %v480_v52 }
 0x111   : > { %1033 = vst [vmem:[#allocation2 + $0x98] sm:$0xf] %v1032_v29  ;;  %v637_v34 = vsel %vm7159_vm2, %v5741_v26, %v636_v11  ;;  %v482_v53 = vmul.f32 %v7206_v13, %v459_v44  ;;  %v814_v60 = vsel %vm7159_vm2, 0, %v813_v56  ;;  %v817_v61 = vsel %vm7159_vm2, 0, %v816_v57  ;;  %v5349_v11 = vld [vmem:[%s7133_s21 + $0x14] sm:$0x1] }
 0x112   : > { %v6430_v39 = vld [vmem:[#allocation2] ss:$8 sps:$4 sm:$0xff]   ;;  %638 = vst [vmem:[#allocation2 + $0xc] sm:$0x1] %v637_v34  ;;  %vm761_vm15 = vcmp.gt.f32.partialorder %v753_v50, 0.0  ;;  %vm762_vm0 = vcmp.gt.f32.partialorder %v754_v51, 0.0  ;;  %v855_v6 = vunpack.c.l.bf16 %v5394_v62  ;;  %v857_v10 = vunpack.c.h.bf16 %v5394_v62 }
 0x113   : > { %v1267_v40 = vld [vmem:[#allocation2 + $0x8] sm:$0xf]  ;;  %2508 = vmatmul.mubr.bf16.vlgmr.msra.gmra.mrb[0].mxu0 %v6430_v39  ;;  %v769_v0 = vmul.f32 0.1, %v753_v50  ;;  %v770_v2 = vmul.f32 0.1, %v754_v51  ;;  %v505_v5 = vadd.f32 %v7208_v14, %v482_v53  ;;  %v1297_v23 = vsel %vm7293_vm14, %v7271_v35, %v7278_v45 }
 0x114   : > { %v1299_v46 = vshrl.u32 %v1267_v40, 16  ;;  %v1302_v47 = vshll.u32 %v1267_v40, 16  ;;  %5869 = vmatpush3.bf16.msra.mxu0 %v6433_v25  ;;  %815 = vst [vmem:[#allocation2 + $0xa0] sm:$0x1] %v814_v60  ;;  %818 = vst [vmem:[#allocation2 + $0xa8] sm:$0x1] %v817_v61  ;;  %v878_v25 = vmul.f32 %v7206_v13, %v855_v6  ;;  %v880_v26 = vmul.f32 %v7206_v13, %v857_v10 }
 0x115   : > { %5870 = vmatprep.subr.bf16.mxu0 %v6436_v30  ;;  %v777_v8 = vsel %vm761_vm15, %v753_v50, %v769_v0  ;;  %v778_v9 = vsel %vm762_vm0, %v754_v51, %v770_v2  ;;  %vm519_vm1 = vcmp.gt.f32.partialorder %v503_v4, 0.0  ;;  %vm521_vm3 = vcmp.gt.f32.partialorder %v505_v5, 0.0  ;;  %v5351_v27 = vld [vmem:[%s7133_s21 + $0x1c] sm:$0x1]  ;;  %v6435_v34 = vld [vmem:[#allocation9 + $0x180] sm:$0xff]   ;;  %v6438_v40 = vld [vmem:[#allocation9 + $0x1c8] sm:$0xff]  }
 0x116   : > { %v1301_v58 = vrot.slane %v1299_v46, 4  ;;  %v1304_v59 = vrot.slane %v1302_v47, 5  ;;  %v785_v16 = vpack.c.bf16 %v777_v8, %v777_v8  ;;  %v786_v17 = vpack.c.bf16 %v778_v9, %v778_v9  ;;  %v645_v32 = vld [vmem:[#allocation2 + $0x18] sm:$0xf]  ;;  %v6447_v46 = vld [vmem:[#allocation9 + $0x158] sm:$0xff]   ;;  %v6445_v61 = vld [vmem:[#allocation9 + $0x1d0] sm:$0xff]  }
 0x117   : > { %v535_v21 = vmul.f32 0.1, %v503_v4  ;;  %v537_v22 = vmul.f32 0.1, %v505_v5  ;;  %v639_v24 = vld [vmem:[#allocation2 + $0x10] sm:$0xf]  ;;  %v458_v28 = vunpack.c.l.bf16 %v5349_v11  ;;  %v460_v33 = vunpack.c.l.bf16 %v5351_v27 }
 0x118   : > { %v1305_v3 = vor.u32 %v1304_v59, %v1301_v58  ;;  %v6432_v7 = vld [vmem:[#allocation2 + $0x90] ss:$8 sps:$4 sm:$0xff]   ;;  %5871 = vmatpush3.bf16.msra.mxu0 %v6437_v48  ;;  %794 = vst [vmem:[#allocation2 + $0x58] sm:$0xf] %v785_v16  ;;  %795 = vst [vmem:[#allocation2 + $0x60] sm:$0xf] %v786_v17  ;;  %v901_v35 = vadd.f32 %v7208_v14, %v878_v25  ;;  %v903_v38 = vadd.f32 %v7208_v14, %v880_v26 }
 0x119   : > { %v1268_v12 = vld [vmem:[#allocation2 + $0xc] sm:$0x1]  ;;  %2572 = vmatprep.mubr.bf16.mxu1 %v6432_v7  ;;  %5872 = vmatprep.subr.bf16.mxu0 %v6442_v55  ;;  %v551_v30 = vsel %vm519_vm1, %v503_v4, %v535_v21  ;;  %v553_v31 = vsel %vm521_vm3, %v505_v5, %v537_v22  ;;  %v481_v41 = vmul.f32 %v7206_v13, %v458_v28  ;;  %v6440_v47 = vld [vmem:[#allocation9 + $0x188] sm:$0xff]   ;;  %v642_v2 = vld [vmem:[#allocation2 + $0x14] sm:$0x1] }
 0x11a   : > { %v1306_v15 = vrot.slane %v1305_v3, 4  ;;  %v1308_v19 = vshll.u32 %v1268_v12, 16  ;;  %v5742_v36 = vpack.c.bf16 %v551_v30, %v551_v30  ;;  %v5744_v37 = vpack.c.bf16 %v553_v31, %v553_v31  ;;  %v6448_v53 = vld [vmem:[#allocation9 + $0x118] sm:$0xff]   ;;  %v648_v3 = vld [vmem:[#allocation2 + $0x1c] sm:$0x1]  ;;  %v6446_v4 = vld [vmem:[#allocation9 + $0x190] sm:$0xff]  }
 0x11b   : > { %v483_v42 = vmul.f32 %v7206_v13, %v460_v33  ;;  %vm917_vm5 = vcmp.gt.f32.partialorder %v901_v35, 0.0  ;;  %vm919_vm6 = vcmp.gt.f32.partialorder %v903_v38, 0.0  ;;  %v933_v48 = vmul.f32 0.1, %v901_v35  ;;  %v1037_v50 = vld [vmem:[#allocation2 + $0xa0] sm:$0xf] }
 0x11c   : > { %v1310_v29 = vrot.slane %v1308_v19, 5  ;;  %5873 = vmatpush3.bf16.msra.mxu0 %v6444_v18  ;;  %v640_v44 = vsel %vm7250_vm8, %v5742_v36, %v639_v24  ;;  %v646_v45 = vsel %vm7250_vm8, %v5744_v37, %v645_v32  ;;  %v935_v49 = vmul.f32 0.1, %v903_v38  ;;  %v1043_v51 = vld [vmem:[#allocation2 + $0xa8] sm:$0xf]  ;;  %v6453_v19 = vld [vmem:[#allocation9 + $0x160] sm:$0xff]  }
 0x11d   : > { %641 = vst [vmem:[#allocation2 + $0x10] sm:$0xf] %v640_v44  ;;  %647 = vst [vmem:[#allocation2 + $0x18] sm:$0xf] %v646_v45  ;;  %v504_v52 = vadd.f32 %v7208_v14, %v481_v41  ;;  %v506_v55 = vadd.f32 %v7208_v14, %v483_v42  ;;  %5874 = vmatprep.subr.bf16.mxu0 %v6447_v46  ;;  %v949_v57 = vsel %vm917_vm5, %v901_v35, %v933_v48  ;;  %v5383_v5 = vld [vmem:[%s7133_s21 + $0x68] ss:$8 sps:$4 sm:$0xff]  }
 0x11e   : > { %v1311_v39 = vsel %vm7293_vm14, %v1306_v15, %v1310_v29  ;;  %v951_v58 = vsel %vm919_vm6, %v903_v38, %v935_v49  ;;  %v5760_v59 = vpack.c.bf16 %v949_v57, %v949_v57  ;;  %v6449_v8 = vld [vmem:[#allocation9 + $0x1d8] sm:$0xff]   ;;  %v725_v9 = vunpack.c.l.bf16 %v5383_v5  ;;  %v423_v11 = vld [vmem:[#allocation2 + $0x20] sm:$0x1]  ;;  %v5352_v18 = vld [vmem:[%s7133_s21 + $0x20] ss:$8 sps:$4 sm:$0xff]  }
 0x11f   : > { %v5442_v43 = vcombine.low %v1297_v23, %v1311_v39  ;;  %v6439_v56 = vld [vmem:[#allocation2 + $0x58] ss:$8 sps:$4 sm:$0xff]   ;;  %v5762_v60 = vpack.c.bf16 %v951_v58, %v951_v58  ;;  %vm520_vm7 = vcmp.gt.f32.partialorder %v504_v52, 0.0  ;;  %vm522_vm9 = vcmp.gt.f32.partialorder %v506_v55, 0.0  ;;  %v426_v17 = vld [vmem:[#allocation2 + $0x28] sm:$0x1] }
 0x120   : > { %5875 = vmatpush3.bf16.msra.mxu0 %v6448_v53  ;;  %2515 = vmatprep.mubr.bf16.mxu0 %v6439_v56  ;;  %v536_v62 = vmul.f32 0.1, %v504_v52  ;;  %v538_v0 = vmul.f32 0.1, %v506_v55  ;;  %v1038_v6 = vsel %vm7250_vm8, %v5760_v59, %v1037_v50  ;;  %v726_v10 = vunpack.c.h.bf16 %v5383_v5  ;;  %v6455_v31 = vld [vmem:[#allocation9 + $0x120] sm:$0xff]  }
 0x121   : > { %2573 = vmatmul.mubr.bf16.vlgmr.msra.gmra.mrb[0].mxu1 %v5442_v43  ;;  %v1044_v7 = vsel %vm7250_vm8, %v5762_v60, %v1043_v51  ;;  %1039 = vst [vmem:[#allocation2 + $0xa0] sm:$0xf] %v1038_v6  ;;  %v424_v16 = vsel %vm7159_vm2, 0, %v423_v11  ;;  %v740_v24 = vmul.f32 %v7206_v13, %v725_v9  ;;  %v427_v28 = vsel %vm7159_vm2, 0, %v426_v17  ;;  %5876 = vmatprep.subr.bf16.mxu0 %v6453_v19  ;;  %v5398_v45 = vld [vmem:[%s7133_s21 + $0xb0] ss:$8 sps:$4 sm:$0xff]  }
 0x122   : > { %5909 = vmatpush3.bf16.msra.mxu1 %v6435_v34  ;;  %1045 = vst [vmem:[#allocation2 + $0xa8] sm:$0xf] %v1044_v7  ;;  %v552_v12 = vsel %vm520_vm7, %v504_v52, %v536_v62  ;;  %v554_v15 = vsel %vm522_vm9, %v506_v55, %v538_v0  ;;  %v741_v25 = vmul.f32 %v7206_v13, %v726_v10  ;;  %425 = vst [vmem:[#allocation2 + $0x20] sm:$0x1] %v424_v16  ;;  %v819_v48 = vld [vmem:[#allocation2 + $0xb0] sm:$0x1] }
 0x123   : > { %5910 = vmatprep.subr.bf16.mxu1 %v6438_v40  ;;  %v5743_v22 = vpack.c.bf16 %v552_v12, %v552_v12  ;;  %v5745_v23 = vpack.c.bf16 %v554_v15, %v554_v15  ;;  %v461_v29 = vunpack.c.l.bf16 %v5352_v18  ;;  %v463_v30 = vunpack.c.h.bf16 %v5352_v18  ;;  %428 = vst [vmem:[#allocation2 + $0x28] sm:$0x1] %v427_v28  ;;  %v6451_v40 = vld [vmem:[#allocation9 + $0x198] sm:$0xff]   ;;  %v822_v58 = vld [vmem:[#allocation2 + $0xb8] sm:$0x1]  ;;  %v6456_v0 = vld [vmem:[#allocation9 + $0x1e0] sm:$0xff]  }
 0x124   : > { %v6441_v21 = vld [vmem:[#allocation2 + $0x10] ss:$8 sps:$4 sm:$0xff]   ;;  %v755_v38 = vadd.f32 %v7208_v14, %v740_v24  ;;  %v756_v39 = vadd.f32 %v7208_v14, %v741_v25  ;;  %5877 = vmatpush3.bf16.msra.mxu0 %v6455_v31  ;;  %v859_v53 = vunpack.c.l.bf16 %v5398_v45  ;;  %v861_v59 = vunpack.c.h.bf16 %v5398_v45 }
 0x125   : > { %v1269_v26 = vld [vmem:[#allocation2 + $0x10] sm:$0xf]  ;;  %v1271_v27 = vld [vmem:[#allocation2 + $0x18] sm:$0xf]  ;;  %2516 = vmatmul.mubr.bf16.gmra.mrb[4].mxu0 %v6441_v21  ;;  %v643_v32 = vsel %vm7159_vm2, %v5743_v22, %v642_v2  ;;  %v649_v33 = vsel %vm7159_vm2, %v5745_v23, %v648_v3  ;;  %v484_v43 = vmul.f32 %v7206_v13, %v461_v29  ;;  %v486_v44 = vmul.f32 %v7206_v13, %v463_v30  ;;  %v5353_v22 = vld [vmem:[%s7133_s21 + $0x24] sm:$0x1] }
 0x126   : > { %5911 = vmatpush3.bf16.msra.mxu1 %v6440_v47  ;;  %v1313_v34 = vshrl.u32 %v1269_v26, 16  ;;  %v1316_v36 = vshll.u32 %v1269_v26, 16  ;;  %644 = vst [vmem:[#allocation2 + $0x14] sm:$0x1] %v643_v32  ;;  %650 = vst [vmem:[#allocation2 + $0x1c] sm:$0x1] %v649_v33  ;;  %v882_v26 = vmul.f32 %v7206_v13, %v859_v53  ;;  %v462_v32 = vunpack.c.l.bf16 %v5353_v22 }
 0x127   : > { %5912 = vmatprep.subr.bf16.mxu1 %v6445_v61  ;;  %v1327_v37 = vshrl.u32 %v1271_v27, 16  ;;  %v1330_v35 = vshll.u32 %v1271_v27, 16  ;;  %vm763_vm10 = vcmp.gt.f32.partialorder %v755_v38, 0.0  ;;  %vm764_vm11 = vcmp.gt.f32.partialorder %v756_v39, 0.0  ;;  %v6457_v7 = vld [vmem:[#allocation9 + $0x1a0] sm:$0xff]   ;;  %v6458_v16 = vld [vmem:[#allocation9 + $0x168] sm:$0xff]  }
 0x128   : > { %v1315_v41 = vrot.slane %v1313_v34, 4  ;;  %v1318_v42 = vrot.slane %v1316_v36, 5  ;;  %v507_v51 = vadd.f32 %v7208_v14, %v484_v43  ;;  %v509_v52 = vadd.f32 %v7208_v14, %v486_v44  ;;  %v5355_v23 = vld [vmem:[%s7133_s21 + $0x2c] sm:$0x1]  ;;  %5878 = vmatprep.subr.bf16.mxu0 %v6458_v16  ;;  %v429_v22 = vld [vmem:[#allocation2 + $0x30] sm:$0x1] }
 0x129   : > { %v1329_v46 = vrot.slane %v1327_v37, 4  ;;  %v1332_v47 = vrot.slane %v1330_v35, 5  ;;  %v6443_v49 = vld [vmem:[#allocation2 + $0xa0] ss:$8 sps:$4 sm:$0xff]   ;;  %v771_v56 = vmul.f32 0.1, %v755_v38  ;;  %v884_v27 = vmul.f32 %v7206_v13, %v861_v59 }
 0x12a   : > { %5913 = vmatpush3.bf16.msra.mxu1 %v6446_v4  ;;  %v1319_v50 = vor.u32 %v1318_v42, %v1315_v41  ;;  %v772_v57 = vmul.f32 0.1, %v756_v39  ;;  %2580 = vmatprep.mubr.bf16.mxu1 %v6443_v49  ;;  %vm523_vm12 = vcmp.gt.f32.partialorder %v507_v51, 0.0  ;;  %vm525_vm13 = vcmp.gt.f32.partialorder %v509_v52, 0.0  ;;  %v651_v62 = vld [vmem:[#allocation2 + $0x20] sm:$0xf] }
 0x12b   : > { %5914 = vmatprep.subr.bf16.mxu1 %v6449_v8  ;;  %v1333_v55 = vor.u32 %v1332_v47, %v1329_v46  ;;  %v539_v61 = vmul.f32 0.1, %v507_v51  ;;  %v779_v3 = vsel %vm763_vm10, %v755_v38, %v771_v56  ;;  %v541_v5 = vmul.f32 0.1, %v509_v52  ;;  %v657_v6 = vld [vmem:[#allocation2 + $0x28] sm:$0xf] }
 0x12c   : > { %v1320_v60 = vrot.slane %v1319_v50, 4  ;;  %v780_v4 = vsel %vm764_vm11, %v756_v39, %v772_v57  ;;  %v787_v10 = vpack.c.bf16 %v779_v3, %v779_v3  ;;  %v820_v15 = vsel %vm7159_vm2, 0, %v819_v48  ;;  %v6459_v28 = vld [vmem:[#allocation9 + $0x128] sm:$0xff]   ;;  %v5385_v49 = vld [vmem:[%s7133_s21 + $0x78] ss:$8 sps:$4 sm:$0xff]  }
 0x12d   : > { %v1334_v2 = vrot.slane %v1333_v55, 4  ;;  %v1270_v8 = vld [vmem:[#allocation2 + $0x14] sm:$0x1]  ;;  %v1272_v9 = vld [vmem:[#allocation2 + $0x1c] sm:$0x1]  ;;  %v788_v11 = vpack.c.bf16 %v780_v4, %v780_v4  ;;  %v555_v12 = vsel %vm523_vm12, %v507_v51, %v539_v61  ;;  %v557_v19 = vsel %vm525_vm13, %v509_v52, %v541_v5  ;;  %5879 = vmatpush3.bf16.msra.mxu0 %v6459_v28  ;;  %v6464_v61 = vld [vmem:[#allocation9 + $0x170] sm:$0xff]  }
 0x12e   : > { %5915 = vmatpush3.bf16.msra.mxu1 %v6451_v40  ;;  %v1322_v17 = vshll.u32 %v1270_v8, 16  ;;  %v1336_v18 = vshll.u32 %v1272_v9, 16  ;;  %v5746_v21 = vpack.c.bf16 %v555_v12, %v555_v12  ;;  %821 = vst [vmem:[#allocation2 + $0xb0] sm:$0x1] %v820_v15  ;;  %796 = vst [vmem:[#allocation2 + $0x68] sm:$0xf] %v787_v10  ;;  %v5748_v24 = vpack.c.bf16 %v557_v19, %v557_v19 }
 0x12f   : > { %5916 = vmatprep.subr.bf16.mxu1 %v6456_v0  ;;  %797 = vst [vmem:[#allocation2 + $0x70] sm:$0xf] %v788_v11  ;;  %v823_v25 = vsel %vm7159_vm2, 0, %v822_v58  ;;  %v905_v34 = vadd.f32 %v7208_v14, %v882_v26  ;;  %v907_v36 = vadd.f32 %v7208_v14, %v884_v27  ;;  %v464_v37 = vunpack.c.l.bf16 %v5355_v23  ;;  %v6460_v45 = vld [vmem:[#allocation9 + $0x1e8] sm:$0xff]   ;;  %v654_v59 = vld [vmem:[#allocation2 + $0x24] sm:$0x1]  ;;  %5880 = vmatprep.subr.bf16.mxu0 %v6464_v61 }
 0x130   : > { %v1324_v29 = vrot.slane %v1322_v17, 5  ;;  %v1338_v30 = vrot.slane %v1336_v18, 5  ;;  %v652_v31 = vsel %vm7250_vm8, %v5746_v21, %v651_v62  ;;  %824 = vst [vmem:[#allocation2 + $0xb8] sm:$0x1] %v823_v25  ;;  %v658_v33 = vsel %vm7250_vm8, %v5748_v24, %v657_v6  ;;  %v6462_v46 = vld [vmem:[#allocation9 + $0x1a8] sm:$0xff]   ;;  %v6466_v4 = vld [vmem:[#allocation9 + $0x130] sm:$0xff]  }
 0x131   : > { %653 = vst [vmem:[#allocation2 + $0x20] sm:$0xf] %v652_v31  ;;  %659 = vst [vmem:[#allocation2 + $0x28] sm:$0xf] %v658_v33  ;;  %v485_v39 = vmul.f32 %v7206_v13, %v462_v32  ;;  %vm921_vm15 = vcmp.gt.f32.partialorder %v905_v34, 0.0  ;;  %vm923_vm0 = vcmp.gt.f32.partialorder %v907_v36, 0.0  ;;  %v487_v43 = vmul.f32 %v7206_v13, %v464_v37  ;;  %5881 = vmatpush3.bf16.msra.mxu0 %v6466_v4 }
 0x132   : > { %5917 = vmatpush3.bf16.msra.mxu1 %v6457_v7  ;;  %v1325_v35 = vsel %vm7293_vm14, %v1320_v60, %v1324_v29  ;;  %v1339_v38 = vsel %vm7293_vm14, %v1334_v2, %v1338_v30  ;;  %v937_v41 = vmul.f32 0.1, %v905_v34  ;;  %v939_v42 = vmul.f32 0.1, %v907_v36  ;;  %v660_v2 = vld [vmem:[#allocation2 + $0x2c] sm:$0x1] }
 0x133   : > { %v5443_v40 = vcombine.low %v1325_v35, %v1339_v38  ;;  %v508_v44 = vadd.f32 %v7208_v14, %v485_v39  ;;  %v510_v53 = vadd.f32 %v7208_v14, %v487_v43  ;;  %5918 = vmatprep.subr.bf16.mxu1 %v6460_v45  ;;  %v727_v55 = vunpack.c.l.bf16 %v5385_v49  ;;  %v432_v23 = vld [vmem:[#allocation2 + $0x38] sm:$0x1]  ;;  %v5356_v28 = vld [vmem:[%s7133_s21 + $0x30] ss:$8 sps:$4 sm:$0xff]   ;;  %v5357_v61 = vld [vmem:[%s7133_s21 + $0x34] sm:$0x1] }
 0x134   : > { %v953_v47 = vsel %vm921_vm15, %v905_v34, %v937_v41  ;;  %v955_v51 = vsel %vm923_vm0, %v907_v36, %v939_v42  ;;  %v728_v60 = vunpack.c.h.bf16 %v5385_v49  ;;  %v6467_v32 = vld [vmem:[#allocation9 + $0x1f0] sm:$0xff]   ;;  %v433_v38 = vsel %vm7159_vm2, 0, %v432_v23  ;;  %v828_v41 = vld [vmem:[#allocation2 + $0xc8] sm:$0x1]  ;;  %v5402_v45 = vld [vmem:[%s7133_s21 + $0xc0] ss:$8 sps:$4 sm:$0xff]  }
 0x135   : > { %2581 = vmatmul.mubr.bf16.gmra.mrb[4].mxu1 %v5443_v40  ;;  %v1049_v48 = vld [vmem:[#allocation2 + $0xb0] sm:$0xf]  ;;  %v5764_v52 = vpack.c.bf16 %v953_v47, %v953_v47  ;;  %v5766_v56 = vpack.c.bf16 %v955_v51, %v955_v51  ;;  %vm524_vm1 = vcmp.gt.f32.partialorder %v508_v44, 0.0  ;;  %v540_v58 = vmul.f32 0.1, %v508_v44  ;;  %v6468_v37 = vld [vmem:[#allocation9 + $0x1b0] sm:$0xff]  }
 0x136   : > { %v6450_v50 = vld [vmem:[#allocation2 + $0x68] ss:$8 sps:$4 sm:$0xff]   ;;  %5919 = vmatpush3.bf16.msra.mxu1 %v6462_v46  ;;  %vm526_vm3 = vcmp.gt.f32.partialorder %v510_v53, 0.0  ;;  %v542_v0 = vmul.f32 0.1, %v510_v53  ;;  %v742_v3 = vmul.f32 %v7206_v13, %v727_v55  ;;  %v743_v9 = vmul.f32 %v7206_v13, %v728_v60 }
 0x137   : > { %v1055_v57 = vld [vmem:[#allocation2 + $0xb8] sm:$0xf]  ;;  %2523 = vmatprep.mubr.bf16.mxu0 %v6450_v50  ;;  %v1050_v62 = vsel %vm7250_vm8, %v5764_v52, %v1049_v48  ;;  %v556_v7 = vsel %vm524_vm1, %v508_v44, %v540_v58  ;;  %v465_v39 = vunpack.c.l.bf16 %v5356_v28  ;;  %v825_v40 = vld [vmem:[#allocation2 + $0xc0] sm:$0x1]  ;;  %5920 = vmatprep.subr.bf16.mxu1 %v6467_v32  ;;  %434 = vst [vmem:[#allocation2 + $0x38] sm:$0x1] %v433_v38  ;;  %v467_v44 = vunpack.c.h.bf16 %v5356_v28 }
 0x138   : > { %v6452_v5 = vld [vmem:[#allocation2 + $0x20] ss:$8 sps:$4 sm:$0xff]   ;;  %1051 = vst [vmem:[#allocation2 + $0xb0] sm:$0xf] %v1050_v62  ;;  %v1056_v6 = vsel %vm7250_vm8, %v5766_v56, %v1055_v57  ;;  %v558_v10 = vsel %vm526_vm3, %v510_v53, %v542_v0  ;;  %v5747_v11 = vpack.c.bf16 %v556_v7, %v556_v7  ;;  %v757_v21 = vadd.f32 %v7208_v14, %v742_v3  ;;  %v5359_v62 = vld [vmem:[%s7133_s21 + $0x3c] sm:$0x1] }
 0x139   : > { %v1273_v8 = vld [vmem:[#allocation2 + $0x20] sm:$0xf]  ;;  %1057 = vst [vmem:[#allocation2 + $0xb8] sm:$0xf] %v1056_v6  ;;  %v1275_v12 = vld [vmem:[#allocation2 + $0x28] sm:$0xf]  ;;  %2524 = vmatmul.mubr.bf16.gmra.mrb[8].mxu0 %v6452_v5  ;;  %v5749_v17 = vpack.c.bf16 %v558_v10, %v558_v10  ;;  %v758_v27 = vadd.f32 %v7208_v14, %v743_v9  ;;  %v488_v50 = vmul.f32 %v7206_v13, %v465_v39  ;;  %v863_v56 = vunpack.c.l.bf16 %v5402_v45 }
 0x13a   : > { %v1341_v15 = vshrl.u32 %v1273_v8, 16  ;;  %v1344_v16 = vshll.u32 %v1273_v8, 16  ;;  %v1355_v18 = vshrl.u32 %v1275_v12, 16  ;;  %v1358_v19 = vshll.u32 %v1275_v12, 16  ;;  %5921 = vmatpush3.bf16.msra.mxu1 %v6468_v37  ;;  %v6469_v46 = vld [vmem:[#allocation9 + $0x178] sm:$0xff]  }
 0x13b   : > { %v655_v24 = vsel %vm7159_vm2, %v5747_v11, %v654_v59  ;;  %v661_v29 = vsel %vm7159_vm2, %v5749_v17, %v660_v2  ;;  %vm765_vm5 = vcmp.gt.f32.partialorder %v757_v21, 0.0  ;;  %vm766_vm6 = vcmp.gt.f32.partialorder %v758_v27, 0.0  ;;  %v6470_v51 = vld [vmem:[#allocation9 + $0x138] sm:$0xff]   ;;  %5882 = vmatprep.subr.bf16.mxu0 %v6469_v46  ;;  %v7397_v59 = vld [vmem:[#allocation14] ss:$0 sm:$0xff] }
 0x13c   : > { %v1343_v25 = vrot.slane %v1341_v15, 4  ;;  %v1346_v26 = vrot.slane %v1344_v16, 5  ;;  %656 = vst [vmem:[#allocation2 + $0x24] sm:$0x1] %v655_v24  ;;  %v1357_v30 = vrot.slane %v1355_v18, 4  ;;  %v1360_v31 = vrot.slane %v1358_v19, 5  ;;  %5883 = vmatpush3.bf16.msra.mxu0 %v6470_v51 }
 0x13d   : > { %662 = vst [vmem:[#allocation2 + $0x2c] sm:$0x1] %v661_v29  ;;  %v773_v34 = vmul.f32 0.1, %v757_v21  ;;  %v774_v36 = vmul.f32 0.1, %v758_v27  ;;  %v490_v52 = vmul.f32 %v7206_v13, %v467_v44  ;;  %v511_v60 = vadd.f32 %v7397_v59, %v488_v50 }
 0x13e   : > { %v1347_v33 = vor.u32 %v1346_v26, %v1343_v25  ;;  %v1361_v35 = vor.u32 %v1360_v31, %v1357_v30  ;;  %v430_v14 = vsel %vm7159_vm2, 0, %v429_v22  ;;  %v826_v53 = vsel %vm7159_vm2, 0, %v825_v40  ;;  %v7403_v3 = vld [vmem:[#allocation12] ss:$0 sm:$0xff]  ;;  %v669_v19 = vld [vmem:[#allocation2 + $0x38] sm:$0xf] }
 0x13f   : > { %v781_v42 = vsel %vm765_vm5, %v757_v21, %v773_v34  ;;  %v782_v43 = vsel %vm766_vm6, %v758_v27, %v774_v36  ;;  %431 = vst [vmem:[#allocation2 + $0x30] sm:$0x1] %v430_v14  ;;  %v829_v55 = vsel %vm7159_vm2, 0, %v828_v41  ;;  %827 = vst [vmem:[#allocation2 + $0xc0] sm:$0x1] %v826_v53  ;;  %v865_v13 = vunpack.c.h.bf16 %v5402_v45  ;;  %v6471_v23 = vld [vmem:[#allocation9 + $0x1f8] sm:$0xff]  }
 0x140   : > { %v6454_v47 = vld [vmem:[#allocation2 + $0xb0] ss:$8 sps:$4 sm:$0xff]   ;;  %v789_v48 = vpack.c.bf16 %v781_v42, %v781_v42  ;;  %v790_v49 = vpack.c.bf16 %v782_v43, %v782_v43  ;;  %v1348_v57 = vrot.slane %v1347_v33, 4  ;;  %v1362_v58 = vrot.slane %v1361_v35, 4  ;;  %830 = vst [vmem:[#allocation2 + $0xc8] sm:$0x1] %v829_v55  ;;  %5922 = vmatprep.subr.bf16.mxu1 %v6471_v23 }
 0x141   : > { %2588 = vmatprep.mubr.bf16.mxu1 %v6454_v47  ;;  %v513_v2 = vadd.f32 %v7397_v59, %v490_v52  ;;  %v886_v4 = vmul.f32 %v7403_v3, %v863_v56  ;;  %v466_v5 = vunpack.c.l.bf16 %v5357_v61  ;;  %v468_v6 = vunpack.c.l.bf16 %v5359_v62  ;;  %v6472_v30 = vld [vmem:[#allocation9 + $0x1b8] sm:$0xff]   ;;  %v7422_v44 = vld [vmem:[#allocation9 + $0x200] sm:$0xff]   ;;  %v5391_v51 = vld [vmem:[%s7133_s21 + $0x94] sm:$0x1] }
 0x142   : > { %798 = vst [vmem:[#allocation2 + $0x78] sm:$0xf] %v789_v48  ;;  %799 = vst [vmem:[#allocation2 + $0x80] sm:$0xf] %v790_v49  ;;  %vm527_vm7 = vcmp.gt.f32.partialorder %v511_v60, 0.0  ;;  %v888_v10 = vmul.f32 %v7403_v3, %v865_v13  ;;  %5923 = vmatpush3.bf16.msra.mxu1 %v6472_v30  ;;  %6144 = vmatprep.subr.bf16.mxu0 %v7422_v44 }
 0x143   : > { %v1274_v0 = vld [vmem:[#allocation2 + $0x24] sm:$0x1]  ;;  %v543_v9 = vmul.f32 0.1, %v511_v60  ;;  %vm529_vm9 = vcmp.gt.f32.partialorder %v513_v2, 0.0  ;;  %v909_v15 = vadd.f32 %v7397_v59, %v886_v4  ;;  %v489_v22 = vmul.f32 %v7403_v3, %v466_v5 }
 0x144   : > { %v1276_v7 = vld [vmem:[#allocation2 + $0x2c] sm:$0x1]  ;;  %v1350_v8 = vshll.u32 %v1274_v0, 16  ;;  %v545_v12 = vmul.f32 0.1, %v513_v2  ;;  %v911_v21 = vadd.f32 %v7397_v59, %v888_v10  ;;  %v491_v34 = vmul.f32 %v7403_v3, %v468_v6 }
 0x145   : > { %v1364_v11 = vshll.u32 %v1276_v7, 16  ;;  %v559_v17 = vsel %vm527_vm7, %v511_v60, %v543_v9  ;;  %vm925_vm10 = vcmp.gt.f32.partialorder %v909_v15, 0.0  ;;  %v941_v29 = vmul.f32 0.1, %v909_v15  ;;  %v666_v50 = vld [vmem:[#allocation2 + $0x34] sm:$0x1] }
 0x146   : > { %v1352_v16 = vrot.slane %v1350_v8, 5  ;;  %v663_v18 = vld [vmem:[#allocation2 + $0x30] sm:$0xf]  ;;  %v561_v25 = vsel %vm529_vm9, %v513_v2, %v545_v12  ;;  %v5750_v26 = vpack.c.bf16 %v559_v17, %v559_v17  ;;  %vm927_vm11 = vcmp.gt.f32.partialorder %v911_v21, 0.0  ;;  %v1061_v39 = vld [vmem:[#allocation2 + $0xc0] sm:$0xf] }
 0x147   : > { %v1366_v24 = vrot.slane %v1364_v11, 5  ;;  %v5752_v28 = vpack.c.bf16 %v561_v25, %v561_v25  ;;  %v512_v36 = vadd.f32 %v7397_v59, %v489_v22  ;;  %v943_v14 = vmul.f32 0.1, %v911_v21  ;;  %v1067_v40 = vld [vmem:[#allocation2 + $0xc8] sm:$0xf] }
 0x148   : > { %v1353_v27 = vsel %vm7293_vm14, %v1348_v57, %v1352_v16  ;;  %v664_v33 = vsel %vm7250_vm8, %v5750_v26, %v663_v18  ;;  %v957_v38 = vsel %vm925_vm10, %v909_v15, %v941_v29  ;;  %v514_v42 = vadd.f32 %v7397_v59, %v491_v34  ;;  %v5393_v52 = vld [vmem:[%s7133_s21 + $0x9c] sm:$0x1]  ;;  %v672_v57 = vld [vmem:[#allocation2 + $0x3c] sm:$0x1]  ;;  %v1488_v60 = vld [vmem:[#allocation2 + $0x90] sm:$0xf] }
 0x149   : > { %v1367_v31 = vsel %vm7293_vm14, %v1362_v58, %v1366_v24  ;;  %v6461_v32 = vld [vmem:[#allocation2 + $0x78] ss:$8 sps:$4 sm:$0xff]   ;;  %665 = vst [vmem:[#allocation2 + $0x30] sm:$0xf] %v664_v33  ;;  %v670_v35 = vsel %vm7250_vm8, %v5752_v28, %v669_v19  ;;  %v5768_v41 = vpack.c.bf16 %v957_v38, %v957_v38  ;;  %vm528_vm12 = vcmp.gt.f32.partialorder %v512_v36, 0.0 }
 0x14a   : > { %v5444_v37 = vcombine.low %v1353_v27, %v1367_v31  ;;  %2531 = vmatprep.mubr.bf16.mxu0 %v6461_v32  ;;  %671 = vst [vmem:[#allocation2 + $0x38] sm:$0xf] %v670_v35  ;;  %v544_v43 = vmul.f32 0.1, %v512_v36  ;;  %v959_v45 = vsel %vm927_vm11, %v911_v21, %v943_v14  ;;  %vm530_vm13 = vcmp.gt.f32.partialorder %v514_v42, 0.0 }
 0x14b   : > { %v5770_v46 = vpack.c.bf16 %v959_v45, %v959_v45  ;;  %v1062_v47 = vsel %vm7250_vm8, %v5768_v41, %v1061_v39  ;;  %v546_v48 = vmul.f32 0.1, %v514_v42  ;;  %v852_v58 = vunpack.c.l.bf16 %v5391_v51  ;;  %v1490_v13 = vld [vmem:[#allocation2 + $0x98] sm:$0xf]  ;;  %v5424_v24 = vld [vmem:[%s7133_s21 + $0xd8] ss:$8 sps:$4 sm:$0xff]  }
 0x14c   : > { %2589 = vmatmul.mubr.bf16.gmra.mrb[8].mxu1 %v5444_v37  ;;  %1063 = vst [vmem:[#allocation2 + $0xc0] sm:$0xf] %v1062_v47  ;;  %v560_v49 = vsel %vm528_vm12, %v512_v36, %v544_v43  ;;  %v854_v62 = vunpack.c.l.bf16 %v5393_v52  ;;  %v1505_v0 = vshrl.u32 %v1488_v60, 16  ;;  %v1508_v2 = vshll.u32 %v1488_v60, 16  ;;  %v1028_v31 = vld [vmem:[#allocation2 + $0x94] sm:$0x1] }
 0x14d   : > { %v1068_v53 = vsel %vm7250_vm8, %v5770_v46, %v1067_v40  ;;  %v562_v55 = vsel %vm530_vm13, %v514_v42, %v546_v48  ;;  %v5751_v56 = vpack.c.bf16 %v560_v49, %v560_v49  ;;  %v875_v6 = vmul.f32 %v7403_v3, %v852_v58  ;;  %v1034_v32 = vld [vmem:[#allocation2 + $0x9c] sm:$0x1]  ;;  %v7441_v33 = vld [vmem:[#allocation12] ss:$0 sm:$0xff]  ;;  %v7443_v41 = vld [vmem:[#allocation14] ss:$0 sm:$0xff] }
 0x14e   : > { %1069 = vst [vmem:[#allocation2 + $0xc8] sm:$0xf] %v1068_v53  ;;  %v5753_v61 = vpack.c.bf16 %v562_v55, %v562_v55  ;;  %v1519_v7 = vshrl.u32 %v1490_v13, 16  ;;  %v1522_v8 = vshll.u32 %v1490_v13, 16  ;;  %v877_v12 = vmul.f32 %v7403_v3, %v854_v62 }
 0x14f   : > { %v667_v4 = vsel %vm7159_vm2, %v5751_v56, %v666_v50  ;;  %v898_v19 = vadd.f32 %v7397_v59, %v875_v6  ;;  %v1507_v22 = vrot.slane %v1505_v0, 4  ;;  %v1510_v23 = vrot.slane %v1508_v2, 5  ;;  %v5397_v6 = vld [vmem:[%s7133_s21 + $0xac] sm:$0x1] }
 0x150   : > { %v1277_v5 = vld [vmem:[#allocation2 + $0x30] sm:$0xf]  ;;  %668 = vst [vmem:[#allocation2 + $0x34] sm:$0x1] %v667_v4  ;;  %v673_v10 = vsel %vm7159_vm2, %v5753_v61, %v672_v57  ;;  %v900_v21 = vadd.f32 %v7397_v59, %v877_v12  ;;  %v1521_v35 = vrot.slane %v1519_v7, 4  ;;  %v1524_v39 = vrot.slane %v1522_v8, 5 }
 0x151   : > { %v6463_v9 = vld [vmem:[#allocation2 + $0x30] ss:$8 sps:$4 sm:$0xff]   ;;  %674 = vst [vmem:[#allocation2 + $0x3c] sm:$0x1] %v673_v10  ;;  %v1369_v15 = vshrl.u32 %v1277_v5, 16  ;;  %v1372_v16 = vshll.u32 %v1277_v5, 16  ;;  %v1115_v40 = vunpack.c.l.bf16 %v5424_v24  ;;  %v1511_v47 = vor.u32 %v1510_v23, %v1507_v22 }
 0x152   : > { %v1279_v11 = vld [vmem:[#allocation2 + $0x38] sm:$0xf]  ;;  %2532 = vmatmul.mubr.bf16.gmra.mrb[12].mxu0 %v6463_v9  ;;  %vm914_vm15 = vcmp.gt.f32.partialorder %v898_v19, 0.0  ;;  %vm916_vm0 = vcmp.gt.f32.partialorder %v900_v21, 0.0  ;;  %v930_v29 = vmul.f32 0.1, %v898_v19  ;;  %v1525_v51 = vor.u32 %v1524_v39, %v1521_v35 }
 0x153   : > { %v1383_v17 = vshrl.u32 %v1279_v11, 16  ;;  %v1386_v18 = vshll.u32 %v1279_v11, 16  ;;  %v1371_v25 = vrot.slane %v1369_v15, 4  ;;  %v1374_v26 = vrot.slane %v1372_v16, 5  ;;  %v5395_v5 = vld [vmem:[%s7133_s21 + $0xa4] sm:$0x1] }
 0x154   : > { %v932_v30 = vmul.f32 0.1, %v900_v21  ;;  %v946_v14 = vsel %vm914_vm15, %v898_v19, %v930_v29  ;;  %v1116_v52 = vunpack.c.h.bf16 %v5424_v24  ;;  %v1130_v57 = vmul.f32 %v7441_v33, %v1115_v40  ;;  %v6475_v9 = vld [vmem:[#allocation2 + $0x50] ss:$8 sps:$4 sm:$0xff]   ;;  %v1492_v16 = vld [vmem:[#allocation2 + $0xa0] sm:$0xf] }
 0x155   : > { %v1385_v27 = vrot.slane %v1383_v17, 4  ;;  %v1388_v28 = vrot.slane %v1386_v18, 5  ;;  %v6465_v34 = vld [vmem:[#allocation2 + $0xc0] ss:$8 sps:$4 sm:$0xff]   ;;  %v1375_v36 = vor.u32 %v1374_v26, %v1371_v25  ;;  %v5757_v45 = vpack.c.bf16 %v946_v14, %v946_v14  ;;  %v1040_v40 = vld [vmem:[#allocation2 + $0xa4] sm:$0x1] }
 0x156   : > { %v948_v38 = vsel %vm916_vm0, %v900_v21, %v932_v30  ;;  %2596 = vmatprep.mubr.bf16.mxu1 %v6465_v34  ;;  %v1131_v60 = vmul.f32 %v7441_v33, %v1116_v52  ;;  %v1145_v61 = vadd.f32 %v7443_v41, %v1130_v57  ;;  %v1512_v0 = vrot.slane %v1511_v47, 4  ;;  %v1494_v19 = vld [vmem:[#allocation2 + $0xa8] sm:$0xf] }
 0x157   : > { %v1389_v37 = vor.u32 %v1388_v28, %v1385_v27  ;;  %v1278_v42 = vld [vmem:[#allocation2 + $0x34] sm:$0x1]  ;;  %v1376_v43 = vrot.slane %v1375_v36, 4  ;;  %v5759_v46 = vpack.c.bf16 %v948_v38, %v948_v38  ;;  %v1029_v55 = vsel %vm7159_vm2, %v5757_v45, %v1028_v31  ;;  %v5426_v27 = vld [vmem:[%s7133_s21 + $0xe8] ss:$8 sps:$4 sm:$0xff]  }
 0x158   : > { %v1280_v48 = vld [vmem:[#allocation2 + $0x3c] sm:$0x1]  ;;  %v1378_v49 = vshll.u32 %v1278_v42, 16  ;;  %1030 = vst [vmem:[#allocation2 + $0x94] sm:$0x1] %v1029_v55  ;;  %v1526_v2 = vrot.slane %v1525_v51, 4  ;;  %v1146_v4 = vadd.f32 %v7443_v41, %v1131_v60  ;;  %v856_v10 = vunpack.c.l.bf16 %v5395_v5 }
 0x159   : > { %v1390_v50 = vrot.slane %v1389_v37, 4  ;;  %v1392_v53 = vshll.u32 %v1280_v48, 16  ;;  %v1035_v56 = vsel %vm7159_vm2, %v5759_v46, %v1034_v32  ;;  %vm1153_vm1 = vcmp.gt.f32.partialorder %v1145_v61, 0.0  ;;  %v6476_v35 = vld [vmem:[#allocation2 + $0x8] ss:$8 sps:$4 sm:$0xff]  }
 0x15a   : > { %v1380_v58 = vrot.slane %v1378_v49, 5  ;;  %1036 = vst [vmem:[#allocation2 + $0x9c] sm:$0x1] %v1035_v56  ;;  %v1161_v8 = vmul.f32 0.1, %v1145_v61  ;;  %vm1154_vm3 = vcmp.gt.f32.partialorder %v1146_v4, 0.0  ;;  %v858_v15 = vunpack.c.l.bf16 %v5397_v6 }
 0x15b   : > { %v1394_v13 = vrot.slane %v1392_v53, 5  ;;  %v1162_v12 = vmul.f32 0.1, %v1146_v4  ;;  %v879_v18 = vmul.f32 %v7403_v3, %v856_v10  ;;  %v1533_v21 = vshrl.u32 %v1492_v16, 16  ;;  %v6480_v52 = vld [vmem:[#allocation2 + $0x60] ss:$8 sps:$4 sm:$0xff]  }
 0x15c   : > { %v1381_v62 = vsel %vm7293_vm14, %v1376_v43, %v1380_v58  ;;  %v1169_v17 = vsel %vm1153_vm1, %v1145_v61, %v1161_v8  ;;  %v1536_v22 = vshll.u32 %v1492_v16, 16  ;;  %v881_v25 = vmul.f32 %v7403_v3, %v858_v15  ;;  %v1046_v58 = vld [vmem:[#allocation2 + $0xac] sm:$0x1]  ;;  %v6477_v16 = vld [vmem:[#allocation9 + $0x208] sm:$0xff]  }
 0x15d   : > { %v1395_v7 = vsel %vm7293_vm14, %v1390_v50, %v1394_v13  ;;  %v1170_v23 = vsel %vm1154_vm3, %v1146_v4, %v1162_v12  ;;  %v1177_v24 = vpack.c.bf16 %v1169_v17, %v1169_v17  ;;  %v1547_v26 = vshrl.u32 %v1494_v19, 16  ;;  %v5401_v4 = vld [vmem:[%s7133_s21 + $0xbc] sm:$0x1] }
 0x15e   : > { %v5445_v11 = vcombine.low %v1381_v62, %v1395_v7  ;;  %v1178_v30 = vpack.c.bf16 %v1170_v23, %v1170_v23  ;;  %v902_v31 = vadd.f32 %v7397_v59, %v879_v18  ;;  %v1535_v32 = vrot.slane %v1533_v21, 4  ;;  %v5399_v62 = vld [vmem:[%s7133_s21 + $0xb4] sm:$0x1]  ;;  %v6481_v18 = vld [vmem:[#allocation2 + $0x18] ss:$8 sps:$4 sm:$0xff]  }
 0x15f   : > { %v1489_v28 = vld [vmem:[#allocation2 + $0x94] sm:$0x1]  ;;  %v1538_v34 = vrot.slane %v1536_v22, 5  ;;  %1185 = vst [vmem:[#allocation2 + $0xd8] sm:$0xf] %v1177_v24  ;;  %v904_v14 = vadd.f32 %v7397_v59, %v881_v25  ;;  %v7464_v38 = vrot.slane %v1547_v26, 4  ;;  %v1117_v51 = vunpack.c.l.bf16 %v5426_v27 }
 0x160   : > { %2597 = vmatmul.mubr.bf16.gmra.mrb[12].mxu1 %v5445_v11  ;;  %v1514_v36 = vshll.u32 %v1489_v28, 16  ;;  %1186 = vst [vmem:[#allocation2 + $0xe0] sm:$0xf] %v1178_v30  ;;  %vm918_vm5 = vcmp.gt.f32.partialorder %v902_v31, 0.0  ;;  %v934_v39 = vmul.f32 0.1, %v902_v31  ;;  %v1118_v61 = vunpack.c.h.bf16 %v5426_v27 }
 0x161   : > { %v1491_v29 = vld [vmem:[#allocation2 + $0x9c] sm:$0x1]  ;;  %2702 = vmatprep.mubr.bf16.mxu1 %v6475_v9  ;;  %v1539_v42 = vor.u32 %v1538_v34, %v1535_v32  ;;  %v1550_v43 = vshll.u32 %v1494_v19, 16  ;;  %vm920_vm6 = vcmp.gt.f32.partialorder %v904_v14, 0.0  ;;  %v936_v47 = vmul.f32 0.1, %v904_v14 }
 0x162   : > { %v1528_v37 = vshll.u32 %v1491_v29, 16  ;;  %v1516_v45 = vrot.slane %v1514_v36, 5  ;;  %v950_v48 = vsel %vm918_vm5, %v902_v31, %v934_v39  ;;  %v1132_v6 = vmul.f32 %v7441_v33, %v1117_v51  ;;  %v1498_v11 = vld [vmem:[#allocation2 + $0xb8] sm:$0xf]  ;;  %v5428_v27 = vld [vmem:[%s7133_s21 + $0xf8] ss:$8 sps:$4 sm:$0xff]  }
 0x163   : > { %v7466_v49 = vrot.slane %v1539_v42, 4  ;;  %v7468_v50 = vrot.slane %v1550_v43, 5  ;;  %v952_v56 = vsel %vm920_vm6, %v904_v14, %v936_v47  ;;  %v5761_v57 = vpack.c.bf16 %v950_v48, %v950_v48  ;;  %v6479_v32 = vld [vmem:[#allocation9 + $0x210] sm:$0xff]   ;;  %v1052_v14 = vld [vmem:[#allocation2 + $0xb4] sm:$0x1] }
 0x164   : > { %v1530_v46 = vrot.slane %v1528_v37, 5  ;;  %v1517_v53 = vsel %vm7293_vm14, %v1512_v0, %v1516_v45  ;;  %v5763_v13 = vpack.c.bf16 %v952_v56, %v952_v56  ;;  %v860_v7 = vunpack.c.l.bf16 %v5399_v62  ;;  %v1496_v0 = vld [vmem:[#allocation2 + $0xb0] sm:$0xf]  ;;  %v1058_v42 = vld [vmem:[#allocation2 + $0xbc] sm:$0x1] }
 0x165   : > { %v1041_v5 = vsel %vm7159_vm2, %v5761_v57, %v1040_v40  ;;  %v862_v8 = vunpack.c.l.bf16 %v5401_v4  ;;  %v1553_v9 = vor.u32 %v7468_v50, %v7464_v38  ;;  %v1133_v10 = vmul.f32 %v7441_v33, %v1118_v61  ;;  %v6485_v50 = vld [vmem:[#allocation2 + $0x70] ss:$8 sps:$4 sm:$0xff]  }
 0x166   : > { %v1531_v55 = vsel %vm7293_vm14, %v1526_v2, %v1530_v46  ;;  %1042 = vst [vmem:[#allocation2 + $0xa4] sm:$0x1] %v1041_v5  ;;  %v1047_v2 = vsel %vm7159_vm2, %v5763_v13, %v1046_v58  ;;  %v1561_v12 = vshrl.u32 %v1496_v0, 16  ;;  %v1147_v17 = vadd.f32 %v7443_v41, %v1132_v6  ;;  %v6482_v58 = vld [vmem:[#allocation9 + $0x218] sm:$0xff]  }
 0x167   : > { %v5454_v60 = vcombine.low %v1517_v53, %v1531_v55  ;;  %v6473_v15 = vld [vmem:[#allocation2 + $0xd8] ss:$8 sps:$4 sm:$0xff]   ;;  %1048 = vst [vmem:[#allocation2 + $0xac] sm:$0x1] %v1047_v2  ;;  %v883_v19 = vmul.f32 %v7403_v3, %v860_v7  ;;  %v885_v21 = vmul.f32 %v7403_v3, %v862_v8  ;;  %v1564_v22 = vshll.u32 %v1496_v0, 16 }
 0x168   : > { %2703 = vmatmul.mubr.bf16.vlgmr.msra.gmra.mrb[16].mxu1 %v6476_v35  ;;  %v1148_v23 = vadd.f32 %v7443_v41, %v1133_v10  ;;  %v1563_v24 = vrot.slane %v1561_v12, 4  ;;  %v1575_v25 = vshrl.u32 %v1498_v11, 16  ;;  %v1578_v26 = vshll.u32 %v1498_v11, 16  ;;  %v6486_v62 = vld [vmem:[#allocation2 + $0x28] ss:$8 sps:$4 sm:$0xff]  }
 0x169   : > { %2637 = vmatprep.mubr.bf16.mxu0 %v5454_v60  ;;  %2710 = vmatprep.mubr.bf16.mxu1 %v6480_v52  ;;  %vm1155_vm7 = vcmp.gt.f32.partialorder %v1147_v17, 0.0  ;;  %v1163_v28 = vmul.f32 0.1, %v1147_v17  ;;  %v906_v29 = vadd.f32 %v7397_v59, %v883_v19  ;;  %v908_v30 = vadd.f32 %v7397_v59, %v885_v21  ;;  %v5403_v10 = vld [vmem:[%s7133_s21 + $0xc4] sm:$0x1] }
 0x16a   : > { %2638 = vmatmul.mubr.bf16.vlgmr.msra.gmra.mrb[16].mxu0 %v6473_v15  ;;  %vm1156_vm9 = vcmp.gt.f32.partialorder %v1148_v23, 0.0  ;;  %v1164_v31 = vmul.f32 0.1, %v1148_v23  ;;  %v1566_v34 = vrot.slane %v1564_v22, 5  ;;  %v1577_v36 = vrot.slane %v1575_v25, 4  ;;  %v6484_v22 = vld [vmem:[#allocation9 + $0x220] sm:$0xff]  }
 0x16b   : > { %6145 = vmatpush3.bf16.msra.mxu0 %v7422_v44  ;;  %v1171_v37 = vsel %vm1155_vm7, %v1147_v17, %v1163_v28  ;;  %vm922_vm10 = vcmp.gt.f32.partialorder %v906_v29, 0.0  ;;  %vm924_vm11 = vcmp.gt.f32.partialorder %v908_v30, 0.0  ;;  %v938_v35 = vmul.f32 0.1, %v906_v29  ;;  %v5405_v11 = vld [vmem:[%s7133_s21 + $0xcc] sm:$0x1] }
 0x16c   : > { %6146 = vmatprep.subr.bf16.mxu0 %v6477_v16  ;;  %v1172_v38 = vsel %vm1156_vm9, %v1148_v23, %v1164_v31  ;;  %v1179_v39 = vpack.c.bf16 %v1171_v37, %v1171_v37  ;;  %v940_v40 = vmul.f32 0.1, %v908_v30  ;;  %v1567_v43 = vor.u32 %v1566_v34, %v1563_v24  ;;  %v1502_v23 = vld [vmem:[#allocation2 + $0xc8] sm:$0xf]  ;;  %v5430_v28 = vld [vmem:[%s7133_s21 + $0x108] ss:$8 sps:$4 sm:$0xff]  }
 0x16d   : > { %v1493_v45 = vld [vmem:[#allocation2 + $0xa4] sm:$0x1]  ;;  %v1180_v46 = vpack.c.bf16 %v1172_v38, %v1172_v38  ;;  %v954_v44 = vsel %vm922_vm10, %v906_v29, %v938_v35  ;;  %v1580_v47 = vrot.slane %v1578_v26, 5  ;;  %v1119_v48 = vunpack.c.l.bf16 %v5428_v27 }
 0x16e   : > { %v1495_v51 = vld [vmem:[#allocation2 + $0xac] sm:$0x1]  ;;  %v1542_v52 = vshll.u32 %v1493_v45, 16  ;;  %v1554_v53 = vrot.slane %v1553_v9, 4  ;;  %1187 = vst [vmem:[#allocation2 + $0xe8] sm:$0xf] %v1179_v39  ;;  %v956_v55 = vsel %vm924_vm11, %v908_v30, %v940_v40  ;;  %v5765_v56 = vpack.c.bf16 %v954_v44, %v954_v44 }
 0x16f   : > { %6147 = vmatpush3.bf16.msra.mxu0 %v6477_v16  ;;  %v1556_v57 = vshll.u32 %v1495_v51, 16  ;;  %1188 = vst [vmem:[#allocation2 + $0xf0] sm:$0xf] %v1180_v46  ;;  %v5767_v60 = vpack.c.bf16 %v956_v55, %v956_v55  ;;  %v1581_v13 = vor.u32 %v1580_v47, %v1577_v36  ;;  %v1120_v61 = vunpack.c.h.bf16 %v5428_v27  ;;  %v6487_v39 = vld [vmem:[#allocation9 + $0x228] sm:$0xff]   ;;  %v1064_v44 = vld [vmem:[#allocation2 + $0xc4] sm:$0x1] }
 0x170   : > { %2711 = vmatmul.mubr.bf16.gmra.mrb[20].mxu1 %v6481_v18  ;;  %6148 = vmatprep.subr.bf16.mxu0 %v6479_v32  ;;  %v1544_v4 = vrot.slane %v1542_v52, 5  ;;  %v1053_v5 = vsel %vm7159_vm2, %v5765_v56, %v1052_v14  ;;  %v7495_v6 = vrot.slane %v1567_v43, 4  ;;  %v1134_v7 = vmul.f32 %v7441_v33, %v1119_v48  ;;  %v1500_v18 = vld [vmem:[#allocation2 + $0xc0] sm:$0xf]  ;;  %v5387_v48 = vld [vmem:[%s7133_s21 + $0x40] ss:$72 sps:$4 sm:$0xff]  }
 0x171   : > { %2718 = vmatprep.mubr.bf16.mxu1 %v6485_v50  ;;  %v1558_v8 = vrot.slane %v1556_v57, 5  ;;  %1054 = vst [vmem:[#allocation2 + $0xb4] sm:$0x1] %v1053_v5  ;;  %v1059_v0 = vsel %vm7159_vm2, %v5767_v60, %v1058_v42  ;;  %v7500_v2 = vrot.slane %v1581_v13, 4  ;;  %v1135_v9 = vmul.f32 %v7441_v33, %v1120_v61  ;;  %v6489_v13 = vld [vmem:[#allocation9 + $0x230] sm:$0xff]  }
 0x172   : > { %v1545_v12 = vsel %vm7293_vm14, %v7466_v49, %v1544_v4  ;;  %1060 = vst [vmem:[#allocation2 + $0xbc] sm:$0x1] %v1059_v0  ;;  %v1149_v15 = vadd.f32 %v7443_v41, %v1134_v7  ;;  %v864_v16 = vunpack.c.l.bf16 %v5403_v10  ;;  %v866_v17 = vunpack.c.l.bf16 %v5405_v11  ;;  %v435_v7 = vld [vmem:[#allocation2 + $0x40] sm:$0x1] }
 0x173   : > { %6149 = vmatpush3.bf16.msra.mxu0 %v6479_v32  ;;  %v1559_v19 = vsel %vm7293_vm14, %v1554_v53, %v1558_v8  ;;  %v1150_v21 = vadd.f32 %v7443_v41, %v1135_v9  ;;  %v1589_v24 = vshrl.u32 %v1500_v18, 16  ;;  %v1592_v25 = vshll.u32 %v1500_v18, 16  ;;  %v1070_v53 = vld [vmem:[#allocation2 + $0xcc] sm:$0x1] }
 0x174   : > { %6150 = vmatprep.subr.bf16.mxu0 %v6482_v58  ;;  %v5455_v26 = vcombine.low %v1545_v12, %v1559_v19  ;;  %vm1157_vm12 = vcmp.gt.f32.partialorder %v1149_v15, 0.0  ;;  %v1165_v49 = vmul.f32 0.1, %v1149_v15  ;;  %v887_v27 = vmul.f32 %v7403_v3, %v864_v16 }
 0x175   : > { %vm1158_vm13 = vcmp.gt.f32.partialorder %v1150_v21, 0.0  ;;  %v1166_v29 = vmul.f32 0.1, %v1150_v21  ;;  %v889_v30 = vmul.f32 %v7403_v3, %v866_v17  ;;  %v1591_v31 = vrot.slane %v1589_v24, 4 }
 0x176   : > { %2645 = vmatprep.mubr.bf16.mxu0 %v5455_v26  ;;  %v6478_v32 = vld [vmem:[#allocation2 + $0xe8] ss:$8 sps:$4 sm:$0xff]   ;;  %v1173_v34 = vsel %vm1157_vm12, %v1149_v15, %v1165_v49  ;;  %v910_v36 = vadd.f32 %v7397_v59, %v887_v27  ;;  %v1594_v37 = vrot.slane %v1592_v25, 5  ;;  %v1603_v35 = vshrl.u32 %v1502_v23, 16  ;;  %v1709_v26 = vld [vmem:[#allocation2 + $0xc] sm:$0x1] }
 0x177   : > { %6151 = vmatpush3.bf16.msra.mxu0 %v6482_v58  ;;  %v1174_v14 = vsel %vm1158_vm13, %v1150_v21, %v1166_v29  ;;  %v1181_v38 = vpack.c.bf16 %v1173_v34, %v1173_v34  ;;  %v912_v40 = vadd.f32 %v7397_v59, %v889_v30  ;;  %v1606_v42 = vshll.u32 %v1502_v23, 16  ;;  %v6492_v25 = vld [vmem:[#allocation9 + $0x238] sm:$0xff]  }
 0x178   : > { %2719 = vmatmul.mubr.bf16.gmra.mrb[24].mxu1 %v6486_v62  ;;  %6152 = vmatprep.subr.bf16.mxu0 %v6484_v22  ;;  %v1497_v43 = vld [vmem:[#allocation2 + $0xb4] sm:$0x1]  ;;  %v1182_v45 = vpack.c.bf16 %v1174_v14, %v1174_v14  ;;  %vm926_vm15 = vcmp.gt.f32.partialorder %v910_v36, 0.0  ;;  %v942_v46 = vmul.f32 0.1, %v910_v36  ;;  %v1595_v47 = vor.u32 %v1594_v37, %v1591_v31 }
 0x179   : > { %2646 = vmatmul.mubr.bf16.gmra.mrb[20].mxu0 %v6478_v32  ;;  %v1499_v50 = vld [vmem:[#allocation2 + $0xbc] sm:$0x1]  ;;  %v1570_v51 = vshll.u32 %v1497_v43, 16  ;;  %1189 = vst [vmem:[#allocation2 + $0xf8] sm:$0xf] %v1181_v38  ;;  %vm928_vm0 = vcmp.gt.f32.partialorder %v912_v40, 0.0  ;;  %v1121_v55 = vunpack.c.l.bf16 %v5430_v28  ;;  %v1122_v9 = vunpack.c.h.bf16 %v5430_v28 }
 0x17a   : > { %v944_v52 = vmul.f32 0.1, %v912_v40  ;;  %v1584_v56 = vshll.u32 %v1499_v50, 16  ;;  %1190 = vst [vmem:[#allocation2 + $0x100] sm:$0xf] %v1182_v45  ;;  %v958_v57 = vsel %vm926_vm15, %v910_v36, %v942_v46  ;;  %v7518_v58 = vrot.slane %v1595_v47, 4 }
 0x17b   : > { %6153 = vmatpush3.bf16.msra.mxu0 %v6484_v22  ;;  %v1605_v60 = vrot.slane %v1603_v35, 4  ;;  %v1572_v61 = vrot.slane %v1570_v51, 5  ;;  %v5769_v4 = vpack.c.bf16 %v958_v57, %v958_v57  ;;  %v1608_v5 = vrot.slane %v1606_v42, 5  ;;  %v1708_v22 = vld [vmem:[#allocation2 + $0x8] sm:$0xf] }
 0x17c   : > { %6154 = vmatprep.subr.bf16.mxu0 %v6487_v39  ;;  %v960_v62 = vsel %vm928_vm0, %v912_v40, %v944_v52  ;;  %v1586_v8 = vrot.slane %v1584_v56, 5  ;;  %v1136_v10 = vmul.f32 %v7441_v33, %v1121_v55  ;;  %v729_v16 = vunpack.c.h.bf16 %v5387_v48  ;;  %v1710_v37 = vld [vmem:[#allocation2 + $0x10] sm:$0xf]  ;;  %v1711_v40 = vld [vmem:[#allocation2 + $0x14] sm:$0x1] }
 0x17d   : > { %v5771_v0 = vpack.c.bf16 %v960_v62, %v960_v62  ;;  %v1573_v11 = vsel %vm7293_vm14, %v7495_v6, %v1572_v61  ;;  %v1065_v12 = vsel %vm7159_vm2, %v5769_v4, %v1064_v44  ;;  %v1609_v15 = vor.u32 %v1608_v5, %v1605_v60  ;;  %v1713_v60 = vld [vmem:[#allocation2 + $0x1c] sm:$0x1] }
 0x17e   : > { %v1587_v17 = vsel %vm7293_vm14, %v7500_v2, %v1586_v8  ;;  %1066 = vst [vmem:[#allocation2 + $0xc4] sm:$0x1] %v1065_v12  ;;  %v1137_v19 = vmul.f32 %v7441_v33, %v1122_v9  ;;  %v1151_v21 = vadd.f32 %v7443_v41, %v1136_v10  ;;  %v744_v24 = vmul.f32 %v7403_v3, %v729_v16  ;;  %v1715_v10 = vld [vmem:[#allocation2 + $0x24] sm:$0x1] }
 0x17f   : > { %6155 = vmatpush3.bf16.msra.mxu0 %v6487_v39  ;;  %v1071_v18 = vsel %vm7159_vm2, %v5771_v0, %v1070_v53  ;;  %v5456_v6 = vcombine.low %v1573_v11, %v1587_v17  ;;  %v7533_v23 = vrot.slane %v1609_v15, 4  ;;  %v436_v2 = vsel %vm7159_vm2, 0, %v435_v7  ;;  %v1714_v7 = vld [vmem:[#allocation2 + $0x20] sm:$0xf] }
 0x180   : > { %1072 = vst [vmem:[#allocation2 + $0xcc] sm:$0x1] %v1071_v18  ;;  %6156 = vmatprep.subr.bf16.mxu0 %v6489_v13  ;;  %v1152_v49 = vadd.f32 %v7443_v41, %v1137_v19  ;;  %vm1159_vm1 = vcmp.gt.f32.partialorder %v1151_v21, 0.0  ;;  %v1167_v27 = vmul.f32 0.1, %v1151_v21  ;;  %v469_v33 = vunpack.c.l.bf16 %v5387_v48 }
 0x181   : > { %437 = vst [vmem:[#allocation2 + $0x40] sm:$0x1] %v436_v2  ;;  %2653 = vmatprep.mubr.bf16.mxu0 %v5456_v6  ;;  %v6483_v28 = vld [vmem:[#allocation2 + $0xf8] ss:$8 sps:$4 sm:$0xff]   ;;  %v759_v29 = vadd.f32 %v7397_v59, %v744_v24  ;;  %v1725_v30 = vshrl.u32 %v1708_v22, 16  ;;  %v1728_v31 = vshll.u32 %v1708_v22, 16 }
 0x182   : > { %vm1160_vm3 = vcmp.gt.f32.partialorder %v1152_v49, 0.0  ;;  %v1168_v32 = vmul.f32 0.1, %v1152_v49  ;;  %v1175_v34 = vsel %vm1159_vm1, %v1151_v21, %v1167_v27  ;;  %v492_v36 = vmul.f32 %v7403_v3, %v469_v33  ;;  %2654 = vmatmul.mubr.bf16.gmra.mrb[24].mxu0 %v6483_v28  ;;  %v1712_v3 = vld [vmem:[#allocation2 + $0x18] sm:$0xf] }
 0x183   : > { %6157 = vmatpush3.bf16.msra.mxu0 %v6489_v13  ;;  %v1183_v35 = vpack.c.bf16 %v1175_v34, %v1175_v34  ;;  %vm767_vm5 = vcmp.gt.f32.partialorder %v759_v29, 0.0  ;;  %v775_v41 = vmul.f32 0.1, %v759_v29  ;;  %v1727_v14 = vrot.slane %v1725_v30, 4  ;;  %v1716_v18 = vld [vmem:[#allocation2 + $0x28] sm:$0xf] }
 0x184   : > { %6158 = vmatprep.subr.bf16.mxu0 %v6492_v25  ;;  %v1176_v38 = vsel %vm1160_vm3, %v1152_v49, %v1168_v32  ;;  %v515_v39 = vadd.f32 %v7397_v59, %v492_v36  ;;  %v1730_v42 = vrot.slane %v1728_v31, 5  ;;  %v1734_v43 = vshll.u32 %v1709_v26, 16  ;;  %v5361_v19 = vld [vmem:[%s7133_s21 + $0x44] sm:$0x1]  ;;  %v1717_v49 = vld [vmem:[#allocation2 + $0x2c] sm:$0x1] }
 0x185   : > { %v1501_v45 = vld [vmem:[#allocation2 + $0xc4] sm:$0x1]  ;;  %v1184_v46 = vpack.c.bf16 %v1176_v38, %v1176_v38  ;;  %1191 = vst [vmem:[#allocation2 + $0x108] sm:$0xf] %v1183_v35  ;;  %v783_v44 = vsel %vm767_vm5, %v759_v29, %v775_v41  ;;  %v1739_v47 = vshrl.u32 %v1710_v37, 16  ;;  %v1742_v48 = vshll.u32 %v1710_v37, 16 }
 0x186   : > { %v1598_v51 = vshll.u32 %v1501_v45, 16  ;;  %v791_v52 = vpack.c.bf16 %v783_v44, %v783_v44  ;;  %vm531_vm6 = vcmp.gt.f32.partialorder %v515_v39, 0.0  ;;  %v547_v53 = vmul.f32 0.1, %v515_v39  ;;  %v1718_v27 = vld [vmem:[#allocation2 + $0x30] sm:$0xf] }
 0x187   : > { %v1503_v50 = vld [vmem:[#allocation2 + $0xcc] sm:$0x1]  ;;  %6159 = vmatpush3.bf16.msra.mxu0 %v6492_v25  ;;  %1192 = vst [vmem:[#allocation2 + $0x110] sm:$0xf] %v1184_v46  ;;  %v1731_v56 = vor.u32 %v1730_v42, %v1727_v14  ;;  %v1736_v59 = vrot.slane %v1734_v43, 5  ;;  %v1741_v57 = vrot.slane %v1739_v47, 4 }
 0x188   : > { %v1612_v55 = vshll.u32 %v1503_v50, 16  ;;  %v1600_v13 = vrot.slane %v1598_v51, 5  ;;  %800 = vst [vmem:[#allocation2 + $0x88] sm:$0xf] %v791_v52  ;;  %v563_v61 = vsel %vm531_vm6, %v515_v39, %v547_v53  ;;  %v675_v62 = vld [vmem:[#allocation2 + $0x40] sm:$0xf]  ;;  %v470_v39 = vunpack.c.l.bf16 %v5361_v19 }
 0x189   : > { %v1744_v4 = vrot.slane %v1742_v48, 5  ;;  %v1748_v5 = vshll.u32 %v1711_v40, 16  ;;  %v5754_v0 = vpack.c.bf16 %v563_v61, %v563_v61  ;;  %v1732_v9 = vrot.slane %v1731_v56, 4  ;;  %v1719_v30 = vld [vmem:[#allocation2 + $0x34] sm:$0x1] }
 0x18a   : > { %v1614_v8 = vrot.slane %v1612_v55, 5  ;;  %v1753_v11 = vshrl.u32 %v1712_v3, 16  ;;  %v1601_v12 = vsel %vm7293_vm14, %v7518_v58, %v1600_v13  ;;  %v1756_v17 = vshll.u32 %v1712_v3, 16  ;;  %v1720_v46 = vld [vmem:[#allocation2 + $0x38] sm:$0xf] }
 0x18b   : > { %v1745_v15 = vor.u32 %v1744_v4, %v1741_v57  ;;  %v1750_v16 = vrot.slane %v1748_v5, 5  ;;  %v676_v22 = vsel %vm7250_vm8, %v5754_v0, %v675_v62  ;;  %v1737_v6 = vsel %vm7293_vm14, %v1732_v9, %v1736_v59  ;;  %v6591_v52 = vld [vmem:[#allocation12] ss:$0 sm:$0xff]  ;;  %v6592_v5 = vld [vmem:[#allocation14] ss:$0 sm:$0xff] }
 0x18c   : > { %v1615_v21 = vsel %vm7293_vm14, %v7533_v23, %v1614_v8  ;;  %v1755_v24 = vrot.slane %v1753_v11, 4  ;;  %677 = vst [vmem:[#allocation2 + $0x40] sm:$0xf] %v676_v22  ;;  %v1758_v58 = vrot.slane %v1756_v17, 5  ;;  %v1762_v26 = vshll.u32 %v1713_v60, 16 }
 0x18d   : > { %v5457_v2 = vcombine.low %v1601_v12, %v1615_v21  ;;  %v1746_v25 = vrot.slane %v1745_v15, 4  ;;  %v1767_v33 = vshrl.u32 %v1714_v7, 16  ;;  %v1770_v28 = vshll.u32 %v1714_v7, 16  ;;  %v1721_v8 = vld [vmem:[#allocation2 + $0x3c] sm:$0x1] }
 0x18e   : > { %v1776_v29 = vshll.u32 %v1715_v10, 16  ;;  %v1781_v31 = vshrl.u32 %v1716_v18, 16  ;;  %v6488_v23 = vld [vmem:[#allocation2 + $0x108] ss:$8 sps:$4 sm:$0xff]   ;;  %v1759_v34 = vor.u32 %v1758_v58, %v1755_v24  ;;  %v1764_v36 = vrot.slane %v1762_v26, 5 }
 0x18f   : > { %2661 = vmatprep.mubr.bf16.mxu0 %v5457_v2  ;;  %v1751_v32 = vsel %vm7293_vm14, %v1746_v25, %v1750_v16  ;;  %v1784_v37 = vshll.u32 %v1716_v18, 16  ;;  %v6490_v35 = vld [vmem:[#allocation2 + $0x80] ss:$8 sps:$4 sm:$0xff]   ;;  %v1769_v14 = vrot.slane %v1767_v33, 4  ;;  %v1772_v38 = vrot.slane %v1770_v28, 5 }
 0x190   : > { %v5466_v41 = vcombine.low %v1737_v6, %v1751_v32  ;;  %2662 = vmatmul.mubr.bf16.gmra.mrb[28].mxu0 %v6488_v23  ;;  %v1760_v40 = vrot.slane %v1759_v34, 4  ;;  %v1778_v42 = vrot.slane %v1776_v29, 5  ;;  %v1783_v43 = vrot.slane %v1781_v31, 4  ;;  %2726 = vmatprep.mubr.bf16.mxu1 %v6490_v35  ;;  %v678_v16 = vld [vmem:[#allocation2 + $0x44] sm:$0x1] }
 0x191   : > { %v1786_v45 = vrot.slane %v1784_v37, 5  ;;  %v1773_v44 = vor.u32 %v1772_v38, %v1769_v14  ;;  %v1790_v47 = vshll.u32 %v1717_v49, 16  ;;  %v1795_v48 = vshrl.u32 %v1718_v27, 16  ;;  %v6493_v14 = vld [vmem:[#allocation17] sm:$0xff]   ;;  %v6494_v38 = vld [vmem:[#allocation17 + $0x8] sm:$0xff]  }
 0x192   : > { %6160 = vmatprep.mubr.bf16.mxu0 %v5466_v41  ;;  %v1798_v3 = vshll.u32 %v1718_v27, 16  ;;  %v1804_v51 = vshll.u32 %v1719_v30, 16  ;;  %v493_v53 = vmul.f32 %v6591_v52, %v470_v39  ;;  %v1765_v56 = vsel %vm7293_vm14, %v1760_v40, %v1764_v36  ;;  %6168 = vmatprep.subr.bf16.mxu1 %v6493_v14  ;;  %v6495_v39 = vld [vmem:[#allocation17 + $0x10] sm:$0xff]   ;;  %v6496_v40 = vld [vmem:[#allocation17 + $0x18] sm:$0xff]  }
 0x193   : > { %v1787_v50 = vor.u32 %v1786_v45, %v1783_v43  ;;  %v6491_v55 = vld [vmem:[#allocation2 + $0x38] ss:$8 sps:$4 sm:$0xff]   ;;  %v1774_v59 = vrot.slane %v1773_v44, 4  ;;  %v1792_v60 = vrot.slane %v1790_v47, 5  ;;  %v1797_v13 = vrot.slane %v1795_v48, 4  ;;  %6169 = vmatpush3.bf16.msra.mxu1 %v6493_v14  ;;  %v6499_v45 = vld [vmem:[#allocation17 + $0x30] sm:$0xff]  }
 0x194   : > { %v1800_v61 = vrot.slane %v1798_v3, 5  ;;  %v1722_v62 = vld [vmem:[#allocation2 + $0x40] sm:$0xf]  ;;  %2727 = vmatmul.mubr.bf16.gmra.mrb[28].mxu1 %v6491_v55  ;;  %v516_v7 = vadd.f32 %v6592_v5, %v493_v53  ;;  %v1809_v0 = vshrl.u32 %v1720_v46, 16  ;;  %v1812_v9 = vshll.u32 %v1720_v46, 16  ;;  %6170 = vmatprep.subr.bf16.mxu1 %v6494_v38  ;;  %v6500_v52 = vld [vmem:[#allocation17 + $0x38] sm:$0xff]  }
 0x195   : > { %v1788_v57 = vrot.slane %v1787_v50, 4  ;;  %v1779_v4 = vsel %vm7293_vm14, %v1774_v59, %v1778_v42  ;;  %v1806_v12 = vrot.slane %v1804_v51, 5  ;;  %v1823_v22 = vshrl.u32 %v1722_v62, 16  ;;  %v6497_v42 = vld [vmem:[#allocation17 + $0x20] sm:$0xff]   ;;  %v6498_v43 = vld [vmem:[#allocation17 + $0x28] sm:$0xff]   ;;  %v6514_v14 = vld [vmem:[#allocation11 + $0x98] sm:$0xff]  }
 0x196   : > { %v5467_v10 = vcombine.low %v1765_v56, %v1779_v4  ;;  %v1801_v11 = vor.u32 %v1800_v61, %v1797_v13  ;;  %vm532_vm7 = vcmp.gt.f32.partialorder %v516_v7, 0.0  ;;  %v548_v15 = vmul.f32 0.1, %v516_v7  ;;  %v7569_v51 = vld [vmem:[#allocation15] ss:$0 sm:$0xff] }
 0x197   : > { %v1811_v17 = vrot.slane %v1809_v0, 4  ;;  %v1814_v18 = vrot.slane %v1812_v9, 5  ;;  %v1793_v19 = vsel %vm7293_vm14, %v1788_v57, %v1792_v60  ;;  %v1826_v6 = vshll.u32 %v1722_v62, 16  ;;  %6171 = vmatpush3.bf16.msra.mxu1 %v6494_v38  ;;  %v6501_v13 = vld [vmem:[#allocation2 + $0xd8] ss:$8 sps:$4 sm:$0xff]   ;;  %v6502_v61 = vld [vmem:[#allocation11 + $0xc0] sm:$0xff]  }
 0x198   : > { %6161 = vmatmul.mubr.bf16.vlgmr.msra.gmra.mrb[32].mxu0 %v5467_v10  ;;  %v1802_v21 = vrot.slane %v1801_v11, 4  ;;  %v564_v24 = vsel %vm532_vm7, %v516_v7, %v548_v15  ;;  %v1818_v26 = vshll.u32 %v1721_v8, 16  ;;  %v1825_v27 = vrot.slane %v1823_v22, 4  ;;  %6172 = vmatprep.subr.bf16.mxu1 %v6495_v39  ;;  %v6503_v62 = vld [vmem:[#allocation2 + $0xe8] ss:$8 sps:$4 sm:$0xff]   ;;  %v6505_v22 = vld [vmem:[#allocation11 + $0xc8] sm:$0xff]  }
 0x199   : > { %v5755_v25 = vpack.c.bf16 %v564_v24, %v564_v24  ;;  %v1815_v58 = vor.u32 %v1814_v18, %v1811_v17  ;;  %v1828_v33 = vrot.slane %v1826_v6, 5  ;;  %v6504_v5 = vld [vmem:[#allocation11 + $0x80] sm:$0xff]   ;;  %6184 = vmatprep.mubr.bf16.mxu1 %v6501_v13  ;;  %v2838_v9 = vld [vmem:[#allocation4 + $0x18] sm:$0x1]  ;;  %v2869_v10 = vld [vmem:[#allocation4 + $0x1c] sm:$0x1] }
 0x19a   : > { %v1807_v2 = vsel %vm7293_vm14, %v1802_v21, %v1806_v12  ;;  %v1820_v30 = vrot.slane %v1818_v26, 5  ;;  %v2839_v11 = vsel %vm7159_vm2, 0, %v2838_v9  ;;  %v2870_v12 = vsel %vm7215_vm4, 0, %v2869_v10  ;;  %v6506_v6 = vld [vmem:[#allocation11 + $0x88] sm:$0xff]   ;;  %v6507_v24 = vld [vmem:[#allocation11 + $0x40] sm:$0xff]   ;;  %v6515_v38 = vld [vmem:[#allocation11 + $0x50] sm:$0xff]  }
 0x19b   : > { %v5468_v49 = vcombine.low %v1793_v19, %v1807_v2  ;;  %v679_v28 = vsel %vm7159_vm2, %v5755_v25, %v678_v16  ;;  %v1816_v29 = vrot.slane %v1815_v58, 4  ;;  %v1829_v31 = vor.u32 %v1828_v33, %v1825_v27  ;;  %6173 = vmatpush3.bf16.msra.mxu1 %v6495_v39  ;;  %2840 = vst [vmem:[#allocation4 + $0x18] sm:$0x1] %v2839_v11  ;;  %v2832_v2 = vld [vmem:[#allocation4 + $0x8] sm:$0x1] }
 0x19c   : > { %680 = vst [vmem:[#allocation2 + $0x44] sm:$0x1] %v679_v28  ;;  %6174 = vmatprep.subr.bf16.mxu1 %v6496_v40  ;;  %2871 = vst [vmem:[#allocation4 + $0x1c] sm:$0x1] %v2870_v12  ;;  %v2863_v25 = vld [vmem:[#allocation4 + $0xc] sm:$0x1]  ;;  %5972 = vmatprep.subr.bf16.mxu0 %v6507_v24 }
 0x19d   : > { %6164 = vmatprep.mubr.bf16.mxu0 %v5468_v49  ;;  %v1830_v32 = vrot.slane %v1829_v31, 4  ;;  %v1821_v36 = vsel %vm7293_vm14, %v1816_v29, %v1820_v30  ;;  %v2833_v58 = vsel %vm7159_vm2, 0, %v2832_v2  ;;  %v2864_v26 = vsel %vm7215_vm4, 0, %v2863_v25  ;;  %v2841_v49 = vld [vmem:[#allocation4 + $0x20] sm:$0x1]  ;;  %v6524_v24 = vld [vmem:[#allocation11 + $0x60] sm:$0xff]  }
 0x19e   : > { %v2872_v27 = vld [vmem:[#allocation4 + $0x24] sm:$0x1]  ;;  %2834 = vst [vmem:[#allocation4 + $0x8] sm:$0x1] %v2833_v58  ;;  %2865 = vst [vmem:[#allocation4 + $0xc] sm:$0x1] %v2864_v26 }
 0x19f   : > { %6175 = vmatpush3.bf16.msra.mxu1 %v6496_v40  ;;  %v2842_v33 = vsel %vm7159_vm2, 0, %v2841_v49  ;;  %v2873_v28 = vsel %vm7215_vm4, 0, %v2872_v27  ;;  %v2835_v29 = vld [vmem:[#allocation4 + $0x10] sm:$0x1]  ;;  %v2866_v30 = vld [vmem:[#allocation4 + $0x14] sm:$0x1] }
 0x1a0   : > { %6176 = vmatprep.subr.bf16.mxu1 %v6497_v42  ;;  %2843 = vst [vmem:[#allocation4 + $0x20] sm:$0x1] %v2842_v33  ;;  %2874 = vst [vmem:[#allocation4 + $0x24] sm:$0x1] %v2873_v28  ;;  %v2836_v31 = vsel %vm7159_vm2, 0, %v2835_v29  ;;  %v6526_v27 = vld [vmem:[#allocation11 + $0x20] sm:$0xff]  }
 0x1a1   : > { %2837 = vst [vmem:[#allocation4 + $0x10] sm:$0x1] %v2836_v31  ;;  %v2853_v9 = vld [vmem:[#allocation4 + $0x40] sm:$0x1]  ;;  %v2884_v10 = vld [vmem:[#allocation4 + $0x44] sm:$0x1] }
 0x1a2   : > { %v2854_v12 = vsel %vm7159_vm2, 0, %v2853_v9  ;;  %v6523_v58 = vld [vmem:[#allocation2 + $0xf8] ss:$8 sps:$4 sm:$0xff]   ;;  %v6525_v26 = vld [vmem:[#allocation2 + $0x108] ss:$8 sps:$4 sm:$0xff]   ;;  %vm3267_vm13 = vcmask 1042432  }
 0x1a3   : > { %v1723_v23 = vld [vmem:[#allocation2 + $0x44] sm:$0x1]  ;;  %6177 = vmatpush3.bf16.msra.mxu1 %v6497_v42  ;;  %v6517_v42 = vld [vmem:[#allocation11 + $0xe0] sm:$0xff]   ;;  %2855 = vst [vmem:[#allocation4 + $0x40] sm:$0x1] %v2854_v12  ;;  %v6529_v29 = vld [vmem:[#allocation11 + $0x68] sm:$0xff]  }
 0x1a4   : > { %v1832_v34 = vshll.u32 %v1723_v23, 16  ;;  %6178 = vmatprep.subr.bf16.mxu1 %v6498_v43  ;;  %v2867_v23 = vsel %vm7215_vm4, 0, %v2866_v30  ;;  %v6527_v33 = vld [vmem:[#allocation11 + $0xf0] sm:$0xff]   ;;  %vm3268_vm15 = vcmask 1046532  }
 0x1a5   : > { %2868 = vst [vmem:[#allocation4 + $0x14] sm:$0x1] %v2867_v23  ;;  %v6528_v28 = vld [vmem:[#allocation11 + $0xb0] sm:$0xff]   ;;  %v6531_v23 = vld [vmem:[#allocation11 + $0xf8] sm:$0xff]   ;;  %vm7673_vm0 = vmor %vm3267_vm13, %vm3268_vm15 }
 0x1a6   : > { %v1834_v37 = vrot.slane %v1832_v34, 5  ;;  %v6509_v34 = vld [vmem:[#allocation11 + $0xd0] sm:$0xff]  }
 0x1a7   : > { %6179 = vmatpush3.bf16.msra.mxu1 %v6498_v43  ;;  %v2860_v30 = vld [vmem:[#allocation4 + $0x4] sm:$0x1]  ;;  %v2829_v31 = vld [vmem:[#allocation4] sm:$0x1] }
 0x1a8   : > { %v1835_v35 = vsel %vm7293_vm14, %v1830_v32, %v1834_v37  ;;  %6180 = vmatprep.subr.bf16.mxu1 %v6499_v45  ;;  %v6508_v32 = vld [vmem:[#allocation11] sm:$0xff]   ;;  %v6511_v37 = vld [vmem:[#allocation11 + $0x48] sm:$0xff]  }
 0x1a9   : > { %v5469_v41 = vcombine.low %v1821_v36, %v1835_v35  ;;  %v6510_v36 = vld [vmem:[#allocation11 + $0x90] sm:$0xff]   ;;  %v6513_v35 = vld [vmem:[#allocation11 + $0xd8] sm:$0xff]   ;;  %5973 = vmatpush3.bf16.msra.mxu0 %v6508_v32  ;;  %v2861_v32 = vsel %vm7215_vm4, 0, %v2860_v30 }
 0x1aa   : > { %5974 = vmatprep.subr.bf16.mxu0 %v6511_v37  ;;  %2862 = vst [vmem:[#allocation4 + $0x4] sm:$0x1] %v2861_v32  ;;  %v2830_v37 = vsel %vm7159_vm2, 0, %v2829_v31 }
 0x1ab   : > { %6165 = vmatmul.mubr.bf16.gmra.mrb[36].mxu0 %v5469_v41  ;;  %6181 = vmatpush3.bf16.msra.mxu1 %v6499_v45  ;;  %v6512_v41 = vld [vmem:[#allocation11 + $0x8] sm:$0xff]   ;;  %v6516_v45 = vld [vmem:[#allocation11 + $0x10] sm:$0xff]   ;;  %2831 = vst [vmem:[#allocation4] sm:$0x1] %v2830_v37 }
 0x1ac   : > { %6182 = vmatprep.subr.bf16.mxu1 %v6500_v52 }
 0x1ad   : > { %5975 = vmatpush3.bf16.msra.mxu0 %v6512_v41  ;;  %v6535_v41 = vld [vmem:[#allocation11 + $0x30] sm:$0xff]  }
 0x1ae   : > { %5976 = vmatprep.subr.bf16.mxu0 %v6515_v38  ;;  %v6539_v38 = vld [vmem:[#allocation11 + $0x78] sm:$0xff]  }
 0x1af   : > { %6183 = vmatpush3.bf16.msra.mxu1 %v6500_v52 }
 0x1b0   : > { %6012 = vmatprep.subr.bf16.mxu1 %v6502_v61  ;;  %v2875_v61 = vld [vmem:[#allocation4 + $0x2c] sm:$0x1] }
 0x1b1   : > { %5977 = vmatpush3.bf16.msra.mxu0 %v6516_v45 }
 0x1b2   : > { %6185 = vmatmul.mubr.bf16.vlgmr.msra.gmra.mrb[32].mxu1 %v6503_v62  ;;  %v6520_v62 = vld [vmem:[#allocation11 + $0x18] sm:$0xff]  }
 0x1b3   : > { %6013 = vmatpush3.bf16.msra.mxu1 %v6504_v5  ;;  %6188 = vmatprep.mubr.bf16.mxu1 %v6523_v58  ;;  %v2887_v58 = vld [vmem:[#allocation4 + $0x4c] sm:$0x1] }
 0x1b4   : > { %6014 = vmatprep.subr.bf16.mxu1 %v6505_v22  ;;  %v2878_v22 = vld [vmem:[#allocation4 + $0x34] sm:$0x1] }
 0x1b5   : > { %v2879_v25 = vsel %vm7215_vm4, 0, %v2878_v22 }
 0x1b6   : > { %2880 = vst [vmem:[#allocation4 + $0x34] sm:$0x1] %v2879_v25  ;;  %v2856_v25 = vld [vmem:[#allocation4 + $0x48] sm:$0x1] }
 0x1b7   : > { %6015 = vmatpush3.bf16.msra.mxu1 %v6506_v6  ;;  %v6522_v6 = vld [vmem:[#allocation11 + $0xa8] sm:$0xff]  }
 0x1b8   : > { %6016 = vmatprep.subr.bf16.mxu1 %v6509_v34  ;;  %v6530_v34 = vld [vmem:[#allocation11 + $0x28] sm:$0xff]  }
 0x1ba   : > { %6189 = vmatmul.mubr.bf16.gmra.mrb[36].mxu1 %v6525_v26 }
 0x1bb   : > { %6017 = vmatpush3.bf16.msra.mxu1 %v6510_v36  ;;  %v6532_v36 = vld [vmem:[#allocation11 + $0xb8] sm:$0xff]  }
 0x1bc   : > { %6018 = vmatprep.subr.bf16.mxu1 %v6513_v35  ;;  %v6533_v35 = vld [vmem:[#allocation11 + $0x70] sm:$0xff]  }
 0x1bf   : > { %6019 = vmatpush3.bf16.msra.mxu1 %v6514_v14  ;;  %v6536_v14 = vld [vmem:[#allocation11 + $0x1c0] sm:$0xff]  }
 0x1c0   : > { %6020 = vmatprep.subr.bf16.mxu1 %v6517_v42 }
 0x1e6   : > { %v5804_v46 = vpop.f32.mrb[0].mxu0 }
 0x1e7   : > { %v5805_v44 = vpop.f32.mrb[1].mxu0 }
 0x1e8   : > { %v5806_v47 = vadd.f32 %v5805_v44, %v5804_v46  ;;  %v5807_v48 = vpop.f32.mrb[2].mxu0 }
 0x1e9   : > { %v5808_v3 = vpop.f32.mrb[3].mxu0 }
 0x1ea   : > { %v5809_v50 = vadd.f32 %v5808_v3, %v5807_v48  ;;  %v2510_v53 = vadd.f32 %v5806_v47, %v7569_v51  ;;  %v6518_v48 = vld [vmem:[#allocation11 + $0xa0] sm:$0xff]  }
 0x1eb   : > { %6021 = vmatpush3.bf16.msra.mxu1 %v6518_v48 }
 0x1ec   : > { %v2513_v59 = vadd.f32 %v5809_v50, %v7569_v51  ;;  %v6519_v50 = vld [vmem:[#allocation11 + $0x58] sm:$0xff]  }
 0x1ed   : > { %5978 = vmatprep.subr.bf16.mxu0 %v6519_v50 }
 0x1ee   : > { %5979 = vmatpush3.bf16.msra.mxu0 %v6520_v62 }
 0x1ef   : > { %5980 = vmatprep.subr.bf16.mxu0 %v6524_v24 }
 0x1f2   : > { %5981 = vmatpush3.bf16.msra.mxu0 %v6526_v27  ;;  %v2888_v27 = vsel %vm7215_vm4, 0, %v2887_v58 }
 0x1f3   : > { %5982 = vmatprep.subr.bf16.mxu0 %v6529_v29  ;;  %2889 = vst [vmem:[#allocation4 + $0x4c] sm:$0x1] %v2888_v27 }
 0x1f4   : > { %v5844_v55 = vpop.f32.mrb[0].mxu1 }
 0x1f5   : > { %v5845_v56 = vpop.f32.mrb[1].mxu1 }
 0x1f6   : > { %v5846_v57 = vadd.f32 %v5845_v56, %v5844_v55  ;;  %v5847_v60 = vpop.f32.mrb[2].mxu1  ;;  %v2850_v55 = vld [vmem:[#allocation4 + $0x38] sm:$0x1]  ;;  %v2881_v56 = vld [vmem:[#allocation4 + $0x3c] sm:$0x1]  ;;  %5983 = vmatpush3.bf16.msra.mxu0 %v6530_v34 }
 0x1f7   : > { %v5848_v4 = vpop.f32.mrb[3].mxu1  ;;  %5984 = vmatprep.subr.bf16.mxu0 %v6533_v35 }
 0x1f8   : > { %v7573_v7 = vadd.f32 %v5846_v57, %v2510_v53  ;;  %v5849_v8 = vadd.f32 %v5848_v4, %v5847_v60  ;;  %v5810_v15 = vpop.f32.mrb[4].mxu0  ;;  %v2851_v57 = vsel %vm7159_vm2, 0, %v2850_v55  ;;  %v2882_v60 = vsel %vm7215_vm4, 0, %v2881_v56 }
 0x1f9   : > { %v5811_v16 = vpop.f32.mrb[5].mxu0  ;;  %2852 = vst [vmem:[#allocation4 + $0x38] sm:$0x1] %v2851_v57  ;;  %2883 = vst [vmem:[#allocation4 + $0x3c] sm:$0x1] %v2882_v60 }
 0x1fa   : > { %v7575_v0 = vadd.f32 %v5849_v8, %v2513_v59  ;;  %v5812_v17 = vadd.f32 %v5811_v16, %v5810_v15  ;;  %v5813_v18 = vpop.f32.mrb[6].mxu0  ;;  %v2844_v59 = vld [vmem:[#allocation4 + $0x28] sm:$0x1]  ;;  %v2876_v8 = vsel %vm7215_vm4, 0, %v2875_v61  ;;  %v2885_v15 = vsel %vm7215_vm4, 0, %v2884_v10  ;;  %5985 = vmatpush3.bf16.msra.mxu0 %v6535_v41 }
 0x1fb   : > { %v5814_v19 = vpop.f32.mrb[7].mxu0  ;;  %v2845_v13 = vsel %vm7159_vm2, 0, %v2844_v59  ;;  %2877 = vst [vmem:[#allocation4 + $0x2c] sm:$0x1] %v2876_v8  ;;  %v2847_v16 = vld [vmem:[#allocation4 + $0x30] sm:$0x1]  ;;  %5986 = vmatprep.subr.bf16.mxu0 %v6539_v38 }
 0x1fc   : > { %v5815_v21 = vadd.f32 %v5814_v19, %v5813_v18  ;;  %v2518_v39 = vadd.f32 %v5812_v17, %v7569_v51  ;;  %2846 = vst [vmem:[#allocation4 + $0x28] sm:$0x1] %v2845_v13  ;;  %v6521_v17 = vld [vmem:[#allocation11 + $0xe8] sm:$0xff]   ;;  %2886 = vst [vmem:[#allocation4 + $0x44] sm:$0x1] %v2885_v15 }
 0x1fd   : > { %6022 = vmatprep.subr.bf16.mxu1 %v6521_v17 }
 0x1fe   : > { %v2521_v46 = vadd.f32 %v5815_v21, %v7569_v51  ;;  %v2848_v21 = vsel %vm7159_vm2, 0, %v2847_v16  ;;  %6023 = vmatpush3.bf16.msra.mxu1 %v6522_v6 }
 0x1ff   : > { %2849 = vst [vmem:[#allocation4 + $0x30] sm:$0x1] %v2848_v21  ;;  %6024 = vmatprep.subr.bf16.mxu1 %v6527_v33 }
 0x202   : > { %6025 = vmatpush3.bf16.msra.mxu1 %v6528_v28 }
 0x203   : > { %6026 = vmatprep.subr.bf16.mxu1 %v6531_v23 }
 0x206   : > { %6027 = vmatpush3.bf16.msra.mxu1 %v6532_v36 }
 0x207   : > { %6092 = vmatprep.subr.bf16.mxu1 %v6536_v14 }
 0x208   : > { %v5850_v40 = vpop.f32.mrb[4].mxu1 }
 0x209   : > { %v5851_v43 = vpop.f32.mrb[5].mxu1 }
 0x20a   : > { %v5852_v44 = vadd.f32 %v5851_v43, %v5850_v40  ;;  %v5853_v47 = vpop.f32.mrb[6].mxu1  ;;  %v6544_v40 = vld [vmem:[#allocation11 + $0x140] sm:$0xff]  }
 0x20b   : > { %v5854_v3 = vpop.f32.mrb[7].mxu1 }
 0x20c   : > { %v7595_v52 = vadd.f32 %v5852_v44, %v2518_v39  ;;  %v5855_v53 = vadd.f32 %v5854_v3, %v5853_v47  ;;  %v5816_v5 = vpop.f32.mrb[8].mxu0  ;;  %v6540_v39 = vld [vmem:[#allocation11 + $0x38] sm:$0xff]  }
 0x20d   : > { %v5817_v11 = vpop.f32.mrb[9].mxu0  ;;  %5987 = vmatpush3.bf16.msra.mxu0 %v6540_v39 }
 0x20e   : > { %v7603_v4 = vadd.f32 %v5855_v53, %v2521_v46  ;;  %v5818_v18 = vadd.f32 %v5817_v11, %v5816_v5  ;;  %v5819_v19 = vpop.f32.mrb[10].mxu0  ;;  %6052 = vmatprep.subr.bf16.mxu0 %v6544_v40 }
 0x20f   : > { %v5820_v2 = vpop.f32.mrb[11].mxu0 }
 0x210   : > { %v5821_v49 = vadd.f32 %v5820_v2, %v5819_v19  ;;  %v2526_v42 = vadd.f32 %v5818_v18, %v7569_v51 }
 0x212   : > { %v2529_v46 = vadd.f32 %v5821_v49, %v7569_v51 }
 0x21f   : > { %v5856_v43 = vpop.f32.mrb[8].mxu1 }
 0x220   : > { %v5857_v45 = vpop.f32.mrb[9].mxu1 }
 0x221   : > { %v5858_v44 = vadd.f32 %v5857_v45, %v5856_v43  ;;  %v5859_v47 = vpop.f32.mrb[10].mxu1 }
 0x222   : > { %v5860_v48 = vpop.f32.mrb[11].mxu1 }
 0x223   : > { %v7621_v3 = vadd.f32 %v5858_v44, %v2526_v42  ;;  %v5861_v50 = vadd.f32 %v5860_v48, %v5859_v47 }
 0x225   : > { %v7623_v53 = vadd.f32 %v5861_v50, %v2529_v46  ;;  %v5822_v55 = vpop.f32.mrb[12].mxu0 }
 0x226   : > { %v5823_v56 = vpop.f32.mrb[13].mxu0 }
 0x227   : > { %v5824_v59 = vadd.f32 %v5823_v56, %v5822_v55  ;;  %v5825_v57 = vpop.f32.mrb[14].mxu0 }
 0x228   : > { %v5826_v60 = vpop.f32.mrb[15].mxu0 }
 0x229   : > { %v5827_v13 = vadd.f32 %v5826_v60, %v5825_v57  ;;  %v2534_v61 = vadd.f32 %v5824_v59, %v7569_v51 }
 0x22b   : > { %v2537_v8 = vadd.f32 %v5827_v13, %v7569_v51  ;;  %v2857_v51 = vsel %vm7159_vm2, 0, %v2856_v25 }
 0x22c   : > { %2858 = vst [vmem:[#allocation4 + $0x48] sm:$0x1] %v2857_v51 }
 0x233   : > { %v5862_v62 = vpop.f32.mrb[12].mxu1 }
 0x234   : > { %v5863_v5 = vpop.f32.mrb[13].mxu1 }
 0x235   : > { %v5864_v9 = vadd.f32 %v5863_v5, %v5862_v62  ;;  %v5865_v10 = vpop.f32.mrb[14].mxu1 }
 0x236   : > { %v5866_v11 = vpop.f32.mrb[15].mxu1 }
 0x237   : > { %v2599_v12 = vadd.f32 %v5864_v9, %v2534_v61  ;;  %v5867_v15 = vadd.f32 %v5866_v11, %v5865_v10 }
 0x239   : > { %v7627_v16 = vadd.f32 %v5867_v15, %v2537_v8 }
 0x23b   : > { %v5924_v17 = vpop.f32.mrb[16].mxu1 }
 0x23c   : > { %v5925_v18 = vpop.f32.mrb[17].mxu1 }
 0x23d   : > { %v5926_v19 = vadd.f32 %v5925_v18, %v5924_v17  ;;  %v5927_v21 = vpop.f32.mrb[18].mxu1  ;;  %v5884_v6 = vpop.f32.mrb[16].mxu0 }
 0x23e   : > { %v5928_v22 = vpop.f32.mrb[19].mxu1  ;;  %v5885_v2 = vpop.f32.mrb[17].mxu0 }
 0x23f   : > { %v5929_v24 = vadd.f32 %v5928_v22, %v5927_v21  ;;  %v5886_v26 = vadd.f32 %v5885_v2, %v5884_v6  ;;  %v5887_v49 = vpop.f32.mrb[18].mxu0  ;;  %v3087_v22 = vld [vmem:[#allocation4] sm:$0xf] }
 0x240   : > { %v5888_v33 = vpop.f32.mrb[19].mxu0  ;;  %v3104_v58 = vshrl.u32 %v3087_v22, 16 }
 0x241   : > { %v2640_v28 = vadd.f32 %v5886_v26, %v7573_v7  ;;  %v5889_v29 = vadd.f32 %v5888_v33, %v5887_v49  ;;  %v3107_v33 = vshll.u32 %v3087_v22, 16  ;;  %v3024_v22 = vld [vmem:[#allocation4 + $0x24] sm:$0x1] }
 0x243   : > { %v5930_v30 = vpop.f32.mrb[20].mxu1  ;;  %v2643_v23 = vadd.f32 %v5889_v29, %v7575_v0  ;;  %v2705_v36 = vadd.f32 %v5926_v19, %v2640_v28 }
 0x244   : > { %v5931_v31 = vpop.f32.mrb[21].mxu1 }
 0x245   : > { %v5932_v32 = vadd.f32 %v5931_v31, %v5930_v30  ;;  %v5933_v34 = vpop.f32.mrb[22].mxu1  ;;  %v2708_v41 = vadd.f32 %v5929_v24, %v2643_v23 }
 0x246   : > { %v5934_v37 = vpop.f32.mrb[23].mxu1 }
 0x247   : > { %v5935_v35 = vadd.f32 %v5934_v37, %v5933_v34  ;;  %v7648_v34 = vrot.slane %v3104_v58, 4  ;;  %v3009_v58 = vld [vmem:[#allocation4 + $0x10] sm:$0xf] }
 0x24b   : > { %v5936_v14 = vpop.f32.mrb[24].mxu1 }
 0x24c   : > { %v5937_v38 = vpop.f32.mrb[25].mxu1  ;;  %v5890_v42 = vpop.f32.mrb[20].mxu0 }
 0x24d   : > { %v5938_v39 = vadd.f32 %v5937_v38, %v5936_v14  ;;  %v5939_v40 = vpop.f32.mrb[26].mxu1  ;;  %v5891_v45 = vpop.f32.mrb[21].mxu0  ;;  %v7650_v14 = vrot.slane %v3107_v33, 5 }
 0x24e   : > { %v5940_v43 = vpop.f32.mrb[27].mxu1  ;;  %v5892_v7 = vadd.f32 %v5891_v45, %v5890_v42  ;;  %v5893_v44 = vpop.f32.mrb[22].mxu0  ;;  %v3641_v45 = vld [vmem:[#allocation4 + $0x48] sm:$0xf] }
 0x24f   : > { %v5941_v46 = vadd.f32 %v5940_v43, %v5939_v40  ;;  %v5894_v47 = vpop.f32.mrb[23].mxu0  ;;  %v7652_v40 = vld [vmem:[#allocation4 + $0x4] sm:$0x1] }
 0x250   : > { %v2648_v48 = vadd.f32 %v5892_v7, %v7595_v52  ;;  %v5895_v0 = vadd.f32 %v5894_v47, %v5893_v44  ;;  %v3018_v47 = vld [vmem:[#allocation4 + $0x1c] sm:$0x1] }
 0x252   : > { %v2651_v50 = vadd.f32 %v5895_v0, %v7603_v4  ;;  %v2713_v55 = vadd.f32 %v5932_v32, %v2648_v48 }
 0x254   : > { %v2716_v56 = vadd.f32 %v5935_v35, %v2651_v50  ;;  %v3110_v50 = vor.u32 %v7650_v14, %v7648_v34 }
 0x255   : > { %v5896_v59 = vpop.f32.mrb[24].mxu0 }
 0x256   : > { %v5897_v57 = vpop.f32.mrb[25].mxu0 }
 0x257   : > { %v5898_v60 = vadd.f32 %v5897_v57, %v5896_v59  ;;  %v5899_v13 = vpop.f32.mrb[26].mxu0  ;;  %v3003_v57 = vld [vmem:[#allocation4 + $0x8] sm:$0xf] }
 0x258   : > { %v5900_v61 = vpop.f32.mrb[27].mxu0 }
 0x259   : > { %v2656_v62 = vadd.f32 %v5898_v60, %v7621_v3  ;;  %v5901_v5 = vadd.f32 %v5900_v61, %v5899_v13  ;;  %v3742_v13 = vshrl.u32 %v3641_v45, 16 }
 0x25b   : > { %v2659_v8 = vadd.f32 %v5901_v5, %v7623_v53  ;;  %v7639_v9 = vadd.f32 %v5938_v39, %v2656_v62  ;;  %v3006_v5 = vld [vmem:[#allocation4 + $0xc] sm:$0x1]  ;;  %v3744_v34 = vrot.slane %v3742_v13, 4 }
 0x25d   : > { %v7641_v10 = vadd.f32 %v5941_v46, %v2659_v8 }
 0x263   : > { %v5902_v52 = vpop.f32.mrb[28].mxu0 }
 0x264   : > { %v5903_v11 = vpop.f32.mrb[29].mxu0 }
 0x265   : > { %v5904_v15 = vadd.f32 %v5903_v11, %v5902_v52  ;;  %v5905_v4 = vpop.f32.mrb[30].mxu0  ;;  %v3745_v52 = vshll.u32 %v3641_v45, 16  ;;  %v7682_v45 = vld [vmem:[#allocation4 + $0x4c] sm:$0x1] }
 0x266   : > { %v5906_v17 = vpop.f32.mrb[31].mxu0 }
 0x267   : > { %v2664_v18 = vadd.f32 %v5904_v15, %v2599_v12  ;;  %v5907_v19 = vadd.f32 %v5906_v17, %v5905_v4  ;;  %v5942_v21 = vpop.f32.mrb[28].mxu1 }
 0x268   : > { %v5943_v24 = vpop.f32.mrb[29].mxu1 }
 0x269   : > { %v2667_v6 = vadd.f32 %v5907_v19, %v7627_v16  ;;  %v5944_v3 = vadd.f32 %v5943_v24, %v5942_v21  ;;  %v5945_v2 = vpop.f32.mrb[30].mxu1 }
 0x26a   : > { %v5946_v25 = vpop.f32.mrb[31].mxu1 }
 0x26b   : > { %v6162_v53 = vpop.f32.mrb[32].mxu0  ;;  %v5947_v26 = vadd.f32 %v5946_v25, %v5945_v2  ;;  %v7644_v27 = vadd.f32 %v5944_v3, %v2664_v18  ;;  %v3021_v18 = vld [vmem:[#allocation4 + $0x20] sm:$0xf] }
 0x26c   : > { %v2778_v49 = vadd.f32 %v6162_v53, %v2713_v55  ;;  %v2769_v51 = vpop.f32.mrb[33].mxu0  ;;  %v3113_v55 = vshll.u32 %v7652_v40, 16 }
 0x26d   : > { %v2770_v28 = vadd.f32 %v2769_v51, %v2705_v36  ;;  %v6163_v29 = vpop.f32.mrb[34].mxu0  ;;  %v7646_v23 = vadd.f32 %v5947_v26, %v2667_v6  ;;  %v3012_v26 = vld [vmem:[#allocation4 + $0x14] sm:$0x1] }
 0x26e   : > { %vm2802_vm9 = vcmp.gt.f32.partialorder %v2778_v49, 0.0  ;;  %v2810_v12 = vmul.f32 0.1, %v2778_v49  ;;  %v2781_v30 = vadd.f32 %v6163_v29, %v2716_v56  ;;  %v2772_v31 = vpop.f32.mrb[35].mxu0  ;;  %v3235_v29 = vld [vmem:[#allocation4] sm:$0xe] }
 0x26f   : > { %vm2800_vm10 = vcmp.gt.f32.partialorder %v2770_v28, 0.0  ;;  %v2808_v16 = vmul.f32 0.1, %v2770_v28  ;;  %v2773_v32 = vadd.f32 %v2772_v31, %v2708_v41  ;;  %v3015_v41 = vld [vmem:[#allocation4 + $0x18] sm:$0xf] }
 0x270   : > { %v2818_v37 = vsel %vm2802_vm9, %v2778_v49, %v2810_v12  ;;  %vm2803_vm11 = vcmp.gt.f32.partialorder %v2781_v30, 0.0  ;;  %v2811_v35 = vmul.f32 0.1, %v2781_v30  ;;  %v3236_v12 = vld [vmem:[#allocation4 + $0x4] sm:$0x1] }
 0x271   : > { %v5774_v38 = vpack.c.bf16 %v2818_v37, %v2818_v37  ;;  %v2816_v39 = vsel %vm2800_vm10, %v2770_v28, %v2808_v16  ;;  %vm2801_vm12 = vcmp.gt.f32.partialorder %v2773_v32, 0.0  ;;  %v2809_v36 = vmul.f32 0.1, %v2773_v32 }
 0x272   : > { %v5772_v42 = vpack.c.bf16 %v2816_v39, %v2816_v39  ;;  %v2819_v43 = vsel %vm2803_vm11, %v2781_v30, %v2811_v35  ;;  %v3747_v37 = vrot.slane %v3745_v52, 5  ;;  %v5559_v35 = vrot.slane %v3235_v29, 9  ;;  %v3045_v29 = vld [vmem:[#allocation4 + $0x40] sm:$0xf] }
 0x273   : > { %v2939_v46 = vshrl.u32 %v5774_v38, 16  ;;  %v5775_v7 = vpack.c.bf16 %v2819_v43, %v2819_v43  ;;  %v2817_v44 = vsel %vm2801_vm12, %v2773_v32, %v2809_v36  ;;  %v2942_v59 = vshll.u32 %v5774_v38, 16  ;;  %v4977_v38 = vld [vmem:[%s7152_s12 + $0x28] sm:$0x1] }
 0x274   : > { %v2923_v48 = vshrl.u32 %v5772_v42, 16  ;;  %v5773_v0 = vpack.c.bf16 %v2817_v44, %v2817_v44  ;;  %v2926_v62 = vshll.u32 %v5772_v42, 16  ;;  %v3272_v14 = vrot.slane %v3236_v12, 5  ;;  %v3048_v12 = vld [vmem:[#allocation4 + $0x44] sm:$0x1] }
 0x275   : > { %v2941_v56 = vrot.slane %v2939_v46, 7  ;;  %v2947_v60 = vshrl.u32 %v5775_v7, 16  ;;  %v2950_v17 = vshll.u32 %v5775_v7, 16  ;;  %v7677_v39 = vrot.slane %v3110_v50, 4 }
 0x276   : > { %v2925_v61 = vrot.slane %v2923_v48, 7  ;;  %v2931_v8 = vshrl.u32 %v5773_v0, 16  ;;  %v2934_v24 = vshll.u32 %v5773_v0, 16  ;;  %v7679_v36 = vrot.slane %v3113_v55, 5 }
 0x277   : > { %v2944_v11 = vor.u32 %v2942_v59, %v2941_v56  ;;  %v2945_v15 = vrot.slane %v2941_v56, 4  ;;  %v2949_v4 = vrot.slane %v2947_v60, 7  ;;  %v3748_v46 = vor.u32 %v3747_v37, %v3744_v34 }
 0x278   : > { %v2928_v19 = vor.u32 %v2926_v62, %v2925_v61  ;;  %v2929_v21 = vrot.slane %v2925_v61, 4  ;;  %v2933_v6 = vrot.slane %v2931_v8, 7  ;;  %v3751_v59 = vshll.u32 %v7682_v45, 16 }
 0x279   : > { %v3016_v3 = vsel %vm7250_vm8, %v2944_v11, %v3015_v41  ;;  %v3019_v2 = vsel %vm7159_vm2, %v2945_v15, %v3018_v47  ;;  %v2952_v25 = vor.u32 %v2950_v17, %v2949_v4  ;;  %v2953_v53 = vrot.slane %v2949_v4, 4 }
 0x27a   : > { %3017 = vst [vmem:[#allocation4 + $0x18] sm:$0xf] %v3016_v3  ;;  %3020 = vst [vmem:[#allocation4 + $0x1c] sm:$0x1] %v3019_v2  ;;  %v3004_v49 = vsel %vm7250_vm8, %v2928_v19, %v3003_v57  ;;  %v3007_v51 = vsel %vm7159_vm2, %v2929_v21, %v3006_v5  ;;  %v2936_v33 = vor.u32 %v2934_v24, %v2933_v6  ;;  %v2937_v28 = vrot.slane %v2933_v6, 4 }
 0x27b   : > { %3005 = vst [vmem:[#allocation4 + $0x8] sm:$0xf] %v3004_v49  ;;  %3008 = vst [vmem:[#allocation4 + $0xc] sm:$0x1] %v3007_v51  ;;  %v3022_v30 = vsel %vm7250_vm8, %v2952_v25, %v3021_v18  ;;  %v3025_v31 = vsel %vm7159_vm2, %v2953_v53, %v3024_v22  ;;  %v7687_v41 = vsel %vm7673_vm0, %v5559_v35, %v3272_v14  ;;  %v7698_v13 = vrot.slane %v3748_v46, 4  ;;  %v6541_v46 = vld [vmem:[#allocation11 + $0x1c8] sm:$0xff]  }
 0x27c   : > { %3023 = vst [vmem:[#allocation4 + $0x20] sm:$0xf] %v3022_v30  ;;  %3026 = vst [vmem:[#allocation4 + $0x24] sm:$0x1] %v3025_v31  ;;  %v3010_v16 = vsel %vm7250_vm8, %v2936_v33, %v3009_v58  ;;  %v3013_v32 = vsel %vm7159_vm2, %v2937_v28, %v3012_v26  ;;  %v3039_v22 = vld [vmem:[#allocation4 + $0x38] sm:$0xf] }
 0x27d   : > { %3011 = vst [vmem:[#allocation4 + $0x10] sm:$0xf] %v3010_v16  ;;  %3014 = vst [vmem:[#allocation4 + $0x14] sm:$0x1] %v3013_v32  ;;  %v3042_v6 = vld [vmem:[#allocation4 + $0x3c] sm:$0x1] }
 0x27e   : > { %v6166_v40 = vpop.f32.mrb[36].mxu0  ;;  %v3027_v58 = vld [vmem:[#allocation4 + $0x28] sm:$0xf]  ;;  %v3030_v26 = vld [vmem:[#allocation4 + $0x2c] sm:$0x1]  ;;  %v6538_v32 = vld [vmem:[#allocation11 + $0x180] sm:$0xff]  }
 0x27f   : > { %v2794_v42 = vadd.f32 %v6166_v40, %v7644_v27  ;;  %v2785_v43 = vpop.f32.mrb[37].mxu0  ;;  %v3116_v27 = vsel %vm7293_vm14, %v7677_v39, %v7679_v36  ;;  %v3033_v14 = vld [vmem:[#allocation4 + $0x30] sm:$0xf]  ;;  %v3036_v40 = vld [vmem:[#allocation4 + $0x34] sm:$0x1] }
 0x280   : > { %v2786_v7 = vadd.f32 %v2785_v43, %v7639_v9  ;;  %v6167_v44 = vpop.f32.mrb[38].mxu0 }
 0x281   : > { %v7689_v47 = vld [vmem:[#allocation4 + $0x18] sm:$0xf]  ;;  %vm2806_vm1 = vcmp.gt.f32.partialorder %v2794_v42, 0.0  ;;  %v2814_v48 = vmul.f32 0.1, %v2794_v42  ;;  %v2797_v0 = vadd.f32 %v6167_v44, %v7646_v23  ;;  %v2788_v50 = vpop.f32.mrb[39].mxu0 }
 0x282   : > { %vm2804_vm3 = vcmp.gt.f32.partialorder %v2786_v7, 0.0  ;;  %v2812_v55 = vmul.f32 0.1, %v2786_v7  ;;  %v2789_v9 = vadd.f32 %v2788_v50, %v7641_v10  ;;  %v3237_v56 = vld [vmem:[#allocation4 + $0x8] sm:$0xe]  ;;  %v3146_v4 = vshrl.u32 %v7689_v47, 16 }
 0x283   : > { %v2822_v57 = vsel %vm2806_vm1, %v2794_v42, %v2814_v48  ;;  %vm2807_vm5 = vcmp.gt.f32.partialorder %v2797_v0, 0.0  ;;  %v2815_v60 = vmul.f32 0.1, %v2797_v0  ;;  %v3238_v11 = vld [vmem:[#allocation4 + $0xc] sm:$0x1]  ;;  %v5560_v15 = vrot.slane %v3237_v56, 9 }
 0x284   : > { %v5778_v61 = vpack.c.bf16 %v2822_v57, %v2822_v57  ;;  %v2820_v23 = vsel %vm2804_vm3, %v2786_v7, %v2812_v55  ;;  %vm2805_vm6 = vcmp.gt.f32.partialorder %v2789_v9, 0.0  ;;  %v2813_v62 = vmul.f32 0.1, %v2789_v9  ;;  %v6534_v5 = vld [vmem:[#allocation4 + $0x8] ss:$8 sps:$4 sm:$0xff]  }
 0x285   : > { %v5776_v8 = vpack.c.bf16 %v2820_v23, %v2820_v23  ;;  %v2823_v52 = vsel %vm2807_vm5, %v2797_v0, %v2815_v60  ;;  %4729 = vmatprep.mubr.bf16.mxu1 %v6534_v5  ;;  %v7701_v21 = vld [vmem:[#allocation4 + $0x8] sm:$0xf]  ;;  %v3276_v25 = vrot.slane %v3238_v11, 5  ;;  %v6537_v43 = vld [vmem:[#allocation4 + $0x18] ss:$8 sps:$4 sm:$0xff]  }
 0x286   : > { %v2971_v10 = vshrl.u32 %v5778_v61, 16  ;;  %v2974_v17 = vshll.u32 %v5778_v61, 16  ;;  %v5779_v18 = vpack.c.bf16 %v2823_v52, %v2823_v52  ;;  %v2821_v19 = vsel %vm2805_vm6, %v2789_v9, %v2813_v62  ;;  %v3090_v0 = vld [vmem:[#allocation4 + $0xc] sm:$0x1]  ;;  %v6542_v60 = vld [vmem:[#allocation11 + $0x188] sm:$0xff]   ;;  %v6546_v11 = vld [vmem:[#allocation11 + $0x1d0] sm:$0xff]  }
 0x287   : > { %v2955_v24 = vshrl.u32 %v5776_v8, 16  ;;  %v2958_v3 = vshll.u32 %v5776_v8, 16  ;;  %v5777_v2 = vpack.c.bf16 %v2821_v19, %v2821_v19  ;;  %v3118_v33 = vshrl.u32 %v7701_v21, 16  ;;  %v3091_v61 = vld [vmem:[#allocation4 + $0x10] sm:$0xf] }
 0x288   : > { %v2973_v53 = vrot.slane %v2971_v10, 7  ;;  %v2979_v49 = vshrl.u32 %v5779_v18, 16  ;;  %v2982_v51 = vshll.u32 %v5779_v18, 16  ;;  %v3277_v16 = vsel %vm7673_vm0, %v5560_v15, %v3276_v25  ;;  %v3092_v23 = vld [vmem:[#allocation4 + $0x14] sm:$0x1] }
 0x289   : > { %v2957_v28 = vrot.slane %v2955_v24, 7  ;;  %v2963_v30 = vshrl.u32 %v5777_v2, 16  ;;  %v2966_v31 = vshll.u32 %v5777_v2, 16  ;;  %v5567_v42 = vcombine.low %v7687_v41, %v3277_v16  ;;  %v3094_v52 = vld [vmem:[#allocation4 + $0x1c] sm:$0x1] }
 0x28a   : > { %v2976_v34 = vor.u32 %v2974_v17, %v2973_v53  ;;  %v2977_v37 = vrot.slane %v2973_v53, 4  ;;  %v2981_v35 = vrot.slane %v2979_v49, 7  ;;  %v3120_v50 = vrot.slane %v3118_v33, 4  ;;  %v3239_v19 = vld [vmem:[#allocation4 + $0x10] sm:$0xe]  ;;  %v6548_v53 = vld [vmem:[#allocation11 + $0x190] sm:$0xff]  }
 0x28b   : > { %v2960_v7 = vor.u32 %v2958_v3, %v2957_v28  ;;  %v2961_v44 = vrot.slane %v2957_v28, 4  ;;  %v2965_v48 = vrot.slane %v2963_v30, 7  ;;  %4730 = vmatmul.mubr.bf16.vlgmr.msra.gmra.mrb[40].mxu1 %v5567_v42  ;;  %v3121_v17 = vshll.u32 %v7701_v21, 16  ;;  %v3240_v2 = vld [vmem:[#allocation4 + $0x14] sm:$0x1] }
 0x28c   : > { %v3040_v55 = vsel %vm7250_vm8, %v2976_v34, %v3039_v22  ;;  %v3043_v9 = vsel %vm7159_vm2, %v2977_v37, %v3042_v6  ;;  %v2984_v56 = vor.u32 %v2982_v51, %v2981_v35  ;;  %v2985_v57 = vrot.slane %v2981_v35, 4  ;;  %4737 = vmatprep.mubr.bf16.mxu1 %v6537_v43  ;;  %6093 = vmatpush3.bf16.msra.mxu1 %v6538_v32  ;;  %v3241_v25 = vld [vmem:[#allocation4 + $0x18] sm:$0xe]  ;;  %v3242_v51 = vld [vmem:[#allocation4 + $0x1c] sm:$0x1]  ;;  %v6551_v37 = vld [vmem:[#allocation11 + $0x1d8] sm:$0xff]  }
 0x28d   : > { %3041 = vst [vmem:[#allocation4 + $0x38] sm:$0xf] %v3040_v55  ;;  %3044 = vst [vmem:[#allocation4 + $0x3c] sm:$0x1] %v3043_v9  ;;  %v3028_v41 = vsel %vm7250_vm8, %v2960_v7, %v3027_v58  ;;  %v3031_v62 = vsel %vm7159_vm2, %v2961_v44, %v3030_v26  ;;  %v2968_v5 = vor.u32 %v2966_v31, %v2965_v48  ;;  %v2969_v8 = vrot.slane %v2965_v48, 4  ;;  %v6545_v55 = vld [vmem:[#allocation11 + $0x100] sm:$0xff]  }
 0x28e   : > { %3029 = vst [vmem:[#allocation4 + $0x28] sm:$0xf] %v3028_v41  ;;  %3032 = vst [vmem:[#allocation4 + $0x2c] sm:$0x1] %v3031_v62  ;;  %v3046_v15 = vsel %vm7250_vm8, %v2984_v56, %v3045_v29  ;;  %v3049_v10 = vsel %vm7159_vm2, %v2985_v57, %v3048_v12  ;;  %6094 = vmatprep.subr.bf16.mxu1 %v6541_v46  ;;  %v3127_v18 = vshll.u32 %v3090_v0, 16  ;;  %v3132_v24 = vshrl.u32 %v3091_v61, 16 }
 0x28f   : > { %3047 = vst [vmem:[#allocation4 + $0x40] sm:$0xf] %v3046_v15  ;;  %3050 = vst [vmem:[#allocation4 + $0x44] sm:$0x1] %v3049_v10  ;;  %v3034_v22 = vsel %vm7250_vm8, %v2968_v5, %v3033_v14  ;;  %v3037_v6 = vsel %vm7159_vm2, %v2969_v8, %v3036_v40  ;;  %v3135_v3 = vshll.u32 %v3091_v61, 16  ;;  %v3123_v58 = vrot.slane %v3121_v17, 5 }
 0x290   : > { %3035 = vst [vmem:[#allocation4 + $0x30] sm:$0xf] %v3034_v22  ;;  %3038 = vst [vmem:[#allocation4 + $0x34] sm:$0x1] %v3037_v6  ;;  %v3129_v26 = vrot.slane %v3127_v18, 5  ;;  %v3141_v21 = vshll.u32 %v3092_v23, 16  ;;  %6095 = vmatpush3.bf16.msra.mxu1 %v6542_v60 }
 0x291   : > { %v3148_v49 = vrot.slane %v3146_v4, 4  ;;  %v3134_v33 = vrot.slane %v3132_v24, 4  ;;  %v3137_v28 = vrot.slane %v3135_v3, 5  ;;  %v3149_v29 = vshll.u32 %v7689_v47, 16  ;;  %v3095_v30 = vld [vmem:[#allocation4 + $0x20] sm:$0xf]  ;;  %6096 = vmatprep.subr.bf16.mxu1 %v6546_v11 }
 0x292   : > { %v3155_v12 = vshll.u32 %v3094_v52, 16  ;;  %v3124_v31 = vor.u32 %v3123_v58, %v3120_v50  ;;  %v3143_v16 = vrot.slane %v3141_v21, 5  ;;  %v5561_v32 = vrot.slane %v3239_v19, 9  ;;  %v3096_v43 = vld [vmem:[#allocation4 + $0x24] sm:$0x1]  ;;  %v6549_v23 = vld [vmem:[#allocation11 + $0x148] sm:$0xff]  }
 0x293   : > { %v3280_v34 = vrot.slane %v3240_v2, 5  ;;  %v3138_v35 = vor.u32 %v3137_v28, %v3134_v33  ;;  %v3151_v14 = vrot.slane %v3149_v29, 5  ;;  %v5562_v42 = vrot.slane %v3241_v25, 9  ;;  %v3243_v47 = vld [vmem:[#allocation4 + $0x20] sm:$0xe]  ;;  %v6552_v18 = vld [vmem:[#allocation11 + $0x198] sm:$0xff]  }
 0x294   : > { %v3157_v40 = vrot.slane %v3155_v12, 5  ;;  %v3125_v4 = vrot.slane %v3124_v31, 4  ;;  %v3284_v7 = vrot.slane %v3242_v51, 5  ;;  %v3160_v44 = vshrl.u32 %v3095_v30, 16  ;;  %v3244_v48 = vld [vmem:[#allocation4 + $0x24] sm:$0x1]  ;;  %6097 = vmatpush3.bf16.msra.mxu1 %v6548_v53 }
 0x295   : > { %v3281_v46 = vsel %vm7673_vm0, %v5561_v32, %v3280_v34  ;;  %v3139_v0 = vrot.slane %v3138_v35, 4  ;;  %v3152_v50 = vor.u32 %v3151_v14, %v3148_v49  ;;  %v3097_v9 = vld [vmem:[#allocation4 + $0x28] sm:$0xf]  ;;  %v3163_v56 = vshll.u32 %v3095_v30, 16  ;;  %6098 = vmatprep.subr.bf16.mxu1 %v6551_v37  ;;  %v3098_v41 = vld [vmem:[#allocation4 + $0x2c] sm:$0x1] }
 0x296   : > { %v3130_v57 = vsel %vm7293_vm14, %v3125_v4, %v3129_v26  ;;  %v6543_v60 = vld [vmem:[#allocation4] ss:$8 sps:$4 sm:$0xff]   ;;  %v3285_v61 = vsel %vm7673_vm0, %v5562_v42, %v3284_v7  ;;  %v3162_v62 = vrot.slane %v3160_v44, 4  ;;  %v3169_v5 = vshll.u32 %v3096_v43, 16  ;;  %v7740_v19 = vld [vmem:[#allocation4 + $0x10] sm:$0xf] }
 0x297   : > { %v3245_v8 = vld [vmem:[#allocation4 + $0x28] sm:$0xe]  ;;  %v5555_v52 = vcombine.low %v3116_v27, %v3130_v57  ;;  %v3144_v11 = vsel %vm7293_vm14, %v3139_v0, %v3143_v16  ;;  %v3153_v15 = vrot.slane %v3152_v50, 4  ;;  %v5568_v10 = vcombine.low %v3281_v46, %v3285_v61  ;;  %v3246_v3 = vld [vmem:[#allocation4 + $0x2c] sm:$0x1]  ;;  %v6556_v53 = vld [vmem:[#allocation11 + $0x1e0] sm:$0xff]  }
 0x298   : > { %v6547_v17 = vld [vmem:[#allocation4 + $0x28] ss:$8 sps:$4 sm:$0xff]   ;;  %v3165_v22 = vrot.slane %v3163_v56, 5  ;;  %v3174_v6 = vshrl.u32 %v3097_v9, 16  ;;  %v3177_v24 = vshll.u32 %v3097_v9, 16  ;;  %v7744_v2 = vrot.slane %v3751_v59, 5  ;;  %6099 = vmatpush3.bf16.msra.mxu1 %v6552_v18 }
 0x299   : > { %4664 = vmatprep.mubr.bf16.mxu0 %v5555_v52  ;;  %v3158_v39 = vsel %vm7293_vm14, %v3153_v15, %v3157_v40  ;;  %4738 = vmatmul.mubr.bf16.gmra.mrb[44].mxu1 %v5568_v10  ;;  %v3183_v36 = vshll.u32 %v3098_v41, 16  ;;  %v5563_v27 = vrot.slane %v3243_v47, 9  ;;  %v3288_v25 = vrot.slane %v3244_v48, 5  ;;  %v6550_v26 = vld [vmem:[#allocation11 + $0x108] sm:$0xff]   ;;  %v6554_v21 = vld [vmem:[#allocation11 + $0x150] sm:$0xff]   ;;  %v6558_v12 = vld [vmem:[#allocation11 + $0x1a0] sm:$0xff]  }
 0x29a   : > { %4665 = vmatmul.mubr.bf16.vlgmr.msra.gmra.mrb[40].mxu0 %v6543_v60  ;;  %v5556_v58 = vcombine.low %v3144_v11, %v3158_v39  ;;  %4745 = vmatprep.mubr.bf16.mxu1 %v6547_v17  ;;  %v3166_v49 = vor.u32 %v3165_v22, %v3162_v62  ;;  %v3176_v51 = vrot.slane %v3174_v6, 4  ;;  %v3179_v33 = vrot.slane %v3177_v24, 5  ;;  %v6561_v30 = vld [vmem:[#allocation11 + $0x1e8] sm:$0xff]   ;;  %v3099_v32 = vld [vmem:[#allocation4 + $0x30] sm:$0xf]  ;;  %v6555_v40 = vld [vmem:[#allocation11 + $0x110] sm:$0xff]  }
 0x29b   : > { %6053 = vmatpush3.bf16.msra.mxu0 %v6545_v55  ;;  %v3171_v45 = vrot.slane %v3169_v5, 5  ;;  %v3185_v59 = vrot.slane %v3183_v36, 5  ;;  %v5564_v28 = vrot.slane %v3245_v8, 9  ;;  %v3292_v29 = vrot.slane %v3246_v3, 5  ;;  %v3100_v34 = vld [vmem:[#allocation4 + $0x34] sm:$0x1]  ;;  %6100 = vmatprep.subr.bf16.mxu1 %v6556_v53 }
 0x29c   : > { %4672 = vmatprep.mubr.bf16.mxu0 %v5556_v58  ;;  %6054 = vmatprep.subr.bf16.mxu0 %v6549_v23  ;;  %v3167_v31 = vrot.slane %v3166_v49, 4  ;;  %v3180_v16 = vor.u32 %v3179_v33, %v3176_v51  ;;  %v3644_v37 = vshrl.u32 %v7740_v19, 16  ;;  %v3289_v35 = vsel %vm7673_vm0, %v5563_v27, %v3288_v25  ;;  %v3101_v42 = vld [vmem:[#allocation4 + $0x38] sm:$0xf]  ;;  %v3102_v43 = vld [vmem:[#allocation4 + $0x3c] sm:$0x1] }
 0x29d   : > { %v3293_v14 = vsel %vm7673_vm0, %v5564_v28, %v3292_v29  ;;  %v3188_v4 = vshrl.u32 %v3099_v32, 16  ;;  %v3191_v46 = vshll.u32 %v3099_v32, 16  ;;  %v6553_v7 = vld [vmem:[#allocation4 + $0x10] ss:$8 sps:$4 sm:$0xff]   ;;  %v6559_v48 = vld [vmem:[#allocation11 + $0x158] sm:$0xff]   ;;  %v3197_v50 = vshll.u32 %v3100_v34, 16  ;;  %6101 = vmatpush3.bf16.msra.mxu1 %v6558_v12 }
 0x29e   : > { %v3181_v44 = vrot.slane %v3180_v16, 4  ;;  %v5569_v47 = vcombine.low %v3289_v35, %v3293_v14  ;;  %v6562_v0 = vld [vmem:[#allocation11 + $0x1a8] sm:$0xff]   ;;  %v3247_v55 = vld [vmem:[#allocation4 + $0x30] sm:$0xe]  ;;  %v3248_v9 = vld [vmem:[#allocation4 + $0x34] sm:$0x1]  ;;  %v3172_v41 = vsel %vm7293_vm14, %v3167_v31, %v3171_v45  ;;  %6102 = vmatprep.subr.bf16.mxu1 %v6561_v30 }
 0x29f   : > { %6055 = vmatpush3.bf16.msra.mxu0 %v6550_v26  ;;  %v3190_v56 = vrot.slane %v3188_v4, 4  ;;  %v3193_v57 = vrot.slane %v3191_v46, 5  ;;  %v3202_v60 = vshrl.u32 %v3101_v42, 16  ;;  %v3205_v61 = vshll.u32 %v3101_v42, 16  ;;  %v3249_v23 = vld [vmem:[#allocation4 + $0x38] sm:$0xe] }
 0x2a0   : > { %6056 = vmatprep.subr.bf16.mxu0 %v6554_v21  ;;  %v3186_v62 = vsel %vm7293_vm14, %v3181_v44, %v3185_v59  ;;  %v6557_v5 = vld [vmem:[#allocation4 + $0x38] ss:$8 sps:$4 sm:$0xff]   ;;  %v3211_v8 = vshll.u32 %v3102_v43, 16  ;;  %v3250_v52 = vld [vmem:[#allocation4 + $0x3c] sm:$0x1]  ;;  %v5565_v11 = vrot.slane %v3247_v55, 9 }
 0x2a1   : > { %v5557_v15 = vcombine.low %v3172_v41, %v3186_v62  ;;  %4746 = vmatmul.mubr.bf16.gmra.mrb[48].mxu1 %v5569_v47  ;;  %v6560_v10 = vld [vmem:[#allocation11 + $0x118] sm:$0xff]   ;;  %v3194_v17 = vor.u32 %v3193_v57, %v3190_v56  ;;  %v3204_v18 = vrot.slane %v3202_v60, 4  ;;  %v3207_v22 = vrot.slane %v3205_v61, 5  ;;  %v6566_v6 = vld [vmem:[#allocation11 + $0x1f0] sm:$0xff]   ;;  %v3629_v24 = vld [vmem:[#allocation4 + $0x18] sm:$0xf] }
 0x2a2   : > { %4673 = vmatmul.mubr.bf16.gmra.mrb[44].mxu0 %v6553_v7  ;;  %4753 = vmatprep.mubr.bf16.mxu1 %v6557_v5  ;;  %v6564_v3 = vld [vmem:[#allocation11 + $0x160] sm:$0xff]   ;;  %v3199_v39 = vrot.slane %v3197_v50, 5  ;;  %v3296_v36 = vrot.slane %v3248_v9, 5  ;;  %v5566_v27 = vrot.slane %v3249_v23, 9  ;;  %v3300_v25 = vrot.slane %v3250_v52, 5  ;;  %v6567_v53 = vld [vmem:[#allocation11 + $0x1b0] sm:$0xff]  }
 0x2a3   : > { %v3628_v58 = vld [vmem:[#allocation4 + $0x14] sm:$0x1]  ;;  %4680 = vmatprep.mubr.bf16.mxu0 %v5557_v15  ;;  %6057 = vmatpush3.bf16.msra.mxu0 %v6555_v40  ;;  %v3195_v26 = vrot.slane %v3194_v17, 4  ;;  %v3208_v21 = vor.u32 %v3207_v22, %v3204_v18  ;;  %v3646_v49 = vrot.slane %v3644_v37, 4  ;;  %v3647_v51 = vshll.u32 %v7740_v19, 16  ;;  %v6570_v33 = vld [vmem:[#allocation11 + $0x1f8] sm:$0xff]  }
 0x2a4   : > { %6058 = vmatprep.subr.bf16.mxu0 %v6559_v48  ;;  %6103 = vmatpush3.bf16.msra.mxu1 %v6562_v0  ;;  %v3213_v45 = vrot.slane %v3211_v8, 5  ;;  %v3297_v59 = vsel %vm7673_vm0, %v5565_v11, %v3296_v36  ;;  %v3630_v28 = vld [vmem:[#allocation4 + $0x1c] sm:$0x1]  ;;  %v3658_v29 = vshrl.u32 %v3629_v24, 16  ;;  %v7760_v12 = vld [vmem:[#allocation4 + $0x48] sm:$0xe]  ;;  %v3301_v31 = vsel %vm7673_vm0, %v5566_v27, %v3300_v25 }
 0x2a5   : > { %v3209_v30 = vrot.slane %v3208_v21, 4  ;;  %v6565_v16 = vld [vmem:[#allocation11 + $0x120] sm:$0xff]   ;;  %6104 = vmatprep.subr.bf16.mxu1 %v6566_v6  ;;  %v3649_v32 = vrot.slane %v3647_v51, 5  ;;  %v3506_v34 = vld [vmem:[#allocation4 + $0x8] sm:$0xe]  ;;  %v3200_v14 = vsel %vm7293_vm14, %v3195_v26, %v3199_v39  ;;  %v3653_v40 = vshll.u32 %v3628_v58, 16 }
 0x2a6   : > { %v3507_v19 = vld [vmem:[#allocation4 + $0xc] sm:$0x1]  ;;  %v6563_v35 = vld [vmem:[#allocation4 + $0x20] ss:$8 sps:$4 sm:$0xff]   ;;  %v3660_v42 = vrot.slane %v3658_v29, 4  ;;  %v3661_v43 = vshll.u32 %v3629_v24, 16  ;;  %v5570_v44 = vcombine.low %v3297_v59, %v3301_v31  ;;  %v3754_v17 = vsel %vm7293_vm14, %v7698_v13, %v7744_v2 }
 0x2a7   : > { %v7764_v37 = vld [vmem:[#allocation4 + $0x4c] sm:$0x1]  ;;  %v6568_v4 = vld [vmem:[#allocation11 + $0x168] sm:$0xff]   ;;  %v3508_v46 = vld [vmem:[#allocation4 + $0x10] sm:$0xe]  ;;  %6059 = vmatpush3.bf16.msra.mxu0 %v6560_v10  ;;  %v3214_v7 = vsel %vm7293_vm14, %v3209_v30, %v3213_v45  ;;  %v3650_v47 = vor.u32 %v3649_v32, %v3646_v49  ;;  %v3667_v48 = vshll.u32 %v3630_v28, 16 }
 0x2a8   : > { %v6571_v0 = vld [vmem:[#allocation11 + $0x1b8] sm:$0xff]   ;;  %v3509_v50 = vld [vmem:[#allocation4 + $0x14] sm:$0x1]  ;;  %6060 = vmatprep.subr.bf16.mxu0 %v6564_v3  ;;  %6105 = vmatpush3.bf16.msra.mxu1 %v6567_v53  ;;  %v3663_v55 = vrot.slane %v3661_v43, 5  ;;  %v5579_v9 = vrot.slane %v3506_v34, 9  ;;  %v3540_v56 = vrot.slane %v3507_v19, 5  ;;  %v5558_v60 = vcombine.low %v3200_v14, %v3214_v7 }
 0x2a9   : > { %v5580_v57 = vrot.slane %v3508_v46, 9  ;;  %4754 = vmatmul.mubr.bf16.gmra.mrb[52].mxu1 %v5570_v44  ;;  %v3651_v61 = vrot.slane %v3650_v47, 4  ;;  %v6569_v23 = vld [vmem:[#allocation11 + $0x128] sm:$0xff]   ;;  %6106 = vmatprep.subr.bf16.mxu1 %v6570_v33  ;;  %v3544_v41 = vrot.slane %v3509_v50, 5  ;;  %v7770_v62 = vld [vmem:[#allocation11 + $0x200] sm:$0xff]   ;;  %v5606_v8 = vrot.slane %v7760_v12, 9 }
 0x2aa   : > { %v3631_v5 = vld [vmem:[#allocation4 + $0x20] sm:$0xf]  ;;  %4681 = vmatmul.mubr.bf16.gmra.mrb[48].mxu0 %v6563_v35  ;;  %v3655_v52 = vrot.slane %v3653_v40, 5  ;;  %v3664_v11 = vor.u32 %v3663_v55, %v3660_v42  ;;  %v3632_v15 = vld [vmem:[#allocation4 + $0x24] sm:$0x1]  ;;  %v3837_v18 = vrot.slane %v7764_v37, 5  ;;  %v3541_v53 = vsel %vm7673_vm0, %v5579_v9, %v3540_v56 }
 0x2ab   : > { %v3633_v10 = vld [vmem:[#allocation4 + $0x28] sm:$0xf]  ;;  %4688 = vmatprep.mubr.bf16.mxu0 %v5558_v60  ;;  %6061 = vmatpush3.bf16.msra.mxu0 %v6565_v16  ;;  %v3669_v22 = vrot.slane %v3667_v48, 5  ;;  %v6573_v6 = vld [vmem:[#allocation11 + $0x170] sm:$0xff]   ;;  %v3545_v24 = vsel %vm7673_vm0, %v5580_v57, %v3544_v41  ;;  %v3672_v3 = vshrl.u32 %v3631_v5, 16  ;;  %v3675_v39 = vshll.u32 %v3631_v5, 16 }
 0x2ac   : > { %v3358_v36 = vld [vmem:[#allocation4 + $0x8] sm:$0xf]  ;;  %v3656_v27 = vsel %vm7293_vm14, %v3651_v61, %v3655_v52  ;;  %v3665_v25 = vrot.slane %v3664_v11, 4  ;;  %6062 = vmatprep.subr.bf16.mxu0 %v6568_v4  ;;  %6107 = vmatpush3.bf16.msra.mxu1 %v6571_v0  ;;  %v3634_v58 = vld [vmem:[#allocation4 + $0x2c] sm:$0x1]  ;;  %v3686_v26 = vshrl.u32 %v3633_v10, 16  ;;  %v5587_v31 = vcombine.low %v3541_v53, %v3545_v24 }
 0x2ad   : > { %v3359_v21 = vld [vmem:[#allocation4 + $0xc] sm:$0x1]  ;;  %v6574_v49 = vld [vmem:[#allocation11 + $0x130] sm:$0xff]   ;;  %6216 = vmatprep.subr.bf16.mxu1 %v7770_v62  ;;  %v3674_v51 = vrot.slane %v3672_v3, 4  ;;  %v3677_v33 = vrot.slane %v3675_v39, 5  ;;  %v3681_v45 = vshll.u32 %v3632_v15, 16 }
 0x2ae   : > { %v3689_v59 = vshll.u32 %v3633_v10, 16  ;;  %v3360_v28 = vld [vmem:[#allocation4 + $0x10] sm:$0xf]  ;;  %v3670_v29 = vsel %vm7293_vm14, %v3665_v25, %v3669_v22  ;;  %v3688_v32 = vrot.slane %v3686_v26, 4  ;;  %v6577_v34 = vld [vmem:[#allocation11 + $0x178] sm:$0xff]   ;;  %v3375_v35 = vshrl.u32 %v3358_v36, 16 }
 0x2af   : > { %v6572_v30 = vld [vmem:[#allocation4 + $0x30] ss:$8 sps:$4 sm:$0xff]   ;;  %v3361_v19 = vld [vmem:[#allocation4 + $0x14] sm:$0x1]  ;;  %v5595_v40 = vcombine.low %v3656_v27, %v3670_v29  ;;  %6063 = vmatpush3.bf16.msra.mxu0 %v6569_v23  ;;  %v3678_v42 = vor.u32 %v3677_v33, %v3674_v51  ;;  %v3695_v4 = vshll.u32 %v3634_v58, 16  ;;  %v3378_v47 = vshll.u32 %v3358_v36, 16 }
 0x2b0   : > { %v6575_v16 = vld [vmem:[#allocation4 + $0x10] ss:$8 sps:$4 sm:$0xff]   ;;  %v3691_v43 = vrot.slane %v3689_v59, 5  ;;  %v3511_v46 = vld [vmem:[#allocation4 + $0x1c] sm:$0x1]  ;;  %6064 = vmatprep.subr.bf16.mxu0 %v6573_v6  ;;  %v3377_v44 = vrot.slane %v3375_v35, 4 }
 0x2b1   : > { %v3510_v14 = vld [vmem:[#allocation4 + $0x18] sm:$0xe]  ;;  %v3512_v7 = vld [vmem:[#allocation4 + $0x20] sm:$0xe]  ;;  %v3384_v48 = vshll.u32 %v3359_v21, 16  ;;  %v3389_v0 = vshrl.u32 %v3360_v28, 16  ;;  %4859 = vmatprep.mubr.bf16.mxu1 %v5595_v40 }
 0x2b2   : > { %v3513_v50 = vld [vmem:[#allocation4 + $0x24] sm:$0x1]  ;;  %v3679_v55 = vrot.slane %v3678_v42, 4  ;;  %v3692_v9 = vor.u32 %v3691_v43, %v3688_v32  ;;  %v7787_v56 = vld [vmem:[#allocation11 + $0x208] sm:$0xff]   ;;  %v3392_v57 = vshll.u32 %v3360_v28, 16  ;;  %v3398_v60 = vshll.u32 %v3361_v19, 16  ;;  %4689 = vmatmul.mubr.bf16.gmra.mrb[52].mxu0 %v6572_v30  ;;  %4860 = vmatmul.mubr.bf16.vlgmr.msra.gmra.mrb[56].mxu1 %v6575_v16 }
 0x2b3   : > { %v3683_v61 = vrot.slane %v3681_v45, 5  ;;  %v3380_v23 = vrot.slane %v3378_v47, 5  ;;  %v3391_v41 = vrot.slane %v3389_v0, 4  ;;  %v5581_v5 = vrot.slane %v3510_v14, 9  ;;  %6065 = vmatpush3.bf16.msra.mxu0 %v6574_v49  ;;  %4794 = vmatprep.mubr.bf16.mxu0 %v5587_v31  ;;  %v6578_v15 = vld [vmem:[#allocation11 + $0x138] sm:$0xff]   ;;  %v7795_v26 = vld [vmem:[#allocation11 + $0x210] sm:$0xff]  }
 0x2b4   : > { %v3693_v52 = vrot.slane %v3692_v9, 4  ;;  %v3697_v11 = vrot.slane %v3695_v4, 5  ;;  %v3386_v10 = vrot.slane %v3384_v48, 5  ;;  %v3394_v22 = vrot.slane %v3392_v57, 5  ;;  %6224 = vmatpush3.bf16.msra.mxu1 %v7770_v62  ;;  %6066 = vmatprep.subr.bf16.mxu0 %v6577_v34  ;;  %v3635_v36 = vld [vmem:[#allocation4 + $0x30] sm:$0xf] }
 0x2b5   : > { %v3381_v6 = vor.u32 %v3380_v23, %v3377_v44  ;;  %v3548_v24 = vrot.slane %v3511_v46, 5  ;;  %v5582_v3 = vrot.slane %v3512_v7, 9  ;;  %v3552_v39 = vrot.slane %v3513_v50, 5  ;;  %6217 = vmatprep.subr.bf16.mxu1 %v7787_v56  ;;  %v3636_v21 = vld [vmem:[#allocation4 + $0x34] sm:$0x1]  ;;  %v7808_v9 = vld [vmem:[#allocation11 + $0x218] sm:$0xff]  }
 0x2b6   : > { %v3684_v27 = vsel %vm7293_vm14, %v3679_v55, %v3683_v61  ;;  %v3698_v25 = vsel %vm7293_vm14, %v3693_v52, %v3697_v11  ;;  %v3395_v53 = vor.u32 %v3394_v22, %v3391_v41  ;;  %v3400_v58 = vrot.slane %v3398_v60, 5  ;;  %v3637_v49 = vld [vmem:[#allocation4 + $0x38] sm:$0xf]  ;;  %v6580_v28 = vld [vmem:[#allocation4 + $0x20] ss:$8 sps:$4 sm:$0xff]  }
 0x2b7   : > { %v5596_v51 = vcombine.low %v3684_v27, %v3698_v25  ;;  %v3382_v33 = vrot.slane %v3381_v6, 4  ;;  %v3549_v45 = vsel %vm7673_vm0, %v5581_v5, %v3548_v24  ;;  %v3553_v59 = vsel %vm7673_vm0, %v5582_v3, %v3552_v39  ;;  %v3638_v29 = vld [vmem:[#allocation4 + $0x3c] sm:$0x1]  ;;  %v3362_v30 = vld [vmem:[#allocation4 + $0x18] sm:$0xf]  ;;  %6067 = vmatpush3.bf16.msra.mxu0 %v6578_v15  ;;  %v7811_v24 = vld [vmem:[#allocation11 + $0x220] sm:$0xff]  }
 0x2b8   : > { %v3396_v31 = vrot.slane %v3395_v53, 4  ;;  %v5588_v16 = vcombine.low %v3549_v45, %v3553_v59  ;;  %v3700_v32 = vshrl.u32 %v3635_v36, 16  ;;  %v3703_v34 = vshll.u32 %v3635_v36, 16  ;;  %v3363_v19 = vld [vmem:[#allocation4 + $0x1c] sm:$0x1]  ;;  %6225 = vmatpush3.bf16.msra.mxu1 %v7787_v56  ;;  %6192 = vmatprep.subr.bf16.mxu0 %v7770_v62 }
 0x2b9   : > { %4867 = vmatprep.mubr.bf16.mxu1 %v5596_v51  ;;  %v3387_v35 = vsel %vm7293_vm14, %v3382_v33, %v3386_v10  ;;  %v3709_v14 = vshll.u32 %v3636_v21, 16  ;;  %v3714_v40 = vshrl.u32 %v3637_v49, 16  ;;  %v3717_v42 = vshll.u32 %v3637_v49, 16  ;;  %v3364_v43 = vld [vmem:[#allocation4 + $0x20] sm:$0xf]  ;;  %6218 = vmatprep.subr.bf16.mxu1 %v7795_v26 }
 0x2ba   : > { %v3401_v4 = vsel %vm7293_vm14, %v3396_v31, %v3400_v58  ;;  %v3702_v46 = vrot.slane %v3700_v32, 4  ;;  %v3705_v7 = vrot.slane %v3703_v34, 5  ;;  %v3723_v44 = vshll.u32 %v3638_v29, 16  ;;  %v3365_v47 = vld [vmem:[#allocation4 + $0x24] sm:$0x1]  ;;  %4868 = vmatmul.mubr.bf16.gmra.mrb[60].mxu1 %v6580_v28  ;;  %v7821_v32 = vld [vmem:[#allocation11 + $0x228] sm:$0xff]  }
 0x2bb   : > { %v5575_v48 = vcombine.low %v3387_v35, %v3401_v4  ;;  %v3711_v0 = vrot.slane %v3709_v14, 5  ;;  %v3716_v50 = vrot.slane %v3714_v40, 4  ;;  %v3719_v55 = vrot.slane %v3717_v42, 5  ;;  %v3514_v57 = vld [vmem:[#allocation4 + $0x28] sm:$0xe] }
 0x2bc   : > { %v3706_v60 = vor.u32 %v3705_v7, %v3702_v46  ;;  %v3725_v61 = vrot.slane %v3723_v44, 5  ;;  %v3403_v23 = vshrl.u32 %v3362_v30, 16  ;;  %v3406_v41 = vshll.u32 %v3362_v30, 16  ;;  %v3515_v5 = vld [vmem:[#allocation4 + $0x2c] sm:$0x1]  ;;  %6226 = vmatpush3.bf16.msra.mxu1 %v7795_v26 }
 0x2bd   : > { %v3516_v52 = vld [vmem:[#allocation4 + $0x30] sm:$0xe]  ;;  %4795 = vmatmul.mubr.bf16.vlgmr.msra.gmra.mrb[56].mxu0 %v5575_v48  ;;  %v3720_v11 = vor.u32 %v3719_v55, %v3716_v50  ;;  %v3412_v15 = vshll.u32 %v3363_v19, 16  ;;  %v3417_v10 = vshrl.u32 %v3364_v43, 16  ;;  %v3420_v22 = vshll.u32 %v3364_v43, 16  ;;  %6219 = vmatprep.subr.bf16.mxu1 %v7808_v9  ;;  %v7825_v43 = vpop.f32.mrb[32].mxu1 }
 0x2be   : > { %v3517_v6 = vld [vmem:[#allocation4 + $0x34] sm:$0x1]  ;;  %4802 = vmatprep.mubr.bf16.mxu0 %v5588_v16  ;;  %6193 = vmatpush3.bf16.msra.mxu0 %v7770_v62  ;;  %v3707_v3 = vrot.slane %v3706_v60, 4  ;;  %v3405_v39 = vrot.slane %v3403_v23, 4  ;;  %v3408_v36 = vrot.slane %v3406_v41, 5  ;;  %v3426_v27 = vshll.u32 %v3365_v47, 16 }
 0x2bf   : > { %v3721_v25 = vrot.slane %v3720_v11, 4  ;;  %6194 = vmatprep.subr.bf16.mxu0 %v7787_v56  ;;  %v3414_v53 = vrot.slane %v3412_v15, 5  ;;  %v3419_v58 = vrot.slane %v3417_v10, 4  ;;  %v3422_v21 = vrot.slane %v3420_v22, 5  ;;  %v3639_v59 = vld [vmem:[#allocation4 + $0x40] sm:$0xf] }
 0x2c0   : > { %v3712_v49 = vsel %vm7293_vm14, %v3707_v3, %v3711_v0  ;;  %v3409_v51 = vor.u32 %v3408_v36, %v3405_v39  ;;  %v3428_v33 = vrot.slane %v3426_v27, 5  ;;  %v5583_v45 = vrot.slane %v3514_v57, 9  ;;  %6227 = vmatpush3.bf16.msra.mxu1 %v7808_v9  ;;  %v6583_v31 = vld [vmem:[#allocation4 + $0x30] ss:$8 sps:$4 sm:$0xff]   ;;  %v3640_v16 = vld [vmem:[#allocation4 + $0x44] sm:$0x1] }
 0x2c1   : > { %v3726_v62 = vsel %vm7293_vm14, %v3721_v25, %v3725_v61  ;;  %v3423_v28 = vor.u32 %v3422_v21, %v3419_v58  ;;  %v3556_v29 = vrot.slane %v3515_v5, 5  ;;  %v5584_v30 = vrot.slane %v3516_v52, 9  ;;  %v3366_v34 = vld [vmem:[#allocation4 + $0x28] sm:$0xf]  ;;  %6220 = vmatprep.subr.bf16.mxu1 %v7811_v24  ;;  %v3367_v42 = vld [vmem:[#allocation4 + $0x2c] sm:$0x1] }
 0x2c2   : > { %v5597_v19 = vcombine.low %v3712_v49, %v3726_v62  ;;  %6195 = vmatpush3.bf16.msra.mxu0 %v7787_v56  ;;  %v3410_v35 = vrot.slane %v3409_v51, 4  ;;  %v3560_v14 = vrot.slane %v3517_v6, 5  ;;  %v3728_v40 = vshrl.u32 %v3639_v59, 16  ;;  %v3368_v47 = vld [vmem:[#allocation4 + $0x30] sm:$0xf]  ;;  %v7830_v48 = vpop.f32.mrb[33].mxu1 }
 0x2c3   : > { %v3424_v4 = vrot.slane %v3423_v28, 4  ;;  %6196 = vmatprep.subr.bf16.mxu0 %v7795_v26  ;;  %v3557_v46 = vsel %vm7673_vm0, %v5583_v45, %v3556_v29  ;;  %v3731_v7 = vshll.u32 %v3639_v59, 16  ;;  %v3737_v44 = vshll.u32 %v3640_v16, 16  ;;  %v3369_v55 = vld [vmem:[#allocation4 + $0x34] sm:$0x1]  ;;  %v7838_v15 = vld [vmem:[#allocation11 + $0x230] sm:$0xff]  }
 0x2c4   : > { %4875 = vmatprep.mubr.bf16.mxu1 %v5597_v19  ;;  %v3415_v56 = vsel %vm7293_vm14, %v3410_v35, %v3414_v53  ;;  %v3561_v0 = vsel %vm7673_vm0, %v5584_v30, %v3560_v14  ;;  %v3730_v50 = vrot.slane %v3728_v40, 4  ;;  %v3431_v57 = vshrl.u32 %v3366_v34, 16  ;;  %v3518_v60 = vld [vmem:[#allocation4 + $0x38] sm:$0xe]  ;;  %v3519_v52 = vld [vmem:[#allocation4 + $0x3c] sm:$0x1]  ;;  %6228 = vmatpush3.bf16.msra.mxu1 %v7811_v24 }
 0x2c5   : > { %v3429_v61 = vsel %vm7293_vm14, %v3424_v4, %v3428_v33  ;;  %v5589_v23 = vcombine.low %v3557_v46, %v3561_v0  ;;  %4876 = vmatmul.mubr.bf16.gmra.mrb[64].mxu1 %v6583_v31  ;;  %v3733_v41 = vrot.slane %v3731_v7, 5  ;;  %v3739_v5 = vrot.slane %v3737_v44, 5  ;;  %v3520_v11 = vld [vmem:[#allocation4 + $0x40] sm:$0xe]  ;;  %v3521_v39 = vld [vmem:[#allocation4 + $0x44] sm:$0x1]  ;;  %6221 = vmatprep.subr.bf16.mxu1 %v7821_v32 }
 0x2c6   : > { %v5576_v10 = vcombine.low %v3415_v56, %v3429_v61  ;;  %6197 = vmatpush3.bf16.msra.mxu0 %v7795_v26  ;;  %v3433_v22 = vrot.slane %v3431_v57, 4  ;;  %v3434_v6 = vshll.u32 %v3366_v34, 16  ;;  %v3440_v3 = vshll.u32 %v3367_v42, 16  ;;  %v7842_v36 = vpop.f32.mrb[34].mxu1  ;;  %v3783_v29 = vld [vmem:[#allocation4 + $0x30] sm:$0xe] }
 0x2c7   : > { %v3734_v27 = vor.u32 %v3733_v41, %v3730_v50  ;;  %6198 = vmatprep.subr.bf16.mxu0 %v7808_v9  ;;  %v3445_v25 = vshrl.u32 %v3368_v47, 16  ;;  %v3448_v53 = vshll.u32 %v3368_v47, 16  ;;  %v3454_v58 = vshll.u32 %v3369_v55, 16  ;;  %v7846_v21 = vpop.f32.mrb[35].mxu1  ;;  %v3784_v34 = vld [vmem:[#allocation4 + $0x34] sm:$0x1] }
 0x2c8   : > { %4803 = vmatmul.mubr.bf16.gmra.mrb[60].mxu0 %v5576_v10  ;;  %v3436_v26 = vrot.slane %v3434_v6, 5  ;;  %v3442_v49 = vrot.slane %v3440_v3, 5  ;;  %v5585_v51 = vrot.slane %v3518_v60, 9  ;;  %v3564_v33 = vrot.slane %v3519_v52, 5  ;;  %6229 = vmatpush3.bf16.msra.mxu1 %v7821_v32  ;;  %v3785_v19 = vld [vmem:[#allocation4 + $0x38] sm:$0xe] }
 0x2c9   : > { %4810 = vmatprep.mubr.bf16.mxu0 %v5589_v23  ;;  %v3735_v45 = vrot.slane %v3734_v27, 4  ;;  %v3447_v59 = vrot.slane %v3445_v25, 4  ;;  %v3450_v62 = vrot.slane %v3448_v53, 5  ;;  %v3456_v28 = vrot.slane %v3454_v58, 5  ;;  %6222 = vmatprep.subr.bf16.mxu1 %v7838_v15  ;;  %v3786_v40 = vld [vmem:[#allocation4 + $0x3c] sm:$0x1] }
 0x2ca   : > { %6199 = vmatpush3.bf16.msra.mxu0 %v7808_v9  ;;  %v3437_v30 = vor.u32 %v3436_v26, %v3433_v22  ;;  %v5586_v31 = vrot.slane %v3520_v11, 9  ;;  %v3568_v16 = vrot.slane %v3521_v39, 5  ;;  %v5603_v42 = vrot.slane %v3783_v29, 9  ;;  %v3370_v46 = vld [vmem:[#allocation4 + $0x38] sm:$0xf]  ;;  %v7861_v56 = vld [vmem:[#allocation11 + $0x238] sm:$0xff]  }
 0x2cb   : > { %v3740_v35 = vsel %vm7293_vm14, %v3735_v45, %v3739_v5  ;;  %v3451_v14 = vor.u32 %v3450_v62, %v3447_v59  ;;  %6200 = vmatprep.subr.bf16.mxu0 %v7811_v24  ;;  %v3825_v4 = vrot.slane %v3784_v34, 5  ;;  %v5604_v47 = vrot.slane %v3785_v19, 9  ;;  %v3372_v0 = vld [vmem:[#allocation4 + $0x40] sm:$0xf]  ;;  %v3371_v23 = vld [vmem:[#allocation4 + $0x3c] sm:$0x1] }
 0x2cc   : > { %v5598_v9 = vcombine.low %v3740_v35, %v3754_v17  ;;  %v3438_v7 = vrot.slane %v3437_v30, 4  ;;  %v3569_v44 = vsel %vm7673_vm0, %v5586_v31, %v3568_v16  ;;  %v3565_v55 = vsel %vm7673_vm0, %v5585_v51, %v3564_v33  ;;  %v6586_v57 = vld [vmem:[#allocation4 + $0x40] ss:$8 sps:$4 sm:$0xff]   ;;  %v3373_v17 = vld [vmem:[#allocation4 + $0x44] sm:$0x1]  ;;  %6230 = vmatpush3.bf16.msra.mxu1 %v7838_v15 }
 0x2cd   : > { %v3452_v50 = vrot.slane %v3451_v14, 4  ;;  %v3826_v60 = vsel %vm7673_vm0, %v5603_v42, %v3825_v4  ;;  %v3829_v61 = vrot.slane %v3786_v40, 5  ;;  %v5590_v2 = vcombine.low %v3565_v55, %v3569_v44  ;;  %v3775_v52 = vld [vmem:[#allocation4 + $0x10] sm:$0xe]  ;;  %v3776_v3 = vld [vmem:[#allocation4 + $0x14] sm:$0x1]  ;;  %6223 = vmatprep.subr.bf16.mxu1 %v7861_v56 }
 0x2ce   : > { %4883 = vmatprep.mubr.bf16.mxu1 %v5598_v9  ;;  %v3443_v13 = vsel %vm7293_vm14, %v3438_v7, %v3442_v49  ;;  %6201 = vmatpush3.bf16.msra.mxu0 %v7811_v24  ;;  %v3459_v41 = vshrl.u32 %v3370_v46, 16  ;;  %v3462_v5 = vshll.u32 %v3370_v46, 16  ;;  %v3473_v22 = vshrl.u32 %v3372_v0, 16  ;;  %v3777_v39 = vld [vmem:[#allocation4 + $0x18] sm:$0xe] }
 0x2cf   : > { %v3457_v11 = vsel %vm7293_vm14, %v3452_v50, %v3456_v28  ;;  %4884 = vmatmul.mubr.bf16.gmra.mrb[68].mxu1 %v6586_v57  ;;  %v3830_v10 = vsel %vm7673_vm0, %v5604_v47, %v3829_v61  ;;  %6202 = vmatprep.subr.bf16.mxu0 %v7821_v32  ;;  %v3476_v6 = vshll.u32 %v3372_v0, 16  ;;  %v3778_v58 = vld [vmem:[#allocation4 + $0x1c] sm:$0x1]  ;;  %v3787_v26 = vld [vmem:[#allocation4 + $0x40] sm:$0xe]  ;;  %v3468_v49 = vshll.u32 %v3371_v23, 16 }
 0x2d0   : > { %v5577_v27 = vcombine.low %v3443_v13, %v3457_v11  ;;  %v5609_v24 = vcombine.low %v3826_v60, %v3830_v10  ;;  %v3461_v25 = vrot.slane %v3459_v41, 4  ;;  %v3464_v53 = vrot.slane %v3462_v5, 5  ;;  %v3788_v59 = vld [vmem:[#allocation4 + $0x44] sm:$0x1]  ;;  %6231 = vmatpush3.bf16.msra.mxu1 %v7861_v56  ;;  %v3781_v37 = vld [vmem:[#allocation4 + $0x28] sm:$0xe] }
 0x2d1   : > { %v3475_v51 = vrot.slane %v3473_v22, 4  ;;  %v3478_v33 = vrot.slane %v3476_v6, 5  ;;  %v3482_v45 = vshll.u32 %v3373_v17, 16  ;;  %v5599_v28 = vrot.slane %v3775_v52, 9  ;;  %v3782_v46 = vld [vmem:[#allocation4 + $0x2c] sm:$0x1] }
 0x2d2   : > { %4811 = vmatmul.mubr.bf16.gmra.mrb[64].mxu0 %v5577_v27  ;;  %6212 = vmatprep.mubr.bf16.mxu1 %v5609_v24  ;;  %v3465_v62 = vor.u32 %v3464_v53, %v3461_v25  ;;  %v3809_v29 = vrot.slane %v3776_v3, 5  ;;  %v5605_v31 = vrot.slane %v3787_v26, 9  ;;  %v3838_v16 = vsel %vm7673_vm0, %v5606_v8, %v3837_v18  ;;  %v3779_v47 = vld [vmem:[#allocation4 + $0x20] sm:$0xe]  ;;  %v3780_v0 = vld [vmem:[#allocation4 + $0x24] sm:$0x1] }
 0x2d3   : > { %4818 = vmatprep.mubr.bf16.mxu0 %v5590_v2  ;;  %6203 = vmatpush3.bf16.msra.mxu0 %v7821_v32  ;;  %v3479_v30 = vor.u32 %v3478_v33, %v3475_v51  ;;  %v5600_v19 = vrot.slane %v3777_v39, 9  ;;  %v3813_v35 = vrot.slane %v3778_v58, 5  ;;  %v3833_v14 = vrot.slane %v3788_v59, 5  ;;  %v4983_v13 = vld [vmem:[%s7152_s12 + $0x38] sm:$0x1] }
 0x2d4   : > { %v3466_v34 = vrot.slane %v3465_v62, 4  ;;  %6204 = vmatprep.subr.bf16.mxu0 %v7838_v15  ;;  %v3470_v40 = vrot.slane %v3468_v49, 5  ;;  %v3484_v32 = vrot.slane %v3482_v45, 5  ;;  %v3810_v4 = vsel %vm7673_vm0, %v5599_v28, %v3809_v29  ;;  %v5013_v2 = vld [vmem:[%s7152_s12 + $0x3c] sm:$0x1] }
 0x2d5   : > { %v3480_v42 = vrot.slane %v3479_v30, 4  ;;  %v3834_v12 = vsel %vm7673_vm0, %v5605_v31, %v3833_v14  ;;  %v3814_v44 = vsel %vm7673_vm0, %v5600_v19, %v3813_v35  ;;  %v5602_v55 = vrot.slane %v3781_v37, 9  ;;  %v5007_v41 = vld [vmem:[%s7152_s12 + $0x2c] sm:$0x1]  ;;  %v4986_v11 = vld [vmem:[%s7152_s12 + $0x40] sm:$0x1] }
 0x2d6   : > { %v3471_v8 = vsel %vm7293_vm14, %v3466_v34, %v3470_v40  ;;  %v5610_v9 = vcombine.low %v3834_v12, %v3838_v16  ;;  %v5607_v50 = vcombine.low %v3810_v4, %v3814_v44  ;;  %v3821_v63 = vrot.slane %v3782_v46, 5  ;;  %v5016_v10 = vld [vmem:[%s7152_s12 + $0x44] sm:$0x1]  ;;  %v4980_v3 = vld [vmem:[%s7152_s12 + $0x30] sm:$0x1] }
 0x2d7   : > { %v3485_v18 = vsel %vm7293_vm14, %v3480_v42, %v3484_v32  ;;  %6205 = vmatpush3.bf16.msra.mxu0 %v7838_v15  ;;  %v5601_v15 = vrot.slane %v3779_v47, 9  ;;  %v3817_v57 = vrot.slane %v3780_v0, 5  ;;  %v5014_v17 = vsel %vm7215_vm4, 0, %v5013_v2  ;;  %v5010_v39 = vld [vmem:[%s7152_s12 + $0x34] sm:$0x1] }
 0x2d8   : > { %v5578_v7 = vcombine.low %v3471_v8, %v3485_v18  ;;  %6206 = vmatprep.subr.bf16.mxu0 %v7861_v56  ;;  %6213 = vmatmul.mubr.bf16.vlgmr.msra.gmra.mrb[36].mxu1 %v5610_v9  ;;  %v3822_v60 = vsel %vm7673_vm0, %v5602_v55, %v3821_v63  ;;  %5015 = vst [vmem:[%s7152_s12 + $0x3c] sm:$0x1] %v5014_v17  ;;  %v4978_v5 = vsel %vm7159_vm2, 0, %v4977_v38  ;;  %v5008_v52 = vsel %vm7215_vm4, 0, %v5007_v41  ;;  %v4971_v25 = vld [vmem:[%s7152_s12 + $0x18] sm:$0x1] }
 0x2d9   : > { %v3818_v61 = vsel %vm7673_vm0, %v5601_v15, %v3817_v57  ;;  %4979 = vst [vmem:[%s7152_s12 + $0x28] sm:$0x1] %v4978_v5  ;;  %5009 = vst [vmem:[%s7152_s12 + $0x2c] sm:$0x1] %v5008_v52  ;;  %v4987_v22 = vsel %vm7159_vm2, 0, %v4986_v11  ;;  %v5017_v6 = vsel %vm7215_vm4, 0, %v5016_v10 }
 0x2da   : > { %4819 = vmatmul.mubr.bf16.gmra.mrb[68].mxu0 %v5578_v7  ;;  %v5608_v23 = vcombine.low %v3818_v61, %v3822_v60  ;;  %4988 = vst [vmem:[%s7152_s12 + $0x40] sm:$0x1] %v4987_v22  ;;  %5018 = vst [vmem:[%s7152_s12 + $0x44] sm:$0x1] %v5017_v6  ;;  %v4981_v27 = vsel %vm7159_vm2, 0, %v4980_v3  ;;  %v5011_v24 = vsel %vm7215_vm4, 0, %v5010_v39 }
 0x2db   : > { %6208 = vmatprep.mubr.bf16.mxu0 %v5607_v50  ;;  %6207 = vmatpush3.bf16.msra.mxu0 %v7861_v56  ;;  %v4984_v56 = vsel %vm7159_vm2, 0, %v4983_v13  ;;  %v5001_v53 = vld [vmem:[%s7152_s12 + $0x1c] sm:$0x1]  ;;  %4982 = vst [vmem:[%s7152_s12 + $0x30] sm:$0x1] %v4981_v27  ;;  %v4972_v58 = vsel %vm7159_vm2, 0, %v4971_v25 }
 0x2dc   : > { %4985 = vst [vmem:[%s7152_s12 + $0x38] sm:$0x1] %v4984_v56  ;;  %5012 = vst [vmem:[%s7152_s12 + $0x34] sm:$0x1] %v5011_v24  ;;  %v5002_v26 = vsel %vm7215_vm4, 0, %v5001_v53 }
 0x2dd   : > { %v4965_v49 = vld [vmem:[%s7152_s12 + $0x8] sm:$0x1]  ;;  %v4995_v51 = vld [vmem:[%s7152_s12 + $0xc] sm:$0x1]  ;;  %4973 = vst [vmem:[%s7152_s12 + $0x18] sm:$0x1] %v4972_v58 }
 0x2de   : > { %5003 = vst [vmem:[%s7152_s12 + $0x1c] sm:$0x1] %v5002_v26  ;;  %v4966_v33 = vsel %vm7159_vm2, 0, %v4965_v49  ;;  %v4996_v45 = vsel %vm7215_vm4, 0, %v4995_v51  ;;  %v4974_v59 = vld [vmem:[%s7152_s12 + $0x20] sm:$0x1] }
 0x2df   : > { %v5004_v62 = vld [vmem:[%s7152_s12 + $0x24] sm:$0x1]  ;;  %4967 = vst [vmem:[%s7152_s12 + $0x8] sm:$0x1] %v4966_v33  ;;  %4997 = vst [vmem:[%s7152_s12 + $0xc] sm:$0x1] %v4996_v45 }
 0x2e0   : > { %v4975_v28 = vsel %vm7159_vm2, 0, %v4974_v59  ;;  %v5005_v29 = vsel %vm7215_vm4, 0, %v5004_v62  ;;  %v4968_v30 = vld [vmem:[%s7152_s12 + $0x10] sm:$0x1]  ;;  %v4998_v31 = vld [vmem:[%s7152_s12 + $0x14] sm:$0x1] }
 0x2e1   : > { %4976 = vst [vmem:[%s7152_s12 + $0x20] sm:$0x1] %v4975_v28  ;;  %5006 = vst [vmem:[%s7152_s12 + $0x24] sm:$0x1] %v5005_v29  ;;  %v4969_v16 = vsel %vm7159_vm2, 0, %v4968_v30  ;;  %v4999_v34 = vsel %vm7215_vm4, 0, %v4998_v31 }
 0x2e2   : > { %6209 = vmatmul.mubr.bf16.vlgmr.msra.gmra.mrb[72].mxu0 %v5608_v23  ;;  %4970 = vst [vmem:[%s7152_s12 + $0x10] sm:$0x1] %v4969_v16  ;;  %5000 = vst [vmem:[%s7152_s12 + $0x14] sm:$0x1] %v4999_v34 }
 0x35e   : > { %v6028_v19 = vpop.f32.mrb[40].mxu1 }
 0x35f   : > { %v6029_v35 = vpop.f32.mrb[41].mxu1 }
 0x360   : > { %v6030_v14 = vadd.f32 %v6029_v35, %v6028_v19  ;;  %v6031_v40 = vpop.f32.mrb[42].mxu1 }
 0x361   : > { %v6032_v42 = vpop.f32.mrb[43].mxu1 }
 0x362   : > { %v6033_v32 = vadd.f32 %v6032_v42, %v6031_v40 }
 0x36c   : > { %v6034_v4 = vpop.f32.mrb[44].mxu1 }
 0x36d   : > { %v5988_v12 = vpop.f32.mrb[40].mxu0  ;;  %v6035_v37 = vpop.f32.mrb[45].mxu1 }
 0x36e   : > { %v5989_v46 = vpop.f32.mrb[41].mxu0  ;;  %v6036_v8 = vadd.f32 %v6035_v37, %v6034_v4  ;;  %v6037_v18 = vpop.f32.mrb[46].mxu1 }
 0x36f   : > { %v5990_v9 = vadd.f32 %v5989_v46, %v5988_v12  ;;  %v5991_v7 = vpop.f32.mrb[42].mxu0  ;;  %v6038_v44 = vpop.f32.mrb[47].mxu1 }
 0x370   : > { %v5992_v47 = vpop.f32.mrb[43].mxu0  ;;  %v6039_v20 = vadd.f32 %v6038_v44, %v6037_v18 }
 0x371   : > { %v4667_v0 = vadd.f32 %v5990_v9, %v7830_v48  ;;  %v5993_v50 = vadd.f32 %v5992_v47, %v5991_v7 }
 0x373   : > { %v4670_v55 = vadd.f32 %v5993_v50, %v7846_v21  ;;  %v4732_v63 = vadd.f32 %v6030_v14, %v4667_v0 }
 0x374   : > { %v6040_v15 = vpop.f32.mrb[48].mxu1 }
 0x375   : > { %v5994_v57 = vpop.f32.mrb[44].mxu0  ;;  %v6041_v60 = vpop.f32.mrb[49].mxu1  ;;  %v4735_v61 = vadd.f32 %v6033_v32, %v4670_v55 }
 0x376   : > { %v5995_v23 = vpop.f32.mrb[45].mxu0  ;;  %v6042_v13 = vadd.f32 %v6041_v60, %v6040_v15  ;;  %v6043_v2 = vpop.f32.mrb[50].mxu1 }
 0x377   : > { %v5996_v56 = vadd.f32 %v5995_v23, %v5994_v57  ;;  %v5997_v17 = vpop.f32.mrb[46].mxu0  ;;  %v6044_v38 = vpop.f32.mrb[51].mxu1 }
 0x378   : > { %v5998_v41 = vpop.f32.mrb[47].mxu0  ;;  %v6045_v5 = vadd.f32 %v6044_v38, %v6043_v2 }
 0x379   : > { %v4675_v52 = vadd.f32 %v7825_v43, %v5996_v56  ;;  %v5999_v11 = vadd.f32 %v5998_v41, %v5997_v17 }
 0x37b   : > { %v4678_v48 = vadd.f32 %v7842_v36, %v5999_v11  ;;  %v4740_v10 = vadd.f32 %v6036_v8, %v4675_v52 }
 0x37c   : > { %v6046_v21 = vpop.f32.mrb[52].mxu1 }
 0x37d   : > { %v6000_v22 = vpop.f32.mrb[48].mxu0  ;;  %v6047_v6 = vpop.f32.mrb[53].mxu1  ;;  %v4743_v3 = vadd.f32 %v6039_v20, %v4678_v48 }
 0x37e   : > { %v6001_v39 = vpop.f32.mrb[49].mxu0  ;;  %v6048_v27 = vadd.f32 %v6047_v6, %v6046_v21  ;;  %v6049_v24 = vpop.f32.mrb[54].mxu1 }
 0x37f   : > { %v6002_v25 = vadd.f32 %v6001_v39, %v6000_v22  ;;  %v6003_v53 = vpop.f32.mrb[50].mxu0  ;;  %v6050_v58 = vpop.f32.mrb[55].mxu1 }
 0x380   : > { %v6004_v26 = vpop.f32.mrb[51].mxu0  ;;  %v6051_v49 = vadd.f32 %v6050_v58, %v6049_v24 }
 0x381   : > { %v6256_v51 = vadd.f32 %v6042_v13, %v6002_v25  ;;  %v6005_v33 = vadd.f32 %v6004_v26, %v6003_v53 }
 0x383   : > { %v6264_v45 = vadd.f32 %v6045_v5, %v6005_v33 }
 0x385   : > { %v6006_v43 = vpop.f32.mrb[52].mxu0  ;;  %v6108_v59 = vpop.f32.mrb[56].mxu1 }
 0x386   : > { %v6007_v62 = vpop.f32.mrb[53].mxu0  ;;  %v6109_v36 = vpop.f32.mrb[57].mxu1 }
 0x387   : > { %v6008_v28 = vadd.f32 %v6007_v62, %v6006_v43  ;;  %v6009_v29 = vpop.f32.mrb[54].mxu0  ;;  %v6110_v30 = vadd.f32 %v6109_v36, %v6108_v59  ;;  %v6111_v31 = vpop.f32.mrb[58].mxu1 }
 0x388   : > { %v6010_v16 = vpop.f32.mrb[55].mxu0  ;;  %v6112_v34 = vpop.f32.mrb[59].mxu1 }
 0x389   : > { %v7971_v19 = vadd.f32 %v6048_v27, %v6008_v28  ;;  %v6011_v35 = vadd.f32 %v6010_v16, %v6009_v29  ;;  %v6113_v14 = vadd.f32 %v6112_v34, %v6111_v31 }
 0x38b   : > { %v7973_v40 = vadd.f32 %v6051_v49, %v6011_v35 }
 0x38d   : > { %v6114_v42 = vpop.f32.mrb[60].mxu1 }
 0x38e   : > { %v6115_v32 = vpop.f32.mrb[61].mxu1 }
 0x38f   : > { %v6116_v12 = vadd.f32 %v6115_v32, %v6114_v42  ;;  %v6117_v37 = vpop.f32.mrb[62].mxu1 }
 0x390   : > { %v6068_v4 = vpop.f32.mrb[56].mxu0  ;;  %v6118_v8 = vpop.f32.mrb[63].mxu1 }
 0x391   : > { %v6069_v46 = vpop.f32.mrb[57].mxu0  ;;  %v6119_v7 = vadd.f32 %v6118_v8, %v6117_v37 }
 0x392   : > { %v6070_v18 = vadd.f32 %v6069_v46, %v6068_v4  ;;  %v6071_v9 = vpop.f32.mrb[58].mxu0 }
 0x393   : > { %v6072_v44 = vpop.f32.mrb[59].mxu0 }
 0x394   : > { %v4797_v47 = vadd.f32 %v6070_v18, %v4732_v63  ;;  %v6073_v20 = vadd.f32 %v6072_v44, %v6071_v9  ;;  %v5721_v44 = vld [vmem:[%s7152_s12 + $0x28] sm:$0xf] }
 0x396   : > { %v4800_v0 = vadd.f32 %v6073_v20, %v4735_v61  ;;  %v7975_v50 = vadd.f32 %v6110_v30, %v4797_v47  ;;  %v5723_v47 = vld [vmem:[%s7152_s12 + $0x2c] sm:$0x1] }
 0x398   : > { %v6120_v55 = vpop.f32.mrb[64].mxu1  ;;  %v7977_v15 = vadd.f32 %v6113_v14, %v4800_v0 }
 0x399   : > { %v6121_v57 = vpop.f32.mrb[65].mxu1 }
 0x39a   : > { %v6122_v60 = vadd.f32 %v6121_v57, %v6120_v55  ;;  %v6123_v23 = vpop.f32.mrb[66].mxu1 }
 0x39b   : > { %v6074_v13 = vpop.f32.mrb[60].mxu0  ;;  %v6124_v2 = vpop.f32.mrb[67].mxu1 }
 0x39c   : > { %v6075_v56 = vpop.f32.mrb[61].mxu0  ;;  %v6125_v17 = vadd.f32 %v6124_v2, %v6123_v23 }
 0x39d   : > { %v6076_v38 = vadd.f32 %v6075_v56, %v6074_v13  ;;  %v6077_v41 = vpop.f32.mrb[62].mxu0  ;;  %v5725_v56 = vld [vmem:[%s7152_s12 + $0x30] sm:$0xf] }
 0x39e   : > { %v6078_v5 = vpop.f32.mrb[63].mxu0 }
 0x39f   : > { %v4805_v52 = vadd.f32 %v6076_v38, %v4740_v10  ;;  %v6079_v11 = vadd.f32 %v6078_v5, %v6077_v41 }
 0x3a1   : > { %v4808_v63 = vadd.f32 %v6079_v11, %v4743_v3  ;;  %v4870_v48 = vadd.f32 %v6116_v12, %v4805_v52 }
 0x3a2   : > { %v6126_v61 = vpop.f32.mrb[68].mxu1 }
 0x3a3   : > { %v6127_v21 = vpop.f32.mrb[69].mxu1  ;;  %v7979_v22 = vadd.f32 %v6119_v7, %v4808_v63 }
 0x3a4   : > { %v6128_v6 = vadd.f32 %v6127_v21, %v6126_v61  ;;  %v6129_v39 = vpop.f32.mrb[70].mxu1 }
 0x3a5   : > { %v6080_v27 = vpop.f32.mrb[64].mxu0  ;;  %v6130_v24 = vpop.f32.mrb[71].mxu1 }
 0x3a6   : > { %v6081_v25 = vpop.f32.mrb[65].mxu0  ;;  %v6131_v53 = vadd.f32 %v6130_v24, %v6129_v39  ;;  %v5729_v39 = vld [vmem:[%s7152_s12 + $0x38] sm:$0xf] }
 0x3a7   : > { %v6082_v58 = vadd.f32 %v6081_v25, %v6080_v27  ;;  %v6083_v26 = vpop.f32.mrb[66].mxu0 }
 0x3a8   : > { %v6084_v49 = vpop.f32.mrb[67].mxu0 }
 0x3a9   : > { %v6257_v33 = vadd.f32 %v6256_v51, %v6082_v58  ;;  %v6085_v43 = vadd.f32 %v6084_v49, %v6083_v26  ;;  %v5731_v26 = vld [vmem:[%s7152_s12 + $0x3c] sm:$0x1] }
 0x3ab   : > { %v6265_v59 = vadd.f32 %v6264_v45, %v6085_v43  ;;  %v6258_v10 = vadd.f32 %v6257_v33, %v6122_v60  ;;  %v6214_v62 = vpop.f32.mrb[36].mxu1 }
 0x3ac   : > { %v4942_v36 = vpop.f32.mrb[37].mxu1 }
 0x3ad   : > { %v6086_v3 = vpop.f32.mrb[68].mxu0  ;;  %v6266_v28 = vadd.f32 %v6265_v59, %v6125_v17  ;;  %v6259_v30 = vadd.f32 %v6258_v10, %v4942_v36  ;;  %v6215_v31 = vpop.f32.mrb[38].mxu1  ;;  %v5727_v17 = vld [vmem:[%s7152_s12 + $0x34] sm:$0x1]  ;;  %v5733_v59 = vld [vmem:[%s7152_s12 + $0x40] sm:$0xf] }
 0x3ae   : > { %v6087_v29 = vpop.f32.mrb[69].mxu0  ;;  %v4945_v35 = vpop.f32.mrb[39].mxu1  ;;  %v5735_v10 = vld [vmem:[%s7152_s12 + $0x44] sm:$0x1] }
 0x3af   : > { %v6088_v16 = vadd.f32 %v6087_v29, %v6086_v3  ;;  %v6089_v34 = vpop.f32.mrb[70].mxu0  ;;  %v5784_v14 = vpack.c.bf16 %v6259_v30, %v6259_v30  ;;  %v6267_v32 = vadd.f32 %v6266_v28, %v4945_v35 }
 0x3b0   : > { %v6090_v42 = vpop.f32.mrb[71].mxu0 }
 0x3b1   : > { %v6253_v51 = vadd.f32 %v7971_v19, %v6088_v16  ;;  %v6091_v4 = vadd.f32 %v6090_v42, %v6089_v34  ;;  %v5087_v45 = vshrl.u32 %v5784_v14, 16  ;;  %v5785_v12 = vpack.c.bf16 %v6267_v32, %v6267_v32  ;;  %v5713_v16 = vld [vmem:[%s7152_s12 + $0x18] sm:$0xf]  ;;  %v5715_v34 = vld [vmem:[%s7152_s12 + $0x1c] sm:$0x1] }
 0x3b2   : > { %v5090_v18 = vshll.u32 %v5784_v14, 16 }
 0x3b3   : > { %v6254_v37 = vadd.f32 %v6253_v51, %v6128_v6  ;;  %v6261_v46 = vadd.f32 %v7973_v40, %v6091_v4  ;;  %v5089_v8 = vrot.slane %v5087_v45, 7  ;;  %v5095_v9 = vshrl.u32 %v5785_v12, 16 }
 0x3b4   : > { %v5098_v0 = vshll.u32 %v5785_v12, 16 }
 0x3b5   : > { %v6255_v7 = vadd.f32 %v6254_v37, %v6214_v62  ;;  %v6262_v20 = vadd.f32 %v6261_v46, %v6131_v53  ;;  %v6210_v55 = vpop.f32.mrb[72].mxu0  ;;  %v5092_v57 = vor.u32 %v5090_v18, %v5089_v8  ;;  %v5093_v60 = vrot.slane %v5089_v8, 4  ;;  %v5705_v37 = vld [vmem:[%s7152_s12 + $0x8] sm:$0xf]  ;;  %v5707_v46 = vld [vmem:[%s7152_s12 + $0xc] sm:$0x1] }
 0x3b6   : > { %v5097_v19 = vrot.slane %v5095_v9, 7  ;;  %v4935_v23 = vadd.f32 %v6210_v55, %v4870_v48  ;;  %v4926_v13 = vpop.f32.mrb[73].mxu0 }
 0x3b7   : > { %v5786_v2 = vpack.c.bf16 %v6255_v7, %v6255_v7  ;;  %v6263_v40 = vadd.f32 %v6262_v20, %v6215_v31  ;;  %v4927_v38 = vadd.f32 %v4926_v13, %v7975_v50  ;;  %v6211_v41 = vpop.f32.mrb[74].mxu0  ;;  %v5160_v5 = vsel %vm7250_vm8, %v5092_v57, %v5721_v44 }
 0x3b8   : > { %v5163_v52 = vsel %vm7159_vm2, %v5093_v60, %v5723_v47  ;;  %v5100_v11 = vor.u32 %v5098_v0, %v5097_v19  ;;  %v5101_v63 = vrot.slane %v5097_v19, 4  ;;  %v4929_v48 = vpop.f32.mrb[75].mxu0  ;;  %5722 = vst [vmem:[%s7152_s12 + $0x28] sm:$0xf] %v5160_v5  ;;  %v5782_v6 = vpack.c.bf16 %v4935_v23, %v4935_v23  ;;  %v5717_v19 = vld [vmem:[%s7152_s12 + $0x20] sm:$0xf] }
 0x3b9   : > { %v5103_v61 = vshrl.u32 %v5786_v2, 16  ;;  %v5106_v21 = vshll.u32 %v5786_v2, 16  ;;  %5724 = vst [vmem:[%s7152_s12 + $0x2c] sm:$0x1] %v5163_v52  ;;  %v5787_v50 = vpack.c.bf16 %v6263_v40, %v6263_v40  ;;  %v5780_v25 = vpack.c.bf16 %v4927_v38, %v4927_v38  ;;  %v5719_v23 = vld [vmem:[%s7152_s12 + $0x24] sm:$0x1] }
 0x3ba   : > { %v5166_v27 = vsel %vm7250_vm8, %v5100_v11, %v5725_v56  ;;  %v5169_v24 = vsel %vm7159_vm2, %v5101_v63, %v5727_v17  ;;  %v4938_v53 = vadd.f32 %v6211_v41, %v7979_v22  ;;  %v5071_v43 = vshrl.u32 %v5782_v6, 16  ;;  %v5709_v5 = vld [vmem:[%s7152_s12 + $0x10] sm:$0xf]  ;;  %v5711_v52 = vld [vmem:[%s7152_s12 + $0x14] sm:$0x1] }
 0x3bb   : > { %v5105_v58 = vrot.slane %v5103_v61, 7  ;;  %v5111_v49 = vshrl.u32 %v5787_v50, 16  ;;  %v5114_v33 = vshll.u32 %v5787_v50, 16  ;;  %5726 = vst [vmem:[%s7152_s12 + $0x30] sm:$0xf] %v5166_v27  ;;  %v5074_v62 = vshll.u32 %v5782_v6, 16 }
 0x3bc   : > { %5728 = vst [vmem:[%s7152_s12 + $0x34] sm:$0x1] %v5169_v24  ;;  %v5055_v3 = vshrl.u32 %v5780_v25, 16  ;;  %v5058_v36 = vshll.u32 %v5780_v25, 16  ;;  %v5783_v28 = vpack.c.bf16 %v4938_v53, %v4938_v53  ;;  %v5073_v31 = vrot.slane %v5071_v43, 7 }
 0x3bd   : > { %v5108_v29 = vor.u32 %v5106_v21, %v5105_v58  ;;  %v5109_v22 = vrot.slane %v5105_v58, 4  ;;  %v5113_v30 = vrot.slane %v5111_v49, 7  ;;  %v4930_v32 = vadd.f32 %v4929_v48, %v7977_v15 }
 0x3be   : > { %v5057_v35 = vrot.slane %v5055_v3, 7  ;;  %v5079_v14 = vshrl.u32 %v5783_v28, 16  ;;  %v5082_v42 = vshll.u32 %v5783_v28, 16  ;;  %v5076_v8 = vor.u32 %v5074_v62, %v5073_v31 }
 0x3bf   : > { %v5172_v51 = vsel %vm7250_vm8, %v5108_v29, %v5729_v39  ;;  %v5175_v4 = vsel %vm7159_vm2, %v5109_v22, %v5731_v26  ;;  %v5116_v45 = vor.u32 %v5114_v33, %v5113_v30  ;;  %v5117_v12 = vrot.slane %v5113_v30, 4 }
 0x3c0   : > { %5730 = vst [vmem:[%s7152_s12 + $0x38] sm:$0xf] %v5172_v51  ;;  %5732 = vst [vmem:[%s7152_s12 + $0x3c] sm:$0x1] %v5175_v4  ;;  %v5077_v18 = vrot.slane %v5073_v31, 4  ;;  %v5060_v15 = vor.u32 %v5058_v36, %v5057_v35  ;;  %v5061_v9 = vrot.slane %v5057_v35, 4  ;;  %v5781_v20 = vpack.c.bf16 %v4930_v32, %v4930_v32 }
 0x3c1   : > { %v5178_v7 = vsel %vm7250_vm8, %v5116_v45, %v5733_v59  ;;  %v5181_v44 = vsel %vm7159_vm2, %v5117_v12, %v5735_v10  ;;  %v5081_v47 = vrot.slane %v5079_v14, 7  ;;  %v5148_v0 = vsel %vm7250_vm8, %v5076_v8, %v5713_v16 }
 0x3c2   : > { %5734 = vst [vmem:[%s7152_s12 + $0x40] sm:$0xf] %v5178_v7  ;;  %5736 = vst [vmem:[%s7152_s12 + $0x44] sm:$0x1] %v5181_v44  ;;  %v5151_v55 = vsel %vm7159_vm2, %v5077_v18, %v5715_v34  ;;  %v5136_v57 = vsel %vm7250_vm8, %v5060_v15, %v5705_v37  ;;  %v5139_v60 = vsel %vm7159_vm2, %v5061_v9, %v5707_v46  ;;  %v5063_v40 = vshrl.u32 %v5781_v20, 16 }
 0x3c3   : > { %5714 = vst [vmem:[%s7152_s12 + $0x18] sm:$0xf] %v5148_v0  ;;  %5716 = vst [vmem:[%s7152_s12 + $0x1c] sm:$0x1] %v5151_v55  ;;  %v5084_v13 = vor.u32 %v5082_v42, %v5081_v47  ;;  %v5085_v2 = vrot.slane %v5081_v47, 4  ;;  %v5066_v41 = vshll.u32 %v5781_v20, 16 }
 0x3c4   : > { %5706 = vst [vmem:[%s7152_s12 + $0x8] sm:$0xf] %v5136_v57  ;;  %5708 = vst [vmem:[%s7152_s12 + $0xc] sm:$0x1] %v5139_v60  ;;  %v5065_v38 = vrot.slane %v5063_v40, 7 }
 0x3c5   : > { %v5154_v56 = vsel %vm7250_vm8, %v5084_v13, %v5717_v19  ;;  %v5157_v17 = vsel %vm7159_vm2, %v5085_v2, %v5719_v23 }
 0x3c6   : > { %5718 = vst [vmem:[%s7152_s12 + $0x20] sm:$0xf] %v5154_v56  ;;  %5720 = vst [vmem:[%s7152_s12 + $0x24] sm:$0x1] %v5157_v17  ;;  %v5068_v11 = vor.u32 %v5066_v41, %v5065_v38  ;;  %v5069_v63 = vrot.slane %v5065_v38, 4 }
 0x3c8   : > { %v5142_v48 = vsel %vm7250_vm8, %v5068_v11, %v5709_v5  ;;  %v5145_v61 = vsel %vm7159_vm2, %v5069_v63, %v5711_v52 }
 0x3c9   : > { %5710 = vst [vmem:[%s7152_s12 + $0x10] sm:$0xf] %v5142_v48  ;;  %5712 = vst [vmem:[%s7152_s12 + $0x14] sm:$0x1] %v5145_v61 }
 0x3ca   : > { %6774 = shalt.err (!%p6771_p6)
}
 0x3cb   : > { %s6775_s16 = scalar_lea.hbm %s8049_s19, 1280  ;;  %s6779_s9 = scalar_lea.hbm %s8108_s7, 2560 }
 0x3cc   : > { %p6776_p11 = scmp.ne.s32.totalorder %s8049_s19, %s6775_s16  ;;  %p6780_p0 = scmp.lt.u32.totalorder %s8049_s19, %s8108_s7 }
 0x3cd   : > { %p6781_p7 = scmp.lt.u32.totalorder %s6779_s9, %s6775_s16  ;;  %p6783_p10 = scmp.lt.u32.totalorder %s6775_s16, %s8049_s19 }
 0x3ce   : > { %p6777_p12 = pnand %p6776_p11, %p8158_p9 }
 0x3cf   : > { %p6782_p8 = por %p6781_p7, %p6780_p0 }
 0x3d0   : > { %p6778_p13 = pneg %p6777_p12 }
 0x3d1   : > { %p6784_p1 = por %p6783_p10, %p6782_p8 }
 0x3d3   : > { %p6785_p3 = pnand %p6784_p1, %p6778_p13 }
 0x3d5   : > { %6788 = shalt.err (!%p6785_p3)
}
 0x3d6   : > { %s6857_s10 = smov 64   ;;  %s6858_s21 = smov 4  }
 0x3d7   : > { %6310 = dma.vmem_to_hbm [thread:$0]  (%p8158_p9), %s8051_s18, 1280, %s8049_s19, %s5184_s17, %s6857_s10, %s6857_s10, %s6858_s21  }
 0x3d8 PF: > { %s8159_s11 = sld [smem:[#allocation27_spill]]  ;;  %s8160_s12 = sld [smem:[#allocation30_spill]] }
 0x3de   : > { %s5212_s15 = sand.u32 1, %s8159_s11   ;;  %p8161_p2 = scmp.ne.s32.totalorder %s8160_s12, 0 }
 0x3df   : > { %s5213_s28 = scalar_lea.sflag [#allocation8], %s5212_s15 }
 0x3e0   : > { %p6332_p5 = pnand %p5335_p4, %p8161_p2 }
 0x3e2   : > { %6822 = dma.done.wait (!%p6332_p5), %s5213_s28, 1280  }
 0x3e3   : > { %6824 = vsyncadd (!%p6332_p5), %s5213_s28, 4294966016  ;;  %s8162_s27 = sld [smem:[#allocation28_spill]]  ;;  %s8163_s3 = sld [smem:[#allocation29_spill]] }
 0x3e4   : > { %s8164_s24 = smov %s6831_s25  ;;  %s8165_s25 = smov %s6835_s26 }
 0x3e9   : > { %p23_p6 = scmp.ge.s32.totalorder %s8162_s27, 4   ;;  %s8166_s26 = smov %s8163_s3 }
 0x3eb   :  { %25 = sbr.rel (!%p23_p6) target bundleno = 11 (0xb), region = 138 }
 0x3f2   :  { %5218 = vsyncpa [#allocation7], 1 }
 0x3f3   :  { %5220 = vsyncpa [#allocation7 + $0x1], 1 }
 0x3f4   :  { %5221 = vsyncpa [#allocation10], 1 }
 0x3f5   :  { %5222 = vsyncpa [#allocation13], 1 }
 0x3f6   :  { %5223 = vsyncpa [#allocation16], 1 }
 0x3f7   :  { %5224 = vsyncpa [#allocation8], 1 }
 0x3f8   :  { %5226 = vsyncpa [#allocation8 + $0x1], 1 }

</bundles_post_ra>
